<compile_context>
chip_gen: v6e
topology: v6e:2x2x1
jax: 0.10.0
libtpu: 0.0.40
codegen_flags: <defaults>
</compile_context>

<pallas_src>
import functools

import jax
import jax.numpy as jnp
from jax.experimental import pallas as pl
from jax.experimental.pallas import tpu as pltpu

CP = 128    # conv channels padded 96 -> 128 (lane-dense)
POOL = 3    # MaxPool1d kernel/stride


# ---------------------------------------------------------------------------
# Fused kernel: one grid step == one batch sample end-to-end.
# ---------------------------------------------------------------------------
def _siamese_kernel(x_ref, w1_ref, b1_ref, w2_ref, b2_ref,
                    wf1_ref, bf1_ref, wf2_ref, bf2_ref,
                    o_ref, h_s,
                    *, K1, K2, L1, L2, L3, L4):
    # ---- conv1 + bias + ReLU (shift-and-matmul over the K1 taps) ----------
    # TODO(synk): on v5e a Cin*K1=400-wide single contraction would use MXU depth
    # better than K=40 per tap; per-tap kept for simpler, copy-free VMEM access.
    x = x_ref[0]                                              # (L, Cin) bf16
    acc1 = jnp.dot(x[0:L1, :], w1_ref[0], preferred_element_type=jnp.float32)
    for j in range(1, K1):
        acc1 = acc1 + jnp.dot(x[j:j + L1, :], w1_ref[j],
                              preferred_element_type=jnp.float32)
    h_s[...] = jnp.maximum(acc1 + b1_ref[...], 0.0)           # (L1, CP) f32

    # ---- pool1: MaxPool1d(3), floor mode --------------------------------
    p1 = jnp.maximum(jnp.maximum(h_s[pl.ds(0, L2, POOL), :],
                                 h_s[pl.ds(1, L2, POOL), :]),
                     h_s[pl.ds(2, L2, POOL), :])              # (L2, CP) f32
    p1b = p1.astype(jnp.bfloat16)

    # ---- conv2 + bias + ReLU ---------------------------------------------
    acc2 = jnp.dot(p1b[0:L3, :], w2_ref[0], preferred_element_type=jnp.float32)
    for j in range(1, K2):
        acc2 = acc2 + jnp.dot(p1b[j:j + L3, :], w2_ref[j],
                              preferred_element_type=jnp.float32)
    h_s[0:L3, :] = jnp.maximum(acc2 + b2_ref[...], 0.0)       # reuse scratch

    # ---- pool2 -------------------------------------------------------------
    p2 = jnp.maximum(jnp.maximum(h_s[pl.ds(0, L4, POOL), :],
                                 h_s[pl.ds(1, L4, POOL), :]),
                     h_s[pl.ds(2, L4, POOL), :])              # (L4, CP) f32
    p2b = p2.astype(jnp.bfloat16)

    # ---- fc1 + ReLU: contraction decomposed over the L4 positions ----------
    # wf1[l, c, n] == fc1_w[n, c*L4 + l]  (padded channels are zero), so this
    # equals PyTorch's flatten(NCW) @ fc1_w.T with no reshape inside the kernel.
    f1 = jnp.dot(p2b[0:1, :], wf1_ref[0], preferred_element_type=jnp.float32)
    for l in range(1, L4):
        f1 = f1 + jnp.dot(p2b[l:l + 1, :], wf1_ref[l],
                          preferred_element_type=jnp.float32)
    f1b = jnp.maximum(f1 + bf1_ref[...], 0.0).astype(jnp.bfloat16)   # (1, N1)

    # ---- fc2 ----------------------------------------------------------------
    out = jnp.dot(f1b, wf2_ref[...], preferred_element_type=jnp.float32)
    out = out + bf2_ref[...]
    o_ref[0] = out.astype(o_ref.dtype)                        # (1, NO) row


# ---------------------------------------------------------------------------
# One-time weight repack: channels-last, tap-major, channels padded to 128.
# ---------------------------------------------------------------------------
def prepare_params(params, compute_dtype=jnp.bfloat16):
    c1w, c1b = params["conv1_w"], params["conv1_b"]   # (96, 40, 10), (96,)
    c2w, c2b = params["conv2_w"], params["conv2_b"]   # (96, 96, 8),  (96,)
    f1w, f1b = params["fc1_w"], params["fc1_b"]       # (1024, 672),  (1024,)
    f2w, f2b = params["fc2_w"], params["fc2_b"]       # (dim_out, 1024), (dim_out,)

    co, _, _ = c1w.shape
    _, c2i, _ = c2w.shape
    pad_o = CP - co

    w1 = jnp.pad(jnp.transpose(c1w, (2, 1, 0)), ((0, 0), (0, 0), (0, pad_o)))
    b1 = jnp.pad(c1b, (0, pad_o)).reshape(1, CP)
    w2 = jnp.pad(jnp.transpose(c2w, (2, 1, 0)),
                 ((0, 0), (0, CP - c2i), (0, pad_o)))
    b2 = jnp.pad(c2b, (0, pad_o)).reshape(1, CP)

    n1, flat = f1w.shape
    l4 = flat // co                                    # 7
    wf1 = jnp.transpose(f1w.reshape(n1, co, l4), (2, 1, 0))   # (l4, 96, n1)
    wf1 = jnp.pad(wf1, ((0, 0), (0, pad_o), (0, 0)))          # (l4, 128, n1)
    bf1 = f1b.reshape(1, n1)
    wf2 = f2w.T                                        # (n1, dim_out)
    bf2 = f2b.reshape(1, -1)

    return {
        "w1": w1.astype(compute_dtype), "b1": b1.astype(jnp.float32),
        "w2": w2.astype(compute_dtype), "b2": b2.astype(jnp.float32),
        "wf1": wf1.astype(compute_dtype), "bf1": bf1.astype(jnp.float32),
        "wf2": wf2.astype(compute_dtype), "bf2": bf2.astype(jnp.float32),
    }


# ---------------------------------------------------------------------------
# Forward pass (mirrors SiameseNet.forward); single fused pallas_call.
# ---------------------------------------------------------------------------
@jax.jit
def siamese_forward(x, p):
    B, Cin, L = x.shape
    K1 = p["w1"].shape[0]
    K2 = p["w2"].shape[0]
    L1 = L - K1 + 1
    L2 = L1 // POOL
    L3 = L2 - K2 + 1
    L4 = L3 // POOL
    N1 = p["wf1"].shape[2]
    NO = p["wf2"].shape[1]
    assert p["wf1"].shape[0] == L4, (p["wf1"].shape, L4)

    x_t = jnp.transpose(x, (0, 2, 1)).astype(p["w1"].dtype)   # (B, L, Cin), channels-last

    kernel = functools.partial(_siamese_kernel, K1=K1, K2=K2,
                               L1=L1, L2=L2, L3=L3, L4=L4)
    const3 = lambda b: (0, 0, 0)
    const2 = lambda b: (0, 0)

    out3 = pl.pallas_call(
        kernel,
        grid=(B,),
        in_specs=[
            pl.BlockSpec((1, L, Cin), lambda b: (b, 0, 0)),     # x slice per sample
            pl.BlockSpec((K1, Cin, CP), const3),                # conv1 weights (resident)
            pl.BlockSpec((1, CP), const2),
            pl.BlockSpec((K2, CP, CP), const3),                 # conv2 weights
            pl.BlockSpec((1, CP), const2),
            pl.BlockSpec((L4, CP, N1), const3),                 # fc1 weights (repacked)
            pl.BlockSpec((1, N1), const2),
            pl.BlockSpec((N1, NO), const2),                     # fc2 weights
            pl.BlockSpec((1, NO), const2),
        ],
        out_specs=pl.BlockSpec((1, 1, NO), lambda b: (b, 0, 0)),
        out_shape=jax.ShapeDtypeStruct((B, 1, NO), jnp.float32),
        scratch_shapes=[pltpu.VMEM((L1, CP), jnp.float32)],     # conv/pool staging buffer
        compiler_params=pltpu.CompilerParams(
            dimension_semantics=("parallel",)),                 # v7x: 2 TCs share the batch
    )(x_t, p["w1"], p["b1"], p["w2"], p["b2"],
      p["wf1"], p["bf1"], p["wf2"], p["bf2"])
    return jnp.squeeze(out3, axis=1)                            # (B, dim_out)


# ---------------------------------------------------------------------------
if __name__ == "__main__":
    key = jax.random.PRNGKey(0)
    ks = jax.random.split(key, 9)
    dim_out = 1024
    # Deterministic synthetic parameters (PyTorch module shapes).
    params = {
        "conv1_w": jax.random.normal(ks[0], (96, 40, 10), jnp.float32) * 0.05,
        "conv1_b": jax.random.normal(ks[1], (96,), jnp.float32) * 0.05,
        "conv2_w": jax.random.normal(ks[2], (96, 96, 8), jnp.float32) * 0.05,
        "conv2_b": jax.random.normal(ks[3], (96,), jnp.float32) * 0.05,
        "fc1_w":   jax.random.normal(ks[4], (1024, 672), jnp.float32) * 0.02,
        "fc1_b":   jax.random.normal(ks[5], (1024,), jnp.float32) * 0.02,
        "fc2_w":   jax.random.normal(ks[6], (dim_out, 1024), jnp.float32) * 0.02,
        "fc2_b":   jax.random.normal(ks[7], (dim_out,), jnp.float32) * 0.02,
    }
    # L=94 so the pipeline yields the 672 (=96*7) flattened features fc1 expects.
    x = jax.random.normal(ks[8], (2, 40, 94), jnp.float32)

    prep = prepare_params(params)          # one-time repack, outside the forward
    out = siamese_forward(x, prep)
    out = jax.block_until_ready(out)
    assert out.shape == (2, dim_out), out.shape
    assert bool(jnp.all(jnp.isfinite(out)))
    print("KERNEL_OK")
</pallas_src>

<mosaic_0001>
module attributes {stable_mosaic.version = 11 : i64} {
  func.func @_siamese_kernel(%arg0: i32, %arg1: memref<1x94x40xbf16, #tpu.memory_space<vmem>>, %arg2: memref<10x40x128xbf16, #tpu.memory_space<vmem>>, %arg3: memref<1x128xf32, #tpu.memory_space<vmem>>, %arg4: memref<8x128x128xbf16, #tpu.memory_space<vmem>>, %arg5: memref<1x128xf32, #tpu.memory_space<vmem>>, %arg6: memref<7x128x1024xbf16, #tpu.memory_space<vmem>>, %arg7: memref<1x1024xf32, #tpu.memory_space<vmem>>, %arg8: memref<1024x1024xbf16, #tpu.memory_space<vmem>>, %arg9: memref<1x1024xf32, #tpu.memory_space<vmem>>, %arg10: memref<1x1x1024xf32, #tpu.memory_space<vmem>>, %arg11: memref<85x128xf32, #tpu.memory_space<vmem>>) attributes {dimension_semantics = [#tpu.dimension_semantics<parallel>], iteration_bounds = array<i64: 2>, scalar_prefetch = 0 : i64, scratch_operands = 1 : i64, tpu.core_type = #tpu.core_type<tc>, window_params = [{transform_indices = @transform_0, window_bounds = array<i64: 1, 94, 40>}, {pipeline_mode = #tpu.pipeline_mode<synchronous>, transform_indices = @transform_1, window_bounds = array<i64: 10, 40, 128>}, {pipeline_mode = #tpu.pipeline_mode<synchronous>, transform_indices = @transform_2, window_bounds = array<i64: 1, 128>}, {pipeline_mode = #tpu.pipeline_mode<synchronous>, transform_indices = @transform_3, window_bounds = array<i64: 8, 128, 128>}, {pipeline_mode = #tpu.pipeline_mode<synchronous>, transform_indices = @transform_4, window_bounds = array<i64: 1, 128>}, {pipeline_mode = #tpu.pipeline_mode<synchronous>, transform_indices = @transform_5, window_bounds = array<i64: 7, 128, 1024>}, {pipeline_mode = #tpu.pipeline_mode<synchronous>, transform_indices = @transform_6, window_bounds = array<i64: 1, 1024>}, {pipeline_mode = #tpu.pipeline_mode<synchronous>, transform_indices = @transform_7, window_bounds = array<i64: 1024, 1024>}, {pipeline_mode = #tpu.pipeline_mode<synchronous>, transform_indices = @transform_8, window_bounds = array<i64: 1, 1024>}, {transform_indices = @transform_9, window_bounds = array<i64: 1, 1, 1024>}]} {
    %c0 = arith.constant 0 : index
    %c0_0 = arith.constant 0 : index
    %c0_1 = arith.constant 0 : index
    %0 = vector.load %arg1[%c0, %c0_0, %c0_1] : memref<1x94x40xbf16, #tpu.memory_space<vmem>>, vector<1x94x40xbf16>
    %1 = vector.shape_cast %0 : vector<1x94x40xbf16> to vector<94x40xbf16>
    %2 = vector.extract_strided_slice %1 {offsets = [0, 0], sizes = [85, 40], strides = [1, 1]} : vector<94x40xbf16> to vector<85x40xbf16>
    %c0_2 = arith.constant 0 : index
    %c0_3 = arith.constant 0 : index
    %c0_4 = arith.constant 0 : index
    %3 = vector.load %arg2[%c0_2, %c0_3, %c0_4] : memref<10x40x128xbf16, #tpu.memory_space<vmem>>, vector<1x40x128xbf16>
    %4 = vector.shape_cast %3 : vector<1x40x128xbf16> to vector<40x128xbf16>
    %cst = arith.constant dense<0.000000e+00> : vector<85x128xf32>
    %5 = tpu.matmul %2, %4, %cst {dimension_numbers = #tpu.dot_dimension_numbers<[1], [0], [0], [1], [0, 0, 1, 1], [], []>} : vector<85x40xbf16>, vector<40x128xbf16>, vector<85x128xf32> -> vector<85x128xf32>
    %6 = vector.extract_strided_slice %1 {offsets = [1, 0], sizes = [85, 40], strides = [1, 1]} : vector<94x40xbf16> to vector<85x40xbf16>
    %c1 = arith.constant 1 : index
    %c0_5 = arith.constant 0 : index
    %c0_6 = arith.constant 0 : index
    %7 = vector.load %arg2[%c1, %c0_5, %c0_6] : memref<10x40x128xbf16, #tpu.memory_space<vmem>>, vector<1x40x128xbf16>
    %8 = vector.shape_cast %7 : vector<1x40x128xbf16> to vector<40x128xbf16>
    %cst_7 = arith.constant dense<0.000000e+00> : vector<85x128xf32>
    %9 = tpu.matmul %6, %8, %cst_7 {dimension_numbers = #tpu.dot_dimension_numbers<[1], [0], [0], [1], [0, 0, 1, 1], [], []>} : vector<85x40xbf16>, vector<40x128xbf16>, vector<85x128xf32> -> vector<85x128xf32>
    %10 = arith.addf %5, %9 : vector<85x128xf32>
    %11 = vector.extract_strided_slice %1 {offsets = [2, 0], sizes = [85, 40], strides = [1, 1]} : vector<94x40xbf16> to vector<85x40xbf16>
    %c2 = arith.constant 2 : index
    %c0_8 = arith.constant 0 : index
    %c0_9 = arith.constant 0 : index
    %12 = vector.load %arg2[%c2, %c0_8, %c0_9] : memref<10x40x128xbf16, #tpu.memory_space<vmem>>, vector<1x40x128xbf16>
    %13 = vector.shape_cast %12 : vector<1x40x128xbf16> to vector<40x128xbf16>
    %cst_10 = arith.constant dense<0.000000e+00> : vector<85x128xf32>
    %14 = tpu.matmul %11, %13, %cst_10 {dimension_numbers = #tpu.dot_dimension_numbers<[1], [0], [0], [1], [0, 0, 1, 1], [], []>} : vector<85x40xbf16>, vector<40x128xbf16>, vector<85x128xf32> -> vector<85x128xf32>
    %15 = arith.addf %10, %14 : vector<85x128xf32>
    %16 = vector.extract_strided_slice %1 {offsets = [3, 0], sizes = [85, 40], strides = [1, 1]} : vector<94x40xbf16> to vector<85x40xbf16>
    %c3 = arith.constant 3 : index
    %c0_11 = arith.constant 0 : index
    %c0_12 = arith.constant 0 : index
    %17 = vector.load %arg2[%c3, %c0_11, %c0_12] : memref<10x40x128xbf16, #tpu.memory_space<vmem>>, vector<1x40x128xbf16>
    %18 = vector.shape_cast %17 : vector<1x40x128xbf16> to vector<40x128xbf16>
    %cst_13 = arith.constant dense<0.000000e+00> : vector<85x128xf32>
    %19 = tpu.matmul %16, %18, %cst_13 {dimension_numbers = #tpu.dot_dimension_numbers<[1], [0], [0], [1], [0, 0, 1, 1], [], []>} : vector<85x40xbf16>, vector<40x128xbf16>, vector<85x128xf32> -> vector<85x128xf32>
    %20 = arith.addf %15, %19 : vector<85x128xf32>
    %21 = vector.extract_strided_slice %1 {offsets = [4, 0], sizes = [85, 40], strides = [1, 1]} : vector<94x40xbf16> to vector<85x40xbf16>
    %c4 = arith.constant 4 : index
    %c0_14 = arith.constant 0 : index
    %c0_15 = arith.constant 0 : index
    %22 = vector.load %arg2[%c4, %c0_14, %c0_15] : memref<10x40x128xbf16, #tpu.memory_space<vmem>>, vector<1x40x128xbf16>
    %23 = vector.shape_cast %22 : vector<1x40x128xbf16> to vector<40x128xbf16>
    %cst_16 = arith.constant dense<0.000000e+00> : vector<85x128xf32>
    %24 = tpu.matmul %21, %23, %cst_16 {dimension_numbers = #tpu.dot_dimension_numbers<[1], [0], [0], [1], [0, 0, 1, 1], [], []>} : vector<85x40xbf16>, vector<40x128xbf16>, vector<85x128xf32> -> vector<85x128xf32>
    %25 = arith.addf %20, %24 : vector<85x128xf32>
    %26 = vector.extract_strided_slice %1 {offsets = [5, 0], sizes = [85, 40], strides = [1, 1]} : vector<94x40xbf16> to vector<85x40xbf16>
    %c5 = arith.constant 5 : index
    %c0_17 = arith.constant 0 : index
    %c0_18 = arith.constant 0 : index
    %27 = vector.load %arg2[%c5, %c0_17, %c0_18] : memref<10x40x128xbf16, #tpu.memory_space<vmem>>, vector<1x40x128xbf16>
    %28 = vector.shape_cast %27 : vector<1x40x128xbf16> to vector<40x128xbf16>
    %cst_19 = arith.constant dense<0.000000e+00> : vector<85x128xf32>
    %29 = tpu.matmul %26, %28, %cst_19 {dimension_numbers = #tpu.dot_dimension_numbers<[1], [0], [0], [1], [0, 0, 1, 1], [], []>} : vector<85x40xbf16>, vector<40x128xbf16>, vector<85x128xf32> -> vector<85x128xf32>
    %30 = arith.addf %25, %29 : vector<85x128xf32>
    %31 = vector.extract_strided_slice %1 {offsets = [6, 0], sizes = [85, 40], strides = [1, 1]} : vector<94x40xbf16> to vector<85x40xbf16>
    %c6 = arith.constant 6 : index
    %c0_20 = arith.constant 0 : index
    %c0_21 = arith.constant 0 : index
    %32 = vector.load %arg2[%c6, %c0_20, %c0_21] : memref<10x40x128xbf16, #tpu.memory_space<vmem>>, vector<1x40x128xbf16>
    %33 = vector.shape_cast %32 : vector<1x40x128xbf16> to vector<40x128xbf16>
    %cst_22 = arith.constant dense<0.000000e+00> : vector<85x128xf32>
    %34 = tpu.matmul %31, %33, %cst_22 {dimension_numbers = #tpu.dot_dimension_numbers<[1], [0], [0], [1], [0, 0, 1, 1], [], []>} : vector<85x40xbf16>, vector<40x128xbf16>, vector<85x128xf32> -> vector<85x128xf32>
    %35 = arith.addf %30, %34 : vector<85x128xf32>
    %36 = vector.extract_strided_slice %1 {offsets = [7, 0], sizes = [85, 40], strides = [1, 1]} : vector<94x40xbf16> to vector<85x40xbf16>
    %c7 = arith.constant 7 : index
    %c0_23 = arith.constant 0 : index
    %c0_24 = arith.constant 0 : index
    %37 = vector.load %arg2[%c7, %c0_23, %c0_24] : memref<10x40x128xbf16, #tpu.memory_space<vmem>>, vector<1x40x128xbf16>
    %38 = vector.shape_cast %37 : vector<1x40x128xbf16> to vector<40x128xbf16>
    %cst_25 = arith.constant dense<0.000000e+00> : vector<85x128xf32>
    %39 = tpu.matmul %36, %38, %cst_25 {dimension_numbers = #tpu.dot_dimension_numbers<[1], [0], [0], [1], [0, 0, 1, 1], [], []>} : vector<85x40xbf16>, vector<40x128xbf16>, vector<85x128xf32> -> vector<85x128xf32>
    %40 = arith.addf %35, %39 : vector<85x128xf32>
    %41 = vector.extract_strided_slice %1 {offsets = [8, 0], sizes = [85, 40], strides = [1, 1]} : vector<94x40xbf16> to vector<85x40xbf16>
    %c8 = arith.constant 8 : index
    %c0_26 = arith.constant 0 : index
    %c0_27 = arith.constant 0 : index
    %42 = vector.load %arg2[%c8, %c0_26, %c0_27] : memref<10x40x128xbf16, #tpu.memory_space<vmem>>, vector<1x40x128xbf16>
    %43 = vector.shape_cast %42 : vector<1x40x128xbf16> to vector<40x128xbf16>
    %cst_28 = arith.constant dense<0.000000e+00> : vector<85x128xf32>
    %44 = tpu.matmul %41, %43, %cst_28 {dimension_numbers = #tpu.dot_dimension_numbers<[1], [0], [0], [1], [0, 0, 1, 1], [], []>} : vector<85x40xbf16>, vector<40x128xbf16>, vector<85x128xf32> -> vector<85x128xf32>
    %45 = arith.addf %40, %44 : vector<85x128xf32>
    %46 = vector.extract_strided_slice %1 {offsets = [9, 0], sizes = [85, 40], strides = [1, 1]} : vector<94x40xbf16> to vector<85x40xbf16>
    %c9 = arith.constant 9 : index
    %c0_29 = arith.constant 0 : index
    %c0_30 = arith.constant 0 : index
    %47 = vector.load %arg2[%c9, %c0_29, %c0_30] : memref<10x40x128xbf16, #tpu.memory_space<vmem>>, vector<1x40x128xbf16>
    %48 = vector.shape_cast %47 : vector<1x40x128xbf16> to vector<40x128xbf16>
    %cst_31 = arith.constant dense<0.000000e+00> : vector<85x128xf32>
    %49 = tpu.matmul %46, %48, %cst_31 {dimension_numbers = #tpu.dot_dimension_numbers<[1], [0], [0], [1], [0, 0, 1, 1], [], []>} : vector<85x40xbf16>, vector<40x128xbf16>, vector<85x128xf32> -> vector<85x128xf32>
    %50 = arith.addf %45, %49 : vector<85x128xf32>
    %c0_32 = arith.constant 0 : index
    %c0_33 = arith.constant 0 : index
    %51 = vector.load %arg3[%c0_32, %c0_33] : memref<1x128xf32, #tpu.memory_space<vmem>>, vector<1x128xf32>
    %52 = vector.broadcast %51 : vector<1x128xf32> to vector<85x128xf32>
    %53 = arith.addf %50, %52 : vector<85x128xf32>
    %cst_34 = arith.constant 0.000000e+00 : f32
    %54 = vector.broadcast %cst_34 : f32 to vector<85x128xf32>
    %55 = arith.maximumf %53, %54 : vector<85x128xf32>
    %c0_35 = arith.constant 0 : index
    %c0_36 = arith.constant 0 : index
    %56 = vector.load %arg11[%c0_35, %c0_36] : memref<85x128xf32, #tpu.memory_space<vmem>>, vector<85x128xf32>
    tpu.vector_store %arg11[%c0_35, %c0_36], %55 {strides = array<i32>} : memref<85x128xf32, #tpu.memory_space<vmem>>, vector<85x128xf32>,
    %c0_37 = arith.constant 0 : index
    %c0_38 = arith.constant 0 : index
    %57 = tpu.strided_load %arg11[%c0_37, %c0_38] {strides = array<i32: 3, 1>} : memref<85x128xf32, #tpu.memory_space<vmem>>, vector<28x128xf32>
    %c1_39 = arith.constant 1 : index
    %c0_40 = arith.constant 0 : index
    %58 = tpu.strided_load %arg11[%c1_39, %c0_40] {strides = array<i32: 3, 1>} : memref<85x128xf32, #tpu.memory_space<vmem>>, vector<28x128xf32>
    %59 = arith.maximumf %57, %58 : vector<28x128xf32>
    %c2_41 = arith.constant 2 : index
    %c0_42 = arith.constant 0 : index
    %60 = tpu.strided_load %arg11[%c2_41, %c0_42] {strides = array<i32: 3, 1>} : memref<85x128xf32, #tpu.memory_space<vmem>>, vector<28x128xf32>
    %61 = arith.maximumf %59, %60 : vector<28x128xf32>
    %62 = arith.truncf %61 : vector<28x128xf32> to vector<28x128xbf16>
    %63 = vector.extract_strided_slice %62 {offsets = [0, 0], sizes = [21, 128], strides = [1, 1]} : vector<28x128xbf16> to vector<21x128xbf16>
    %c0_43 = arith.constant 0 : index
    %c0_44 = arith.constant 0 : index
    %c0_45 = arith.constant 0 : index
    %64 = vector.load %arg4[%c0_43, %c0_44, %c0_45] : memref<8x128x128xbf16, #tpu.memory_space<vmem>>, vector<1x128x128xbf16>
    %65 = vector.shape_cast %64 : vector<1x128x128xbf16> to vector<128x128xbf16>
    %cst_46 = arith.constant dense<0.000000e+00> : vector<21x128xf32>
    %66 = tpu.matmul %63, %65, %cst_46 {dimension_numbers = #tpu.dot_dimension_numbers<[1], [0], [0], [1], [0, 0, 1, 1], [], []>} : vector<21x128xbf16>, vector<128x128xbf16>, vector<21x128xf32> -> vector<21x128xf32>
    %67 = vector.extract_strided_slice %62 {offsets = [1, 0], sizes = [21, 128], strides = [1, 1]} : vector<28x128xbf16> to vector<21x128xbf16>
    %c1_47 = arith.constant 1 : index
    %c0_48 = arith.constant 0 : index
    %c0_49 = arith.constant 0 : index
    %68 = vector.load %arg4[%c1_47, %c0_48, %c0_49] : memref<8x128x128xbf16, #tpu.memory_space<vmem>>, vector<1x128x128xbf16>
    %69 = vector.shape_cast %68 : vector<1x128x128xbf16> to vector<128x128xbf16>
    %cst_50 = arith.constant dense<0.000000e+00> : vector<21x128xf32>
    %70 = tpu.matmul %67, %69, %cst_50 {dimension_numbers = #tpu.dot_dimension_numbers<[1], [0], [0], [1], [0, 0, 1, 1], [], []>} : vector<21x128xbf16>, vector<128x128xbf16>, vector<21x128xf32> -> vector<21x128xf32>
    %71 = arith.addf %66, %70 : vector<21x128xf32>
    %72 = vector.extract_strided_slice %62 {offsets = [2, 0], sizes = [21, 128], strides = [1, 1]} : vector<28x128xbf16> to vector<21x128xbf16>
    %c2_51 = arith.constant 2 : index
    %c0_52 = arith.constant 0 : index
    %c0_53 = arith.constant 0 : index
    %73 = vector.load %arg4[%c2_51, %c0_52, %c0_53] : memref<8x128x128xbf16, #tpu.memory_space<vmem>>, vector<1x128x128xbf16>
    %74 = vector.shape_cast %73 : vector<1x128x128xbf16> to vector<128x128xbf16>
    %cst_54 = arith.constant dense<0.000000e+00> : vector<21x128xf32>
    %75 = tpu.matmul %72, %74, %cst_54 {dimension_numbers = #tpu.dot_dimension_numbers<[1], [0], [0], [1], [0, 0, 1, 1], [], []>} : vector<21x128xbf16>, vector<128x128xbf16>, vector<21x128xf32> -> vector<21x128xf32>
    %76 = arith.addf %71, %75 : vector<21x128xf32>
    %77 = vector.extract_strided_slice %62 {offsets = [3, 0], sizes = [21, 128], strides = [1, 1]} : vector<28x128xbf16> to vector<21x128xbf16>
    %c3_55 = arith.constant 3 : index
    %c0_56 = arith.constant 0 : index
    %c0_57 = arith.constant 0 : index
    %78 = vector.load %arg4[%c3_55, %c0_56, %c0_57] : memref<8x128x128xbf16, #tpu.memory_space<vmem>>, vector<1x128x128xbf16>
    %79 = vector.shape_cast %78 : vector<1x128x128xbf16> to vector<128x128xbf16>
    %cst_58 = arith.constant dense<0.000000e+00> : vector<21x128xf32>
    %80 = tpu.matmul %77, %79, %cst_58 {dimension_numbers = #tpu.dot_dimension_numbers<[1], [0], [0], [1], [0, 0, 1, 1], [], []>} : vector<21x128xbf16>, vector<128x128xbf16>, vector<21x128xf32> -> vector<21x128xf32>
    %81 = arith.addf %76, %80 : vector<21x128xf32>
    %82 = vector.extract_strided_slice %62 {offsets = [4, 0], sizes = [21, 128], strides = [1, 1]} : vector<28x128xbf16> to vector<21x128xbf16>
    %c4_59 = arith.constant 4 : index
    %c0_60 = arith.constant 0 : index
    %c0_61 = arith.constant 0 : index
    %83 = vector.load %arg4[%c4_59, %c0_60, %c0_61] : memref<8x128x128xbf16, #tpu.memory_space<vmem>>, vector<1x128x128xbf16>
    %84 = vector.shape_cast %83 : vector<1x128x128xbf16> to vector<128x128xbf16>
    %cst_62 = arith.constant dense<0.000000e+00> : vector<21x128xf32>
    %85 = tpu.matmul %82, %84, %cst_62 {dimension_numbers = #tpu.dot_dimension_numbers<[1], [0], [0], [1], [0, 0, 1, 1], [], []>} : vector<21x128xbf16>, vector<128x128xbf16>, vector<21x128xf32> -> vector<21x128xf32>
    %86 = arith.addf %81, %85 : vector<21x128xf32>
    %87 = vector.extract_strided_slice %62 {offsets = [5, 0], sizes = [21, 128], strides = [1, 1]} : vector<28x128xbf16> to vector<21x128xbf16>
    %c5_63 = arith.constant 5 : index
    %c0_64 = arith.constant 0 : index
    %c0_65 = arith.constant 0 : index
    %88 = vector.load %arg4[%c5_63, %c0_64, %c0_65] : memref<8x128x128xbf16, #tpu.memory_space<vmem>>, vector<1x128x128xbf16>
    %89 = vector.shape_cast %88 : vector<1x128x128xbf16> to vector<128x128xbf16>
    %cst_66 = arith.constant dense<0.000000e+00> : vector<21x128xf32>
    %90 = tpu.matmul %87, %89, %cst_66 {dimension_numbers = #tpu.dot_dimension_numbers<[1], [0], [0], [1], [0, 0, 1, 1], [], []>} : vector<21x128xbf16>, vector<128x128xbf16>, vector<21x128xf32> -> vector<21x128xf32>
    %91 = arith.addf %86, %90 : vector<21x128xf32>
    %92 = vector.extract_strided_slice %62 {offsets = [6, 0], sizes = [21, 128], strides = [1, 1]} : vector<28x128xbf16> to vector<21x128xbf16>
    %c6_67 = arith.constant 6 : index
    %c0_68 = arith.constant 0 : index
    %c0_69 = arith.constant 0 : index
    %93 = vector.load %arg4[%c6_67, %c0_68, %c0_69] : memref<8x128x128xbf16, #tpu.memory_space<vmem>>, vector<1x128x128xbf16>
    %94 = vector.shape_cast %93 : vector<1x128x128xbf16> to vector<128x128xbf16>
    %cst_70 = arith.constant dense<0.000000e+00> : vector<21x128xf32>
    %95 = tpu.matmul %92, %94, %cst_70 {dimension_numbers = #tpu.dot_dimension_numbers<[1], [0], [0], [1], [0, 0, 1, 1], [], []>} : vector<21x128xbf16>, vector<128x128xbf16>, vector<21x128xf32> -> vector<21x128xf32>
    %96 = arith.addf %91, %95 : vector<21x128xf32>
    %97 = vector.extract_strided_slice %62 {offsets = [7, 0], sizes = [21, 128], strides = [1, 1]} : vector<28x128xbf16> to vector<21x128xbf16>
    %c7_71 = arith.constant 7 : index
    %c0_72 = arith.constant 0 : index
    %c0_73 = arith.constant 0 : index
    %98 = vector.load %arg4[%c7_71, %c0_72, %c0_73] : memref<8x128x128xbf16, #tpu.memory_space<vmem>>, vector<1x128x128xbf16>
    %99 = vector.shape_cast %98 : vector<1x128x128xbf16> to vector<128x128xbf16>
    %cst_74 = arith.constant dense<0.000000e+00> : vector<21x128xf32>
    %100 = tpu.matmul %97, %99, %cst_74 {dimension_numbers = #tpu.dot_dimension_numbers<[1], [0], [0], [1], [0, 0, 1, 1], [], []>} : vector<21x128xbf16>, vector<128x128xbf16>, vector<21x128xf32> -> vector<21x128xf32>
    %101 = arith.addf %96, %100 : vector<21x128xf32>
    %c0_75 = arith.constant 0 : index
    %c0_76 = arith.constant 0 : index
    %102 = vector.load %arg5[%c0_75, %c0_76] : memref<1x128xf32, #tpu.memory_space<vmem>>, vector<1x128xf32>
    %103 = vector.broadcast %102 : vector<1x128xf32> to vector<21x128xf32>
    %104 = arith.addf %101, %103 : vector<21x128xf32>
    %cst_77 = arith.constant 0.000000e+00 : f32
    %105 = vector.broadcast %cst_77 : f32 to vector<21x128xf32>
    %106 = arith.maximumf %104, %105 : vector<21x128xf32>
    %c0_78 = arith.constant 0 : index
    %c0_79 = arith.constant 0 : index
    %107 = vector.load %arg11[%c0_78, %c0_79] : memref<85x128xf32, #tpu.memory_space<vmem>>, vector<21x128xf32>
    tpu.vector_store %arg11[%c0_78, %c0_79], %106 {strides = array<i32>} : memref<85x128xf32, #tpu.memory_space<vmem>>, vector<21x128xf32>,
    %c0_80 = arith.constant 0 : index
    %c0_81 = arith.constant 0 : index
    %108 = tpu.strided_load %arg11[%c0_80, %c0_81] {strides = array<i32: 3, 1>} : memref<85x128xf32, #tpu.memory_space<vmem>>, vector<7x128xf32>
    %c1_82 = arith.constant 1 : index
    %c0_83 = arith.constant 0 : index
    %109 = tpu.strided_load %arg11[%c1_82, %c0_83] {strides = array<i32: 3, 1>} : memref<85x128xf32, #tpu.memory_space<vmem>>, vector<7x128xf32>
    %110 = arith.maximumf %108, %109 : vector<7x128xf32>
    %c2_84 = arith.constant 2 : index
    %c0_85 = arith.constant 0 : index
    %111 = tpu.strided_load %arg11[%c2_84, %c0_85] {strides = array<i32: 3, 1>} : memref<85x128xf32, #tpu.memory_space<vmem>>, vector<7x128xf32>
    %112 = arith.maximumf %110, %111 : vector<7x128xf32>
    %113 = arith.truncf %112 : vector<7x128xf32> to vector<7x128xbf16>
    %114 = vector.extract_strided_slice %113 {offsets = [0, 0], sizes = [1, 128], strides = [1, 1]} : vector<7x128xbf16> to vector<1x128xbf16>
    %c0_86 = arith.constant 0 : index
    %c0_87 = arith.constant 0 : index
    %c0_88 = arith.constant 0 : index
    %115 = vector.load %arg6[%c0_86, %c0_87, %c0_88] : memref<7x128x1024xbf16, #tpu.memory_space<vmem>>, vector<1x128x1024xbf16>
    %116 = vector.shape_cast %115 : vector<1x128x1024xbf16> to vector<128x1024xbf16>
    %cst_89 = arith.constant dense<0.000000e+00> : vector<1x1024xf32>
    %117 = tpu.matmul %114, %116, %cst_89 {dimension_numbers = #tpu.dot_dimension_numbers<[1], [0], [0], [1], [0, 0, 1, 1], [], []>} : vector<1x128xbf16>, vector<128x1024xbf16>, vector<1x1024xf32> -> vector<1x1024xf32>
    %118 = vector.extract_strided_slice %113 {offsets = [1, 0], sizes = [1, 128], strides = [1, 1]} : vector<7x128xbf16> to vector<1x128xbf16>
    %c1_90 = arith.constant 1 : index
    %c0_91 = arith.constant 0 : index
    %c0_92 = arith.constant 0 : index
    %119 = vector.load %arg6[%c1_90, %c0_91, %c0_92] : memref<7x128x1024xbf16, #tpu.memory_space<vmem>>, vector<1x128x1024xbf16>
    %120 = vector.shape_cast %119 : vector<1x128x1024xbf16> to vector<128x1024xbf16>
    %cst_93 = arith.constant dense<0.000000e+00> : vector<1x1024xf32>
    %121 = tpu.matmul %118, %120, %cst_93 {dimension_numbers = #tpu.dot_dimension_numbers<[1], [0], [0], [1], [0, 0, 1, 1], [], []>} : vector<1x128xbf16>, vector<128x1024xbf16>, vector<1x1024xf32> -> vector<1x1024xf32>
    %122 = arith.addf %117, %121 : vector<1x1024xf32>
    %123 = vector.extract_strided_slice %113 {offsets = [2, 0], sizes = [1, 128], strides = [1, 1]} : vector<7x128xbf16> to vector<1x128xbf16>
    %c2_94 = arith.constant 2 : index
    %c0_95 = arith.constant 0 : index
    %c0_96 = arith.constant 0 : index
    %124 = vector.load %arg6[%c2_94, %c0_95, %c0_96] : memref<7x128x1024xbf16, #tpu.memory_space<vmem>>, vector<1x128x1024xbf16>
    %125 = vector.shape_cast %124 : vector<1x128x1024xbf16> to vector<128x1024xbf16>
    %cst_97 = arith.constant dense<0.000000e+00> : vector<1x1024xf32>
    %126 = tpu.matmul %123, %125, %cst_97 {dimension_numbers = #tpu.dot_dimension_numbers<[1], [0], [0], [1], [0, 0, 1, 1], [], []>} : vector<1x128xbf16>, vector<128x1024xbf16>, vector<1x1024xf32> -> vector<1x1024xf32>
    %127 = arith.addf %122, %126 : vector<1x1024xf32>
    %128 = vector.extract_strided_slice %113 {offsets = [3, 0], sizes = [1, 128], strides = [1, 1]} : vector<7x128xbf16> to vector<1x128xbf16>
    %c3_98 = arith.constant 3 : index
    %c0_99 = arith.constant 0 : index
    %c0_100 = arith.constant 0 : index
    %129 = vector.load %arg6[%c3_98, %c0_99, %c0_100] : memref<7x128x1024xbf16, #tpu.memory_space<vmem>>, vector<1x128x1024xbf16>
    %130 = vector.shape_cast %129 : vector<1x128x1024xbf16> to vector<128x1024xbf16>
    %cst_101 = arith.constant dense<0.000000e+00> : vector<1x1024xf32>
    %131 = tpu.matmul %128, %130, %cst_101 {dimension_numbers = #tpu.dot_dimension_numbers<[1], [0], [0], [1], [0, 0, 1, 1], [], []>} : vector<1x128xbf16>, vector<128x1024xbf16>, vector<1x1024xf32> -> vector<1x1024xf32>
    %132 = arith.addf %127, %131 : vector<1x1024xf32>
    %133 = vector.extract_strided_slice %113 {offsets = [4, 0], sizes = [1, 128], strides = [1, 1]} : vector<7x128xbf16> to vector<1x128xbf16>
    %c4_102 = arith.constant 4 : index
    %c0_103 = arith.constant 0 : index
    %c0_104 = arith.constant 0 : index
    %134 = vector.load %arg6[%c4_102, %c0_103, %c0_104] : memref<7x128x1024xbf16, #tpu.memory_space<vmem>>, vector<1x128x1024xbf16>
    %135 = vector.shape_cast %134 : vector<1x128x1024xbf16> to vector<128x1024xbf16>
    %cst_105 = arith.constant dense<0.000000e+00> : vector<1x1024xf32>
    %136 = tpu.matmul %133, %135, %cst_105 {dimension_numbers = #tpu.dot_dimension_numbers<[1], [0], [0], [1], [0, 0, 1, 1], [], []>} : vector<1x128xbf16>, vector<128x1024xbf16>, vector<1x1024xf32> -> vector<1x1024xf32>
    %137 = arith.addf %132, %136 : vector<1x1024xf32>
    %138 = vector.extract_strided_slice %113 {offsets = [5, 0], sizes = [1, 128], strides = [1, 1]} : vector<7x128xbf16> to vector<1x128xbf16>
    %c5_106 = arith.constant 5 : index
    %c0_107 = arith.constant 0 : index
    %c0_108 = arith.constant 0 : index
    %139 = vector.load %arg6[%c5_106, %c0_107, %c0_108] : memref<7x128x1024xbf16, #tpu.memory_space<vmem>>, vector<1x128x1024xbf16>
    %140 = vector.shape_cast %139 : vector<1x128x1024xbf16> to vector<128x1024xbf16>
    %cst_109 = arith.constant dense<0.000000e+00> : vector<1x1024xf32>
    %141 = tpu.matmul %138, %140, %cst_109 {dimension_numbers = #tpu.dot_dimension_numbers<[1], [0], [0], [1], [0, 0, 1, 1], [], []>} : vector<1x128xbf16>, vector<128x1024xbf16>, vector<1x1024xf32> -> vector<1x1024xf32>
    %142 = arith.addf %137, %141 : vector<1x1024xf32>
    %143 = vector.extract_strided_slice %113 {offsets = [6, 0], sizes = [1, 128], strides = [1, 1]} : vector<7x128xbf16> to vector<1x128xbf16>
    %c6_110 = arith.constant 6 : index
    %c0_111 = arith.constant 0 : index
    %c0_112 = arith.constant 0 : index
    %144 = vector.load %arg6[%c6_110, %c0_111, %c0_112] : memref<7x128x1024xbf16, #tpu.memory_space<vmem>>, vector<1x128x1024xbf16>
    %145 = vector.shape_cast %144 : vector<1x128x1024xbf16> to vector<128x1024xbf16>
    %cst_113 = arith.constant dense<0.000000e+00> : vector<1x1024xf32>
    %146 = tpu.matmul %143, %145, %cst_113 {dimension_numbers = #tpu.dot_dimension_numbers<[1], [0], [0], [1], [0, 0, 1, 1], [], []>} : vector<1x128xbf16>, vector<128x1024xbf16>, vector<1x1024xf32> -> vector<1x1024xf32>
    %147 = arith.addf %142, %146 : vector<1x1024xf32>
    %c0_114 = arith.constant 0 : index
    %c0_115 = arith.constant 0 : index
    %148 = vector.load %arg7[%c0_114, %c0_115] : memref<1x1024xf32, #tpu.memory_space<vmem>>, vector<1x1024xf32>
    %149 = arith.addf %147, %148 : vector<1x1024xf32>
    %cst_116 = arith.constant 0.000000e+00 : f32
    %150 = vector.broadcast %cst_116 : f32 to vector<1x1024xf32>
    %151 = arith.maximumf %149, %150 : vector<1x1024xf32>
    %152 = arith.truncf %151 : vector<1x1024xf32> to vector<1x1024xbf16>
    %c0_117 = arith.constant 0 : index
    %c0_118 = arith.constant 0 : index
    %153 = vector.load %arg8[%c0_117, %c0_118] : memref<1024x1024xbf16, #tpu.memory_space<vmem>>, vector<1024x1024xbf16>
    %cst_119 = arith.constant dense<0.000000e+00> : vector<1x1024xf32>
    %154 = tpu.matmul %152, %153, %cst_119 {dimension_numbers = #tpu.dot_dimension_numbers<[1], [0], [0], [1], [0, 0, 1, 1], [], []>} : vector<1x1024xbf16>, vector<1024x1024xbf16>, vector<1x1024xf32> -> vector<1x1024xf32>
    %c0_120 = arith.constant 0 : index
    %c0_121 = arith.constant 0 : index
    %155 = vector.load %arg9[%c0_120, %c0_121] : memref<1x1024xf32, #tpu.memory_space<vmem>>, vector<1x1024xf32>
    %156 = arith.addf %154, %155 : vector<1x1024xf32>
    %c0_122 = arith.constant 0 : index
    %c0_123 = arith.constant 0 : index
    %c0_124 = arith.constant 0 : index
    %157 = vector.load %arg10[%c0_122, %c0_123, %c0_124] : memref<1x1x1024xf32, #tpu.memory_space<vmem>>, vector<1x1x1024xf32>
    %158 = vector.shape_cast %157 : vector<1x1x1024xf32> to vector<1x1024xf32>
    %159 = vector.shape_cast %156 : vector<1x1024xf32> to vector<1x1x1024xf32>
    tpu.vector_store %arg10[%c0_122, %c0_123, %c0_124], %159 {strides = array<i32>} : memref<1x1x1024xf32, #tpu.memory_space<vmem>>, vector<1x1x1024xf32>,
    return
  }
  func.func @transform_0(%arg0: i32) -> (i32, i32, i32) {
    %c0_i32 = arith.constant 0 : i32
    %c0_i32_0 = arith.constant 0 : i32
    %c0_i32_1 = arith.constant 0 : i32
    return %arg0, %c0_i32, %c0_i32_0 : i32, i32, i32
  }
  func.func @transform_1(%arg0: i32) -> (i32, i32, i32) {
    %c0_i32 = arith.constant 0 : i32
    %c0_i32_0 = arith.constant 0 : i32
    %c0_i32_1 = arith.constant 0 : i32
    %c0_i32_2 = arith.constant 0 : i32
    return %c0_i32, %c0_i32_0, %c0_i32_1 : i32, i32, i32
  }
  func.func @transform_2(%arg0: i32) -> (i32, i32) {
    %c0_i32 = arith.constant 0 : i32
    %c0_i32_0 = arith.constant 0 : i32
    %c0_i32_1 = arith.constant 0 : i32
    return %c0_i32, %c0_i32_0 : i32, i32
  }
  func.func @transform_3(%arg0: i32) -> (i32, i32, i32) {
    %c0_i32 = arith.constant 0 : i32
    %c0_i32_0 = arith.constant 0 : i32
    %c0_i32_1 = arith.constant 0 : i32
    %c0_i32_2 = arith.constant 0 : i32
    return %c0_i32, %c0_i32_0, %c0_i32_1 : i32, i32, i32
  }
  func.func @transform_4(%arg0: i32) -> (i32, i32) {
    %c0_i32 = arith.constant 0 : i32
    %c0_i32_0 = arith.constant 0 : i32
    %c0_i32_1 = arith.constant 0 : i32
    return %c0_i32, %c0_i32_0 : i32, i32
  }
  func.func @transform_5(%arg0: i32) -> (i32, i32, i32) {
    %c0_i32 = arith.constant 0 : i32
    %c0_i32_0 = arith.constant 0 : i32
    %c0_i32_1 = arith.constant 0 : i32
    %c0_i32_2 = arith.constant 0 : i32
    return %c0_i32, %c0_i32_0, %c0_i32_1 : i32, i32, i32
  }
  func.func @transform_6(%arg0: i32) -> (i32, i32) {
    %c0_i32 = arith.constant 0 : i32
    %c0_i32_0 = arith.constant 0 : i32
    %c0_i32_1 = arith.constant 0 : i32
    return %c0_i32, %c0_i32_0 : i32, i32
  }
  func.func @transform_7(%arg0: i32) -> (i32, i32) {
    %c0_i32 = arith.constant 0 : i32
    %c0_i32_0 = arith.constant 0 : i32
    %c0_i32_1 = arith.constant 0 : i32
    return %c0_i32, %c0_i32_0 : i32, i32
  }
  func.func @transform_8(%arg0: i32) -> (i32, i32) {
    %c0_i32 = arith.constant 0 : i32
    %c0_i32_0 = arith.constant 0 : i32
    %c0_i32_1 = arith.constant 0 : i32
    return %c0_i32, %c0_i32_0 : i32, i32
  }
  func.func @transform_9(%arg0: i32) -> (i32, i32, i32) {
    %c0_i32 = arith.constant 0 : i32
    %c0_i32_0 = arith.constant 0 : i32
    %c0_i32_1 = arith.constant 0 : i32
    return %arg0, %c0_i32, %c0_i32_0 : i32, i32, i32
  }
}

</mosaic_0001>

<bundles_post_ra>
// kernel: siamese_forward.1
= control target key start
LH: loop header
LB: loop body
LE: loop exit
PB: predicated region body
PF: predicated region fallthrough
CT: control target
= control target key end

     0   :  { %14 = vsyncpa [#allocation4], 0  ;;  %s14395_s0 = inlined_call_operand.vmem [shape: bf16[2,94,40], index: 0, kind: input, shape index: {}]   ;;  %s14396_s1 = inlined_call_operand.hbm [shape: bf16[10,40,128], index: 1, kind: input, shape index: {}]   ;;  %s14397_s2 = inlined_call_operand.hbm [shape: f32[1,128], index: 2, kind: input, shape index: {}]   ;;  %s14398_s3 = inlined_call_operand.hbm [shape: bf16[8,128,128], index: 3, kind: input, shape index: {}]   ;;  %s14399_s4 = inlined_call_operand.hbm [shape: f32[1,128], index: 4, kind: input, shape index: {}]   ;;  %s14400_s5 = inlined_call_operand.hbm [shape: bf16[7,128,1024], index: 5, kind: input, shape index: {}]   ;;  %s14401_s6 = inlined_call_operand.hbm [shape: f32[1,1024], index: 6, kind: input, shape index: {}]   ;;  %s14402_s7 = inlined_call_operand.hbm [shape: bf16[1024,1024], index: 7, kind: input, shape index: {}]   ;;  %s14403_s8 = inlined_call_operand.hbm [shape: f32[1,1024], index: 8, kind: input, shape index: {}]   ;;  %s14404_s9 = inlined_call_operand.vmem [shape: f32[2,1,1024], index: 9, kind: output, shape index: {}]  }
   0x1   :  { %15 = vsyncpa [#allocation6], 0 }
   0x2   :  { %16 = vsyncpa [#allocation9], 0 }
   0x3   :  { %17 = vsyncpa [#allocation12], 0 }
   0x4   :  { %18 = vsyncpa [#allocation15], 0  ;;  %s13175_s30 = smov 0  }
   0x5 LB: > { %s13111_s10 = smov [#allocation5]   ;;  %s13181_s12 = sadd.s32 4294967295, %s13109_s30   ;;  %s13109_s30 = sphi %s13175_s30, %s24_s30  }
   0x6   : > { %s275_s11 = sshll.u32 %s13111_s10, 4  ;;  %p10999_p0 = scmp.ge.s32.totalorder %s13109_s30, 1  ;;  %s276_s11 = int_to_ptr.vmem [resolvable:$true] %s275_s11 }
   0x7   : > { %p249_p1 = scmp.lt.s32.totalorder %s13109_s30, 3  ;;  %p14405_p2 = scmp.eq.s32.totalorder %s13181_s12, 0 }
   0x8   : > { %s13112_s14 = smov [#allocation8]   ;;  %s13113_s16 = smov [#allocation11]  }
   0x9   : > { %p13186_p3 = pnand %p10999_p0, %p249_p1  ;;  %s299_s15 = sshll.u32 %s13112_s14, 4  ;;  %s13192_s15 = int_to_ptr.vmem [resolvable:$true] %s299_s15 }
   0xa   : > { %s323_s17 = sshll.u32 %s13113_s16, 4  ;;  %s13114_s19 = smov [#allocation3]   ;;  %s13200_s17 = int_to_ptr.vmem [resolvable:$true] %s323_s17 }
   0xb   : > { %s14410_s13 = scalar_select %p13186_p3, 1, 0 }
   0xc   : > { %p12704_p4 = pneg %p13186_p3  ;;  %s261_s20 = sshll.u32 %s13114_s19, 4  ;;  %s13202_s20 = int_to_ptr.vmem [resolvable:$true] %s261_s20 }
   0xd   : > { %s12886_s22 = scalar_lea.vmem %s276_s11, 16  ;;  %s12893_s23 = scalar_lea.vmem %s276_s11, 32 }
   0xe   : > { %p13196_p5 = pnand %p14405_p2, %p12704_p4  ;;  %p12887_p7 = scmp.ne.s32.totalorder %s276_s11, %s12886_s22 }
   0xf   : > { %p12894_p10 = scmp.lt.s32.totalorder %s276_s11, %s276_s11  ;;  %p12895_p11 = scmp.lt.s32.totalorder %s12893_s23, %s12886_s22 }
  0x10   : > { %p13206_p6 = pneg %p13196_p5 }
  0x11   : > { %p12896_p12 = por %p12895_p11, %p12894_p10 }
  0x12   : > { %p12889_p8 = pnand %p12887_p7, %p13206_p6 }
  0x14   : > { %p12890_p9 = pneg %p12889_p8 }
  0x16   : > { %p12897_p13 = pnand %p12896_p12, %p12890_p9 }
  0x18   : > { %12900 = shalt.err (!%p12897_p13)
}
  0x19   : > { %12710 = dma.hbm_to_vmem [thread:$0]  (!%p13196_p5), %s14397_s2, 16, %s276_s11, [#allocation6]  }
  0x1a   : > { %s12912_s26 = scalar_lea.vmem %s13192_s15, 16  ;;  %s12919_s27 = scalar_lea.vmem %s13192_s15, 32 }
  0x1b   : > { %p12913_p0 = scmp.ne.s32.totalorder %s13192_s15, %s12912_s26  ;;  %p12920_p7 = scmp.lt.s32.totalorder %s13192_s15, %s13192_s15 }
  0x1c   : > { %p12921_p8 = scmp.lt.s32.totalorder %s12919_s27, %s12912_s26 }
  0x1d   : > { %p12915_p1 = pnand %p12913_p0, %p13206_p6 }
  0x1e   : > { %p12922_p9 = por %p12921_p8, %p12920_p7 }
  0x1f   : > { %p12916_p4 = pneg %p12915_p1 }
  0x21   : > { %p12923_p10 = pnand %p12922_p9, %p12916_p4 }
  0x23   : > { %12926 = shalt.err (!%p12923_p10)
}
  0x24   : > { %12716 = dma.hbm_to_vmem [thread:$0]  (!%p13196_p5), %s14399_s4, 16, %s13192_s15, [#allocation9]  }
  0x25   : > { %s12938_s10 = scalar_lea.vmem %s13200_s17, 128  ;;  %p12946_p0 = scmp.lt.s32.totalorder %s13200_s17, %s13200_s17 }
  0x26   : > { %p12939_p11 = scmp.ne.s32.totalorder %s13200_s17, %s12938_s10  ;;  %p12947_p1 = scmp.lt.s32.totalorder %s12938_s10, %s12938_s10 }
  0x28   : > { %p12941_p12 = pnand %p12939_p11, %p13206_p6  ;;  %p12948_p4 = por %p12947_p1, %p12946_p0 }
  0x2a   : > { %p12942_p13 = pneg %p12941_p12 }
  0x2c   : > { %p12949_p7 = pnand %p12948_p4, %p12942_p13 }
  0x2e   : > { %12952 = shalt.err (!%p12949_p7)
}
  0x2f   : > { %12722 = dma.hbm_to_vmem [thread:$0]  (!%p13196_p5), %s14401_s6, 128, %s13200_s17, [#allocation12]  }
  0x30   : > { %s12964_s15 = scalar_lea.vmem %s13202_s20, 3200  ;;  %p12972_p11 = scmp.lt.s32.totalorder %s13202_s20, %s13202_s20 }
  0x31   : > { %p12965_p8 = scmp.ne.s32.totalorder %s13202_s20, %s12964_s15  ;;  %p12973_p12 = scmp.lt.s32.totalorder %s12964_s15, %s12964_s15 }
  0x33   : > { %p12967_p9 = pnand %p12965_p8, %p13206_p6  ;;  %p12974_p13 = por %p12973_p12, %p12972_p11 }
  0x35   : > { %p12968_p10 = pneg %p12967_p9 }
  0x37   : > { %p12975_p0 = pnand %p12974_p13, %p12968_p10 }
  0x39   : > { %12978 = shalt.err (!%p12975_p0)
}
  0x3a   : > { %s13115_s16 = smov 64   ;;  %s13116_s19 = smov 4  }
  0x3b   : > { %12707 = dma.hbm_to_vmem [thread:$0]  (!%p13196_p5), %s14396_s1, 3200, %s13202_s20, [#allocation4], %s13115_s16, %s13115_s16, %s13116_s19  }
  0x3c   : > { %s13117_s17 = smov [#allocation7]   ;;  %s13118_s25 = smov [#allocation10]  }
  0x3d   : > { %s285_s24 = sshll.u32 %s13117_s17, 4  ;;  %s309_s26 = sshll.u32 %s13118_s25, 4  ;;  %s286_s24 = int_to_ptr.vmem [resolvable:$true] %s285_s24  ;;  %s310_s26 = int_to_ptr.vmem [resolvable:$true] %s309_s26 }
  0x3e   : > { %s12990_s27 = scalar_lea.vmem %s286_s24, 8192  ;;  %p12998_p8 = scmp.lt.s32.totalorder %s286_s24, %s286_s24 }
  0x3f   : > { %p12991_p1 = scmp.ne.s32.totalorder %s286_s24, %s12990_s27  ;;  %p12999_p9 = scmp.lt.s32.totalorder %s12990_s27, %s12990_s27 }
  0x41   : > { %p12993_p4 = pnand %p12991_p1, %p13206_p6  ;;  %p13000_p10 = por %p12999_p9, %p12998_p8 }
  0x43   : > { %p12994_p7 = pneg %p12993_p4 }
  0x45   : > { %p13001_p11 = pnand %p13000_p10, %p12994_p7 }
  0x47   : > { %13004 = shalt.err (!%p13001_p11)
}
  0x48   : > { %12713 = dma.hbm_to_vmem [thread:$0]  (!%p13196_p5), %s14398_s3, 8192, %s286_s24, [#allocation6], %s13115_s16, %s13115_s16, %s13116_s19  }
  0x49   : > { %s13016_s20 = scalar_lea.vmem %s310_s26, 57344  ;;  %p13024_p1 = scmp.lt.s32.totalorder %s310_s26, %s310_s26 }
  0x4a   : > { %p13017_p12 = scmp.ne.s32.totalorder %s310_s26, %s13016_s20  ;;  %p13025_p4 = scmp.lt.s32.totalorder %s13016_s20, %s13016_s20 }
  0x4c   : > { %p13019_p13 = pnand %p13017_p12, %p13206_p6  ;;  %p13026_p2 = por %p13025_p4, %p13024_p1 }
  0x4e   : > { %p13020_p0 = pneg %p13019_p13 }
  0x50   : > { %p13027_p3 = pnand %p13026_p2, %p13020_p0 }
  0x52   : > { %13030 = shalt.err (!%p13027_p3)
}
  0x53   : > { %s13119_s10 = smov 512   ;;  %s13120_s11 = smov 32  }
  0x54   : > { %12719 = dma.hbm_to_vmem [thread:$0]  (!%p13196_p5), %s14400_s5, 57344, %s310_s26, [#allocation9], %s13119_s10, %s13119_s10, %s13120_s11  }
  0x55   : > { %s13121_s16 = smov [#allocation13]   ;;  %s13122_s22 = smov [#allocation14]  }
  0x56   : > { %s333_s19 = sshll.u32 %s13121_s16, 4  ;;  %s347_s23 = sshll.u32 %s13122_s22, 4  ;;  %s334_s19 = int_to_ptr.vmem [resolvable:$true] %s333_s19  ;;  %s348_s23 = int_to_ptr.vmem [resolvable:$true] %s347_s23 }
  0x57   : > { %s13042_s17 = scalar_lea.vmem %s334_s19, 65536  ;;  %p13050_p3 = scmp.lt.s32.totalorder %s334_s19, %s334_s19 }
  0x58   : > { %p13043_p7 = scmp.ne.s32.totalorder %s334_s19, %s13042_s17  ;;  %p13051_p9 = scmp.lt.s32.totalorder %s13042_s17, %s13042_s17 }
  0x5a   : > { %p13045_p8 = pnand %p13043_p7, %p13206_p6  ;;  %p13052_p10 = por %p13051_p9, %p13050_p3 }
  0x5c   : > { %p13046_p2 = pneg %p13045_p8 }
  0x5e   : > { %p13053_p11 = pnand %p13052_p10, %p13046_p2 }
  0x60   : > { %13056 = shalt.err (!%p13053_p11)
}
  0x61   : > { %12725 = dma.hbm_to_vmem [thread:$0]  (!%p13196_p5), %s14402_s7, 65536, %s334_s19, [#allocation12], %s13119_s10, %s13119_s10, %s13120_s11  }
  0x62   : > { %s13068_s26 = scalar_lea.vmem %s348_s23, 128  ;;  %p13076_p1 = scmp.lt.s32.totalorder %s348_s23, %s348_s23 }
  0x63   : > { %p13069_p12 = scmp.ne.s32.totalorder %s348_s23, %s13068_s26  ;;  %p13077_p4 = scmp.lt.s32.totalorder %s13068_s26, %s13068_s26 }
  0x65   : > { %p13071_p13 = pnand %p13069_p12, %p13206_p6  ;;  %p13078_p7 = por %p13077_p4, %p13076_p1 }
  0x67   : > { %p13072_p0 = pneg %p13071_p13 }
  0x69   : > { %p13079_p8 = pnand %p13078_p7, %p13072_p0 }
  0x6b   : > { %13082 = shalt.err (!%p13079_p8)
}
  0x6c   : > { %12728 = dma.hbm_to_vmem [thread:$0]  (!%p13196_p5), %s14403_s8, 128, %s348_s23, [#allocation15]  }
  0x6d   : > { %p14413_p2 = scmp.ne.s32.totalorder %s14410_s13, 0 }
  0x6f   : > { %368 = sbr.rel (%p14413_p2) target bundleno = 2052 (0x804), region = 56 }
  0x74   : > { %p14414_p3 = scmp.eq.s32.totalorder %s13181_s12, 0 }
  0x76   : > { %13088 = dma.done.wait (%p14414_p3), [#allocation4], 3200   ;;  %p14415_p6 = pmov %p14414_p3 }
  0x77   : > { %p14416_p9 = pmov %p14414_p3 }
  0x78   : > { %13090 = vsyncadd (%p14415_p6), [#allocation4], 4294964096 }
  0x79   : > { %13092 = dma.done.wait (%p14416_p9), [#allocation6], 8208   ;;  %p14417_p10 = pmov %p14414_p3 }
  0x7a   : > { %p14418_p11 = pmov %p14414_p3 }
  0x7b   : > { %13094 = vsyncadd (%p14417_p10), [#allocation6], 4294959088 }
  0x7c   : > { %13096 = dma.done.wait (%p14418_p11), [#allocation9], 57360   ;;  %p14419_p5 = pmov %p14414_p3 }
  0x7d   : > { %p14420_p12 = pmov %p14414_p3 }
  0x7e   : > { %13098 = vsyncadd (%p14419_p5), [#allocation9], 4294909936 }
  0x7f   : > { %13100 = dma.done.wait (%p14420_p12), [#allocation12], 65664   ;;  %p14421_p13 = pmov %p14414_p3 }
  0x80   : > { %p14422_p0 = pmov %p14414_p3 }
  0x81   : > { %13102 = vsyncadd (%p14421_p13), [#allocation12], 4294901632 }
  0x82   : > { %13104 = dma.done.wait (%p14422_p0), [#allocation15], 128   ;;  %p14423_p1 = pmov %p14422_p0 }
  0x83   : > { %p431_p4 = scmp.lt.s32.totalorder %s13181_s12, 1  ;;  %vm574_vm0 = vcmask 1043456   ;;  %v12767_v0 = vld [vmem:[#allocation3 + $0x24] ss:$0 sps:$4 sm:$0xff]   ;;  %v12768_v1 = vld [vmem:[#allocation3 + $0x10] ss:$0 sps:$4 sm:$0xff]  }
  0x84   : > { %13106 = vsyncadd (%p14423_p1), [#allocation15], 4294967168  ;;  %12661 = vmatprep.subr.msk.bf16.mxu0 %vm574_vm0, %v12767_v0  ;;  %v576_v2 = vsel %vm574_vm0, %v12767_v0, 0  ;;  %v12769_v3 = vld [vmem:[#allocation3 + $0x1c] sm:$0xff]   ;;  %12662 = vmatprep.subr.msk.bf16.mxu1 %vm574_vm0, %v12768_v1  ;;  %v686_v4 = vsel %vm574_vm0, %v12768_v1, 0  ;;  %v12770_v5 = vld [vmem:[#allocation3 + $0x8] sm:$0xff]  }
  0x85   : > { %s14468_s12 = smov (!%p431_p4, %s13181_s12), 1  ;;  %12322 = vmatpush3.bf16.msra.mxu0 %v576_v2  ;;  %12340 = vmatpush3.bf16.msra.mxu1 %v686_v4  ;;  %v12771_v6 = vld [vmem:[#allocation3 + $0x14] sm:$0xff]   ;;  %v12772_v7 = vld [vmem:[#allocation3] sm:$0xff]   ;;  %vm555_vm1 = vcmask 326656   ;;  %v12777_v22 = vld [vmem:[#allocation3 + $0x4c] ss:$0 sps:$4 sm:$0xff]  }
  0x86   : > { %s12671_s13 = smul.u32 48, %s14468_s12  ;;  %12323 = vmatprep.subr.bf16.mxu0 %v12769_v3  ;;  %12341 = vmatprep.subr.bf16.mxu1 %v12770_v5  ;;  %v12776_v16 = vld [vmem:[#allocation3 + $0x38] ss:$0 sps:$4 sm:$0xff]   ;;  %vm492_vm2 = vsmask.f32 7424  ;;  %v977_v32 = vsel %vm574_vm0, %v12777_v22, 0 }
  0x87   : > { %v820_v28 = vsel %vm574_vm0, %v12776_v16, 0  ;;  %v12780_v40 = vld [vmem:[#allocation3 + $0x30] sm:$0xff]   ;;  %v12781_v52 = vld [vmem:[#allocation3 + $0x44] sm:$0xff]   ;;  %v12784_v59 = vld [vmem:[#allocation3 + $0x3c] sm:$0xff]   ;;  %vm774_vm3 = vcmask 1046528   ;;  %vm1386_vm5 = vcmask 1044480  }
  0x88   : > { %s13314_s29 = scalar_lea.vmem %s14395_s0, %s12671_s13  ;;  %v12783_v61 = vld [vmem:[#allocation3 + $0x28] sm:$0xff]   ;;  %v12785_v1 = vld [vmem:[#allocation3 + $0x60] ss:$0 sps:$4 sm:$0xff]   ;;  %vm919_vm4 = vsmask.f32 6400  ;;  %vm1079_vm8 = vcmask 1045504  }
  0x89   : > { %v441_v8 = vld [vmem:[%s13314_s29] sm:$0xf]  ;;  %v442_v9 = vld [vmem:[%s13314_s29 + $0x4] sm:$0xf]  ;;  %v443_v10 = vld [vmem:[%s13314_s29 + $0x8] sm:$0xf]  ;;  %12324 = vmatpush3.bf16.msra.mxu0 %v12769_v3  ;;  %12342 = vmatpush3.bf16.msra.mxu1 %v12770_v5 }
  0x8a   : > { %v444_v11 = vld [vmem:[%s13314_s29 + $0xc] sm:$0xf]  ;;  %v13322_v12 = vcombine.low %v441_v8, %v442_v9  ;;  %v445_v13 = vld [vmem:[%s13314_s29 + $0x10] sm:$0xf]  ;;  %v446_v15 = vld [vmem:[%s13314_s29 + $0x14] sm:$0xf]  ;;  %v13328_v17 = vcombine.low %v442_v9, %v443_v10  ;;  %12325 = vmatprep.subr.bf16.mxu0 %v12771_v6  ;;  %12343 = vmatprep.subr.bf16.mxu1 %v12772_v7 }
  0x8b   : > { %v13325_v14 = vcombine.low %v443_v10, %v444_v11  ;;  %v13330_v18 = vcombine.low %v444_v11, %v445_v13  ;;  %v13338_v21 = vcombine.low %v445_v13, %v446_v15  ;;  %v447_v25 = vld [vmem:[%s13314_s29 + $0x18] sm:$0xf]  ;;  %v448_v29 = vld [vmem:[%s13314_s29 + $0x1c] sm:$0xf]  ;;  %v449_v34 = vld [vmem:[%s13314_s29 + $0x20] sm:$0xf] }
  0x8c   : > { %v13333_v19 = vshrl.u32 %v13322_v12, 16  ;;  %v13336_v20 = vshll.u32 %v13322_v12, 16  ;;  %12345 = vmatprep.mubr.msk.bf16.mxu1 %vm555_vm1, %v13322_v12  ;;  %v13360_v33 = vcombine.low %v447_v25, %v448_v29  ;;  %v450_v35 = vld [vmem:[%s13314_s29 + $0x24] sm:$0xf]  ;;  %v13364_v36 = vcombine.low %v446_v15, %v447_v25  ;;  %v13387_v48 = vld [vmem:[%s13314_s29 + $0x28] sm:$0xf] }
  0x8d   : > { %v13341_v23 = vshll.u32 %v13325_v14, 16  ;;  %v13344_v24 = vshrl.u32 %v13325_v14, 16  ;;  %v13351_v27 = vshll.u32 %v13338_v21, 16  ;;  %v13356_v30 = vshrl.u32 %v13338_v21, 16  ;;  %12326 = vmatpush3.bf16.msra.mxu0 %v12771_v6  ;;  %12344 = vmatpush3.bf16.msra.mxu1 %v12772_v7  ;;  %v12786_v8 = vld [vmem:[#allocation3 + $0x74] ss:$0 sps:$4 sm:$0xff]  }
  0x8e   : > { %v498_v26 = vrot.slane %v13336_v20, 1  ;;  %12663 = vmatprep.subr.msk.bf16.mxu0 %vm574_vm0, %v12776_v16  ;;  %v13369_v39 = vcombine.low %v449_v34, %v450_v35  ;;  %v13371_v41 = vcombine.low %v448_v29, %v449_v34  ;;  %12664 = vmatprep.subr.msk.bf16.mxu1 %vm574_vm0, %v12777_v22  ;;  %v13376_v43 = vshll.u32 %v13360_v33, 16  ;;  %s11019_s20 = sshll.u32 %s14468_s12, 3 }
  0x8f   : > { %v503_v31 = vrot.slane %v13341_v23, 1  ;;  %v511_v38 = vrot.slane %v13351_v27, 1  ;;  %v13379_v44 = vshrl.u32 %v13360_v33, 16  ;;  %v13399_v53 = vcombine.low %v13387_v48, %v13387_v48  ;;  %s439_s14 = scalar_lea.vmem %s14404_s9, %s11019_s20 }
  0x90   : > { %v499_v37 = vor.u32 %v498_v26, %v13333_v19  ;;  %v13384_v47 = vshll.u32 %v13369_v39, 16  ;;  %v13390_v49 = vshrl.u32 %v13369_v39, 16  ;;  %12346 = vmatmul.mubr.msk.bf16.vlgmr.msra.gmra.mxu1 %vm555_vm1, %v13325_v14  ;;  %v519_v51 = vrot.slane %v13376_v43, 1 }
  0x91   : > { %v507_v42 = vor.u32 %v13344_v24, %v503_v31  ;;  %v515_v46 = vor.u32 %v13356_v30, %v511_v38  ;;  %v13402_v54 = vcombine.low %v450_v35, %v13387_v48  ;;  %12376 = vmatpush3.bf16.msra.mxu1 %v977_v32  ;;  %12349 = vmatprep.mubr.msk.bf16.mxu1 %vm555_vm1, %v13338_v21  ;;  %v533_v58 = vshll.u32 %v13399_v53, 16 }
  0x92   : > { %v504_v45 = vsel %vm492_vm2, %v499_v37, %v503_v31  ;;  %v527_v55 = vrot.slane %v13384_v47, 1  ;;  %v523_v57 = vor.u32 %v13379_v44, %v519_v51  ;;  %12377 = vmatprep.subr.bf16.mxu1 %v12781_v52  ;;  %v920_v63 = vrot.slane %v13333_v19, 1 }
  0x93   : > { %12327 = vmatprep.mubr.msk.bf16.mxu0 %vm555_vm1, %v504_v45  ;;  %v512_v50 = vsel %vm492_vm2, %v507_v42, %v511_v38  ;;  %v520_v56 = vsel %vm492_vm2, %v515_v46, %v519_v51  ;;  %v535_v62 = vrot.slane %v533_v58, 1  ;;  %v921_v0 = vrot.slane %v13336_v20, 2 }
  0x94   : > { %12328 = vmatmul.mubr.msk.bf16.vlgmr.msra.gmra.mxu0 %vm555_vm1, %v512_v50  ;;  %v531_v60 = vor.u32 %v13390_v49, %v527_v55  ;;  %v528_v2 = vsel %vm492_vm2, %v523_v57, %v527_v55  ;;  %v923_v3 = vrot.slane %v13344_v24, 1  ;;  %v924_v4 = vrot.slane %v13341_v23, 2  ;;  %v13450_v57 = vld [vmem:[#allocation3 + $0x88] ss:$0 sps:$4 sm:$0xff]  }
  0x95   : > { %12358 = vmatpush3.bf16.msra.mxu0 %v820_v28  ;;  %12331 = vmatprep.mubr.msk.bf16.mxu0 %vm555_vm1, %v520_v56  ;;  %v927_v6 = vrot.slane %v13356_v30, 1  ;;  %v928_v7 = vrot.slane %v13351_v27, 2  ;;  %v537_v9 = vshrl.u32 %v13399_v53, 16  ;;  %v775_v10 = vrot.slane %v13322_v12, 1 }
  0x96   : > { %12359 = vmatprep.subr.bf16.mxu0 %v12780_v40  ;;  %12378 = vmatpush3.bf16.msra.mxu1 %v12781_v52  ;;  %v536_v5 = vsel %vm492_vm2, %v531_v60, %v535_v62  ;;  %v776_v11 = vrot.slane %v13325_v14, 1  ;;  %v922_v13 = vor.u32 %v921_v0, %v920_v63  ;;  %v925_v15 = vor.u32 %v924_v4, %v923_v3  ;;  %v12790_v3 = vld [vmem:[#allocation3 + $0x64] sm:$0xff]  }
  0x97   : > { %12379 = vmatprep.subr.bf16.mxu1 %v12784_v59  ;;  %v778_v16 = vrot.slane %v13338_v21, 1  ;;  %v929_v22 = vor.u32 %v928_v7, %v927_v6  ;;  %v780_v25 = vrot.slane %v13360_v33, 1  ;;  %v931_v26 = vrot.slane %v13379_v44, 1 }
  0x98   : > { %12350 = vmatmul.mubr.msk.bf16.gmra.mxu1 %vm555_vm1, %v13360_v33  ;;  %v932_v28 = vrot.slane %v13376_v43, 2  ;;  %v782_v29 = vrot.slane %v13369_v39, 1  ;;  %v539_v31 = vor.u32 %v537_v9, %v535_v62  ;;  %v935_v32 = vrot.slane %v13390_v49, 1 }
  0x99   : > { %12360 = vmatpush3.bf16.msra.mxu0 %v12780_v40  ;;  %12353 = vmatprep.mubr.msk.bf16.mxu1 %vm555_vm1, %v13369_v39  ;;  %v936_v34 = vrot.slane %v13384_v47, 2  ;;  %v777_v35 = vsel %vm774_vm3, %v775_v10, %v776_v11  ;;  %v926_v37 = vsel %vm919_vm4, %v922_v13, %v925_v15  ;;  %v939_v38 = vrot.slane %v537_v9, 1  ;;  %v13479_v10 = vld [vmem:[%s13314_s29 + $0x2c] sm:$0x7] }
  0x9a   : > { %12361 = vmatprep.subr.bf16.mxu0 %v12783_v61  ;;  %12380 = vmatpush3.bf16.msra.mxu1 %v12784_v59  ;;  %v940_v40 = vrot.slane %v533_v58, 2  ;;  %v779_v42 = vsel %vm774_vm3, %v776_v11, %v778_v16  ;;  %v1125_v45 = vsel %vm574_vm0, %v12785_v1, 0  ;;  %v1287_v46 = vsel %vm574_vm0, %v12786_v8, 0  ;;  %v12787_v11 = vld [vmem:[#allocation3 + $0x58] sm:$0xff]  }
  0x9b   : > { %12666 = vmatprep.subr.msk.bf16.mxu1 %vm574_vm0, %v12786_v8  ;;  %v784_v50 = vrot.slane %v13399_v53, 1  ;;  %v930_v51 = vsel %vm919_vm4, %v925_v15, %v929_v22  ;;  %v933_v52 = vor.u32 %v932_v28, %v931_v26  ;;  %v1080_v55 = vrot.slane %v13322_v12, 2 }
  0x9c   : > { %12332 = vmatmul.mubr.msk.bf16.gmra.mxu0 %vm555_vm1, %v528_v2  ;;  %v1081_v56 = vrot.slane %v13325_v14, 2  ;;  %vm1531_vm6 = vsmask.f32 4352  ;;  %v781_v58 = vsel %vm774_vm3, %v778_v16, %v780_v25  ;;  %v13456_v59 = vsel %vm774_vm3, %v780_v25, %v782_v29 }
  0x9d   : > { %12335 = vmatprep.mubr.msk.bf16.mxu0 %vm555_vm1, %v536_v5  ;;  %12362 = vmatpush3.bf16.msra.mxu0 %v12783_v61  ;;  %v937_v60 = vor.u32 %v936_v34, %v935_v32  ;;  %v13458_v61 = vld [vmem:[#allocation3 + $0x9c] ss:$0 sps:$4 sm:$0xff]   ;;  %v13461_v62 = vor.u32 %v940_v40, %v939_v38  ;;  %v1225_v63 = vrot.slane %v13333_v19, 2  ;;  %v1226_v0 = vrot.slane %v13336_v20, 3 }
  0x9e   : > { %12665 = vmatprep.subr.msk.bf16.mxu0 %vm574_vm0, %v12785_v1  ;;  %v1228_v1 = vrot.slane %v13344_v24, 2  ;;  %v1229_v2 = vrot.slane %v13341_v23, 3  ;;  %v1387_v4 = vrot.slane %v13322_v12, 3  ;;  %v1388_v5 = vrot.slane %v13325_v14, 3 }
  0x9f   : > { %v934_v6 = vsel %vm919_vm4, %v929_v22, %v933_v52  ;;  %v13474_v7 = vsel %vm774_vm3, %v782_v29, %v784_v50  ;;  %v1232_v8 = vrot.slane %v13356_v30, 2  ;;  %v1233_v9 = vrot.slane %v13351_v27, 3 }
  0xa0   : > { %12354 = vmatmul.mubr.msk.bf16.gmra.mxu1 %vm555_vm1, %v13399_v53  ;;  %v13483_v13 = vsel %vm574_vm0, %v13450_v57, 0  ;;  %v13486_v15 = vsel %vm1386_vm5, %v1387_v4, %v1388_v5  ;;  %v1532_v16 = vrot.slane %v13333_v19, 3  ;;  %v1533_v22 = vrot.slane %v13336_v20, 4  ;;  %v12789_v4 = vld [vmem:[#allocation3 + $0x50] sm:$0xff]  }
  0xa1   : > { %12381 = vmatprep.mubr.msk.bf16.mxu1 %vm555_vm1, %v926_v37  ;;  %v938_v25 = vsel %vm919_vm4, %v933_v52, %v937_v60  ;;  %v13493_v26 = vsel %vm919_vm4, %v937_v60, %v13461_v62  ;;  %v13497_v28 = vsel %vm574_vm0, %v13458_v61, 0  ;;  %v1535_v29 = vrot.slane %v13344_v24, 3 }
  0xa2   : > { %v1534_v34 = vor.u32 %v1533_v22, %v1532_v16  ;;  %v1390_v37 = vrot.slane %v13338_v21, 3  ;;  %v1539_v52 = vrot.slane %v13356_v30, 3  ;;  %v1540_v60 = vrot.slane %v13351_v27, 4  ;;  %v12794_v30 = vld [vmem:[#allocation3 + $0x94] sm:$0xff]  }
  0xa3   : > { %v13511_v16 = vcombine.low %v13387_v48, %v13479_v10  ;;  %v1543_v38 = vrot.slane %v13379_v44, 3  ;;  %vm1224_vm7 = vsmask.f32 5376  ;;  %v1827_v48 = vshrl.u32 %v13328_v17, 16 }
  0xa4   : > { %12336 = vmatmul.mubr.msk.bf16.gmra.mxu0 %vm555_vm1, %v539_v31  ;;  %v12788_v31 = vld [vmem:[#allocation3 + $0x6c] sm:$0xff]   ;;  %v13514_v32 = vsel %vm1386_vm5, %v1388_v5, %v1390_v37  ;;  %v1541_v40 = vor.u32 %v1540_v60, %v1539_v52  ;;  %v1548_v52 = vrot.slane %v13384_v47, 4  ;;  %v1844_v24 = vshrl.u32 %v13364_v36, 16 }
  0xa5   : > { %12363 = vmatprep.mubr.msk.bf16.mxu0 %vm555_vm1, %v777_v35  ;;  %v1536_v35 = vrot.slane %v13341_v23, 4  ;;  %v1248_v60 = vshll.u32 %v13511_v16, 16  ;;  %v1241_v23 = vrot.slane %v13384_v47, 3  ;;  %v1234_v12 = vor.u32 %v1233_v9, %v1232_v8 }
  0xa6   : > { %v14426_v53 = vrot.slane %v13338_v21, 2  ;;  %v14427_v27 = vrot.slane %v13360_v33, 2 }
  0xa7   : > { %v1537_v22 = vor.u32 %v1536_v35, %v1535_v29 }
  0xa8   : > { %12382 = vmatmul.mubr.msk.bf16.vlgmr.msra.gmra.mxu1 %vm555_vm1, %v930_v51  ;;  %v1392_v51 = vrot.slane %v13360_v33, 3  ;;  %v14428_v8 = vmov %v14426_v53  ;;  %v12800_v33 = vld [vmem:[#allocation3 + $0xa8] sm:$0xff]  }
  0xa9   : > { %12412 = vmatpush3.bf16.msra.mxu1 %v1287_v46  ;;  %v14407_v46 = vrot.slane %v13369_v39, 3  ;;  %12385 = vmatprep.mubr.msk.bf16.mxu1 %vm555_vm1, %v934_v6  ;;  %v13524_v5 = vsel %vm1531_vm6, %v1534_v34, %v1537_v22  ;;  %v13531_v29 = vsel %vm1531_vm6, %v1537_v22, %v1541_v40  ;;  %v1240_v34 = vrot.slane %v13390_v49, 2 }
  0xaa   : > { %12413 = vmatprep.subr.bf16.mxu1 %v12788_v31  ;;  %v1086_v9 = vsel %vm1079_vm8, %v14428_v8, %v14427_v27 }
  0xab   : > { %v13536_v6 = vsel %vm1386_vm5, %v1392_v51, %v14407_v46  ;;  %v13558_v46 = vld [vmem:[#allocation3 + $0xb0] ss:$0 sps:$4 sm:$0xff]   ;;  %v1242_v14 = vor.u32 %v1241_v23, %v1240_v34 }
  0xac   : > { %12364 = vmatmul.mubr.msk.bf16.vlgmr.msra.gmra.mxu0 %vm555_vm1, %v779_v42  ;;  %v1544_v42 = vrot.slane %v13376_v43, 4 }
  0xad   : > { %12394 = vmatpush3.bf16.msra.mxu0 %v1125_v45  ;;  %12367 = vmatprep.mubr.msk.bf16.mxu0 %vm555_vm1, %v781_v58  ;;  %v13527_v45 = vsel %vm1386_vm5, %v1390_v37, %v1392_v51  ;;  %v1547_v58 = vrot.slane %v13390_v49, 3  ;;  %v1245_v37 = vshrl.u32 %v13511_v16, 16  ;;  %v1829_v51 = vshll.u32 %v13328_v17, 16 }
  0xae   : > { %12395 = vmatprep.subr.bf16.mxu0 %v12787_v11  ;;  %v1545_v35 = vor.u32 %v1544_v42, %v1543_v38  ;;  %12414 = vmatpush3.bf16.msra.mxu1 %v12788_v31  ;;  %v1833_v42 = vshll.u32 %v13330_v18, 16  ;;  %v1227_v31 = vor.u32 %v1226_v0, %v1225_v63 }
  0xaf   : > { %12415 = vmatprep.subr.bf16.mxu1 %v12790_v3  ;;  %v13546_v22 = vor.u32 %v1548_v52, %v1547_v58  ;;  %v1837_v58 = vshrl.u32 %v13330_v18, 16  ;;  %v1840_v52 = vshll.u32 %v13364_v36, 16  ;;  %v1831_v20 = vrot.slane %v1829_v51, 1 }
  0xb0   : > { %v13544_v38 = vsel %vm1531_vm6, %v1541_v40, %v1545_v35  ;;  %v13560_v40 = vld [vmem:[#allocation3 + $0xc4] ss:$0 sps:$4 sm:$0xff]   ;;  %12386 = vmatmul.mubr.msk.bf16.gmra.mxu1 %vm555_vm1, %v938_v25  ;;  %v1835_v63 = vrot.slane %v1833_v42, 1  ;;  %v1089_v25 = vrot.slane %v13511_v16, 2  ;;  %v1247_v47 = vrot.slane %v1245_v37, 2 }
  0xb1   : > { %12396 = vmatpush3.bf16.msra.mxu0 %v12787_v11  ;;  %v1230_v11 = vor.u32 %v1229_v2, %v1228_v1  ;;  %v13567_v19 = vsel %vm1531_vm6, %v1545_v35, %v13546_v22  ;;  %12389 = vmatprep.mubr.msk.bf16.mxu1 %vm555_vm1, %v13493_v26  ;;  %v1842_v0 = vrot.slane %v1840_v52, 1  ;;  %v1847_v1 = vshll.u32 %v13371_v41, 16 }
  0xb2   : > { %12397 = vmatprep.subr.bf16.mxu0 %v12789_v4  ;;  %v1851_v2 = vshrl.u32 %v13371_v41, 16  ;;  %v1832_v35 = vor.u32 %v1831_v20, %v1827_v48  ;;  %v1839_v51 = vor.u32 %v1837_v58, %v1835_v63  ;;  %12416 = vmatpush3.bf16.msra.mxu1 %v12790_v3  ;;  %v1250_v52 = vrot.slane %v1248_v60, 3 }
  0xb3   : > { %v1846_v26 = vor.u32 %v1844_v24, %v1842_v0  ;;  %v1849_v42 = vrot.slane %v1847_v1, 1  ;;  %12668 = vmatprep.subr.msk.bf16.mxu1 %vm574_vm0, %v13458_v61  ;;  %v1728_v3 = vsel %vm574_vm0, %v13558_v46, 0  ;;  %v1231_v61 = vsel %vm1224_vm7, %v1227_v31, %v1230_v11  ;;  %v12793_v31 = vld [vmem:[#allocation3 + $0x80] sm:$0xff]  }
  0xb4   : > { %12368 = vmatmul.mubr.msk.bf16.gmra.mxu0 %vm555_vm1, %v13456_v59  ;;  %v1854_v59 = vshll.u32 %v13402_v54, 16  ;;  %v1551_v24 = vrot.slane %v1245_v37, 3  ;;  %v14425_v37 = vrot.slane %v13376_v43, 3  ;;  %v1251_v21 = vor.u32 %v1250_v52, %v1247_v47  ;;  %v12817_v47 = vld [vmem:[#allocation7 + $0x18] sm:$0xff]  }
  0xb5   : > { %12371 = vmatprep.mubr.msk.bf16.mxu0 %vm555_vm1, %v13474_v7  ;;  %12398 = vmatpush3.bf16.msra.mxu0 %v12789_v4  ;;  %v13586_v7 = vsel %vm492_vm2, %v1832_v35, %v1835_v63  ;;  %v13589_v4 = vsel %vm492_vm2, %v1839_v51, %v1842_v0  ;;  %v13598_v58 = vsel %vm492_vm2, %v1846_v26, %v1849_v42  ;;  %v1552_v63 = vrot.slane %v1248_v60, 4  ;;  %v12801_v35 = vld [vmem:[#allocation3 + $0xbc] sm:$0xff]   ;;  %v12813_v51 = vld [vmem:[#allocation7 + $0x28] sm:$0xff]   ;;  %v12818_v26 = vld [vmem:[#allocation7 + $0x60] sm:$0xff]  }
  0xb6   : > { %12667 = vmatprep.subr.msk.bf16.mxu0 %vm574_vm0, %v13450_v57  ;;  %v13591_v48 = vrot.slane %v1854_v59, 1  ;;  %v1902_v57 = vsel %vm574_vm0, %v13560_v40, 0  ;;  %v1853_v20 = vor.u32 %v1851_v2, %v1849_v42  ;;  %v1082_v0 = vsel %vm1079_vm8, %v1080_v55, %v1081_v56  ;;  %v12816_v59 = vld [vmem:[#allocation7 + $0x68] sm:$0xff]   ;;  %v12819_v42 = vld [vmem:[#allocation7 + $0x10] sm:$0xff]  }
  0xb7   : > { %v14424_v55 = vrot.slane %v13379_v44, 2  ;;  %v12797_v44 = vld [vmem:[#allocation3 + $0x8c] sm:$0xff]   ;;  %v14429_v2 = vrot.slane %v13369_v39, 2  ;;  %v1252_v34 = vsel %vm1224_vm7, %v1242_v14, %v1251_v21 }
  0xb8   : > { %v13608_v1 = vsel %vm492_vm2, %v1853_v20, %v13591_v48  ;;  %12390 = vmatmul.mubr.msk.bf16.gmra.mxu1 %vm555_vm1, %v13461_v62  ;;  %v1235_v62 = vsel %vm1224_vm7, %v1230_v11, %v1234_v12 }
  0xb9   : > { %12417 = vmatprep.mubr.msk.bf16.mxu1 %vm555_vm1, %v1231_v61  ;;  %v1238_v60 = vor.u32 %v14425_v37, %v14424_v55  ;;  %v12824_v55 = vld [vmem:[#allocation7 + $0x48] sm:$0xff]  }
  0xbb   : > { %v1239_v43 = vsel %vm1224_vm7, %v1234_v12, %v1238_v60  ;;  %v1243_v11 = vsel %vm1224_vm7, %v1238_v60, %v1242_v14  ;;  %v12823_v12 = vld [vmem:[#allocation7] sm:$0xff]   ;;  %v13731_v60 = vld [vmem:[#allocation7 + $0xf8] sm:$0xff]  }
  0xbc   : > { %12372 = vmatmul.mubr.msk.bf16.gmra.mxu0 %vm555_vm1, %v784_v50  ;;  %v1084_v50 = vsel %vm1079_vm8, %v1081_v56, %v14426_v53  ;;  %v12796_v56 = vld [vmem:[#allocation3 + $0x78] sm:$0xff]   ;;  %14433 = vst [vmem:[#allocation21_spill] sm:$0xff] %v13731_v60  ;;  %v12826_v14 = vld [vmem:[#allocation7 + $0x40] sm:$0xff]  }
  0xbd   : > { %12399 = vmatprep.mubr.msk.bf16.mxu0 %vm555_vm1, %v1082_v0 }
  0xc0   : > { %12418 = vmatmul.mubr.msk.bf16.vlgmr.msra.gmra.mxu1 %vm555_vm1, %v1235_v62 }
  0xc1   : > { %12448 = vmatpush3.bf16.msra.mxu1 %v13497_v28  ;;  %12421 = vmatprep.mubr.msk.bf16.mxu1 %vm555_vm1, %v1239_v43  ;;  %v14430_v28 = vmov %v14427_v27 }
  0xc2   : > { %12449 = vmatprep.subr.bf16.mxu1 %v12794_v30  ;;  %v1088_v49 = vsel %vm1079_vm8, %v14430_v28, %v14429_v2 }
  0xc4   : > { %12400 = vmatmul.mubr.msk.bf16.vlgmr.msra.gmra.mxu0 %vm555_vm1, %v1084_v50 }
  0xc5   : > { %12430 = vmatpush3.bf16.msra.mxu0 %v13483_v13  ;;  %12403 = vmatprep.mubr.msk.bf16.mxu0 %vm555_vm1, %v1086_v9  ;;  %v14431_v13 = vmov %v14429_v2 }
  0xc6   : > { %12431 = vmatprep.subr.bf16.mxu0 %v12793_v31  ;;  %12450 = vmatpush3.bf16.msra.mxu1 %v12794_v30  ;;  %v1090_v23 = vsel %vm1079_vm8, %v14431_v13, %v1089_v25 }
  0xc7   : > { %12451 = vmatprep.subr.bf16.mxu1 %v12797_v44 }
  0xc8   : > { %12422 = vmatmul.mubr.msk.bf16.gmra.mxu1 %vm555_vm1, %v1243_v11 }
  0xc9   : > { %12432 = vmatpush3.bf16.msra.mxu0 %v12793_v31  ;;  %12425 = vmatprep.mubr.msk.bf16.mxu1 %vm555_vm1, %v1252_v34 }
  0xca   : > { %12433 = vmatprep.subr.bf16.mxu0 %v12796_v56  ;;  %12452 = vmatpush3.bf16.msra.mxu1 %v12797_v44 }
  0xcb   : > { %12670 = vmatprep.subr.msk.bf16.mxu1 %vm574_vm0, %v13560_v40  ;;  %v12803_v40 = vld [vmem:[#allocation3 + $0xb4] sm:$0xff]  }
  0xcc   : > { %12404 = vmatmul.mubr.msk.bf16.gmra.mxu0 %vm555_vm1, %v1088_v49  ;;  %v13746_v49 = vld [vmem:[#allocation7 + $0xb8] sm:$0xff]  }
  0xcd   : > { %12407 = vmatprep.mubr.msk.bf16.mxu0 %vm555_vm1, %v1090_v23  ;;  %12434 = vmatpush3.bf16.msra.mxu0 %v12796_v56  ;;  %14434 = vst [vmem:[#allocation22_spill] sm:$0xff] %v13746_v49 }
  0xce   : > { %12669 = vmatprep.subr.msk.bf16.mxu0 %vm574_vm0, %v13558_v46  ;;  %v1553_v46 = vor.u32 %v1552_v63, %v1551_v24  ;;  %v12822_v63 = vld [vmem:[#allocation7 + $0x50] sm:$0xff]  }
  0xd0   : > { %12426 = vmatmul.mubr.msk.bf16.gmra.mxu1 %vm555_vm1, %v1251_v21 }
  0xd1   : > { %12453 = vmatprep.mubr.msk.bf16.mxu1 %vm555_vm1, %v13524_v5  ;;  %v12802_v5 = vld [vmem:[#allocation3 + $0xa0] sm:$0xff]  }
  0xd4   : > { %12408 = vmatmul.mubr.msk.bf16.gmra.mxu0 %vm555_vm1, %v1089_v25  ;;  %v12812_v25 = vld [vmem:[#allocation7 + $0x78] sm:$0xff]  }
  0xd5   : > { %12435 = vmatprep.mubr.msk.bf16.mxu0 %vm555_vm1, %v13486_v15  ;;  %v1396_v15 = vrot.slane %v13511_v16, 3  ;;  %v1858_v16 = vshrl.u32 %v13402_v54, 16 }
  0xd8   : > { %12454 = vmatmul.mubr.msk.bf16.vlgmr.msra.gmra.mxu1 %vm555_vm1, %v13531_v29  ;;  %v14432_v29 = vrot.slane %v13369_v39, 3  ;;  %v11104_v39 = vcombine.low %v13479_v10, %v13479_v10 }
  0xd9   : > { %12484 = vmatpush3.bf16.msra.mxu1 %v1902_v57  ;;  %12457 = vmatprep.mubr.msk.bf16.mxu1 %vm555_vm1, %v13544_v38 }
  0xda   : > { %12485 = vmatprep.subr.bf16.mxu1 %v12801_v35 }
  0xdc   : > { %12436 = vmatmul.mubr.msk.bf16.vlgmr.msra.gmra.mxu0 %vm555_vm1, %v13514_v32  ;;  %v1554_v32 = vsel %vm1531_vm6, %v13546_v22, %v1553_v46  ;;  %v1865_v22 = vshrl.u32 %v11104_v39, 16 }
  0xdd   : > { %12466 = vmatpush3.bf16.msra.mxu0 %v1728_v3  ;;  %12439 = vmatprep.mubr.msk.bf16.mxu0 %vm555_vm1, %v13527_v45  ;;  %v1397_v45 = vsel %vm1386_vm5, %v14432_v29, %v1396_v15 }
  0xde   : > { %12467 = vmatprep.subr.bf16.mxu0 %v12800_v33  ;;  %12486 = vmatpush3.bf16.msra.mxu1 %v12801_v35 }
  0xdf   : > { %12487 = vmatprep.subr.bf16.mxu1 %v12803_v40 }
  0xe0   : > { %12458 = vmatmul.mubr.msk.bf16.gmra.mxu1 %vm555_vm1, %v13567_v19  ;;  %v12811_v19 = vld [vmem:[#allocation7 + $0x30] sm:$0xff]  }
  0xe1   : > { %12468 = vmatpush3.bf16.msra.mxu0 %v12800_v33  ;;  %12461 = vmatprep.mubr.msk.bf16.mxu1 %vm555_vm1, %v1554_v32 }
  0xe2   : > { %12469 = vmatprep.subr.bf16.mxu0 %v12802_v5  ;;  %12488 = vmatpush3.bf16.msra.mxu1 %v12803_v40 }
  0xe4   : > { %12440 = vmatmul.mubr.msk.bf16.gmra.mxu0 %vm555_vm1, %v13536_v6  ;;  %v1861_v6 = vshll.u32 %v11104_v39, 16 }
  0xe5   : > { %12443 = vmatprep.mubr.msk.bf16.mxu0 %vm555_vm1, %v1397_v45  ;;  %12470 = vmatpush3.bf16.msra.mxu0 %v12802_v5 }
  0xe6   : > { %v1863_v38 = vrot.slane %v1861_v6, 1  ;;  %12501 = vmatprep.subr.bf16.mxu0 %v12812_v25 }
  0xe8   : > { %12462 = vmatmul.mubr.msk.bf16.gmra.mxu1 %vm555_vm1, %v1553_v46 }
  0xe9   : > { %12489 = vmatprep.mubr.msk.bf16.mxu1 %vm555_vm1, %v13586_v7  ;;  %v12820_v7 = vld [vmem:[#allocation7 + $0x58] sm:$0xff]  }
  0xec   : > { %12444 = vmatmul.mubr.msk.bf16.gmra.mxu0 %vm555_vm1, %v1396_v15 }
  0xed   : > { %12471 = vmatprep.mubr.msk.bf16.mxu0 %vm555_vm1, %v13328_v17  ;;  %v1860_v17 = vor.u32 %v1858_v16, %v13591_v48 }
  0xef   : > { %v1864_v10 = vsel %vm492_vm2, %v1860_v17, %v1863_v38 }
  0xf0   : > { %12490 = vmatmul.mubr.msk.bf16.vlgmr.msra.gmra.mxu1 %vm555_vm1, %v13589_v4  ;;  %v12821_v4 = vld [vmem:[#allocation7 + $0x8] sm:$0xff]  }
  0xf1   : > { %12493 = vmatprep.mubr.msk.bf16.mxu1 %vm555_vm1, %v13598_v58 }
  0xf4   : > { %12472 = vmatmul.mubr.msk.bf16.vlgmr.msra.gmra.mxu0 %vm555_vm1, %v13330_v18  ;;  %v1867_v18 = vor.u32 %v1865_v22, %v1863_v38 }
  0xf5   : > { %12475 = vmatprep.mubr.msk.bf16.mxu0 %vm555_vm1, %v13364_v36  ;;  %v12810_v36 = vld [vmem:[#allocation7 + $0x38] sm:$0xff]   ;;  %12502 = vmatpush3.bf16.msra.mxu0 %v12812_v25 }
  0xf6   : > { %12521 = vmatprep.subr.bf16.mxu1 %v12810_v36 }
  0xf7   : > { %12522 = vmatpush3.bf16.msra.mxu1 %v12810_v36 }
  0xf8   : > { %12494 = vmatmul.mubr.msk.bf16.gmra.mxu1 %vm555_vm1, %v13608_v1  ;;  %12523 = vmatprep.subr.bf16.mxu1 %v12811_v19 }
  0xf9   : > { %12497 = vmatprep.mubr.msk.bf16.mxu1 %vm555_vm1, %v1864_v10 }
  0xfb   : > { %12524 = vmatpush3.bf16.msra.mxu1 %v12811_v19 }
  0xfc   : > { %12476 = vmatmul.mubr.msk.bf16.gmra.mxu0 %vm555_vm1, %v13371_v41  ;;  %12525 = vmatprep.subr.bf16.mxu1 %v12813_v51  ;;  %v12814_v41 = vld [vmem:[#allocation7 + $0x70] sm:$0xff]  }
  0xfd   : > { %12479 = vmatprep.mubr.msk.bf16.mxu0 %vm555_vm1, %v13402_v54  ;;  %12503 = vmatprep.subr.bf16.mxu0 %v12814_v41  ;;  %v12815_v54 = vld [vmem:[#allocation7 + $0x20] sm:$0xff]  }
  0xfe   : > { %12504 = vmatpush3.bf16.msra.mxu0 %v12814_v41 }
  0xff   : > { %12526 = vmatpush3.bf16.msra.mxu1 %v12813_v51  ;;  %12505 = vmatprep.subr.bf16.mxu0 %v12816_v59 }
 0x100   : > { %12498 = vmatmul.mubr.msk.bf16.gmra.mxu1 %vm555_vm1, %v1867_v18  ;;  %12527 = vmatprep.subr.bf16.mxu1 %v12815_v54 }
 0x102   : > { %12506 = vmatpush3.bf16.msra.mxu0 %v12816_v59 }
 0x103   : > { %12528 = vmatpush3.bf16.msra.mxu1 %v12815_v54  ;;  %12507 = vmatprep.subr.bf16.mxu0 %v12818_v26 }
 0x104   : > { %12480 = vmatmul.mubr.msk.bf16.gmra.mxu0 %vm555_vm1, %v11104_v39  ;;  %12529 = vmatprep.subr.bf16.mxu1 %v12817_v47 }
 0x106   : > { %12508 = vmatpush3.bf16.msra.mxu0 %v12818_v26 }
 0x107   : > { %12530 = vmatpush3.bf16.msra.mxu1 %v12817_v47  ;;  %12509 = vmatprep.subr.bf16.mxu0 %v12820_v7 }
 0x108   : > { %12531 = vmatprep.subr.bf16.mxu1 %v12819_v42 }
 0x10a   : > { %12510 = vmatpush3.bf16.msra.mxu0 %v12820_v7 }
 0x10b   : > { %12532 = vmatpush3.bf16.msra.mxu1 %v12819_v42  ;;  %12511 = vmatprep.subr.bf16.mxu0 %v12822_v63 }
 0x10c   : > { %12533 = vmatprep.subr.bf16.mxu1 %v12821_v4 }
 0x10e   : > { %12512 = vmatpush3.bf16.msra.mxu0 %v12822_v63 }
 0x10f   : > { %12534 = vmatpush3.bf16.msra.mxu1 %v12821_v4  ;;  %12513 = vmatprep.subr.bf16.mxu0 %v12824_v55 }
 0x110   : > { %12535 = vmatprep.subr.bf16.mxu1 %v12823_v12 }
 0x112   : > { %12514 = vmatpush3.bf16.msra.mxu0 %v12824_v55 }
 0x113   : > { %12536 = vmatpush3.bf16.msra.mxu1 %v12823_v12  ;;  %12515 = vmatprep.subr.bf16.mxu0 %v12826_v14 }
 0x114   : > { %12561 = vmatprep.subr.bf16.mxu1 %v13731_v60 }
 0x116   : > { %12516 = vmatpush3.bf16.msra.mxu0 %v12826_v14 }
 0x117   : > { %12541 = vmatprep.subr.bf16.mxu0 %v13746_v49 }
 0x150   : > { %v12347_v52 = vpop.f32.mrf.mxu1 }
 0x152   : > { %v722_v57 = vpop.f32.mrf.mxu1 }
 0x154   : > { %v12329_v48 = vpop.f32.mrf.mxu0  ;;  %v12348_v61 = vpop.f32.mrf.mxu1 }
 0x155   : > { %v13721_v3 = vadd.f32 %v12347_v52, %v12329_v48 }
 0x156   : > { %v612_v58 = vpop.f32.mrf.mxu0  ;;  %v13727_v1 = vpop.f32.mrf.mxu1 }
 0x157   : > { %v13723_v20 = vadd.f32 %v722_v57, %v612_v58 }
 0x158   : > { %v12330_v24 = vpop.f32.mrf.mxu0  ;;  %v12351_v62 = vpop.f32.mrf.mxu1 }
 0x159   : > { %v13725_v0 = vadd.f32 %v12348_v61, %v12330_v24 }
 0x15a   : > { %v13729_v37 = vpop.f32.mrf.mxu0  ;;  %v738_v50 = vpop.f32.mrf.mxu1 }
 0x15c   : > { %v12333_v31 = vpop.f32.mrf.mxu0  ;;  %v12352_v8 = vpop.f32.mrf.mxu1 }
 0x15d   : > { %v13733_v53 = vadd.f32 %v12351_v62, %v12333_v31 }
 0x15e   : > { %v628_v30 = vpop.f32.mrf.mxu0  ;;  %v13740_v44 = vpop.f32.mrf.mxu1 }
 0x15f   : > { %v13736_v27 = vadd.f32 %v738_v50, %v628_v30 }
 0x160   : > { %v12334_v9 = vpop.f32.mrf.mxu0  ;;  %v12355_v21 = vpop.f32.mrf.mxu1 }
 0x161   : > { %v13738_v43 = vadd.f32 %v12352_v8, %v12334_v9 }
 0x162   : > { %v13742_v56 = vpop.f32.mrf.mxu0  ;;  %v754_v28 = vpop.f32.mrf.mxu1 }
 0x164   : > { %v12337_v11 = vpop.f32.mrf.mxu0  ;;  %v12356_v23 = vpop.f32.mrf.mxu1 }
 0x165   : > { %v13744_v2 = vadd.f32 %v12355_v21, %v12337_v11 }
 0x166   : > { %v644_v34 = vpop.f32.mrf.mxu0  ;;  %v13751_v35 = vpop.f32.mrf.mxu1 }
 0x167   : > { %v13748_v13 = vadd.f32 %v754_v28, %v644_v34 }
 0x168   : > { %v12338_v33 = vpop.f32.mrf.mxu0  ;;  %v13755_v40 = vpop.f32.mrf.mxu1 }
 0x16a   : > { %v13753_v46 = vpop.f32.mrf.mxu0  ;;  %v13757_v5 = vpop.f32.mrf.mxu1 }
 0x16c   : > { %v12365_v15 = vpop.f32.mrf.mxu0  ;;  %v13759_v29 = vpop.f32.mrf.mxu1 }
 0x16e   : > { %v856_v32 = vpop.f32.mrf.mxu0  ;;  %v13761_v39 = vpop.f32.mrf.mxu1 }
 0x170   : > { %v12366_v45 = vpop.f32.mrf.mxu0  ;;  %v13763_v6 = vpop.f32.mrf.mxu1 }
 0x172   : > { %v859_v16 = vpop.f32.mrf.mxu0  ;;  %v13765_v38 = vpop.f32.mrf.mxu1 }
 0x174   : > { %v12369_v17 = vpop.f32.mrf.mxu0  ;;  %v13769_v22 = vpop.f32.mrf.mxu1 }
 0x176   : > { %v13767_v10 = vpop.f32.mrf.mxu0  ;;  %v13773_v36 = vpop.f32.mrf.mxu1 }
 0x178   : > { %v13771_v18 = vpop.f32.mrf.mxu0  ;;  %v13777_v25 = vpop.f32.mrf.mxu1 }
 0x17a   : > { %v13775_v19 = vpop.f32.mrf.mxu0  ;;  %v13781_v41 = vpop.f32.mrf.mxu1 }
 0x17b   : > { %14435 = vst [vmem:[#allocation23_spill] sm:$0xff] %v13781_v41 }
 0x17c   : > { %v13779_v51 = vpop.f32.mrf.mxu0  ;;  %v12392_v59 = vpop.f32.mrf.mxu1 }
 0x17e   : > { %v13783_v54 = vpop.f32.mrf.mxu0  ;;  %v13785_v26 = vpop.f32.mrf.mxu1 }
 0x17f   : > { %14436 = vst [vmem:[#allocation24_spill] sm:$0xff] %v13785_v26 }
 0x180   : > { %v12374_v47 = vpop.f32.mrf.mxu0  ;;  %v12419_v52 = vpop.f32.mrf.mxu1 }
 0x182   : > { %v13787_v42 = vpop.f32.mrf.mxu0  ;;  %v1323_v4 = vpop.f32.mrf.mxu1 }
 0x183   : > { %14437 = vst [vmem:[#allocation25_spill] sm:$0xff] %v13787_v42 }
 0x184   : > { %v12401_v7 = vpop.f32.mrf.mxu0  ;;  %v13789_v57 = vpop.f32.mrf.mxu1 }
 0x186   : > { %v1161_v48 = vpop.f32.mrf.mxu0  ;;  %v13791_v61 = vpop.f32.mrf.mxu1 }
 0x188   : > { %v12402_v58 = vpop.f32.mrf.mxu0  ;;  %v13793_v63 = vpop.f32.mrf.mxu1 }
 0x18a   : > { %v1164_v24 = vpop.f32.mrf.mxu0  ;;  %v13795_v55 = vpop.f32.mrf.mxu1 }
 0x18c   : > { %v12405_v12 = vpop.f32.mrf.mxu0  ;;  %v13799_v31 = vpop.f32.mrf.mxu1 }
 0x18d   : > { %14438 = vst [vmem:[#allocation26_spill] sm:$0xff] %v13799_v31 }
 0x18e   : > { %v13797_v62 = vpop.f32.mrf.mxu0  ;;  %v13803_v30 = vpop.f32.mrf.mxu1 }
 0x18f   : > { %14439 = vst [vmem:[#allocation27_spill] sm:$0xff] %v13803_v30 }
 0x190   : > { %v13801_v50 = vpop.f32.mrf.mxu0  ;;  %v13807_v9 = vpop.f32.mrf.mxu1 }
 0x191   : > { %14440 = vst [vmem:[#allocation28_spill] sm:$0xff] %v13807_v9 }
 0x192   : > { %v13805_v8 = vpop.f32.mrf.mxu0  ;;  %v13811_v21 = vpop.f32.mrf.mxu1 }
 0x193   : > { %14442 = vst [vmem:[#allocation30_spill] sm:$0xff] %v13811_v21  ;;  %v904_v21 = vadd.f32 %v12365_v15, %v13721_v3 }
 0x194   : > { %v13809_v14 = vpop.f32.mrf.mxu0  ;;  %v12428_v28 = vpop.f32.mrf.mxu1 }
 0x195   : > { %14441 = vst [vmem:[#allocation29_spill] sm:$0xff] %v13809_v14  ;;  %v1061_v42 = vadd.f32 %v13755_v40, %v904_v21 }
 0x196   : > { %v13813_v11 = vpop.f32.mrf.mxu0  ;;  %v13815_v23 = vpop.f32.mrf.mxu1 }
 0x197   : > { %14443 = vst [vmem:[#allocation31_spill] sm:$0xff] %v13813_v11  ;;  %14444 = vst [vmem:[#allocation32_spill] sm:$0xff] %v13815_v23  ;;  %v726_v11 = vadd.f32 %v13727_v1, %v13729_v37 }
 0x198   : > { %v12410_v34 = vpop.f32.mrf.mxu0  ;;  %v12455_v59 = vpop.f32.mrf.mxu1 }
 0x199   : > { %v902_v34 = vadd.f32 %v856_v32, %v13723_v20  ;;  %v903_v15 = vadd.f32 %v859_v16, %v726_v11  ;;  %v908_v32 = vadd.f32 %v12369_v17, %v13733_v53  ;;  %v742_v53 = vadd.f32 %v13740_v44, %v13742_v56 }
 0x19a   : > { %v13817_v33 = vpop.f32.mrf.mxu0  ;;  %v1625_v49 = vpop.f32.mrf.mxu1 }
 0x19b   : > { %14445 = vst [vmem:[#allocation33_spill] sm:$0xff] %v13817_v33  ;;  %v1059_v3 = vadd.f32 %v13757_v5, %v902_v34  ;;  %v1060_v5 = vadd.f32 %v13761_v39, %v903_v15  ;;  %v1065_v17 = vadd.f32 %v13763_v6, %v908_v32 }
 0x19c   : > { %v12437_v47 = vpop.f32.mrf.mxu0  ;;  %v13819_v26 = vpop.f32.mrf.mxu1 }
 0x19d   : > { %14446 = vst [vmem:[#allocation34_spill] sm:$0xff] %v13819_v26  ;;  %v905_v26 = vadd.f32 %v12366_v45, %v13725_v0  ;;  %v1207_v37 = vadd.f32 %v1161_v48, %v1059_v3  ;;  %v906_v0 = vadd.f32 %v13767_v10, %v13736_v27  ;;  %v1208_v27 = vadd.f32 %v1164_v24, %v1060_v5 }
 0x19e   : > { %v1468_v60 = vpop.f32.mrf.mxu0  ;;  %v13821_v9 = vpop.f32.mrf.mxu1 }
 0x19f   : > { %14447 = vst [vmem:[#allocation35_spill] sm:$0xff] %v13821_v9  ;;  %v1062_v1 = vadd.f32 %v13759_v29, %v905_v26  ;;  %v909_v29 = vadd.f32 %v13771_v18, %v13738_v43  ;;  %v1369_v48 = vadd.f32 %v1323_v4, %v1207_v37  ;;  %v1063_v39 = vadd.f32 %v13765_v38, %v906_v0  ;;  %v14453_v0 = vld [vmem:[#allocation26_spill] sm:$0xff] }
 0x1a0   : > { %v12438_v30 = vpop.f32.mrf.mxu0  ;;  %v13824_v31 = vpop.f32.mrf.mxu1  ;;  %v912_v43 = vadd.f32 %v13779_v51, %v13744_v2  ;;  %v910_v38 = vadd.f32 %v13783_v54, %v13748_v13  ;;  %v758_v2 = vadd.f32 %v13751_v35, %v13753_v46  ;;  %v14452_v46 = vld [vmem:[#allocation25_spill] sm:$0xff] }
 0x1a1   : > { %14448 = vst [vmem:[#allocation36_spill] sm:$0xff] %v13824_v31  ;;  %v1209_v31 = vadd.f32 %v12401_v7, %v1061_v42  ;;  %v1210_v42 = vadd.f32 %v12402_v58, %v1062_v1  ;;  %v1213_v58 = vadd.f32 %v12405_v12, %v1065_v17  ;;  %v1514_v44 = vadd.f32 %v1468_v60, %v1369_v48 }
 0x1a2   : > { %v1471_v14 = vpop.f32.mrf.mxu0  ;;  %v13827_v23 = vpop.f32.mrf.mxu1  ;;  %v1066_v6 = vadd.f32 %v13769_v22, %v909_v29  ;;  %v1211_v18 = vadd.f32 %v13797_v62, %v1063_v39  ;;  %v1069_v13 = vadd.f32 %v13777_v25, %v912_v43  ;;  %v14454_v25 = vld [vmem:[#allocation29_spill] sm:$0xff] }
 0x1a3   : > { %14449 = vst [vmem:[#allocation37_spill] sm:$0xff] %v13827_v23  ;;  %v1371_v16 = vadd.f32 %v12419_v52, %v1209_v31  ;;  %v907_v52 = vadd.f32 %v13775_v19, %v742_v53  ;;  %v1372_v11 = vadd.f32 %v13789_v57, %v1210_v42  ;;  %v1370_v19 = vadd.f32 %v13791_v61, %v1208_v27  ;;  %v14456_v27 = vld [vmem:[#allocation27_spill] sm:$0xff] }
 0x1a4   : > { %v12441_v28 = vpop.f32.mrf.mxu0  ;;  %v13835_v9 = vpop.f32.mrf.mxu1  ;;  %v1214_v22 = vadd.f32 %v13801_v50, %v1066_v6  ;;  %v1671_v51 = vadd.f32 %v1625_v49, %v1514_v44  ;;  %v1373_v54 = vadd.f32 %v13795_v55, %v1211_v18  ;;  %v14451_v32 = vld [vmem:[#allocation34_spill] sm:$0xff] }
 0x1a5   : > { %v1516_v10 = vadd.f32 %v12437_v47, %v1371_v16  ;;  %v1517_v12 = vadd.f32 %v12438_v30, %v1372_v11  ;;  %v1064_v60 = vadd.f32 %v13773_v36, %v907_v52  ;;  %v1375_v47 = vadd.f32 %v13793_v63, %v1213_v58  ;;  %v13884_v36 = vld [vmem:[#allocation5] ss:$0 sm:$0xff] }
 0x1a6   : > { %v13829_v33 = vpop.f32.mrf.mxu0  ;;  %v13840_v20 = vpop.f32.mrf.mxu1  ;;  %v1515_v62 = vadd.f32 %v1471_v14, %v1370_v19  ;;  %v911_v14 = vadd.f32 %v14452_v46, %v758_v2  ;;  %v1376_v5 = vadd.f32 %v14453_v0, %v1214_v22  ;;  %v1217_v16 = vadd.f32 %v14454_v25, %v1069_v13  ;;  %v14463_v13 = vld [vmem:[#allocation33_spill] sm:$0xff] }
 0x1a7   : > { %v1673_v24 = vadd.f32 %v12455_v59, %v1516_v10  ;;  %v1212_v61 = vadd.f32 %v13805_v8, %v1064_v60  ;;  %v1520_v30 = vadd.f32 %v12441_v28, %v1375_v47  ;;  %v14450_v59 = vld [vmem:[#allocation23_spill] sm:$0xff]  ;;  %v1674_v1 = vadd.f32 %v14451_v32, %v1517_v12 }
 0x1a8   : > { %v13837_v41 = vpop.f32.mrf.mxu0  ;;  %v13846_v40 = vpop.f32.mrf.mxu1  ;;  %v1067_v50 = vadd.f32 %v14450_v59, %v910_v38  ;;  %v1518_v55 = vadd.f32 %v13829_v33, %v1373_v54  ;;  %v14455_v28 = vld [vmem:[#allocation35_spill] sm:$0xff]  ;;  %v14458_v52 = vld [vmem:[#allocation36_spill] sm:$0xff] }
 0x1a9   : > { %v1672_v42 = vadd.f32 %v14455_v28, %v1515_v62  ;;  %v1374_v10 = vadd.f32 %v14456_v27, %v1212_v61  ;;  %v1677_v58 = vadd.f32 %v14458_v52, %v1520_v30  ;;  %v14459_v38 = vld [vmem:[#allocation24_spill] sm:$0xff] }
 0x1aa   : > { %v13843_v23 = vpop.f32.mrf.mxu0  ;;  %v13853_v7 = vpop.f32.mrf.mxu1  ;;  %v1068_v19 = vadd.f32 %v14459_v38, %v911_v14 }
 0x1ab   : > { %v1519_v47 = vadd.f32 %v13843_v23, %v1374_v10 }
 0x1ac   : > { %v13850_v45 = vpop.f32.mrf.mxu0  ;;  %v12464_v21 = vpop.f32.mrf.mxu1  ;;  %v1216_v54 = vadd.f32 %v14463_v13, %v1068_v19 }
 0x1ad   : > { %v14457_v21 = vld [vmem:[#allocation31_spill] sm:$0xff] }
 0x1ae   : > { %v13860_v26 = vpop.f32.mrf.mxu0  ;;  %v13865_v56 = vpop.f32.mrf.mxu1  ;;  %v1215_v39 = vadd.f32 %v14457_v21, %v1067_v50 }
 0x1b0   : > { %v12446_v31 = vpop.f32.mrf.mxu0  ;;  %v12491_v57 = vpop.f32.mrf.mxu1 }
 0x1b1   : > { %v1521_v31 = vadd.f32 %v13837_v41, %v1376_v5  ;;  %v14464_v5 = vld [vmem:[#allocation32_spill] sm:$0xff] }
 0x1b2   : > { %v13871_v4 = vpop.f32.mrf.mxu0  ;;  %v1938_v15 = vpop.f32.mrf.mxu1  ;;  %v1378_v25 = vadd.f32 %v14464_v5, %v1216_v54 }
 0x1b3   : > { %v1678_v61 = vadd.f32 %v13835_v9, %v1521_v31 }
 0x1b4   : > { %v12473_v34 = vpop.f32.mrf.mxu0  ;;  %v12492_v49 = vpop.f32.mrf.mxu1 }
 0x1b5   : > { %v1812_v3 = vadd.f32 %v12473_v34, %v1673_v24  ;;  %v14460_v24 = vld [vmem:[#allocation28_spill] sm:$0xff] }
 0x1b6   : > { %v1764_v63 = vpop.f32.mrf.mxu0  ;;  %v1941_v48 = vpop.f32.mrf.mxu1  ;;  %v1379_v12 = vadd.f32 %v14460_v24, %v1217_v16 }
 0x1b7   : > { %v1986_v37 = vadd.f32 %v12491_v57, %v1812_v3  ;;  %v1810_v35 = vadd.f32 %v1764_v63, %v1671_v51  ;;  %v14461_v57 = vld [vmem:[#allocation37_spill] sm:$0xff]  ;;  %v14462_v3 = vld [vmem:[#allocation30_spill] sm:$0xff] }
 0x1b8   : > { %v12474_v8 = vpop.f32.mrf.mxu0  ;;  %v12495_v18 = vpop.f32.mrf.mxu1  ;;  %v1675_v60 = vadd.f32 %v14461_v57, %v1518_v55  ;;  %v1524_v30 = vadd.f32 %v13850_v45, %v1379_v12 }
 0x1b9   : > { %v2004_v53 = vadd.f32 %v13884_v36, %v1986_v37  ;;  %v1984_v17 = vadd.f32 %v1938_v15, %v1810_v35  ;;  %v1813_v29 = vadd.f32 %v12474_v8, %v1674_v1  ;;  %v1377_v15 = vadd.f32 %v14462_v3, %v1215_v39 }
 0x1ba   : > { %v1767_v11 = vpop.f32.mrf.mxu0  ;;  %v1954_v62 = vpop.f32.mrf.mxu1  ;;  %v1676_v37 = vadd.f32 %v13840_v20, %v1519_v47  ;;  %v1681_v16 = vadd.f32 %v13846_v40, %v1524_v30 }
 0x1bb   : > { %v2015_v44 = vmax.f32 %v2004_v53, 0.0  ;;  %v2002_v33 = vadd.f32 %v13884_v36, %v1984_v17  ;;  %v1987_v6 = vadd.f32 %v12492_v49, %v1813_v29  ;;  %v1811_v43 = vadd.f32 %v1767_v11, %v1672_v42 }
 0x1bc   : > { %v12477_v22 = vpop.f32.mrf.mxu0  ;;  %v12496_v1 = vpop.f32.mrf.mxu1  ;;  %v1522_v35 = vadd.f32 %v13860_v26, %v1377_v15  ;;  %v1523_v17 = vadd.f32 %v13871_v4, %v1378_v25 }
 0x1bd   : > { %2026 = vst [vmem:[#allocation2 + $0x10] sm:$0xff] %v2015_v44  ;;  %v2013_v34 = vmax.f32 %v2002_v33, 0.0  ;;  %v2005_v41 = vadd.f32 %v13884_v36, %v1987_v6  ;;  %v1985_v2 = vadd.f32 %v1941_v48, %v1811_v43  ;;  %v1816_v51 = vadd.f32 %v12477_v22, %v1677_v58 }
 0x1be   : > { %v1780_v63 = vpop.f32.mrf.mxu0  ;;  %v1957_v45 = vpop.f32.mrf.mxu1  ;;  %v1679_v53 = vadd.f32 %v13853_v7, %v1522_v35  ;;  %v1680_v7 = vadd.f32 %v13865_v56, %v1523_v17 }
 0x1bf   : > { %2024 = vst [vmem:[#allocation2] sm:$0xff] %v2013_v34  ;;  %v2016_v59 = vmax.f32 %v2005_v41, 0.0  ;;  %v2003_v23 = vadd.f32 %v13884_v36, %v1985_v2  ;;  %v1990_v50 = vadd.f32 %v12495_v18, %v1816_v51  ;;  %v1814_v32 = vadd.f32 %v1780_v63, %v1675_v60 }
 0x1c0   : > { %v12478_v49 = vpop.f32.mrf.mxu0  ;;  %v12499_v26 = vpop.f32.mrf.mxu1 }
 0x1c1   : > { %2027 = vst [vmem:[#allocation2 + $0x18] sm:$0xff] %v2016_v59  ;;  %v2014_v46 = vmax.f32 %v2003_v23, 0.0  ;;  %v2008_v14 = vadd.f32 %v13884_v36, %v1990_v50  ;;  %v1988_v9 = vadd.f32 %v1954_v62, %v1814_v32  ;;  %v1817_v0 = vadd.f32 %v12478_v49, %v1678_v61 }
 0x1c2   : > { %v1783_v55 = vpop.f32.mrf.mxu0  ;;  %v1970_v40 = vpop.f32.mrf.mxu1 }
 0x1c3   : > { %2025 = vst [vmem:[#allocation2 + $0x8] sm:$0xff] %v2014_v46  ;;  %v2019_v8 = vmax.f32 %v2008_v14, 0.0  ;;  %v2006_v28 = vadd.f32 %v13884_v36, %v1988_v9  ;;  %v1991_v20 = vadd.f32 %v12496_v1, %v1817_v0  ;;  %v1815_v42 = vadd.f32 %v1783_v55, %v1676_v37  ;;  %v12827_v0 = vld [vmem:[#allocation7 + $0xf0] sm:$0xff]  }
 0x1c4   : > { %v12481_v29 = vpop.f32.mrf.mxu0  ;;  %v12500_v44 = vpop.f32.mrf.mxu1  ;;  %v14465_v55 = vld [vmem:[#allocation21_spill] sm:$0xff] }
 0x1c5   : > { %2030 = vst [vmem:[#allocation2 + $0x30] sm:$0xff] %v2019_v8  ;;  %v2017_v48 = vmax.f32 %v2006_v28, 0.0  ;;  %v2009_v27 = vadd.f32 %v13884_v36, %v1991_v20  ;;  %v1989_v10 = vadd.f32 %v1957_v45, %v1815_v42  ;;  %v1820_v21 = vadd.f32 %v12481_v29, %v1681_v16  ;;  %v14466_v44 = vld [vmem:[#allocation22_spill] sm:$0xff] }
 0x1c6   : > { %v1796_v39 = vpop.f32.mrf.mxu0  ;;  %v1973_v12 = vpop.f32.mrf.mxu1 }
 0x1c7   : > { %2028 = vst [vmem:[#allocation2 + $0x20] sm:$0xff] %v2017_v48  ;;  %v2020_v52 = vmax.f32 %v2009_v27, 0.0  ;;  %v2007_v58 = vadd.f32 %v13884_v36, %v1989_v10  ;;  %v1994_v31 = vadd.f32 %v12499_v26, %v1820_v21  ;;  %v1818_v11 = vadd.f32 %v1796_v39, %v1679_v53  ;;  %v12829_v26 = vld [vmem:[#allocation7 + $0xe8] sm:$0xff]   ;;  %v12830_v39 = vld [vmem:[#allocation7 + $0xb0] sm:$0xff]  }
 0x1c8   : > { %v12482_v33 = vpop.f32.mrf.mxu0 }
 0x1c9   : > { %2031 = vst [vmem:[#allocation2 + $0x38] sm:$0xff] %v2020_v52  ;;  %v2018_v4 = vmax.f32 %v2007_v58, 0.0  ;;  %v2012_v6 = vadd.f32 %v13884_v36, %v1994_v31  ;;  %v1992_v43 = vadd.f32 %v1970_v40, %v1818_v11  ;;  %v12831_v11 = vld [vmem:[#allocation7 + $0xe0] sm:$0xff]   ;;  %v12832_v33 = vld [vmem:[#allocation7 + $0xa8] sm:$0xff]  }
 0x1ca   : > { %v1799_v18 = vpop.f32.mrf.mxu0  ;;  %v2035_v47 = vld [vmem:[#allocation2] ss:$3 sm:$0xff]  ;;  %v2043_v22 = vld [vmem:[#allocation2 + $0x1] ss:$3 sm:$0xff]  ;;  %v2055_v3 = vld [vmem:[#allocation2 + $0x2] ss:$3 sm:$0xff] }
 0x1cb   : > { %2029 = vst [vmem:[#allocation2 + $0x28] sm:$0xff] %v2018_v4  ;;  %v2023_v38 = vmax.f32 %v2012_v6, 0.0  ;;  %v2010_v19 = vadd.f32 %v13884_v36, %v1992_v43  ;;  %v1819_v24 = vadd.f32 %v1799_v18, %v1680_v7  ;;  %v2050_v41 = vmax.f32 %v2035_v47, %v2043_v22  ;;  %v12833_v7 = vld [vmem:[#allocation7 + $0xd8] sm:$0xff]   ;;  %v12834_v4 = vld [vmem:[#allocation7 + $0xa0] sm:$0xff]   ;;  %v12835_v6 = vld [vmem:[#allocation7 + $0xd0] sm:$0xff]  }
 0x1cc   : > { %v12836_v43 = vld [vmem:[#allocation7 + $0x98] sm:$0xff]   ;;  %v12837_v18 = vld [vmem:[#allocation7 + $0xc8] sm:$0xff]  }
 0x1cd   : > { %2034 = vst [vmem:[#allocation2 + $0x50] sm:$0x1f] %v2023_v38  ;;  %v2021_v57 = vmax.f32 %v2010_v19, 0.0  ;;  %v1993_v60 = vadd.f32 %v1973_v12, %v1819_v24  ;;  %v2062_v13 = vmax.f32 %v2050_v41, %v2055_v3  ;;  %v12838_v38 = vld [vmem:[#allocation7 + $0x90] sm:$0xff]   ;;  %v12839_v19 = vld [vmem:[#allocation7 + $0xc0] sm:$0xff]   ;;  %v12840_v24 = vld [vmem:[#allocation7 + $0x88] sm:$0xff]  }
 0x1cf   : > { %2032 = vst [vmem:[#allocation2 + $0x40] sm:$0xff] %v2021_v57  ;;  %v2011_v56 = vadd.f32 %v13884_v36, %v1993_v60  ;;  %v12841_v60 = vld [vmem:[#allocation7 + $0x178] sm:$0xff]  }
 0x1d1   : > { %v2022_v34 = vmax.f32 %v2011_v56, 0.0 }
 0x1d2   : > { %v2037_v2 = vld [vmem:[#allocation2 + $0x18] ss:$3 sm:$0xff]  ;;  %v2045_v51 = vld [vmem:[#allocation2 + $0x19] ss:$3 sm:$0xff]  ;;  %v2057_v15 = vld [vmem:[#allocation2 + $0x1a] ss:$3 sm:$0xff] }
 0x1d3   : > { %2033 = vst [vmem:[#allocation2 + $0x48] sm:$0xff] %v2022_v34  ;;  %v2051_v62 = vmax.f32 %v2037_v2, %v2045_v51  ;;  %v12842_v34 = vld [vmem:[#allocation7 + $0x80] sm:$0xff]   ;;  %v12843_v2 = vld [vmem:[#allocation7 + $0x170] sm:$0xff]  }
 0x1d5   : > { %v2063_v54 = vmax.f32 %v2051_v62, %v2057_v15  ;;  %v12844_v62 = vld [vmem:[#allocation7 + $0x138] sm:$0xff]   ;;  %v12845_v15 = vld [vmem:[#allocation7 + $0x168] sm:$0xff]  }
 0x1d6   : > { %v2039_v61 = vld [vmem:[#allocation2 + $0x30] ss:$3 sm:$0xff]  ;;  %v2047_v30 = vld [vmem:[#allocation2 + $0x31] ss:$3 sm:$0xff]  ;;  %v2059_v1 = vld [vmem:[#allocation2 + $0x32] ss:$3 sm:$0xff] }
 0x1d7   : > { %v13923_v63 = vpack.c.bf16 %v2063_v54, %v2062_v13  ;;  %v2052_v59 = vmax.f32 %v2039_v61, %v2047_v30  ;;  %v12846_v54 = vld [vmem:[#allocation7 + $0x130] sm:$0xff]   ;;  %v12847_v30 = vld [vmem:[#allocation7 + $0x160] sm:$0xff]  }
 0x1d9   : > { %12537 = vmatprep.mubr.bf16.mxu1 %v13923_v63  ;;  %v13927_v23 = vshll.u32 %v13923_v63, 16  ;;  %v2064_v35 = vmax.f32 %v2052_v59, %v2059_v1  ;;  %v13930_v46 = vshrl.u32 %v13923_v63, 16  ;;  %v2329_v29 = vrot.slane %v13923_v63, 1  ;;  %v12848_v59 = vld [vmem:[#allocation7 + $0x128] sm:$0xff]  }
 0x1da   : > { %v2041_v36 = vld [vmem:[#allocation2 + $0x48] ss:$3 sm:$0xf]  ;;  %v2049_v50 = vld [vmem:[#allocation2 + $0x49] ss:$3 sm:$0xf] }
 0x1db   : > { %v2053_v32 = vmax.f32 %v2041_v36, %v2049_v50  ;;  %v2061_v37 = vld [vmem:[#allocation2 + $0x4a] ss:$3 sm:$0xf]  ;;  %v2106_v14 = vrot.slane %v13927_v23, 1  ;;  %v2450_v25 = vrot.slane %v13930_v46, 1  ;;  %v2451_v16 = vrot.slane %v13927_v23, 2 }
 0x1dc   : > { %v2821_v48 = vrot.slane %v13923_v63, 3  ;;  %v2696_v47 = vrot.slane %v13930_v46, 2  ;;  %v2697_v22 = vrot.slane %v13927_v23, 3  ;;  %v2575_v13 = vrot.slane %v13923_v63, 2  ;;  %v12849_v36 = vld [vmem:[#allocation7 + $0x158] sm:$0xff]   ;;  %v12850_v63 = vld [vmem:[#allocation7 + $0x120] sm:$0xff]  }
 0x1dd   : > { %v2065_v49 = vmax.f32 %v2053_v32, %v2061_v37  ;;  %v2107_v8 = vor.u32 %v2106_v14, %v13930_v46  ;;  %v2452_v21 = vor.u32 %v2451_v16, %v2450_v25  ;;  %v12851_v50 = vld [vmem:[#allocation7 + $0x150] sm:$0xff]   ;;  %v12852_v32 = vld [vmem:[#allocation7 + $0x118] sm:$0xff]   ;;  %v12853_v1 = vld [vmem:[#allocation7 + $0x148] sm:$0xff]   ;;  %v2942_v16 = vrot.slane %v13930_v46, 3 }
 0x1de   : > { %v2698_v41 = vor.u32 %v2697_v22, %v2696_v47  ;;  %v12854_v37 = vld [vmem:[#allocation7 + $0x110] sm:$0xff]   ;;  %v12857_v25 = vld [vmem:[#allocation7 + $0x1f8] sm:$0xff]   ;;  %v12861_v46 = vld [vmem:[#allocation7 + $0x1e8] sm:$0xff]  }
 0x1df   : > { %v13933_v9 = vpack.c.bf16 %v2065_v49, %v2064_v35  ;;  %v12855_v35 = vld [vmem:[#allocation7 + $0x140] sm:$0xff]   ;;  %v12856_v49 = vld [vmem:[#allocation7 + $0x108] sm:$0xff]  }
 0x1e0   : > { %v3182_v47 = vld [vmem:[#allocation10 + $0x360] sm:$0xff]  ;;  %v3179_v22 = vld [vmem:[#allocation10 + $0x348] sm:$0xff] }
 0x1e1   : > { %12538 = vmatmul.mubr.bf16.vlgmr.msra.gmra.mxu1 %v13933_v9  ;;  %v13937_v45 = vshll.u32 %v13933_v9, 16  ;;  %v13940_v5 = vshrl.u32 %v13933_v9, 16  ;;  %v2822_v28 = vrot.slane %v13933_v9, 3  ;;  %v2330_v42 = vrot.slane %v13933_v9, 1 }
 0x1e2   : > { %12562 = vmatpush3.bf16.msra.mxu1 %v14465_v55  ;;  %v2576_v3 = vrot.slane %v13933_v9, 2  ;;  %v2943_v55 = vrot.slane %v13927_v23, 4  ;;  %v12862_v23 = vld [vmem:[#allocation7 + $0x1b0] sm:$0xff]  }
 0x1e3   : > { %12563 = vmatprep.subr.bf16.mxu1 %v12827_v0  ;;  %v2111_v20 = vrot.slane %v13937_v45, 1  ;;  %v2453_v53 = vrot.slane %v13940_v5, 1  ;;  %v2454_v17 = vrot.slane %v13937_v45, 2  ;;  %v13958_v52 = vsel %vm1386_vm5, %v2821_v48, %v2822_v28  ;;  %v12866_v48 = vld [vmem:[#allocation7 + $0x1a0] sm:$0xff]  }
 0x1e4   : > { %v2331_v58 = vsel %vm774_vm3, %v2329_v29, %v2330_v42  ;;  %v2699_v12 = vrot.slane %v13940_v5, 2  ;;  %v2700_v57 = vrot.slane %v13937_v45, 3  ;;  %v2577_v61 = vsel %vm1079_vm8, %v2575_v13, %v2576_v3  ;;  %v12865_v29 = vld [vmem:[#allocation7 + $0x1d8] sm:$0xff]  }
 0x1e5   : > { %v2112_v27 = vsel %vm492_vm2, %v2107_v8, %v2111_v20  ;;  %v2115_v10 = vor.u32 %v13940_v5, %v2111_v20  ;;  %v2455_v40 = vor.u32 %v2454_v17, %v2453_v53  ;;  %v2945_v14 = vrot.slane %v13940_v5, 3  ;;  %v12858_v20 = vld [vmem:[#allocation7 + $0x100] sm:$0xff]   ;;  %v12860_v5 = vld [vmem:[#allocation7 + $0x1b8] sm:$0xff]   ;;  %v12864_v17 = vld [vmem:[#allocation7 + $0x1a8] sm:$0xff]  }
 0x1e6   : > { %12564 = vmatpush3.bf16.msra.mxu1 %v12827_v0  ;;  %12517 = vmatprep.mubr.bf16.mxu0 %v2112_v27  ;;  %v13969_v56 = vor.u32 %v2700_v57, %v2699_v12  ;;  %v2946_v0 = vrot.slane %v13937_v45, 4  ;;  %v12863_v53 = vld [vmem:[#allocation7 + $0x1e0] sm:$0xff]   ;;  %v12867_v27 = vld [vmem:[#allocation7 + $0x1d0] sm:$0xff]  }
 0x1e7   : > { %12518 = vmatmul.mubr.bf16.vlgmr.msra.gmra.mxu0 %v2115_v10  ;;  %12565 = vmatprep.subr.bf16.mxu1 %v12829_v26  ;;  %v2456_v31 = vsel %vm919_vm4, %v2452_v21, %v2455_v40  ;;  %v12868_v10 = vld [vmem:[#allocation7 + $0x198] sm:$0xff]   ;;  %v12869_v21 = vld [vmem:[#allocation7 + $0x1c8] sm:$0xff]  }
 0x1e8   : > { %12542 = vmatpush3.bf16.msra.mxu0 %v14466_v44  ;;  %12557 = vmatprep.mubr.bf16.mxu0 %v2331_v58  ;;  %v2702_v51 = vsel %vm1224_vm7, %v2698_v41, %v13969_v56  ;;  %v2947_v8 = vor.u32 %v2946_v0, %v2945_v14  ;;  %v12873_v58 = vld [vmem:[#allocation7 + $0x180] sm:$0xff]   ;;  %v3195_v44 = vld [vmem:[#allocation10 + $0x3c8] sm:$0xff]  ;;  %v13123_v14 = vmov 0  }
 0x1e9   : > { %12577 = vmatprep.mubr.bf16.mxu1 %v2456_v31  ;;  %12543 = vmatprep.subr.bf16.mxu0 %v12830_v39  ;;  %v3194_v31 = vld [vmem:[#allocation10 + $0x3c0] sm:$0xff]  ;;  %v3191_v12 = vld [vmem:[#allocation10 + $0x3a8] sm:$0xff] }
 0x1ea   : > { %12566 = vmatpush3.bf16.msra.mxu1 %v12829_v26  ;;  %v12859_v26 = vld [vmem:[#allocation7 + $0x1f0] sm:$0xff]  }
 0x1eb   : > { %12567 = vmatprep.subr.bf16.mxu1 %v12831_v11 }
 0x1ec   : > { %12544 = vmatpush3.bf16.msra.mxu0 %v12830_v39  ;;  %v12871_v39 = vld [vmem:[#allocation7 + $0x1c0] sm:$0xff]  }
 0x1ed   : > { %12545 = vmatprep.subr.bf16.mxu0 %v12832_v33 }
 0x1ee   : > { %12568 = vmatpush3.bf16.msra.mxu1 %v12831_v11  ;;  %v3198_v11 = vld [vmem:[#allocation10 + $0x3e0] sm:$0xff] }
 0x1ef   : > { %12569 = vmatprep.subr.bf16.mxu1 %v12833_v7 }
 0x1f0   : > { %12546 = vmatpush3.bf16.msra.mxu0 %v12832_v33  ;;  %v11245_v33 = vcombine.low %v3194_v31, %v3198_v11 }
 0x1f1   : > { %12547 = vmatprep.subr.bf16.mxu0 %v12834_v4 }
 0x1f2   : > { %12570 = vmatpush3.bf16.msra.mxu1 %v12833_v7  ;;  %v11246_v7 = vcombine.high %v3194_v31, %v3198_v11 }
 0x1f3   : > { %12571 = vmatprep.subr.bf16.mxu1 %v12835_v6 }
 0x1f4   : > { %12548 = vmatpush3.bf16.msra.mxu0 %v12834_v4  ;;  %v3199_v4 = vld [vmem:[#allocation10 + $0x3e8] sm:$0xff] }
 0x1f5   : > { %12549 = vmatprep.subr.bf16.mxu0 %v12836_v43 }
 0x1f6   : > { %12572 = vmatpush3.bf16.msra.mxu1 %v12835_v6  ;;  %v11247_v6 = vcombine.low %v3195_v44, %v3199_v4 }
 0x1f7   : > { %12573 = vmatprep.subr.bf16.mxu1 %v12837_v18 }
 0x1f8   : > { %12550 = vmatpush3.bf16.msra.mxu0 %v12836_v43  ;;  %v11248_v43 = vcombine.high %v3195_v44, %v3199_v4 }
 0x1f9   : > { %12551 = vmatprep.subr.bf16.mxu0 %v12838_v38 }
 0x1fa   : > { %12574 = vmatpush3.bf16.msra.mxu1 %v12837_v18  ;;  %v3186_v18 = vld [vmem:[#allocation10 + $0x380] sm:$0xff] }
 0x1fb   : > { %12575 = vmatprep.subr.bf16.mxu1 %v12839_v19 }
 0x1fc   : > { %12552 = vmatpush3.bf16.msra.mxu0 %v12838_v38  ;;  %v3190_v38 = vld [vmem:[#allocation10 + $0x3a0] sm:$0xff] }
 0x1fd   : > { %12553 = vmatprep.subr.bf16.mxu0 %v12840_v24  ;;  %v11237_v57 = vcombine.low %v3186_v18, %v3190_v38 }
 0x1fe   : > { %12576 = vmatpush3.bf16.msra.mxu1 %v12839_v19  ;;  %v11238_v19 = vcombine.high %v3186_v18, %v3190_v38 }
 0x1ff   : > { %12601 = vmatprep.subr.bf16.mxu1 %v12841_v60 }
 0x200   : > { %12554 = vmatpush3.bf16.msra.mxu0 %v12840_v24  ;;  %v3187_v24 = vld [vmem:[#allocation10 + $0x388] sm:$0xff] }
 0x201   : > { %12578 = vmatmul.mubr.bf16.vlgmr.msra.gmra.mxu1 %v2455_v40  ;;  %12555 = vmatprep.subr.bf16.mxu0 %v12842_v34  ;;  %v12870_v40 = vld [vmem:[#allocation7 + $0x190] sm:$0xff]   ;;  %v11239_v9 = vcombine.low %v3187_v24, %v3191_v12 }
 0x202   : > { %12602 = vmatpush3.bf16.msra.mxu1 %v12841_v60  ;;  %12617 = vmatprep.mubr.bf16.mxu1 %v2702_v51  ;;  %v3178_v60 = vld [vmem:[#allocation10 + $0x340] sm:$0xff] }
 0x203   : > { %12603 = vmatprep.subr.bf16.mxu1 %v12843_v2  ;;  %v11229_v41 = vcombine.low %v3178_v60, %v3182_v47 }
 0x204   : > { %12556 = vmatpush3.bf16.msra.mxu0 %v12842_v34  ;;  %v3183_v34 = vld [vmem:[#allocation10 + $0x368] sm:$0xff] }
 0x205   : > { %12581 = vmatprep.subr.bf16.mxu0 %v12844_v62  ;;  %v11232_v51 = vcombine.high %v3179_v22, %v3183_v34 }
 0x206   : > { %12604 = vmatpush3.bf16.msra.mxu1 %v12843_v2  ;;  %v11231_v2 = vcombine.low %v3179_v22, %v3183_v34 }
 0x207   : > { %12558 = vmatmul.mubr.bf16.vlgmr.msra.gmra.mxu0 %v2330_v42  ;;  %12605 = vmatprep.subr.bf16.mxu1 %v12845_v15  ;;  %v2944_v42 = vor.u32 %v2943_v55, %v2942_v16  ;;  %v3155_v55 = vld [vmem:[#allocation10 + $0x288] sm:$0xff] }
 0x208   : > { %12582 = vmatpush3.bf16.msra.mxu0 %v12844_v62  ;;  %12597 = vmatprep.mubr.bf16.mxu0 %v2577_v61  ;;  %v3170_v62 = vld [vmem:[#allocation10 + $0x300] sm:$0xff] }
 0x209   : > { %12583 = vmatprep.subr.bf16.mxu0 %v12846_v54  ;;  %v2948_v45 = vsel %vm1531_vm6, %v2944_v42, %v2947_v8 }
 0x20a   : > { %12606 = vmatpush3.bf16.msra.mxu1 %v12845_v15  ;;  %v3171_v15 = vld [vmem:[#allocation10 + $0x308] sm:$0xff] }
 0x20b   : > { %12607 = vmatprep.subr.bf16.mxu1 %v12847_v30 }
 0x20c   : > { %12584 = vmatpush3.bf16.msra.mxu0 %v12846_v54  ;;  %v3175_v54 = vld [vmem:[#allocation10 + $0x328] sm:$0xff] }
 0x20d   : > { %12585 = vmatprep.subr.bf16.mxu0 %v12848_v59 }
 0x20e   : > { %12608 = vmatpush3.bf16.msra.mxu1 %v12847_v30  ;;  %v11223_v30 = vcombine.low %v3171_v15, %v3175_v54 }
 0x20f   : > { %12609 = vmatprep.subr.bf16.mxu1 %v12849_v36 }
 0x210   : > { %12586 = vmatpush3.bf16.msra.mxu0 %v12848_v59  ;;  %v11224_v59 = vcombine.high %v3171_v15, %v3175_v54 }
 0x211   : > { %12587 = vmatprep.subr.bf16.mxu0 %v12850_v63 }
 0x212   : > { %12610 = vmatpush3.bf16.msra.mxu1 %v12849_v36  ;;  %v3162_v36 = vld [vmem:[#allocation10 + $0x2c0] sm:$0xff] }
 0x213   : > { %12611 = vmatprep.subr.bf16.mxu1 %v12851_v50 }
 0x214   : > { %12588 = vmatpush3.bf16.msra.mxu0 %v12850_v63  ;;  %v3166_v63 = vld [vmem:[#allocation10 + $0x2e0] sm:$0xff] }
 0x215   : > { %12589 = vmatprep.subr.bf16.mxu0 %v12852_v32 }
 0x216   : > { %12612 = vmatpush3.bf16.msra.mxu1 %v12851_v50  ;;  %v3163_v50 = vld [vmem:[#allocation10 + $0x2c8] sm:$0xff] }
 0x217   : > { %12613 = vmatprep.subr.bf16.mxu1 %v12853_v1 }
 0x218   : > { %12590 = vmatpush3.bf16.msra.mxu0 %v12852_v32  ;;  %v11213_v32 = vcombine.low %v3162_v36, %v3166_v63 }
 0x219   : > { %12591 = vmatprep.subr.bf16.mxu0 %v12854_v37 }
 0x21a   : > { %12614 = vmatpush3.bf16.msra.mxu1 %v12853_v1  ;;  %v11214_v1 = vcombine.high %v3162_v36, %v3166_v63 }
 0x21b   : > { %12615 = vmatprep.subr.bf16.mxu1 %v12855_v35 }
 0x21c   : > { %12592 = vmatpush3.bf16.msra.mxu0 %v12854_v37  ;;  %v3167_v37 = vld [vmem:[#allocation10 + $0x2e8] sm:$0xff] }
 0x21d   : > { %12593 = vmatprep.subr.bf16.mxu0 %v12856_v49  ;;  %v11215_v0 = vcombine.low %v3163_v50, %v3167_v37 }
 0x21e   : > { %12616 = vmatpush3.bf16.msra.mxu1 %v12855_v35  ;;  %v3154_v35 = vld [vmem:[#allocation10 + $0x280] sm:$0xff] }
 0x21f   : > { %12641 = vmatprep.subr.bf16.mxu1 %v12857_v25 }
 0x220   : > { %12594 = vmatpush3.bf16.msra.mxu0 %v12856_v49  ;;  %v3158_v49 = vld [vmem:[#allocation10 + $0x2a0] sm:$0xff] }
 0x221   : > { %12618 = vmatmul.mubr.bf16.vlgmr.msra.gmra.mxu1 %v13969_v56  ;;  %12595 = vmatprep.subr.bf16.mxu0 %v12858_v20  ;;  %v11230_v56 = vcombine.high %v3178_v60, %v3182_v47  ;;  %v11206_v16 = vcombine.high %v3154_v35, %v3158_v49 }
 0x222   : > { %12642 = vmatpush3.bf16.msra.mxu1 %v12857_v25  ;;  %12657 = vmatprep.mubr.bf16.mxu1 %v2948_v45  ;;  %v11216_v25 = vcombine.high %v3163_v50, %v3167_v37  ;;  %v3147_v45 = vld [vmem:[#allocation10 + $0x248] sm:$0xff] }
 0x223   : > { %12643 = vmatprep.subr.bf16.mxu1 %v12859_v26 }
 0x224   : > { %12596 = vmatpush3.bf16.msra.mxu0 %v12858_v20  ;;  %v3146_v20 = vld [vmem:[#allocation10 + $0x240] sm:$0xff] }
 0x225   : > { %12621 = vmatprep.subr.bf16.mxu0 %v12860_v5 }
 0x226   : > { %12644 = vmatpush3.bf16.msra.mxu1 %v12859_v26  ;;  %v3150_v26 = vld [vmem:[#allocation10 + $0x260] sm:$0xff] }
 0x227   : > { %12598 = vmatmul.mubr.bf16.vlgmr.msra.gmra.mxu0 %v2576_v3  ;;  %12645 = vmatprep.subr.bf16.mxu1 %v12861_v46  ;;  %v3174_v3 = vld [vmem:[#allocation10 + $0x320] sm:$0xff]  ;;  %v11197_v11 = vcombine.low %v3146_v20, %v3150_v26 }
 0x228   : > { %12622 = vmatpush3.bf16.msra.mxu0 %v12860_v5  ;;  %12637 = vmatprep.mubr.bf16.mxu0 %v13958_v52  ;;  %v12872_v52 = vld [vmem:[#allocation7 + $0x188] sm:$0xff]   ;;  %v11222_v13 = vcombine.high %v3170_v62, %v3174_v3  ;;  %v11221_v61 = vcombine.low %v3170_v62, %v3174_v3 }
 0x229   : > { %12623 = vmatprep.subr.bf16.mxu0 %v12862_v23  ;;  %v3151_v5 = vld [vmem:[#allocation10 + $0x268] sm:$0xff] }
 0x22a   : > { %12646 = vmatpush3.bf16.msra.mxu1 %v12861_v46  ;;  %v11205_v46 = vcombine.low %v3154_v35, %v3158_v49  ;;  %v11199_v44 = vcombine.low %v3147_v45, %v3151_v5 }
 0x22b   : > { %12647 = vmatprep.subr.bf16.mxu1 %v12863_v53 }
 0x22c   : > { %12624 = vmatpush3.bf16.msra.mxu0 %v12862_v23 }
 0x22d   : > { %12625 = vmatprep.subr.bf16.mxu0 %v12864_v17 }
 0x22e   : > { %12648 = vmatpush3.bf16.msra.mxu1 %v12863_v53  ;;  %v11198_v53 = vcombine.high %v3146_v20, %v3150_v26 }
 0x22f   : > { %12649 = vmatprep.subr.bf16.mxu1 %v12865_v29 }
 0x230   : > { %12626 = vmatpush3.bf16.msra.mxu0 %v12864_v17  ;;  %v3138_v17 = vld [vmem:[#allocation10 + $0x200] sm:$0xff] }
 0x231   : > { %12627 = vmatprep.subr.bf16.mxu0 %v12866_v48 }
 0x232   : > { %12650 = vmatpush3.bf16.msra.mxu1 %v12865_v29  ;;  %v13993_v29 = vld [vmem:[#allocation10 + $0x3d0] sm:$0xff] }
 0x233   : > { %12651 = vmatprep.subr.bf16.mxu1 %v12867_v27 }
 0x234   : > { %12628 = vmatpush3.bf16.msra.mxu0 %v12866_v48  ;;  %v13995_v48 = vld [vmem:[#allocation10 + $0x3f0] sm:$0xff] }
 0x235   : > { %12629 = vmatprep.subr.bf16.mxu0 %v12868_v10  ;;  %v11250_v38 = vcombine.high %v13993_v29, %v13995_v48 }
 0x236   : > { %12652 = vmatpush3.bf16.msra.mxu1 %v12867_v27  ;;  %v11200_v27 = vcombine.high %v3147_v45, %v3151_v5 }
 0x237   : > { %12653 = vmatprep.subr.bf16.mxu1 %v12869_v21 }
 0x238   : > { %12630 = vmatpush3.bf16.msra.mxu0 %v12868_v10  ;;  %v3142_v10 = vld [vmem:[#allocation10 + $0x220] sm:$0xff] }
 0x239   : > { %12631 = vmatprep.subr.bf16.mxu0 %v12870_v40 }
 0x23a   : > { %12654 = vmatpush3.bf16.msra.mxu1 %v12869_v21  ;;  %v11249_v21 = vcombine.low %v13993_v29, %v13995_v48 }
 0x23b   : > { %12655 = vmatprep.subr.bf16.mxu1 %v12871_v39 }
 0x23c   : > { %12632 = vmatpush3.bf16.msra.mxu0 %v12870_v40  ;;  %v13999_v40 = vld [vmem:[#allocation10 + $0x3d8] sm:$0xff] }
 0x23d   : > { %12633 = vmatprep.subr.bf16.mxu0 %v12872_v52 }
 0x23e   : > { %12656 = vmatpush3.bf16.msra.mxu1 %v12871_v39  ;;  %v14001_v39 = vld [vmem:[#allocation10 + $0x3f8] sm:$0xff] }
 0x23f   : > { %3567 = vmatprep.subr.bf16.mxu1 %v11248_v43  ;;  %v11251_v31 = vcombine.low %v13999_v40, %v14001_v39 }
 0x240   : > { %12634 = vmatpush3.bf16.msra.mxu0 %v12872_v52  ;;  %v3139_v52 = vld [vmem:[#allocation10 + $0x208] sm:$0xff] }
 0x241   : > { %12658 = vmatmul.mubr.bf16.vlgmr.msra.gmra.mxu1 %v2947_v8  ;;  %12635 = vmatprep.subr.bf16.mxu0 %v12873_v58  ;;  %v3159_v8 = vld [vmem:[#allocation10 + $0x2a8] sm:$0xff] }
 0x242   : > { %3568 = vmatpush1.bf16.msra.mxu1 %v11247_v6  ;;  %3599 = vmatprep.mubr.bf16.mxu1 %v13123_v14  ;;  %v11208_v42 = vcombine.high %v3155_v55, %v3159_v8  ;;  %v11207_v23 = vcombine.low %v3155_v55, %v3159_v8  ;;  %v11189_v6 = vcombine.low %v3138_v17, %v3142_v10 }
 0x244   : > { %12636 = vmatpush3.bf16.msra.mxu0 %v12873_v58  ;;  %v3143_v58 = vld [vmem:[#allocation10 + $0x228] sm:$0xff] }
 0x245   : > { %3526 = vmatprep.subr.bf16.mxu0 %v11246_v7  ;;  %v11192_v7 = vcombine.high %v3139_v52, %v3143_v58  ;;  %v11191_v18 = vcombine.low %v3139_v52, %v3143_v58 }
 0x247   : > { %12638 = vmatmul.mubr.bf16.vlgmr.msra.gmra.mxu0 %v2822_v28  ;;  %v11240_v28 = vcombine.high %v3187_v24, %v3191_v12 }
 0x248   : > { %3527 = vmatpush1.bf16.msra.mxu0 %v11245_v33  ;;  %3558 = vmatprep.mubr.bf16.mxu0 %v13123_v14  ;;  %v11190_v33 = vcombine.high %v3138_v17, %v3142_v10 }
 0x249   : > { %3528 = vmatprep.subr.bf16.mxu0 %v11238_v19  ;;  %3569 = vmatprep.subr.bf16.mxu1 %v11240_v28  ;;  %v11252_v19 = vcombine.high %v13999_v40, %v14001_v39  ;;  %v3164_v39 = vld [vmem:[#allocation10 + $0x2d0] sm:$0xff] }
 0x24a   : > { %3570 = vmatpush1.bf16.msra.mxu1 %v11239_v9 }
 0x24b   : > { %3571 = vmatprep.subr.bf16.mxu1 %v11232_v51 }
 0x24c   : > { %3529 = vmatpush1.bf16.msra.mxu0 %v11237_v57 }
 0x24d   : > { %3530 = vmatprep.subr.bf16.mxu0 %v11230_v56 }
 0x24e   : > { %3572 = vmatpush1.bf16.msra.mxu1 %v11231_v2 }
 0x24f   : > { %3573 = vmatprep.subr.bf16.mxu1 %v11224_v59 }
 0x250   : > { %3531 = vmatpush1.bf16.msra.mxu0 %v11229_v41 }
 0x251   : > { %3532 = vmatprep.subr.bf16.mxu0 %v11222_v13 }
 0x252   : > { %3574 = vmatpush1.bf16.msra.mxu1 %v11223_v30 }
 0x253   : > { %3575 = vmatprep.subr.bf16.mxu1 %v11216_v25 }
 0x254   : > { %3533 = vmatpush1.bf16.msra.mxu0 %v11221_v61 }
 0x255   : > { %3534 = vmatprep.subr.bf16.mxu0 %v11214_v1 }
 0x256   : > { %3576 = vmatpush1.bf16.msra.mxu1 %v11215_v0 }
 0x257   : > { %3577 = vmatprep.subr.bf16.mxu1 %v11208_v42 }
 0x258   : > { %3535 = vmatpush1.bf16.msra.mxu0 %v11213_v32 }
 0x259   : > { %3536 = vmatprep.subr.bf16.mxu0 %v11206_v16 }
 0x25a   : > { %3578 = vmatpush1.bf16.msra.mxu1 %v11207_v23 }
 0x25b   : > { %3579 = vmatprep.subr.bf16.mxu1 %v11200_v27 }
 0x25c   : > { %3537 = vmatpush1.bf16.msra.mxu0 %v11205_v46 }
 0x25d   : > { %3538 = vmatprep.subr.bf16.mxu0 %v11198_v53  ;;  %v11188_v53 = vld [vmem:[#allocation8] ss:$0 sm:$0xff] }
 0x25e   : > { %3580 = vmatpush1.bf16.msra.mxu1 %v11199_v44 }
 0x25f   : > { %3581 = vmatprep.subr.bf16.mxu1 %v11192_v7 }
 0x260   : > { %3539 = vmatpush1.bf16.msra.mxu0 %v11197_v11 }
 0x261   : > { %3540 = vmatprep.subr.bf16.mxu0 %v11190_v33 }
 0x262   : > { %3582 = vmatpush1.bf16.msra.mxu1 %v11191_v18 }
 0x263   : > { %3649 = vmatprep.subr.bf16.mxu1 %v11252_v19 }
 0x264   : > { %3541 = vmatpush1.bf16.msra.mxu0 %v11189_v6 }
 0x265   : > { %3608 = vmatprep.subr.bf16.mxu0 %v11250_v38 }
 0x2a1   : > { %v12539_v4 = vpop.f32.mrf.mxu1 }
 0x2a3   : > { %v2296_v43 = vpop.f32.mrf.mxu1 }
 0x2a5   : > { %v12540_v24 = vpop.f32.mrf.mxu1 }
 0x2a7   : > { %v12519_v12 = vpop.f32.mrf.mxu0  ;;  %v2299_v47 = vpop.f32.mrf.mxu1 }
 0x2a8   : > { %v2305_v57 = vadd.f32 %v12539_v4, %v12519_v12 }
 0x2a9   : > { %v2200_v9 = vpop.f32.mrf.mxu0 }
 0x2aa   : > { %v2297_v28 = vadd.f32 %v2296_v43, %v2200_v9 }
 0x2ab   : > { %v12520_v60 = vpop.f32.mrf.mxu0 }
 0x2ad   : > { %v2203_v34 = vpop.f32.mrf.mxu0 }
 0x2ae   : > { %v2300_v35 = vadd.f32 %v2299_v47, %v2203_v34  ;;  %v3188_v47 = vld [vmem:[#allocation10 + $0x390] sm:$0xff]  ;;  %v3193_v34 = vld [vmem:[#allocation10 + $0x3b8] sm:$0xff] }
 0x2c1   : > { %v12579_v22 = vpop.f32.mrf.mxu1 }
 0x2c3   : > { %v2541_v56 = vpop.f32.mrf.mxu1 }
 0x2c5   : > { %v12580_v41 = vpop.f32.mrf.mxu1 }
 0x2c7   : > { %v12559_v2 = vpop.f32.mrf.mxu0  ;;  %v2544_v61 = vpop.f32.mrf.mxu1 }
 0x2c8   : > { %v2432_v51 = vadd.f32 %v12559_v2, %v2305_v57 }
 0x2c9   : > { %v2416_v62 = vpop.f32.mrf.mxu0 }
 0x2ca   : > { %v2430_v3 = vadd.f32 %v2416_v62, %v2297_v28  ;;  %v2557_v15 = vadd.f32 %v12579_v22, %v2432_v51  ;;  %v3192_v22 = vld [vmem:[#allocation10 + $0x3b0] sm:$0xff] }
 0x2cb   : > { %v12560_v13 = vpop.f32.mrf.mxu0  ;;  %v11242_v51 = vcombine.high %v3188_v47, %v3192_v22 }
 0x2cc   : > { %v2555_v54 = vadd.f32 %v2541_v56, %v2430_v3  ;;  %v3189_v56 = vld [vmem:[#allocation10 + $0x398] sm:$0xff]  ;;  %v3180_v3 = vld [vmem:[#allocation10 + $0x350] sm:$0xff] }
 0x2cd   : > { %v2419_v36 = vpop.f32.mrf.mxu0  ;;  %v11244_v62 = vcombine.high %v3189_v56, %v3193_v34  ;;  %v3181_v13 = vld [vmem:[#allocation10 + $0x358] sm:$0xff] }
 0x2ce   : > { %v2431_v0 = vadd.f32 %v2419_v36, %v2300_v35  ;;  %v3169_v35 = vld [vmem:[#allocation10 + $0x2f8] sm:$0xff] }
 0x2d0   : > { %v2556_v42 = vadd.f32 %v2544_v61, %v2431_v0  ;;  %v11241_v61 = vcombine.low %v3188_v47, %v3192_v22  ;;  %v3121_v22 = vld [vmem:[#allocation10 + $0x180] sm:$0xff] }
 0x2e1   : > { %v12619_v30 = vpop.f32.mrf.mxu1 }
 0x2e3   : > { %v2787_v59 = vpop.f32.mrf.mxu1 }
 0x2e5   : > { %v12620_v63 = vpop.f32.mrf.mxu1 }
 0x2e6   : > { %v3172_v63 = vld [vmem:[#allocation10 + $0x310] sm:$0xff] }
 0x2e7   : > { %v12599_v50 = vpop.f32.mrf.mxu0  ;;  %v2790_v37 = vpop.f32.mrf.mxu1 }
 0x2e8   : > { %v2678_v25 = vadd.f32 %v12599_v50, %v2557_v15  ;;  %v3184_v15 = vld [vmem:[#allocation10 + $0x370] sm:$0xff] }
 0x2e9   : > { %v2662_v32 = vpop.f32.mrf.mxu0  ;;  %v3176_v50 = vld [vmem:[#allocation10 + $0x330] sm:$0xff]  ;;  %v11233_v29 = vcombine.low %v3180_v3, %v3184_v15 }
 0x2ea   : > { %v2676_v55 = vadd.f32 %v2662_v32, %v2555_v54  ;;  %v2803_v26 = vadd.f32 %v12619_v30, %v2678_v25  ;;  %v3185_v54 = vld [vmem:[#allocation10 + $0x378] sm:$0xff]  ;;  %v11243_v30 = vcombine.low %v3189_v56, %v3193_v34  ;;  %v3125_v56 = vld [vmem:[#allocation10 + $0x1a0] sm:$0xff]  ;;  %v3122_v34 = vld [vmem:[#allocation10 + $0x188] sm:$0xff] }
 0x2eb   : > { %v12600_v1 = vpop.f32.mrf.mxu0  ;;  %v11236_v36 = vcombine.high %v3181_v13, %v3185_v54  ;;  %v3173_v32 = vld [vmem:[#allocation10 + $0x318] sm:$0xff]  ;;  %v11235_v48 = vcombine.low %v3181_v13, %v3185_v54  ;;  %v3113_v54 = vld [vmem:[#allocation10 + $0x140] sm:$0xff] }
 0x2ec   : > { %v2801_v23 = vadd.f32 %v2787_v59, %v2676_v55  ;;  %v11234_v59 = vcombine.high %v3180_v3, %v3184_v15  ;;  %v3177_v1 = vld [vmem:[#allocation10 + $0x338] sm:$0xff]  ;;  %v3156_v55 = vld [vmem:[#allocation10 + $0x290] sm:$0xff]  ;;  %v11302_v15 = vcombine.high %v3121_v22, %v3125_v56 }
 0x2ed   : > { %v2665_v8 = vpop.f32.mrf.mxu0  ;;  %v11228_v40 = vcombine.high %v3173_v32, %v3177_v1  ;;  %v11227_v0 = vcombine.low %v3173_v32, %v3177_v1  ;;  %v3105_v1 = vld [vmem:[#allocation10 + $0x100] sm:$0xff] }
 0x2ee   : > { %v2677_v5 = vadd.f32 %v2665_v8, %v2556_v42  ;;  %v3160_v8 = vld [vmem:[#allocation10 + $0x2b0] sm:$0xff]  ;;  %v3161_v42 = vld [vmem:[#allocation10 + $0x2b8] sm:$0xff] }
 0x2f0   : > { %v2802_v44 = vadd.f32 %v2790_v37, %v2677_v5  ;;  %v3165_v37 = vld [vmem:[#allocation10 + $0x2d8] sm:$0xff]  ;;  %v11210_v5 = vcombine.high %v3156_v55, %v3160_v8 }
 0x301   : > { %v12659_v49 = vpop.f32.mrf.mxu1 }
 0x303   : > { %v3033_v16 = vpop.f32.mrf.mxu1 }
 0x305   : > { %v12660_v20 = vpop.f32.mrf.mxu1 }
 0x306   : > { %v3157_v20 = vld [vmem:[#allocation10 + $0x298] sm:$0xff] }
 0x307   : > { %v12639_v45 = vpop.f32.mrf.mxu0  ;;  %v3036_v43 = vpop.f32.mrf.mxu1 }
 0x308   : > { %v2924_v46 = vadd.f32 %v12639_v45, %v2803_v26  ;;  %v11219_v45 = vcombine.low %v3165_v37, %v3169_v35 }
 0x309   : > { %v2908_v17 = vpop.f32.mrf.mxu0 }
 0x30a   : > { %v3049_v27 = vadd.f32 %v12659_v49, %v2924_v46  ;;  %v2922_v10 = vadd.f32 %v2908_v17, %v2801_v23  ;;  %v11225_v49 = vcombine.low %v3172_v63, %v3176_v50  ;;  %v11212_v46 = vcombine.high %v3157_v20, %v3161_v42  ;;  %v3148_v23 = vld [vmem:[#allocation10 + $0x250] sm:$0xff]  ;;  %v3149_v17 = vld [vmem:[#allocation10 + $0x258] sm:$0xff] }
 0x30b   : > { %v12640_v52 = vpop.f32.mrf.mxu0 }
 0x30c   : > { %v3059_v58 = vadd.f32 %v11188_v53, %v3049_v27  ;;  %v3047_v11 = vadd.f32 %v3033_v16, %v2922_v10  ;;  %v11220_v16 = vcombine.high %v3165_v37, %v3169_v35  ;;  %v3153_v27 = vld [vmem:[#allocation10 + $0x278] sm:$0xff]  ;;  %v11209_v10 = vcombine.low %v3156_v55, %v3160_v8  ;;  %v3097_v35 = vld [vmem:[#allocation10 + $0xc0] sm:$0xff] }
 0x30d   : > { %v2911_v33 = vpop.f32.mrf.mxu0  ;;  %v11211_v52 = vcombine.low %v3157_v20, %v3161_v42  ;;  %v3089_v42 = vld [vmem:[#allocation10 + $0x80] sm:$0xff] }
 0x30e   : > { %v3062_v7 = vmax.f32 %v3059_v58, 0.0  ;;  %v3057_v4 = vadd.f32 %v11188_v53, %v3047_v11  ;;  %v2923_v6 = vadd.f32 %v2911_v33, %v2802_v44  ;;  %v11204_v11 = vcombine.high %v3149_v17, %v3153_v27  ;;  %v3140_v44 = vld [vmem:[#allocation10 + $0x210] sm:$0xff] }
 0x30f   : > { %v3144_v33 = vld [vmem:[#allocation10 + $0x230] sm:$0xff] }
 0x310   : > { %3065 = vst [vmem:[#allocation2 + $0x10] sm:$0x1f] %v3062_v7  ;;  %v3060_v18 = vmax.f32 %v3057_v4, 0.0  ;;  %v3048_v38 = vadd.f32 %v3036_v43, %v2923_v6  ;;  %v3141_v7 = vld [vmem:[#allocation10 + $0x218] sm:$0xff]  ;;  %v11203_v43 = vcombine.low %v3149_v17, %v3153_v27  ;;  %v3081_v27 = vld [vmem:[#allocation10 + $0x40] sm:$0xff] }
 0x311   : > { %v3145_v4 = vld [vmem:[#allocation10 + $0x238] sm:$0xff] }
 0x312   : > { %3063 = vst [vmem:[#allocation2] sm:$0xff] %v3060_v18  ;;  %v3058_v19 = vadd.f32 %v11188_v53, %v3048_v38  ;;  %v3152_v53 = vld [vmem:[#allocation10 + $0x270] sm:$0xff]  ;;  %v11194_v18 = vcombine.high %v3140_v44, %v3144_v33  ;;  %v11196_v38 = vcombine.high %v3141_v7, %v3145_v4 }
 0x313   : > { %v11202_v58 = vcombine.high %v3148_v23, %v3152_v53  ;;  %v11201_v6 = vcombine.low %v3148_v23, %v3152_v53 }
 0x314   : > { %v3061_v24 = vmax.f32 %v3058_v19, 0.0  ;;  %v3129_v19 = vld [vmem:[#allocation10 + $0x1c0] sm:$0xff] }
 0x316   : > { %3064 = vst [vmem:[#allocation2 + $0x8] sm:$0xff] %v3061_v24  ;;  %v3133_v24 = vld [vmem:[#allocation10 + $0x1e0] sm:$0xff] }
 0x31d   : > { %v3066_v12 = vld [vmem:[#allocation2] ss:$3 sm:$0x7f]  ;;  %v3068_v57 = vld [vmem:[#allocation2 + $0x1] ss:$3 sm:$0x7f] }
 0x31e   : > { %v3069_v9 = vmax.f32 %v3066_v12, %v3068_v57  ;;  %v3070_v28 = vld [vmem:[#allocation2 + $0x2] ss:$3 sm:$0x7f] }
 0x31f   : > { %v3130_v12 = vld [vmem:[#allocation10 + $0x1c8] sm:$0xff] }
 0x320   : > { %v3071_v60 = vmax.f32 %v3069_v9, %v3070_v28  ;;  %v3134_v57 = vld [vmem:[#allocation10 + $0x1e8] sm:$0xff]  ;;  %v11193_v9 = vcombine.low %v3140_v44, %v3144_v33  ;;  %v11195_v28 = vcombine.low %v3141_v7, %v3145_v4  ;;  %v3073_v4 = vld [vmem:[#allocation10] sm:$0xff] }
 0x321   : > { %v11312_v47 = vcombine.high %v3130_v12, %v3134_v57  ;;  %v11311_v3 = vcombine.low %v3130_v12, %v3134_v57  ;;  %v3131_v57 = vld [vmem:[#allocation10 + $0x1d0] sm:$0xff] }
 0x322   : > { %v14009_v41 = vpack.c.bf16 %v3071_v60, %v3071_v60  ;;  %v11310_v60 = vcombine.high %v3129_v19, %v3133_v24 }
 0x324   : > { %v14012_v2 = vshrl.u32 %v14009_v41, 16 }
 0x326   : > { %3559 = vmatmul.mubr.bf16.vlgmr.msra.gmra.mxu0 %v14012_v2  ;;  %3600 = vmatmul.mubr.bf16.vlgmr.msra.gmra.mxu1 %v14012_v2 }
 0x327   : > { %3609 = vmatpush1.bf16.msra.mxu0 %v11249_v21  ;;  %3650 = vmatpush1.bf16.msra.mxu1 %v11251_v31  ;;  %v11226_v21 = vcombine.high %v3172_v63, %v3176_v50  ;;  %v3168_v31 = vld [vmem:[#allocation10 + $0x2f0] sm:$0xff] }
 0x328   : > { %3610 = vmatprep.subr.bf16.mxu0 %v11242_v51  ;;  %3651 = vmatprep.subr.bf16.mxu1 %v11244_v62  ;;  %v11218_v25 = vcombine.high %v3164_v39, %v3168_v31  ;;  %v11217_v26 = vcombine.low %v3164_v39, %v3168_v31  ;;  %v3126_v51 = vld [vmem:[#allocation10 + $0x1a8] sm:$0xff]  ;;  %v11309_v62 = vcombine.low %v3129_v19, %v3133_v24 }
 0x329   : > { %3640 = vmatprep.mubr.bf16.mxu0 %v13123_v14  ;;  %3681 = vmatprep.mubr.bf16.mxu1 %v13123_v14  ;;  %v11304_v13 = vcombine.high %v3122_v34, %v3126_v51  ;;  %v11303_v63 = vcombine.low %v3122_v34, %v3126_v51  ;;  %v3123_v51 = vld [vmem:[#allocation10 + $0x190] sm:$0xff] }
 0x32b   : > { %3611 = vmatpush1.bf16.msra.mxu0 %v11241_v61  ;;  %3652 = vmatpush1.bf16.msra.mxu1 %v11243_v30  ;;  %v3117_v61 = vld [vmem:[#allocation10 + $0x160] sm:$0xff]  ;;  %v3114_v30 = vld [vmem:[#allocation10 + $0x148] sm:$0xff] }
 0x32c   : > { %3612 = vmatprep.subr.bf16.mxu0 %v11234_v59  ;;  %3653 = vmatprep.subr.bf16.mxu1 %v11236_v36  ;;  %v3118_v59 = vld [vmem:[#allocation10 + $0x168] sm:$0xff]  ;;  %v11301_v36 = vcombine.low %v3121_v22, %v3125_v56  ;;  %v11294_v50 = vcombine.high %v3113_v54, %v3117_v61 }
 0x32d   : > { %v11296_v32 = vcombine.high %v3114_v30, %v3118_v59  ;;  %v11295_v39 = vcombine.low %v3114_v30, %v3118_v59  ;;  %v3115_v59 = vld [vmem:[#allocation10 + $0x150] sm:$0xff] }
 0x32f   : > { %3613 = vmatpush1.bf16.msra.mxu0 %v11233_v29  ;;  %3654 = vmatpush1.bf16.msra.mxu1 %v11235_v48  ;;  %v3109_v29 = vld [vmem:[#allocation10 + $0x120] sm:$0xff]  ;;  %v3106_v48 = vld [vmem:[#allocation10 + $0x108] sm:$0xff] }
 0x330   : > { %3614 = vmatprep.subr.bf16.mxu0 %v11226_v21  ;;  %3655 = vmatprep.subr.bf16.mxu1 %v11228_v40  ;;  %v3110_v21 = vld [vmem:[#allocation10 + $0x128] sm:$0xff]  ;;  %v11293_v40 = vcombine.low %v3113_v54, %v3117_v61  ;;  %v11286_v31 = vcombine.high %v3105_v1, %v3109_v29 }
 0x331   : > { %v11288_v37 = vcombine.high %v3106_v48, %v3110_v21  ;;  %v11287_v55 = vcombine.low %v3106_v48, %v3110_v21  ;;  %v3107_v21 = vld [vmem:[#allocation10 + $0x110] sm:$0xff] }
 0x333   : > { %3615 = vmatpush1.bf16.msra.mxu0 %v11225_v49  ;;  %3656 = vmatpush1.bf16.msra.mxu1 %v11227_v0  ;;  %v3101_v49 = vld [vmem:[#allocation10 + $0xe0] sm:$0xff]  ;;  %v3098_v0 = vld [vmem:[#allocation10 + $0xc8] sm:$0xff] }
 0x334   : > { %3616 = vmatprep.subr.bf16.mxu0 %v11218_v25  ;;  %3657 = vmatprep.subr.bf16.mxu1 %v11220_v16  ;;  %v3102_v25 = vld [vmem:[#allocation10 + $0xe8] sm:$0xff]  ;;  %v11285_v16 = vcombine.low %v3105_v1, %v3109_v29  ;;  %v11278_v8 = vcombine.high %v3097_v35, %v3101_v49 }
 0x335   : > { %v11280_v20 = vcombine.high %v3098_v0, %v3102_v25  ;;  %v11279_v23 = vcombine.low %v3098_v0, %v3102_v25  ;;  %v3099_v25 = vld [vmem:[#allocation10 + $0xd0] sm:$0xff] }
 0x337   : > { %3617 = vmatpush1.bf16.msra.mxu0 %v11217_v26  ;;  %3658 = vmatpush1.bf16.msra.mxu1 %v11219_v45  ;;  %v3093_v26 = vld [vmem:[#allocation10 + $0xa0] sm:$0xff]  ;;  %v3090_v45 = vld [vmem:[#allocation10 + $0x88] sm:$0xff] }
 0x338   : > { %3618 = vmatprep.subr.bf16.mxu0 %v11210_v5  ;;  %3659 = vmatprep.subr.bf16.mxu1 %v11212_v46  ;;  %v3094_v5 = vld [vmem:[#allocation10 + $0xa8] sm:$0xff]  ;;  %v11277_v46 = vcombine.low %v3097_v35, %v3101_v49  ;;  %v11270_v53 = vcombine.high %v3089_v42, %v3093_v26 }
 0x339   : > { %v11272_v17 = vcombine.high %v3090_v45, %v3094_v5  ;;  %v11271_v44 = vcombine.low %v3090_v45, %v3094_v5  ;;  %v3091_v5 = vld [vmem:[#allocation10 + $0x90] sm:$0xff] }
 0x33b   : > { %3619 = vmatpush1.bf16.msra.mxu0 %v11209_v10  ;;  %3660 = vmatpush1.bf16.msra.mxu1 %v11211_v52  ;;  %v3085_v10 = vld [vmem:[#allocation10 + $0x60] sm:$0xff]  ;;  %v3082_v52 = vld [vmem:[#allocation10 + $0x48] sm:$0xff] }
 0x33c   : > { %3620 = vmatprep.subr.bf16.mxu0 %v11202_v58  ;;  %3661 = vmatprep.subr.bf16.mxu1 %v11204_v11  ;;  %v3086_v58 = vld [vmem:[#allocation10 + $0x68] sm:$0xff]  ;;  %v11269_v11 = vcombine.low %v3089_v42, %v3093_v26  ;;  %v11262_v33 = vcombine.high %v3081_v27, %v3085_v10 }
 0x33d   : > { %v11264_v7 = vcombine.high %v3082_v52, %v3086_v58  ;;  %v11263_v19 = vcombine.low %v3082_v52, %v3086_v58  ;;  %v3083_v58 = vld [vmem:[#allocation10 + $0x50] sm:$0xff] }
 0x33f   : > { %3621 = vmatpush1.bf16.msra.mxu0 %v11201_v6  ;;  %3662 = vmatpush1.bf16.msra.mxu1 %v11203_v43  ;;  %v3077_v6 = vld [vmem:[#allocation10 + $0x20] sm:$0xff]  ;;  %v3074_v43 = vld [vmem:[#allocation10 + $0x8] sm:$0xff] }
 0x340   : > { %3622 = vmatprep.subr.bf16.mxu0 %v11194_v18  ;;  %3663 = vmatprep.subr.bf16.mxu1 %v11196_v38  ;;  %v3078_v18 = vld [vmem:[#allocation10 + $0x28] sm:$0xff]  ;;  %v11261_v38 = vcombine.low %v3081_v27, %v3085_v10  ;;  %v11254_v24 = vcombine.high %v3073_v4, %v3077_v6 }
 0x341   : > { %v11256_v12 = vcombine.high %v3074_v43, %v3078_v18  ;;  %v11255_v22 = vcombine.low %v3074_v43, %v3078_v18  ;;  %v3075_v18 = vld [vmem:[#allocation10 + $0x10] sm:$0xff] }
 0x343   : > { %3623 = vmatpush1.bf16.msra.mxu0 %v11193_v9  ;;  %3664 = vmatpush1.bf16.msra.mxu1 %v11195_v28  ;;  %v3135_v9 = vld [vmem:[#allocation10 + $0x1f0] sm:$0xff]  ;;  %v3132_v28 = vld [vmem:[#allocation10 + $0x1d8] sm:$0xff] }
 0x344   : > { %4010 = vmatprep.subr.bf16.mxu0 %v11310_v60  ;;  %4051 = vmatprep.subr.bf16.mxu1 %v11312_v47  ;;  %v3136_v60 = vld [vmem:[#allocation10 + $0x1f8] sm:$0xff]  ;;  %v11253_v47 = vcombine.low %v3073_v4, %v3077_v6  ;;  %v11314_v56 = vcombine.high %v3131_v57, %v3135_v9 }
 0x345   : > { %v11316_v34 = vcombine.high %v3132_v28, %v3136_v60  ;;  %v11315_v54 = vcombine.low %v3132_v28, %v3136_v60  ;;  %v4231_v60 = vld [vmem:[#allocation10 + $0x5c0] sm:$0xff] }
 0x346   : > { %3641 = vmatmul.mubr.bf16.vlgmr.msra.gmra.mxu0 %v14012_v2  ;;  %3682 = vmatmul.mubr.bf16.vlgmr.msra.gmra.mxu1 %v14012_v2 }
 0x347   : > { %4011 = vmatpush1.bf16.msra.mxu0 %v11309_v62  ;;  %4052 = vmatpush1.bf16.msra.mxu1 %v11311_v3  ;;  %v3127_v62 = vld [vmem:[#allocation10 + $0x1b0] sm:$0xff]  ;;  %v3124_v3 = vld [vmem:[#allocation10 + $0x198] sm:$0xff] }
 0x348   : > { %4012 = vmatprep.subr.bf16.mxu0 %v11302_v15  ;;  %4053 = vmatprep.subr.bf16.mxu1 %v11304_v13  ;;  %v3128_v15 = vld [vmem:[#allocation10 + $0x1b8] sm:$0xff]  ;;  %v11313_v13 = vcombine.low %v3131_v57, %v3135_v9  ;;  %v11306_v61 = vcombine.high %v3123_v51, %v3127_v62 }
 0x349   : > { %4042 = vmatprep.mubr.bf16.mxu0 %v13123_v14  ;;  %4083 = vmatprep.mubr.bf16.mxu1 %v13123_v14  ;;  %v11308_v30 = vcombine.high %v3124_v3, %v3128_v15  ;;  %v11307_v1 = vcombine.low %v3124_v3, %v3128_v15  ;;  %v4223_v15 = vld [vmem:[#allocation10 + $0x580] sm:$0xff] }
 0x34b   : > { %4013 = vmatpush1.bf16.msra.mxu0 %v11301_v36  ;;  %4054 = vmatpush1.bf16.msra.mxu1 %v11303_v63  ;;  %v3119_v36 = vld [vmem:[#allocation10 + $0x170] sm:$0xff]  ;;  %v3116_v63 = vld [vmem:[#allocation10 + $0x158] sm:$0xff] }
 0x34c   : > { %4014 = vmatprep.subr.bf16.mxu0 %v11294_v50  ;;  %4055 = vmatprep.subr.bf16.mxu1 %v11296_v32  ;;  %v3120_v50 = vld [vmem:[#allocation10 + $0x178] sm:$0xff]  ;;  %v11305_v32 = vcombine.low %v3123_v51, %v3127_v62  ;;  %v11298_v29 = vcombine.high %v3115_v59, %v3119_v36 }
 0x34d   : > { %v11300_v48 = vcombine.high %v3116_v63, %v3120_v50  ;;  %v11299_v35 = vcombine.low %v3116_v63, %v3120_v50  ;;  %v4215_v50 = vld [vmem:[#allocation10 + $0x540] sm:$0xff] }
 0x34f   : > { %4015 = vmatpush1.bf16.msra.mxu0 %v11293_v40  ;;  %4056 = vmatpush1.bf16.msra.mxu1 %v11295_v39  ;;  %v3111_v40 = vld [vmem:[#allocation10 + $0x130] sm:$0xff]  ;;  %v3108_v39 = vld [vmem:[#allocation10 + $0x118] sm:$0xff] }
 0x350   : > { %4016 = vmatprep.subr.bf16.mxu0 %v11286_v31  ;;  %4057 = vmatprep.subr.bf16.mxu1 %v11288_v37  ;;  %v3112_v31 = vld [vmem:[#allocation10 + $0x138] sm:$0xff]  ;;  %v11297_v37 = vcombine.low %v3115_v59, %v3119_v36  ;;  %v11290_v49 = vcombine.high %v3107_v21, %v3111_v40 }
 0x351   : > { %v11292_v0 = vcombine.high %v3108_v39, %v3112_v31  ;;  %v11291_v42 = vcombine.low %v3108_v39, %v3112_v31  ;;  %v4207_v31 = vld [vmem:[#allocation10 + $0x500] sm:$0xff] }
 0x353   : > { %4017 = vmatpush1.bf16.msra.mxu0 %v11285_v16  ;;  %4058 = vmatpush1.bf16.msra.mxu1 %v11287_v55  ;;  %v3103_v16 = vld [vmem:[#allocation10 + $0xf0] sm:$0xff]  ;;  %v3100_v55 = vld [vmem:[#allocation10 + $0xd8] sm:$0xff] }
 0x354   : > { %4018 = vmatprep.subr.bf16.mxu0 %v11278_v8  ;;  %4059 = vmatprep.subr.bf16.mxu1 %v11280_v20  ;;  %v3104_v8 = vld [vmem:[#allocation10 + $0xf8] sm:$0xff]  ;;  %v11289_v20 = vcombine.low %v3107_v21, %v3111_v40  ;;  %v11282_v26 = vcombine.high %v3099_v25, %v3103_v16 }
 0x355   : > { %v11284_v45 = vcombine.high %v3100_v55, %v3104_v8  ;;  %v11283_v27 = vcombine.low %v3100_v55, %v3104_v8  ;;  %v4199_v8 = vld [vmem:[#allocation10 + $0x4c0] sm:$0xff] }
 0x357   : > { %4019 = vmatpush1.bf16.msra.mxu0 %v11277_v46  ;;  %4060 = vmatpush1.bf16.msra.mxu1 %v11279_v23  ;;  %v3095_v46 = vld [vmem:[#allocation10 + $0xb0] sm:$0xff]  ;;  %v3092_v23 = vld [vmem:[#allocation10 + $0x98] sm:$0xff] }
 0x358   : > { %4020 = vmatprep.subr.bf16.mxu0 %v11270_v53  ;;  %4061 = vmatprep.subr.bf16.mxu1 %v11272_v17  ;;  %v3096_v53 = vld [vmem:[#allocation10 + $0xb8] sm:$0xff]  ;;  %v11281_v17 = vcombine.low %v3099_v25, %v3103_v16  ;;  %v11274_v10 = vcombine.high %v3091_v5, %v3095_v46 }
 0x359   : > { %v11276_v52 = vcombine.high %v3092_v23, %v3096_v53  ;;  %v11275_v4 = vcombine.low %v3092_v23, %v3096_v53  ;;  %v4191_v53 = vld [vmem:[#allocation10 + $0x480] sm:$0xff] }
 0x35b   : > { %4021 = vmatpush1.bf16.msra.mxu0 %v11269_v11  ;;  %4062 = vmatpush1.bf16.msra.mxu1 %v11271_v44  ;;  %v3087_v11 = vld [vmem:[#allocation10 + $0x70] sm:$0xff]  ;;  %v3084_v44 = vld [vmem:[#allocation10 + $0x58] sm:$0xff] }
 0x35c   : > { %4022 = vmatprep.subr.bf16.mxu0 %v11262_v33  ;;  %4063 = vmatprep.subr.bf16.mxu1 %v11264_v7  ;;  %v3088_v33 = vld [vmem:[#allocation10 + $0x78] sm:$0xff]  ;;  %v11273_v7 = vcombine.low %v3091_v5, %v3095_v46  ;;  %v11266_v6 = vcombine.high %v3083_v58, %v3087_v11 }
 0x35d   : > { %v11268_v43 = vcombine.high %v3084_v44, %v3088_v33  ;;  %v11267_v57 = vcombine.low %v3084_v44, %v3088_v33  ;;  %v4183_v33 = vld [vmem:[#allocation10 + $0x440] sm:$0xff] }
 0x35f   : > { %4023 = vmatpush1.bf16.msra.mxu0 %v11261_v38  ;;  %4064 = vmatpush1.bf16.msra.mxu1 %v11263_v19  ;;  %v3079_v38 = vld [vmem:[#allocation10 + $0x30] sm:$0xff]  ;;  %v3076_v19 = vld [vmem:[#allocation10 + $0x18] sm:$0xff] }
 0x360   : > { %4024 = vmatprep.subr.bf16.mxu0 %v11254_v24  ;;  %4065 = vmatprep.subr.bf16.mxu1 %v11256_v12  ;;  %v3080_v24 = vld [vmem:[#allocation10 + $0x38] sm:$0xff]  ;;  %v11265_v12 = vcombine.low %v3083_v58, %v3087_v11  ;;  %v11258_v9 = vcombine.high %v3075_v18, %v3079_v38 }
 0x361   : > { %v11260_v28 = vcombine.high %v3076_v19, %v3080_v24  ;;  %v11259_v51 = vcombine.low %v3076_v19, %v3080_v24  ;;  %v4175_v24 = vld [vmem:[#allocation10 + $0x400] sm:$0xff] }
 0x363   : > { %4025 = vmatpush1.bf16.msra.mxu0 %v11253_v47  ;;  %4066 = vmatpush1.bf16.msra.mxu1 %v11255_v22  ;;  %v4235_v47 = vld [vmem:[#allocation10 + $0x5e0] sm:$0xff]  ;;  %v4232_v22 = vld [vmem:[#allocation10 + $0x5c8] sm:$0xff] }
 0x364   : > { %4092 = vmatprep.subr.bf16.mxu0 %v11314_v56  ;;  %4133 = vmatprep.subr.bf16.mxu1 %v11316_v34  ;;  %v4236_v56 = vld [vmem:[#allocation10 + $0x5e8] sm:$0xff]  ;;  %v11257_v34 = vcombine.low %v3075_v18, %v3079_v38  ;;  %v11374_v62 = vcombine.high %v4231_v60, %v4235_v47 }
 0x365   : > { %v11376_v3 = vcombine.high %v4232_v22, %v4236_v56  ;;  %v11375_v59 = vcombine.low %v4232_v22, %v4236_v56  ;;  %v4233_v56 = vld [vmem:[#allocation10 + $0x5d0] sm:$0xff] }
 0x366   : > { %4043 = vmatmul.mubr.bf16.vlgmr.msra.gmra.mxu0 %v14009_v41  ;;  %4084 = vmatmul.mubr.bf16.vlgmr.msra.gmra.mxu1 %v14009_v41 }
 0x367   : > { %4093 = vmatpush1.bf16.msra.mxu0 %v11313_v13  ;;  %4134 = vmatpush1.bf16.msra.mxu1 %v11315_v54  ;;  %v4227_v13 = vld [vmem:[#allocation10 + $0x5a0] sm:$0xff]  ;;  %v4224_v54 = vld [vmem:[#allocation10 + $0x588] sm:$0xff] }
 0x368   : > { %4094 = vmatprep.subr.bf16.mxu0 %v11306_v61  ;;  %4135 = vmatprep.subr.bf16.mxu1 %v11308_v30  ;;  %v4228_v61 = vld [vmem:[#allocation10 + $0x5a8] sm:$0xff]  ;;  %v11373_v30 = vcombine.low %v4231_v60, %v4235_v47  ;;  %v11366_v36 = vcombine.high %v4223_v15, %v4227_v13 }
 0x369   : > { %4124 = vmatprep.mubr.bf16.mxu0 %v13123_v14  ;;  %4165 = vmatprep.mubr.bf16.mxu1 %v13123_v14  ;;  %v11368_v63 = vcombine.high %v4224_v54, %v4228_v61  ;;  %v11367_v21 = vcombine.low %v4224_v54, %v4228_v61  ;;  %v4225_v61 = vld [vmem:[#allocation10 + $0x590] sm:$0xff] }
 0x36b   : > { %4095 = vmatpush1.bf16.msra.mxu0 %v11305_v32  ;;  %4136 = vmatpush1.bf16.msra.mxu1 %v11307_v1  ;;  %v4219_v32 = vld [vmem:[#allocation10 + $0x560] sm:$0xff]  ;;  %v4216_v1 = vld [vmem:[#allocation10 + $0x548] sm:$0xff] }
 0x36c   : > { %4096 = vmatprep.subr.bf16.mxu0 %v11298_v29  ;;  %4137 = vmatprep.subr.bf16.mxu1 %v11300_v48  ;;  %v4220_v29 = vld [vmem:[#allocation10 + $0x568] sm:$0xff]  ;;  %v11365_v48 = vcombine.low %v4223_v15, %v4227_v13  ;;  %v11358_v40 = vcombine.high %v4215_v50, %v4219_v32 }
 0x36d   : > { %v11360_v39 = vcombine.high %v4216_v1, %v4220_v29  ;;  %v11359_v25 = vcombine.low %v4216_v1, %v4220_v29 }
 0x36f   : > { %4097 = vmatpush1.bf16.msra.mxu0 %v11297_v37  ;;  %4138 = vmatpush1.bf16.msra.mxu1 %v11299_v35  ;;  %v4211_v37 = vld [vmem:[#allocation10 + $0x520] sm:$0xff]  ;;  %v4208_v35 = vld [vmem:[#allocation10 + $0x508] sm:$0xff] }
 0x370   : > { %4098 = vmatprep.subr.bf16.mxu0 %v11290_v49  ;;  %4139 = vmatprep.subr.bf16.mxu1 %v11292_v0  ;;  %v4212_v49 = vld [vmem:[#allocation10 + $0x528] sm:$0xff]  ;;  %v11357_v0 = vcombine.low %v4215_v50, %v4219_v32  ;;  %v11350_v16 = vcombine.high %v4207_v31, %v4211_v37  ;;  %v14037_v32 = vrot.slane %v14009_v41, 1 }
 0x371   : > { %v11352_v55 = vcombine.high %v4208_v35, %v4212_v49  ;;  %v11351_v5 = vcombine.low %v4208_v35, %v4212_v49 }
 0x373   : > { %4099 = vmatpush1.bf16.msra.mxu0 %v11289_v20  ;;  %4140 = vmatpush1.bf16.msra.mxu1 %v11291_v42  ;;  %v4203_v20 = vld [vmem:[#allocation10 + $0x4e0] sm:$0xff]  ;;  %v4200_v42 = vld [vmem:[#allocation10 + $0x4c8] sm:$0xff] }
 0x374   : > { %4100 = vmatprep.subr.bf16.mxu0 %v11282_v26  ;;  %4141 = vmatprep.subr.bf16.mxu1 %v11284_v45  ;;  %v4204_v26 = vld [vmem:[#allocation10 + $0x4e8] sm:$0xff]  ;;  %v11349_v45 = vcombine.low %v4207_v31, %v4211_v37  ;;  %v11342_v46 = vcombine.high %v4199_v8, %v4203_v20 }
 0x375   : > { %v11344_v23 = vcombine.high %v4200_v42, %v4204_v26  ;;  %v11343_v58 = vcombine.low %v4200_v42, %v4204_v26 }
 0x377   : > { %4101 = vmatpush1.bf16.msra.mxu0 %v11281_v17  ;;  %4142 = vmatpush1.bf16.msra.mxu1 %v11283_v27  ;;  %v4195_v17 = vld [vmem:[#allocation10 + $0x4a0] sm:$0xff]  ;;  %v4192_v27 = vld [vmem:[#allocation10 + $0x488] sm:$0xff] }
 0x378   : > { %4102 = vmatprep.subr.bf16.mxu0 %v11274_v10  ;;  %4143 = vmatprep.subr.bf16.mxu1 %v11276_v52  ;;  %v4196_v10 = vld [vmem:[#allocation10 + $0x4a8] sm:$0xff]  ;;  %v11341_v52 = vcombine.low %v4199_v8, %v4203_v20  ;;  %v11334_v11 = vcombine.high %v4191_v53, %v4195_v17 }
 0x379   : > { %v11336_v44 = vcombine.high %v4192_v27, %v4196_v10  ;;  %v11335_v18 = vcombine.low %v4192_v27, %v4196_v10 }
 0x37b   : > { %4103 = vmatpush1.bf16.msra.mxu0 %v11273_v7  ;;  %4144 = vmatpush1.bf16.msra.mxu1 %v11275_v4  ;;  %v4187_v7 = vld [vmem:[#allocation10 + $0x460] sm:$0xff]  ;;  %v4184_v4 = vld [vmem:[#allocation10 + $0x448] sm:$0xff] }
 0x37c   : > { %4104 = vmatprep.subr.bf16.mxu0 %v11266_v6  ;;  %4145 = vmatprep.subr.bf16.mxu1 %v11268_v43  ;;  %v4188_v6 = vld [vmem:[#allocation10 + $0x468] sm:$0xff]  ;;  %v11333_v43 = vcombine.low %v4191_v53, %v4195_v17  ;;  %v11326_v38 = vcombine.high %v4183_v33, %v4187_v7 }
 0x37d   : > { %v11328_v19 = vcombine.high %v4184_v4, %v4188_v6  ;;  %v11327_v60 = vcombine.low %v4184_v4, %v4188_v6 }
 0x37f   : > { %4105 = vmatpush1.bf16.msra.mxu0 %v11265_v12  ;;  %4146 = vmatpush1.bf16.msra.mxu1 %v11267_v57  ;;  %v4179_v12 = vld [vmem:[#allocation10 + $0x420] sm:$0xff]  ;;  %v4176_v57 = vld [vmem:[#allocation10 + $0x408] sm:$0xff] }
 0x380   : > { %4106 = vmatprep.subr.bf16.mxu0 %v11258_v9  ;;  %4147 = vmatprep.subr.bf16.mxu1 %v11260_v28  ;;  %v4180_v9 = vld [vmem:[#allocation10 + $0x428] sm:$0xff]  ;;  %v11325_v28 = vcombine.low %v4183_v33, %v4187_v7  ;;  %v11318_v47 = vcombine.high %v4175_v24, %v4179_v12 }
 0x381   : > { %v11320_v22 = vcombine.high %v4176_v57, %v4180_v9  ;;  %v11319_v15 = vcombine.low %v4176_v57, %v4180_v9 }
 0x383   : > { %4107 = vmatpush1.bf16.msra.mxu0 %v11257_v34  ;;  %4148 = vmatpush1.bf16.msra.mxu1 %v11259_v51  ;;  %v4237_v34 = vld [vmem:[#allocation10 + $0x5f0] sm:$0xff]  ;;  %v4234_v51 = vld [vmem:[#allocation10 + $0x5d8] sm:$0xff] }
 0x384   : > { %4562 = vmatprep.subr.bf16.mxu0 %v11374_v62  ;;  %4603 = vmatprep.subr.bf16.mxu1 %v11376_v3  ;;  %v4238_v62 = vld [vmem:[#allocation10 + $0x5f8] sm:$0xff]  ;;  %v11317_v3 = vcombine.low %v4175_v24, %v4179_v12  ;;  %v11378_v13 = vcombine.high %v4233_v56, %v4237_v34 }
 0x385   : > { %v11380_v54 = vcombine.high %v4234_v51, %v4238_v62  ;;  %v11379_v50 = vcombine.low %v4234_v51, %v4238_v62 }
 0x386   : > { %4125 = vmatmul.mubr.bf16.vlgmr.msra.gmra.mxu0 %v14009_v41  ;;  %4166 = vmatmul.mubr.bf16.vlgmr.msra.gmra.mxu1 %v14009_v41 }
 0x387   : > { %4563 = vmatpush1.bf16.msra.mxu0 %v11373_v30  ;;  %4604 = vmatpush1.bf16.msra.mxu1 %v11375_v59  ;;  %v4229_v30 = vld [vmem:[#allocation10 + $0x5b0] sm:$0xff]  ;;  %v4226_v59 = vld [vmem:[#allocation10 + $0x598] sm:$0xff] }
 0x388   : > { %4564 = vmatprep.subr.bf16.mxu0 %v11366_v36  ;;  %4605 = vmatprep.subr.bf16.mxu1 %v11368_v63  ;;  %v4230_v36 = vld [vmem:[#allocation10 + $0x5b8] sm:$0xff]  ;;  %v11377_v63 = vcombine.low %v4233_v56, %v4237_v34  ;;  %v11370_v1 = vcombine.high %v4225_v61, %v4229_v30  ;;  %v11369_v31 = vcombine.low %v4225_v61, %v4229_v30 }
 0x389   : > { %4594 = vmatprep.mubr.bf16.mxu0 %v13123_v14  ;;  %4635 = vmatprep.mubr.bf16.mxu1 %v13123_v14  ;;  %v11372_v29 = vcombine.high %v4226_v59, %v4230_v36  ;;  %v11371_v37 = vcombine.low %v4226_v59, %v4230_v36 }
 0x38b   : > { %4565 = vmatpush1.bf16.msra.mxu0 %v11365_v48  ;;  %4606 = vmatpush1.bf16.msra.mxu1 %v11367_v21  ;;  %v4217_v48 = vld [vmem:[#allocation10 + $0x550] sm:$0xff] }
 0x38c   : > { %4566 = vmatprep.subr.bf16.mxu0 %v11358_v40  ;;  %4607 = vmatprep.subr.bf16.mxu1 %v11360_v39  ;;  %v4221_v21 = vld [vmem:[#allocation10 + $0x570] sm:$0xff]  ;;  %v4218_v40 = vld [vmem:[#allocation10 + $0x558] sm:$0xff] }
 0x38d   : > { %v4222_v39 = vld [vmem:[#allocation10 + $0x578] sm:$0xff]  ;;  %v11362_v35 = vcombine.high %v4217_v48, %v4221_v21  ;;  %v11361_v8 = vcombine.low %v4217_v48, %v4221_v21 }
 0x38e   : > { %v11364_v49 = vcombine.high %v4218_v40, %v4222_v39  ;;  %v11363_v20 = vcombine.low %v4218_v40, %v4222_v39 }
 0x38f   : > { %4567 = vmatpush1.bf16.msra.mxu0 %v11357_v0  ;;  %4608 = vmatpush1.bf16.msra.mxu1 %v11359_v25  ;;  %v4209_v0 = vld [vmem:[#allocation10 + $0x510] sm:$0xff] }
 0x390   : > { %4568 = vmatprep.subr.bf16.mxu0 %v11350_v16  ;;  %4609 = vmatprep.subr.bf16.mxu1 %v11352_v55  ;;  %v4213_v25 = vld [vmem:[#allocation10 + $0x530] sm:$0xff]  ;;  %v4210_v16 = vld [vmem:[#allocation10 + $0x518] sm:$0xff] }
 0x391   : > { %v4214_v55 = vld [vmem:[#allocation10 + $0x538] sm:$0xff]  ;;  %v11354_v42 = vcombine.high %v4209_v0, %v4213_v25  ;;  %v11353_v53 = vcombine.low %v4209_v0, %v4213_v25 }
 0x392   : > { %v11356_v26 = vcombine.high %v4210_v16, %v4214_v55  ;;  %v11355_v17 = vcombine.low %v4210_v16, %v4214_v55 }
 0x393   : > { %4569 = vmatpush1.bf16.msra.mxu0 %v11349_v45  ;;  %4610 = vmatpush1.bf16.msra.mxu1 %v11351_v5  ;;  %v4201_v45 = vld [vmem:[#allocation10 + $0x4d0] sm:$0xff] }
 0x394   : > { %4570 = vmatprep.subr.bf16.mxu0 %v11342_v46  ;;  %4611 = vmatprep.subr.bf16.mxu1 %v11344_v23  ;;  %v4205_v5 = vld [vmem:[#allocation10 + $0x4f0] sm:$0xff]  ;;  %v4202_v46 = vld [vmem:[#allocation10 + $0x4d8] sm:$0xff] }
 0x395   : > { %v4206_v23 = vld [vmem:[#allocation10 + $0x4f8] sm:$0xff]  ;;  %v11346_v27 = vcombine.high %v4201_v45, %v4205_v5  ;;  %v11345_v33 = vcombine.low %v4201_v45, %v4205_v5 }
 0x396   : > { %v11348_v10 = vcombine.high %v4202_v46, %v4206_v23  ;;  %v11347_v7 = vcombine.low %v4202_v46, %v4206_v23  ;;  %v4759_v23 = vld [vmem:[#allocation10 + $0x6c0] sm:$0xff] }
 0x397   : > { %4571 = vmatpush1.bf16.msra.mxu0 %v11341_v52  ;;  %4612 = vmatpush1.bf16.msra.mxu1 %v11343_v58  ;;  %v4193_v52 = vld [vmem:[#allocation10 + $0x490] sm:$0xff] }
 0x398   : > { %4572 = vmatprep.subr.bf16.mxu0 %v11334_v11  ;;  %4613 = vmatprep.subr.bf16.mxu1 %v11336_v44  ;;  %v4197_v58 = vld [vmem:[#allocation10 + $0x4b0] sm:$0xff]  ;;  %v4194_v11 = vld [vmem:[#allocation10 + $0x498] sm:$0xff] }
 0x399   : > { %v4198_v44 = vld [vmem:[#allocation10 + $0x4b8] sm:$0xff]  ;;  %v11338_v4 = vcombine.high %v4193_v52, %v4197_v58  ;;  %v11337_v24 = vcombine.low %v4193_v52, %v4197_v58 }
 0x39a   : > { %v11340_v6 = vcombine.high %v4194_v11, %v4198_v44  ;;  %v11339_v12 = vcombine.low %v4194_v11, %v4198_v44  ;;  %v4751_v44 = vld [vmem:[#allocation10 + $0x680] sm:$0xff] }
 0x39b   : > { %4573 = vmatpush1.bf16.msra.mxu0 %v11333_v43  ;;  %4614 = vmatpush1.bf16.msra.mxu1 %v11335_v18  ;;  %v4185_v43 = vld [vmem:[#allocation10 + $0x450] sm:$0xff] }
 0x39c   : > { %4574 = vmatprep.subr.bf16.mxu0 %v11326_v38  ;;  %4615 = vmatprep.subr.bf16.mxu1 %v11328_v19  ;;  %v4189_v18 = vld [vmem:[#allocation10 + $0x470] sm:$0xff]  ;;  %v4186_v38 = vld [vmem:[#allocation10 + $0x458] sm:$0xff] }
 0x39d   : > { %v4190_v19 = vld [vmem:[#allocation10 + $0x478] sm:$0xff]  ;;  %v11330_v57 = vcombine.high %v4185_v43, %v4189_v18  ;;  %v11329_v56 = vcombine.low %v4185_v43, %v4189_v18 }
 0x39e   : > { %v11332_v9 = vcombine.high %v4186_v38, %v4190_v19  ;;  %v11331_v34 = vcombine.low %v4186_v38, %v4190_v19  ;;  %v4743_v19 = vld [vmem:[#allocation10 + $0x640] sm:$0xff] }
 0x39f   : > { %4575 = vmatpush1.bf16.msra.mxu0 %v11325_v28  ;;  %4616 = vmatpush1.bf16.msra.mxu1 %v11327_v60  ;;  %v4177_v28 = vld [vmem:[#allocation10 + $0x410] sm:$0xff] }
 0x3a0   : > { %4576 = vmatprep.subr.bf16.mxu0 %v11318_v47  ;;  %4617 = vmatprep.subr.bf16.mxu1 %v11320_v22  ;;  %v4181_v60 = vld [vmem:[#allocation10 + $0x430] sm:$0xff]  ;;  %v4178_v47 = vld [vmem:[#allocation10 + $0x418] sm:$0xff] }
 0x3a1   : > { %v4182_v22 = vld [vmem:[#allocation10 + $0x438] sm:$0xff]  ;;  %v11322_v51 = vcombine.high %v4177_v28, %v4181_v60  ;;  %v11321_v61 = vcombine.low %v4177_v28, %v4181_v60 }
 0x3a2   : > { %v11324_v62 = vcombine.high %v4178_v47, %v4182_v22  ;;  %v11323_v30 = vcombine.low %v4178_v47, %v4182_v22  ;;  %v4735_v22 = vld [vmem:[#allocation10 + $0x600] sm:$0xff] }
 0x3a3   : > { %4577 = vmatpush1.bf16.msra.mxu0 %v11317_v3  ;;  %4618 = vmatpush1.bf16.msra.mxu1 %v11319_v15  ;;  %v4791_v3 = vld [vmem:[#allocation10 + $0x7c0] sm:$0xff] }
 0x3a4   : > { %4644 = vmatprep.subr.bf16.mxu0 %v11378_v13  ;;  %4685 = vmatprep.subr.bf16.mxu1 %v11380_v54  ;;  %v4795_v15 = vld [vmem:[#allocation10 + $0x7e0] sm:$0xff]  ;;  %v4792_v13 = vld [vmem:[#allocation10 + $0x7c8] sm:$0xff] }
 0x3a5   : > { %v4796_v54 = vld [vmem:[#allocation10 + $0x7e8] sm:$0xff]  ;;  %v11438_v59 = vcombine.high %v4791_v3, %v4795_v15  ;;  %v11437_v48 = vcombine.low %v4791_v3, %v4795_v15 }
 0x3a6   : > { %4595 = vmatmul.mubr.bf16.vlgmr.msra.gmra.mxu0 %v14037_v32  ;;  %4636 = vmatmul.mubr.bf16.vlgmr.msra.gmra.mxu1 %v14037_v32  ;;  %v11440_v36 = vcombine.high %v4792_v13, %v4796_v54  ;;  %v11439_v21 = vcombine.low %v4792_v13, %v4796_v54  ;;  %v4793_v54 = vld [vmem:[#allocation10 + $0x7d0] sm:$0xff] }
 0x3a7   : > { %4645 = vmatpush1.bf16.msra.mxu0 %v11377_v63  ;;  %4686 = vmatpush1.bf16.msra.mxu1 %v11379_v50  ;;  %v4783_v63 = vld [vmem:[#allocation10 + $0x780] sm:$0xff] }
 0x3a8   : > { %4646 = vmatprep.subr.bf16.mxu0 %v11370_v1  ;;  %4687 = vmatprep.subr.bf16.mxu1 %v11372_v29  ;;  %v4787_v50 = vld [vmem:[#allocation10 + $0x7a0] sm:$0xff]  ;;  %v4784_v1 = vld [vmem:[#allocation10 + $0x788] sm:$0xff] }
 0x3a9   : > { %4676 = vmatprep.mubr.bf16.mxu0 %v13123_v14  ;;  %4717 = vmatprep.mubr.bf16.mxu1 %v13123_v14  ;;  %v4788_v29 = vld [vmem:[#allocation10 + $0x7a8] sm:$0xff]  ;;  %v11430_v40 = vcombine.high %v4783_v63, %v4787_v50  ;;  %v11429_v0 = vcombine.low %v4783_v63, %v4787_v50 }
 0x3aa   : > { %v11432_v39 = vcombine.high %v4784_v1, %v4788_v29  ;;  %v11431_v25 = vcombine.low %v4784_v1, %v4788_v29  ;;  %v4785_v29 = vld [vmem:[#allocation10 + $0x790] sm:$0xff] }
 0x3ab   : > { %4647 = vmatpush1.bf16.msra.mxu0 %v11369_v31  ;;  %4688 = vmatpush1.bf16.msra.mxu1 %v11371_v37  ;;  %v4775_v31 = vld [vmem:[#allocation10 + $0x740] sm:$0xff] }
 0x3ac   : > { %4648 = vmatprep.subr.bf16.mxu0 %v11362_v35  ;;  %4689 = vmatprep.subr.bf16.mxu1 %v11364_v49  ;;  %v4779_v37 = vld [vmem:[#allocation10 + $0x760] sm:$0xff]  ;;  %v4776_v35 = vld [vmem:[#allocation10 + $0x748] sm:$0xff] }
 0x3ad   : > { %v4780_v49 = vld [vmem:[#allocation10 + $0x768] sm:$0xff]  ;;  %v11422_v16 = vcombine.high %v4775_v31, %v4779_v37  ;;  %v11421_v45 = vcombine.low %v4775_v31, %v4779_v37  ;;  %v14048_v37 = vrot.slane %v14012_v2, 1 }
 0x3ae   : > { %v11424_v55 = vcombine.high %v4776_v35, %v4780_v49 }
 0x3af   : > { %4649 = vmatpush1.bf16.msra.mxu0 %v11361_v8  ;;  %4690 = vmatpush1.bf16.msra.mxu1 %v11363_v20  ;;  %v4767_v8 = vld [vmem:[#allocation10 + $0x700] sm:$0xff] }
 0x3b0   : > { %4650 = vmatprep.subr.bf16.mxu0 %v11354_v42  ;;  %4691 = vmatprep.subr.bf16.mxu1 %v11356_v26  ;;  %v4771_v20 = vld [vmem:[#allocation10 + $0x720] sm:$0xff]  ;;  %v4768_v42 = vld [vmem:[#allocation10 + $0x708] sm:$0xff] }
 0x3b1   : > { %v4772_v26 = vld [vmem:[#allocation10 + $0x728] sm:$0xff]  ;;  %v11414_v5 = vcombine.high %v4767_v8, %v4771_v20 }
 0x3b2   : > { %v11416_v46 = vcombine.high %v4768_v42, %v4772_v26  ;;  %v11415_v52 = vcombine.low %v4768_v42, %v4772_v26 }
 0x3b3   : > { %4651 = vmatpush1.bf16.msra.mxu0 %v11353_v53  ;;  %4692 = vmatpush1.bf16.msra.mxu1 %v11355_v17  ;;  %v4763_v53 = vld [vmem:[#allocation10 + $0x6e0] sm:$0xff]  ;;  %v4760_v17 = vld [vmem:[#allocation10 + $0x6c8] sm:$0xff] }
 0x3b4   : > { %4652 = vmatprep.subr.bf16.mxu0 %v11346_v27  ;;  %4693 = vmatprep.subr.bf16.mxu1 %v11348_v10  ;;  %v4764_v27 = vld [vmem:[#allocation10 + $0x6e8] sm:$0xff]  ;;  %v11413_v10 = vcombine.low %v4767_v8, %v4771_v20  ;;  %v11406_v58 = vcombine.high %v4759_v23, %v4763_v53 }
 0x3b5   : > { %v11408_v11 = vcombine.high %v4760_v17, %v4764_v27  ;;  %v11407_v43 = vcombine.low %v4760_v17, %v4764_v27  ;;  %v4770_v17 = vld [vmem:[#allocation10 + $0x718] sm:$0xff] }
 0x3b6   : > { %v4774_v27 = vld [vmem:[#allocation10 + $0x738] sm:$0xff] }
 0x3b7   : > { %4653 = vmatpush1.bf16.msra.mxu0 %v11345_v33  ;;  %4694 = vmatpush1.bf16.msra.mxu1 %v11347_v7  ;;  %v4755_v33 = vld [vmem:[#allocation10 + $0x6a0] sm:$0xff]  ;;  %v4752_v7 = vld [vmem:[#allocation10 + $0x688] sm:$0xff] }
 0x3b8   : > { %4654 = vmatprep.subr.bf16.mxu0 %v11338_v4  ;;  %4695 = vmatprep.subr.bf16.mxu1 %v11340_v6  ;;  %v4756_v4 = vld [vmem:[#allocation10 + $0x6a8] sm:$0xff]  ;;  %v11405_v6 = vcombine.low %v4759_v23, %v4763_v53  ;;  %v11398_v18 = vcombine.high %v4751_v44, %v4755_v33  ;;  %v4769_v23 = vld [vmem:[#allocation10 + $0x710] sm:$0xff] }
 0x3b9   : > { %v11400_v38 = vcombine.high %v4752_v7, %v4756_v4  ;;  %v11399_v28 = vcombine.low %v4752_v7, %v4756_v4  ;;  %v4773_v53 = vld [vmem:[#allocation10 + $0x730] sm:$0xff]  ;;  %v11420_v4 = vcombine.high %v4770_v17, %v4774_v27 }
 0x3ba   : > { %v11418_v7 = vcombine.high %v4769_v23, %v4773_v53 }
 0x3bb   : > { %4655 = vmatpush1.bf16.msra.mxu0 %v11337_v24  ;;  %4696 = vmatpush1.bf16.msra.mxu1 %v11339_v12  ;;  %v4747_v24 = vld [vmem:[#allocation10 + $0x660] sm:$0xff]  ;;  %v4744_v12 = vld [vmem:[#allocation10 + $0x648] sm:$0xff] }
 0x3bc   : > { %4656 = vmatprep.subr.bf16.mxu0 %v11330_v57  ;;  %4697 = vmatprep.subr.bf16.mxu1 %v11332_v9  ;;  %v4748_v57 = vld [vmem:[#allocation10 + $0x668] sm:$0xff]  ;;  %v11397_v9 = vcombine.low %v4751_v44, %v4755_v33  ;;  %v11390_v60 = vcombine.high %v4743_v19, %v4747_v24 }
 0x3bd   : > { %v11392_v47 = vcombine.high %v4744_v12, %v4748_v57  ;;  %v11391_v3 = vcombine.low %v4744_v12, %v4748_v57 }
 0x3bf   : > { %4657 = vmatpush1.bf16.msra.mxu0 %v11329_v56  ;;  %4698 = vmatpush1.bf16.msra.mxu1 %v11331_v34  ;;  %v4739_v56 = vld [vmem:[#allocation10 + $0x620] sm:$0xff]  ;;  %v4736_v34 = vld [vmem:[#allocation10 + $0x608] sm:$0xff] }
 0x3c0   : > { %4658 = vmatprep.subr.bf16.mxu0 %v11322_v51  ;;  %4699 = vmatprep.subr.bf16.mxu1 %v11324_v62  ;;  %v4740_v51 = vld [vmem:[#allocation10 + $0x628] sm:$0xff]  ;;  %v11389_v62 = vcombine.low %v4743_v19, %v4747_v24  ;;  %v11382_v15 = vcombine.high %v4735_v22, %v4739_v56  ;;  %v11417_v19 = vcombine.low %v4769_v23, %v4773_v53 }
 0x3c1   : > { %v11384_v13 = vcombine.high %v4736_v34, %v4740_v51  ;;  %v11383_v63 = vcombine.low %v4736_v34, %v4740_v51  ;;  %v11419_v24 = vcombine.low %v4770_v17, %v4774_v27 }
 0x3c3   : > { %4659 = vmatpush1.bf16.msra.mxu0 %v11321_v61  ;;  %4700 = vmatpush1.bf16.msra.mxu1 %v11323_v30  ;;  %v4797_v61 = vld [vmem:[#allocation10 + $0x7f0] sm:$0xff]  ;;  %v4794_v30 = vld [vmem:[#allocation10 + $0x7d8] sm:$0xff] }
 0x3c4   : > { %5121 = vmatprep.subr.bf16.mxu0 %v11438_v59  ;;  %5162 = vmatprep.subr.bf16.mxu1 %v11440_v36  ;;  %v4798_v59 = vld [vmem:[#allocation10 + $0x7f8] sm:$0xff]  ;;  %v11381_v36 = vcombine.low %v4735_v22, %v4739_v56  ;;  %v11442_v50 = vcombine.high %v4793_v54, %v4797_v61 }
 0x3c5   : > { %v11444_v1 = vcombine.high %v4794_v30, %v4798_v59  ;;  %v11443_v31 = vcombine.low %v4794_v30, %v4798_v59 }
 0x3c6   : > { %4677 = vmatmul.mubr.bf16.vlgmr.msra.gmra.mxu0 %v14037_v32  ;;  %4718 = vmatmul.mubr.bf16.vlgmr.msra.gmra.mxu1 %v14037_v32  ;;  %v11423_v32 = vcombine.low %v4776_v35, %v4780_v49 }
 0x3c7   : > { %5122 = vmatpush1.bf16.msra.mxu0 %v11437_v48  ;;  %5163 = vmatpush1.bf16.msra.mxu1 %v11439_v21  ;;  %v4789_v48 = vld [vmem:[#allocation10 + $0x7b0] sm:$0xff]  ;;  %v4786_v21 = vld [vmem:[#allocation10 + $0x798] sm:$0xff] }
 0x3c8   : > { %5123 = vmatprep.subr.bf16.mxu0 %v11430_v40  ;;  %5164 = vmatprep.subr.bf16.mxu1 %v11432_v39  ;;  %v4790_v40 = vld [vmem:[#allocation10 + $0x7b8] sm:$0xff]  ;;  %v11441_v39 = vcombine.low %v4793_v54, %v4797_v61  ;;  %v11434_v35 = vcombine.high %v4785_v29, %v4789_v48  ;;  %v11433_v42 = vcombine.low %v4785_v29, %v4789_v48 }
 0x3c9   : > { %5153 = vmatprep.mubr.bf16.mxu0 %v13123_v14  ;;  %5194 = vmatprep.mubr.bf16.mxu1 %v13123_v14  ;;  %v11436_v49 = vcombine.high %v4786_v21, %v4790_v40  ;;  %v11435_v26 = vcombine.low %v4786_v21, %v4790_v40 }
 0x3cb   : > { %5124 = vmatpush1.bf16.msra.mxu0 %v11429_v0  ;;  %5165 = vmatpush1.bf16.msra.mxu1 %v11431_v25  ;;  %v4777_v0 = vld [vmem:[#allocation10 + $0x750] sm:$0xff] }
 0x3cc   : > { %5125 = vmatprep.subr.bf16.mxu0 %v11422_v16  ;;  %5166 = vmatprep.subr.bf16.mxu1 %v11424_v55  ;;  %v4781_v25 = vld [vmem:[#allocation10 + $0x770] sm:$0xff]  ;;  %v4778_v16 = vld [vmem:[#allocation10 + $0x758] sm:$0xff] }
 0x3cd   : > { %v4782_v55 = vld [vmem:[#allocation10 + $0x778] sm:$0xff] }
 0x3cf   : > { %5126 = vmatpush1.bf16.msra.mxu0 %v11421_v45  ;;  %5167 = vmatpush1.bf16.msra.mxu1 %v11423_v32 }
 0x3d0   : > { %5127 = vmatprep.subr.bf16.mxu0 %v11414_v5  ;;  %5168 = vmatprep.subr.bf16.mxu1 %v11416_v46  ;;  %v11426_v5 = vcombine.high %v4777_v0, %v4781_v25  ;;  %v11428_v46 = vcombine.high %v4778_v16, %v4782_v55 }
 0x3d3   : > { %5128 = vmatpush1.bf16.msra.mxu0 %v11413_v10  ;;  %5169 = vmatpush1.bf16.msra.mxu1 %v11415_v52 }
 0x3d4   : > { %5129 = vmatprep.subr.bf16.mxu0 %v11406_v58  ;;  %5170 = vmatprep.subr.bf16.mxu1 %v11408_v11  ;;  %v11425_v58 = vcombine.low %v4777_v0, %v4781_v25  ;;  %v11427_v11 = vcombine.low %v4778_v16, %v4782_v55 }
 0x3d7   : > { %5130 = vmatpush1.bf16.msra.mxu0 %v11405_v6  ;;  %5171 = vmatpush1.bf16.msra.mxu1 %v11407_v43  ;;  %v4761_v6 = vld [vmem:[#allocation10 + $0x6d0] sm:$0xff] }
 0x3d8   : > { %5131 = vmatprep.subr.bf16.mxu0 %v11398_v18  ;;  %5172 = vmatprep.subr.bf16.mxu1 %v11400_v38  ;;  %v4765_v43 = vld [vmem:[#allocation10 + $0x6f0] sm:$0xff]  ;;  %v4762_v18 = vld [vmem:[#allocation10 + $0x6d8] sm:$0xff] }
 0x3d9   : > { %v4766_v38 = vld [vmem:[#allocation10 + $0x6f8] sm:$0xff]  ;;  %v11410_v12 = vcombine.high %v4761_v6, %v4765_v43  ;;  %v11409_v22 = vcombine.low %v4761_v6, %v4765_v43 }
 0x3da   : > { %v11412_v57 = vcombine.high %v4762_v18, %v4766_v38  ;;  %v11411_v56 = vcombine.low %v4762_v18, %v4766_v38 }
 0x3db   : > { %5132 = vmatpush1.bf16.msra.mxu0 %v11397_v9  ;;  %5173 = vmatpush1.bf16.msra.mxu1 %v11399_v28  ;;  %v4753_v9 = vld [vmem:[#allocation10 + $0x690] sm:$0xff] }
 0x3dc   : > { %5133 = vmatprep.subr.bf16.mxu0 %v11390_v60  ;;  %5174 = vmatprep.subr.bf16.mxu1 %v11392_v47  ;;  %v4757_v28 = vld [vmem:[#allocation10 + $0x6b0] sm:$0xff]  ;;  %v4754_v60 = vld [vmem:[#allocation10 + $0x698] sm:$0xff] }
 0x3dd   : > { %v4758_v47 = vld [vmem:[#allocation10 + $0x6b8] sm:$0xff]  ;;  %v11402_v34 = vcombine.high %v4753_v9, %v4757_v28  ;;  %v11401_v54 = vcombine.low %v4753_v9, %v4757_v28 }
 0x3de   : > { %v11404_v51 = vcombine.high %v4754_v60, %v4758_v47  ;;  %v11403_v61 = vcombine.low %v4754_v60, %v4758_v47 }
 0x3df   : > { %5134 = vmatpush1.bf16.msra.mxu0 %v11389_v62  ;;  %5175 = vmatpush1.bf16.msra.mxu1 %v11391_v3  ;;  %v4745_v62 = vld [vmem:[#allocation10 + $0x650] sm:$0xff] }
 0x3e0   : > { %5135 = vmatprep.subr.bf16.mxu0 %v11382_v15  ;;  %5176 = vmatprep.subr.bf16.mxu1 %v11384_v13  ;;  %v4749_v3 = vld [vmem:[#allocation10 + $0x670] sm:$0xff]  ;;  %v4746_v15 = vld [vmem:[#allocation10 + $0x658] sm:$0xff] }
 0x3e1   : > { %v4750_v13 = vld [vmem:[#allocation10 + $0x678] sm:$0xff]  ;;  %v11394_v30 = vcombine.high %v4745_v62, %v4749_v3  ;;  %v11393_v29 = vcombine.low %v4745_v62, %v4749_v3  ;;  %v5322_v62 = vld [vmem:[#allocation10 + $0x8e0] sm:$0xff]  ;;  %v5319_v3 = vld [vmem:[#allocation10 + $0x8c8] sm:$0xff] }
 0x3e2   : > { %v11396_v59 = vcombine.high %v4746_v15, %v4750_v13  ;;  %v11395_v48 = vcombine.low %v4746_v15, %v4750_v13  ;;  %v5323_v15 = vld [vmem:[#allocation10 + $0x8e8] sm:$0xff] }
 0x3e3   : > { %5136 = vmatpush1.bf16.msra.mxu0 %v11381_v36  ;;  %5177 = vmatpush1.bf16.msra.mxu1 %v11383_v63  ;;  %v4737_v36 = vld [vmem:[#allocation10 + $0x610] sm:$0xff] }
 0x3e4   : > { %5203 = vmatprep.subr.bf16.mxu0 %v11442_v50  ;;  %5244 = vmatprep.subr.bf16.mxu1 %v11444_v1  ;;  %v4741_v63 = vld [vmem:[#allocation10 + $0x630] sm:$0xff]  ;;  %v4738_v50 = vld [vmem:[#allocation10 + $0x618] sm:$0xff] }
 0x3e5   : > { %v4742_v1 = vld [vmem:[#allocation10 + $0x638] sm:$0xff]  ;;  %v11386_v21 = vcombine.high %v4737_v36, %v4741_v63  ;;  %v11385_v0 = vcombine.low %v4737_v36, %v4741_v63  ;;  %v5314_v36 = vld [vmem:[#allocation10 + $0x8a0] sm:$0xff]  ;;  %v5311_v63 = vld [vmem:[#allocation10 + $0x888] sm:$0xff] }
 0x3e6   : > { %5154 = vmatmul.mubr.bf16.vlgmr.msra.gmra.mxu0 %v14048_v37  ;;  %5195 = vmatmul.mubr.bf16.vlgmr.msra.gmra.mxu1 %v14048_v37  ;;  %v14052_v8 = vpop.f32.mrf.mxu0  ;;  %v14054_v20 = vpop.f32.mrf.mxu1  ;;  %v11388_v40 = vcombine.high %v4738_v50, %v4742_v1  ;;  %v11387_v25 = vcombine.low %v4738_v50, %v4742_v1  ;;  %v5315_v50 = vld [vmem:[#allocation10 + $0x8a8] sm:$0xff] }
 0x3e7   : > { %5204 = vmatpush1.bf16.msra.mxu0 %v11441_v39  ;;  %5245 = vmatpush1.bf16.msra.mxu1 %v11443_v31  ;;  %v5350_v39 = vld [vmem:[#allocation10 + $0x9c0] sm:$0xff] }
 0x3e8   : > { %v14056_v45 = vpop.f32.mrf.mxu0  ;;  %v14058_v32 = vpop.f32.mrf.mxu1  ;;  %5205 = vmatprep.subr.bf16.mxu0 %v11434_v35  ;;  %5246 = vmatprep.subr.bf16.mxu1 %v11436_v49  ;;  %v5354_v31 = vld [vmem:[#allocation10 + $0x9e0] sm:$0xff]  ;;  %v5351_v35 = vld [vmem:[#allocation10 + $0x9c8] sm:$0xff] }
 0x3e9   : > { %5235 = vmatprep.mubr.bf16.mxu0 %v13123_v14  ;;  %5276 = vmatprep.mubr.bf16.mxu1 %v13123_v14  ;;  %v5355_v49 = vld [vmem:[#allocation10 + $0x9e8] sm:$0xff]  ;;  %v11502_v16 = vcombine.high %v5350_v39, %v5354_v31  ;;  %v11501_v23 = vcombine.low %v5350_v39, %v5354_v31  ;;  %v5306_v39 = vld [vmem:[#allocation10 + $0x860] sm:$0xff] }
 0x3ea   : > { %v3564_v10 = vpop.f32.mrf.mxu0  ;;  %v3605_v52 = vpop.f32.mrf.mxu1  ;;  %v11504_v55 = vcombine.high %v5351_v35, %v5355_v49  ;;  %v11503_v53 = vcombine.low %v5351_v35, %v5355_v49  ;;  %v5303_v31 = vld [vmem:[#allocation10 + $0x848] sm:$0xff] }
 0x3eb   : > { %5206 = vmatpush1.bf16.msra.mxu0 %v11433_v42  ;;  %5247 = vmatpush1.bf16.msra.mxu1 %v11435_v26  ;;  %v5342_v42 = vld [vmem:[#allocation10 + $0x980] sm:$0xff]  ;;  %v5307_v35 = vld [vmem:[#allocation10 + $0x868] sm:$0xff] }
 0x3ec   : > { %v3565_v44 = vpop.f32.mrf.mxu0  ;;  %v3606_v33 = vpop.f32.mrf.mxu1  ;;  %5207 = vmatprep.subr.bf16.mxu0 %v11426_v5  ;;  %5248 = vmatprep.subr.bf16.mxu1 %v11428_v46  ;;  %v5346_v26 = vld [vmem:[#allocation10 + $0x9a0] sm:$0xff]  ;;  %v5343_v5 = vld [vmem:[#allocation10 + $0x988] sm:$0xff] }
 0x3ed   : > { %v5347_v46 = vld [vmem:[#allocation10 + $0x9a8] sm:$0xff]  ;;  %v11494_v17 = vcombine.high %v5342_v42, %v5346_v26  ;;  %v5334_v10 = vld [vmem:[#allocation10 + $0x940] sm:$0xff] }
 0x3ee   : > { %v11496_v27 = vcombine.high %v5343_v5, %v5347_v46  ;;  %v5338_v52 = vld [vmem:[#allocation10 + $0x960] sm:$0xff] }
 0x3ef   : > { %5208 = vmatpush1.bf16.msra.mxu0 %v11425_v58  ;;  %5249 = vmatpush1.bf16.msra.mxu1 %v11427_v11  ;;  %v5335_v58 = vld [vmem:[#allocation10 + $0x948] sm:$0xff]  ;;  %v11486_v18 = vcombine.high %v5334_v10, %v5338_v52  ;;  %v11485_v28 = vcombine.low %v5334_v10, %v5338_v52  ;;  %v5356_v10 = vld [vmem:[#allocation10 + $0x9f0] sm:$0xff]  ;;  %v5353_v52 = vld [vmem:[#allocation10 + $0x9d8] sm:$0xff] }
 0x3f0   : > { %5209 = vmatprep.subr.bf16.mxu0 %v11418_v7  ;;  %5250 = vmatprep.subr.bf16.mxu1 %v11420_v4  ;;  %v5339_v11 = vld [vmem:[#allocation10 + $0x968] sm:$0xff]  ;;  %v11493_v7 = vcombine.low %v5342_v42, %v5346_v26  ;;  %v11495_v4 = vcombine.low %v5343_v5, %v5347_v46  ;;  %v5298_v42 = vld [vmem:[#allocation10 + $0x820] sm:$0xff] }
 0x3f1   : > { %v11488_v38 = vcombine.high %v5335_v58, %v5339_v11  ;;  %v11487_v60 = vcombine.low %v5335_v58, %v5339_v11  ;;  %v5295_v26 = vld [vmem:[#allocation10 + $0x808] sm:$0xff]  ;;  %v5357_v58 = vld [vmem:[#allocation10 + $0x9f8] sm:$0xff] }
 0x3f2   : > { %v5299_v5 = vld [vmem:[#allocation10 + $0x828] sm:$0xff] }
 0x3f3   : > { %5210 = vmatpush1.bf16.msra.mxu0 %v11417_v19  ;;  %5251 = vmatpush1.bf16.msra.mxu1 %v11419_v24  ;;  %v5326_v19 = vld [vmem:[#allocation10 + $0x900] sm:$0xff] }
 0x3f4   : > { %5211 = vmatprep.subr.bf16.mxu0 %v11410_v12  ;;  %5252 = vmatprep.subr.bf16.mxu1 %v11412_v57  ;;  %v5330_v24 = vld [vmem:[#allocation10 + $0x920] sm:$0xff]  ;;  %v5327_v12 = vld [vmem:[#allocation10 + $0x908] sm:$0xff] }
 0x3f5   : > { %v5331_v57 = vld [vmem:[#allocation10 + $0x928] sm:$0xff]  ;;  %v11477_v13 = vcombine.low %v5326_v19, %v5330_v24 }
 0x3f7   : > { %5212 = vmatpush1.bf16.msra.mxu0 %v11409_v22  ;;  %5253 = vmatpush1.bf16.msra.mxu1 %v11411_v56  ;;  %v11478_v56 = vcombine.high %v5326_v19, %v5330_v24  ;;  %v5348_v19 = vld [vmem:[#allocation10 + $0x9b0] sm:$0xff]  ;;  %v5345_v24 = vld [vmem:[#allocation10 + $0x998] sm:$0xff] }
 0x3f8   : > { %5213 = vmatprep.subr.bf16.mxu0 %v11402_v34  ;;  %5254 = vmatprep.subr.bf16.mxu1 %v11404_v51  ;;  %v11480_v34 = vcombine.high %v5327_v12, %v5331_v57  ;;  %v5318_v51 = vld [vmem:[#allocation10 + $0x8c0] sm:$0xff] }
 0x3f9   : > { %v11469_v1 = vcombine.low %v5318_v51, %v5322_v62 }
 0x3fb   : > { %5214 = vmatpush1.bf16.msra.mxu0 %v11401_v54  ;;  %5255 = vmatpush1.bf16.msra.mxu1 %v11403_v61  ;;  %v11479_v54 = vcombine.low %v5327_v12, %v5331_v57  ;;  %v11470_v61 = vcombine.high %v5318_v51, %v5322_v62  ;;  %v5349_v12 = vld [vmem:[#allocation10 + $0x9b8] sm:$0xff] }
 0x3fc   : > { %5215 = vmatprep.subr.bf16.mxu0 %v11394_v30  ;;  %5256 = vmatprep.subr.bf16.mxu1 %v11396_v59  ;;  %v11472_v30 = vcombine.high %v5319_v3, %v5323_v15  ;;  %v5310_v59 = vld [vmem:[#allocation10 + $0x880] sm:$0xff] }
 0x3fd   : > { %v11461_v49 = vcombine.low %v5310_v59, %v5314_v36 }
 0x3ff   : > { %5216 = vmatpush1.bf16.msra.mxu0 %v11393_v29  ;;  %5257 = vmatpush1.bf16.msra.mxu1 %v11395_v48  ;;  %v11471_v29 = vcombine.low %v5319_v3, %v5323_v15  ;;  %v11462_v48 = vcombine.high %v5310_v59, %v5314_v36 }
 0x400   : > { %5217 = vmatprep.subr.bf16.mxu0 %v11386_v21  ;;  %5258 = vmatprep.subr.bf16.mxu1 %v11388_v40  ;;  %v11464_v21 = vcombine.high %v5311_v63, %v5315_v50  ;;  %v5302_v40 = vld [vmem:[#allocation10 + $0x840] sm:$0xff] }
 0x401   : > { %v11453_v46 = vcombine.low %v5302_v40, %v5306_v39 }
 0x403   : > { %5218 = vmatpush1.bf16.msra.mxu0 %v11385_v0  ;;  %5259 = vmatpush1.bf16.msra.mxu1 %v11387_v25  ;;  %v11463_v0 = vcombine.low %v5311_v63, %v5315_v50  ;;  %v11454_v25 = vcombine.high %v5302_v40, %v5306_v39  ;;  %v5328_v63 = vld [vmem:[#allocation10 + $0x910] sm:$0xff] }
 0x404   : > { %5680 = vmatprep.subr.bf16.mxu0 %v11502_v16  ;;  %5721 = vmatprep.subr.bf16.mxu1 %v11504_v55  ;;  %v11456_v16 = vcombine.high %v5303_v31, %v5307_v35  ;;  %v5294_v55 = vld [vmem:[#allocation10 + $0x800] sm:$0xff] }
 0x405   : > { %v11445_v11 = vcombine.low %v5294_v55, %v5298_v42 }
 0x406   : > { %v14062_v44 = vpop.f32.mrf.mxu0  ;;  %v14064_v33 = vpop.f32.mrf.mxu1  ;;  %5236 = vmatmul.mubr.bf16.vlgmr.msra.gmra.mxu0 %v14048_v37  ;;  %5277 = vmatmul.mubr.bf16.vlgmr.msra.gmra.mxu1 %v14048_v37 }
 0x407   : > { %5681 = vmatpush1.bf16.msra.mxu0 %v11501_v23  ;;  %5722 = vmatpush1.bf16.msra.mxu1 %v11503_v53  ;;  %v11455_v23 = vcombine.low %v5303_v31, %v5307_v35  ;;  %v11446_v53 = vcombine.high %v5294_v55, %v5298_v42 }
 0x408   : > { %v14068_v6 = vpop.f32.mrf.mxu0  ;;  %v14070_v43 = vpop.f32.mrf.mxu1  ;;  %5682 = vmatprep.subr.bf16.mxu0 %v11494_v17  ;;  %5723 = vmatprep.subr.bf16.mxu1 %v11496_v27  ;;  %v11448_v17 = vcombine.high %v5295_v26, %v5299_v5  ;;  %v5352_v27 = vld [vmem:[#allocation10 + $0x9d0] sm:$0xff] }
 0x409   : > { %5712 = vmatprep.mubr.bf16.mxu0 %v13123_v14  ;;  %5753 = vmatprep.mubr.bf16.mxu1 %v13123_v14  ;;  %v11505_v57 = vcombine.low %v5352_v27, %v5356_v10 }
 0x40a   : > { %v3646_v37 = vpop.f32.mrf.mxu0  ;;  %v3687_v9 = vpop.f32.mrf.mxu1 }
 0x40b   : > { %5683 = vmatpush1.bf16.msra.mxu0 %v11493_v7  ;;  %5724 = vmatpush1.bf16.msra.mxu1 %v11495_v4  ;;  %v11447_v7 = vcombine.low %v5295_v26, %v5299_v5  ;;  %v11506_v4 = vcombine.high %v5352_v27, %v5356_v10  ;;  %v11507_v37 = vcombine.low %v5353_v52, %v5357_v58  ;;  %v14075_v9 = vrot.slane %v14009_v41, 2 }
 0x40c   : > { %v3647_v47 = vpop.f32.mrf.mxu0  ;;  %v3688_v22 = vpop.f32.mrf.mxu1  ;;  %5684 = vmatprep.subr.bf16.mxu0 %v11486_v18  ;;  %5725 = vmatprep.subr.bf16.mxu1 %v11488_v38  ;;  %v11508_v18 = vcombine.high %v5353_v52, %v5357_v58  ;;  %v5344_v38 = vld [vmem:[#allocation10 + $0x990] sm:$0xff] }
 0x40d   : > { %v5336_v47 = vld [vmem:[#allocation10 + $0x950] sm:$0xff]  ;;  %v11497_v3 = vcombine.low %v5344_v38, %v5348_v19 }
 0x40e   : > { %v5340_v22 = vld [vmem:[#allocation10 + $0x970] sm:$0xff] }
 0x40f   : > { %5685 = vmatpush1.bf16.msra.mxu0 %v11485_v28  ;;  %5726 = vmatpush1.bf16.msra.mxu1 %v11487_v60  ;;  %v11498_v28 = vcombine.high %v5344_v38, %v5348_v19  ;;  %v11500_v60 = vcombine.high %v5345_v24, %v5349_v12  ;;  %v11490_v59 = vcombine.high %v5336_v47, %v5340_v22 }
 0x410   : > { %5686 = vmatprep.subr.bf16.mxu0 %v11478_v56  ;;  %5727 = vmatprep.subr.bf16.mxu1 %v11480_v34  ;;  %v5337_v56 = vld [vmem:[#allocation10 + $0x958] sm:$0xff]  ;;  %v11489_v40 = vcombine.low %v5336_v47, %v5340_v22 }
 0x411   : > { %v5341_v34 = vld [vmem:[#allocation10 + $0x978] sm:$0xff] }
 0x412   : > { %v11492_v36 = vcombine.high %v5337_v56, %v5341_v34  ;;  %v11491_v39 = vcombine.low %v5337_v56, %v5341_v34 }
 0x413   : > { %5687 = vmatpush1.bf16.msra.mxu0 %v11477_v13  ;;  %5728 = vmatpush1.bf16.msra.mxu1 %v11479_v54  ;;  %v11499_v54 = vcombine.low %v5345_v24, %v5349_v12 }
 0x414   : > { %5688 = vmatprep.subr.bf16.mxu0 %v11470_v61  ;;  %5729 = vmatprep.subr.bf16.mxu1 %v11472_v30 }
 0x417   : > { %5689 = vmatpush1.bf16.msra.mxu0 %v11469_v1  ;;  %5730 = vmatpush1.bf16.msra.mxu1 %v11471_v29  ;;  %v5329_v29 = vld [vmem:[#allocation10 + $0x918] sm:$0xff] }
 0x418   : > { %5690 = vmatprep.subr.bf16.mxu0 %v11462_v48  ;;  %5731 = vmatprep.subr.bf16.mxu1 %v11464_v21 }
 0x41b   : > { %5691 = vmatpush1.bf16.msra.mxu0 %v11461_v49  ;;  %5732 = vmatpush1.bf16.msra.mxu1 %v11463_v0  ;;  %v5320_v49 = vld [vmem:[#allocation10 + $0x8d0] sm:$0xff] }
 0x41c   : > { %5692 = vmatprep.subr.bf16.mxu0 %v11454_v25  ;;  %5733 = vmatprep.subr.bf16.mxu1 %v11456_v16  ;;  %v5324_v0 = vld [vmem:[#allocation10 + $0x8f0] sm:$0xff]  ;;  %v5321_v25 = vld [vmem:[#allocation10 + $0x8d8] sm:$0xff] }
 0x41d   : > { %v5325_v16 = vld [vmem:[#allocation10 + $0x8f8] sm:$0xff]  ;;  %v11474_v26 = vcombine.high %v5320_v49, %v5324_v0  ;;  %v11473_v27 = vcombine.low %v5320_v49, %v5324_v0 }
 0x41e   : > { %v11476_v5 = vcombine.high %v5321_v25, %v5325_v16  ;;  %v11475_v10 = vcombine.low %v5321_v25, %v5325_v16 }
 0x41f   : > { %5693 = vmatpush1.bf16.msra.mxu0 %v11453_v46  ;;  %5734 = vmatpush1.bf16.msra.mxu1 %v11455_v23  ;;  %v5312_v46 = vld [vmem:[#allocation10 + $0x890] sm:$0xff] }
 0x420   : > { %5694 = vmatprep.subr.bf16.mxu0 %v11446_v53  ;;  %5735 = vmatprep.subr.bf16.mxu1 %v11448_v17  ;;  %v5316_v23 = vld [vmem:[#allocation10 + $0x8b0] sm:$0xff]  ;;  %v5313_v53 = vld [vmem:[#allocation10 + $0x898] sm:$0xff] }
 0x421   : > { %v5317_v17 = vld [vmem:[#allocation10 + $0x8b8] sm:$0xff]  ;;  %v11466_v52 = vcombine.high %v5312_v46, %v5316_v23  ;;  %v11465_v38 = vcombine.low %v5312_v46, %v5316_v23 }
 0x422   : > { %v11468_v58 = vcombine.high %v5313_v53, %v5317_v17  ;;  %v11467_v19 = vcombine.low %v5313_v53, %v5317_v17  ;;  %v5885_v53 = vld [vmem:[#allocation10 + $0xb00] sm:$0xff] }
 0x423   : > { %5695 = vmatpush1.bf16.msra.mxu0 %v11445_v11  ;;  %5736 = vmatpush1.bf16.msra.mxu1 %v11447_v7  ;;  %v5304_v11 = vld [vmem:[#allocation10 + $0x850] sm:$0xff] }
 0x424   : > { %5762 = vmatprep.subr.bf16.mxu0 %v11506_v4  ;;  %5803 = vmatprep.subr.bf16.mxu1 %v11508_v18  ;;  %v5308_v7 = vld [vmem:[#allocation10 + $0x870] sm:$0xff]  ;;  %v5305_v4 = vld [vmem:[#allocation10 + $0x858] sm:$0xff] }
 0x425   : > { %v5309_v18 = vld [vmem:[#allocation10 + $0x878] sm:$0xff]  ;;  %v11458_v24 = vcombine.high %v5304_v11, %v5308_v7  ;;  %v11457_v47 = vcombine.low %v5304_v11, %v5308_v7 }
 0x426   : > { %v4044_v51 = vpop.f32.mrf.mxu0  ;;  %v4085_v62 = vpop.f32.mrf.mxu1  ;;  %5713 = vmatmul.mubr.bf16.vlgmr.msra.gmra.mxu0 %v14075_v9  ;;  %5754 = vmatmul.mubr.bf16.vlgmr.msra.gmra.mxu1 %v14075_v9  ;;  %v11460_v12 = vcombine.high %v5305_v4, %v5309_v18  ;;  %v11459_v22 = vcombine.low %v5305_v4, %v5309_v18  ;;  %v5877_v18 = vld [vmem:[#allocation10 + $0xac0] sm:$0xff] }
 0x427   : > { %v14080_v15 = vadd.f32 %v4044_v51, %v14052_v8  ;;  %v14083_v13 = vadd.f32 %v4085_v62, %v14054_v20  ;;  %5763 = vmatpush1.bf16.msra.mxu0 %v11505_v57  ;;  %5804 = vmatpush1.bf16.msra.mxu1 %v11507_v37  ;;  %v5332_v8 = vld [vmem:[#allocation10 + $0x930] sm:$0xff]  ;;  %v5333_v20 = vld [vmem:[#allocation10 + $0x938] sm:$0xff]  ;;  %v5909_v51 = vld [vmem:[#allocation10 + $0xbc0] sm:$0xff] }
 0x428   : > { %v4046_v61 = vpop.f32.mrf.mxu0  ;;  %v4087_v30 = vpop.f32.mrf.mxu1  ;;  %5764 = vmatprep.subr.bf16.mxu0 %v11498_v28  ;;  %5805 = vmatprep.subr.bf16.mxu1 %v11500_v60  ;;  %v11481_v55 = vcombine.low %v5328_v63, %v5332_v8  ;;  %v11483_v42 = vcombine.low %v5329_v29, %v5333_v20  ;;  %v5296_v57 = vld [vmem:[#allocation10 + $0x810] sm:$0xff]  ;;  %v5297_v28 = vld [vmem:[#allocation10 + $0x818] sm:$0xff]  ;;  %v5913_v62 = vld [vmem:[#allocation10 + $0xbe0] sm:$0xff] }
 0x429   : > { %v14086_v50 = vadd.f32 %v4046_v61, %v14056_v45  ;;  %v14089_v1 = vadd.f32 %v4087_v30, %v14058_v32  ;;  %5794 = vmatprep.mubr.bf16.mxu0 %v13123_v14  ;;  %5835 = vmatprep.mubr.bf16.mxu1 %v13123_v14  ;;  %v11482_v45 = vcombine.high %v5328_v63, %v5332_v8  ;;  %v5300_v37 = vld [vmem:[#allocation10 + $0x830] sm:$0xff]  ;;  %v5301_v60 = vld [vmem:[#allocation10 + $0x838] sm:$0xff]  ;;  %v5901_v63 = vld [vmem:[#allocation10 + $0xb80] sm:$0xff] }
 0x42a   : > { %v4048_v48 = vpop.f32.mrf.mxu0  ;;  %v4089_v21 = vpop.f32.mrf.mxu1  ;;  %v11484_v32 = vcombine.high %v5329_v29, %v5333_v20  ;;  %v11450_v56 = vcombine.high %v5296_v57, %v5300_v37  ;;  %v11452_v34 = vcombine.high %v5297_v28, %v5301_v60  ;;  %v11449_v61 = vcombine.low %v5296_v57, %v5300_v37  ;;  %v5905_v8 = vld [vmem:[#allocation10 + $0xba0] sm:$0xff]  ;;  %v5902_v29 = vld [vmem:[#allocation10 + $0xb88] sm:$0xff] }
 0x42b   : > { %5765 = vmatpush1.bf16.msra.mxu0 %v11497_v3  ;;  %5806 = vmatpush1.bf16.msra.mxu1 %v11499_v54  ;;  %v5910_v3 = vld [vmem:[#allocation10 + $0xbc8] sm:$0xff]  ;;  %v11451_v30 = vcombine.low %v5297_v28, %v5301_v60  ;;  %v11565_v48 = vcombine.low %v5909_v51, %v5913_v62  ;;  %v11557_v25 = vcombine.low %v5901_v63, %v5905_v8  ;;  %v5869_v60 = vld [vmem:[#allocation10 + $0xa80] sm:$0xff] }
 0x42c   : > { %v4049_v31 = vpop.f32.mrf.mxu0  ;;  %v4090_v35 = vpop.f32.mrf.mxu1  ;;  %5766 = vmatprep.subr.bf16.mxu0 %v11490_v59  ;;  %5807 = vmatprep.subr.bf16.mxu1 %v11492_v36  ;;  %v5914_v54 = vld [vmem:[#allocation10 + $0xbe8] sm:$0xff]  ;;  %v11566_v59 = vcombine.high %v5909_v51, %v5913_v62 }
 0x42d   : > { %v11568_v36 = vcombine.high %v5910_v3, %v5914_v54  ;;  %v5906_v20 = vld [vmem:[#allocation10 + $0xba8] sm:$0xff]  ;;  %v11567_v21 = vcombine.low %v5910_v3, %v5914_v54  ;;  %v5893_v31 = vld [vmem:[#allocation10 + $0xb40] sm:$0xff] }
 0x42e   : > { %v5897_v35 = vld [vmem:[#allocation10 + $0xb60] sm:$0xff] }
 0x42f   : > { %5767 = vmatpush1.bf16.msra.mxu0 %v11489_v40  ;;  %5808 = vmatpush1.bf16.msra.mxu1 %v11491_v39  ;;  %v11558_v40 = vcombine.high %v5901_v63, %v5905_v8  ;;  %v11560_v39 = vcombine.high %v5902_v29, %v5906_v20  ;;  %v11550_v46 = vcombine.high %v5893_v31, %v5897_v35  ;;  %v5861_v54 = vld [vmem:[#allocation10 + $0xa40] sm:$0xff] }
 0x430   : > { %5768 = vmatprep.subr.bf16.mxu0 %v11482_v45  ;;  %5809 = vmatprep.subr.bf16.mxu1 %v11484_v32  ;;  %v5894_v45 = vld [vmem:[#allocation10 + $0xb48] sm:$0xff] }
 0x431   : > { %v5898_v32 = vld [vmem:[#allocation10 + $0xb68] sm:$0xff] }
 0x432   : > { %v11552_v23 = vcombine.high %v5894_v45, %v5898_v32  ;;  %v11551_v11 = vcombine.low %v5894_v45, %v5898_v32  ;;  %v5911_v32 = vld [vmem:[#allocation10 + $0xbd0] sm:$0xff] }
 0x433   : > { %5769 = vmatpush1.bf16.msra.mxu0 %v11481_v55  ;;  %5810 = vmatpush1.bf16.msra.mxu1 %v11483_v42  ;;  %v11559_v42 = vcombine.low %v5902_v29, %v5906_v20  ;;  %v5853_v20 = vld [vmem:[#allocation10 + $0xa00] sm:$0xff] }
 0x434   : > { %5770 = vmatprep.subr.bf16.mxu0 %v11474_v26  ;;  %5811 = vmatprep.subr.bf16.mxu1 %v11476_v5 }
 0x437   : > { %5771 = vmatpush1.bf16.msra.mxu0 %v11473_v27  ;;  %5812 = vmatpush1.bf16.msra.mxu1 %v11475_v10  ;;  %v5886_v27 = vld [vmem:[#allocation10 + $0xb08] sm:$0xff] }
 0x438   : > { %5772 = vmatprep.subr.bf16.mxu0 %v11466_v52  ;;  %5813 = vmatprep.subr.bf16.mxu1 %v11468_v58  ;;  %v11549_v58 = vcombine.low %v5893_v31, %v5897_v35 }
 0x43b   : > { %5773 = vmatpush1.bf16.msra.mxu0 %v11465_v38  ;;  %5814 = vmatpush1.bf16.msra.mxu1 %v11467_v19  ;;  %v5881_v38 = vld [vmem:[#allocation10 + $0xae0] sm:$0xff]  ;;  %v5878_v19 = vld [vmem:[#allocation10 + $0xac8] sm:$0xff] }
 0x43c   : > { %5774 = vmatprep.subr.bf16.mxu0 %v11458_v24  ;;  %5815 = vmatprep.subr.bf16.mxu1 %v11460_v12  ;;  %v5882_v24 = vld [vmem:[#allocation10 + $0xae8] sm:$0xff]  ;;  %v11534_v37 = vcombine.high %v5877_v18, %v5881_v38 }
 0x43d   : > { %v11536_v28 = vcombine.high %v5878_v19, %v5882_v24  ;;  %v11535_v51 = vcombine.low %v5878_v19, %v5882_v24 }
 0x43f   : > { %5775 = vmatpush1.bf16.msra.mxu0 %v11457_v47  ;;  %5816 = vmatpush1.bf16.msra.mxu1 %v11459_v22  ;;  %v5873_v47 = vld [vmem:[#allocation10 + $0xaa0] sm:$0xff]  ;;  %v5870_v22 = vld [vmem:[#allocation10 + $0xa88] sm:$0xff] }
 0x440   : > { %5776 = vmatprep.subr.bf16.mxu0 %v11450_v56  ;;  %5817 = vmatprep.subr.bf16.mxu1 %v11452_v34  ;;  %v5874_v56 = vld [vmem:[#allocation10 + $0xaa8] sm:$0xff]  ;;  %v11533_v34 = vcombine.low %v5877_v18, %v5881_v38  ;;  %v11526_v62 = vcombine.high %v5869_v60, %v5873_v47 }
 0x441   : > { %v11528_v3 = vcombine.high %v5870_v22, %v5874_v56  ;;  %v11527_v63 = vcombine.low %v5870_v22, %v5874_v56 }
 0x443   : > { %5777 = vmatpush1.bf16.msra.mxu0 %v11449_v61  ;;  %5818 = vmatpush1.bf16.msra.mxu1 %v11451_v30  ;;  %v5865_v61 = vld [vmem:[#allocation10 + $0xa60] sm:$0xff]  ;;  %v5862_v30 = vld [vmem:[#allocation10 + $0xa48] sm:$0xff] }
 0x444   : > { %6239 = vmatprep.subr.bf16.mxu0 %v11566_v59  ;;  %6280 = vmatprep.subr.bf16.mxu1 %v11568_v36  ;;  %v5866_v59 = vld [vmem:[#allocation10 + $0xa68] sm:$0xff]  ;;  %v11525_v36 = vcombine.low %v5869_v60, %v5873_v47  ;;  %v11518_v8 = vcombine.high %v5861_v54, %v5865_v61  ;;  %v5887_v47 = vld [vmem:[#allocation10 + $0xb10] sm:$0xff] }
 0x445   : > { %v11520_v29 = vcombine.high %v5862_v30, %v5866_v59  ;;  %v11519_v31 = vcombine.low %v5862_v30, %v5866_v59  ;;  %v5879_v59 = vld [vmem:[#allocation10 + $0xad0] sm:$0xff] }
 0x446   : > { %v4126_v49 = vpop.f32.mrf.mxu0  ;;  %v4167_v0 = vpop.f32.mrf.mxu1  ;;  %5795 = vmatmul.mubr.bf16.vlgmr.msra.gmra.mxu0 %v14075_v9  ;;  %5836 = vmatmul.mubr.bf16.vlgmr.msra.gmra.mxu1 %v14075_v9 }
 0x447   : > { %v14096_v16 = vadd.f32 %v4126_v49, %v14062_v44  ;;  %v14099_v55 = vadd.f32 %v4167_v0, %v14064_v33  ;;  %6240 = vmatpush1.bf16.msra.mxu0 %v11565_v48  ;;  %6281 = vmatpush1.bf16.msra.mxu1 %v11567_v21  ;;  %v5889_v44 = vld [vmem:[#allocation10 + $0xb20] sm:$0xff]  ;;  %v5890_v33 = vld [vmem:[#allocation10 + $0xb28] sm:$0xff]  ;;  %v5915_v49 = vld [vmem:[#allocation10 + $0xbf0] sm:$0xff] }
 0x448   : > { %v4128_v26 = vpop.f32.mrf.mxu0  ;;  %v4169_v5 = vpop.f32.mrf.mxu1  ;;  %6241 = vmatprep.subr.bf16.mxu0 %v11558_v40  ;;  %6282 = vmatprep.subr.bf16.mxu1 %v11560_v39  ;;  %v11541_v12 = vcombine.low %v5885_v53, %v5889_v44  ;;  %v11543_v57 = vcombine.low %v5886_v27, %v5890_v33  ;;  %v5857_v48 = vld [vmem:[#allocation10 + $0xa20] sm:$0xff]  ;;  %v5854_v21 = vld [vmem:[#allocation10 + $0xa08] sm:$0xff]  ;;  %v11517_v39 = vcombine.low %v5861_v54, %v5865_v61  ;;  %v5912_v0 = vld [vmem:[#allocation10 + $0xbd8] sm:$0xff] }
 0x449   : > { %v14102_v17 = vadd.f32 %v4128_v26, %v14068_v6  ;;  %v14105_v9 = vadd.f32 %v4169_v5, %v14070_v43  ;;  %6271 = vmatprep.mubr.bf16.mxu0 %v13123_v14  ;;  %6312 = vmatprep.mubr.bf16.mxu1 %v13123_v14  ;;  %v11542_v6 = vcombine.high %v5885_v53, %v5889_v44  ;;  %v5858_v40 = vld [vmem:[#allocation10 + $0xa28] sm:$0xff]  ;;  %v5907_v53 = vld [vmem:[#allocation10 + $0xbb0] sm:$0xff]  ;;  %v5904_v44 = vld [vmem:[#allocation10 + $0xb98] sm:$0xff] }
 0x44a   : > { %v4130_v10 = vpop.f32.mrf.mxu0  ;;  %v4171_v52 = vpop.f32.mrf.mxu1  ;;  %v11544_v43 = vcombine.high %v5886_v27, %v5890_v33  ;;  %v11510_v35 = vcombine.high %v5853_v20, %v5857_v48  ;;  %v11512_v45 = vcombine.high %v5854_v21, %v5858_v40  ;;  %v11511_v26 = vcombine.low %v5854_v21, %v5858_v40  ;;  %v5908_v27 = vld [vmem:[#allocation10 + $0xbb8] sm:$0xff]  ;;  %v5871_v40 = vld [vmem:[#allocation10 + $0xa90] sm:$0xff] }
 0x44b   : > { %6242 = vmatpush1.bf16.msra.mxu0 %v11557_v25  ;;  %6283 = vmatpush1.bf16.msra.mxu1 %v11559_v42  ;;  %v5916_v25 = vld [vmem:[#allocation10 + $0xbf8] sm:$0xff]  ;;  %v11509_v42 = vcombine.low %v5853_v20, %v5857_v48  ;;  %v11570_v5 = vcombine.high %v5911_v32, %v5915_v49  ;;  %v11569_v33 = vcombine.low %v5911_v32, %v5915_v49  ;;  %v14110_v52 = vrot.slane %v14012_v2, 2 }
 0x44c   : > { %v4131_v7 = vpop.f32.mrf.mxu0  ;;  %v4172_v4 = vpop.f32.mrf.mxu1  ;;  %6243 = vmatprep.subr.bf16.mxu0 %v11550_v46  ;;  %6284 = vmatprep.subr.bf16.mxu1 %v11552_v23  ;;  %v11572_v46 = vcombine.high %v5912_v0, %v5916_v25  ;;  %v5903_v23 = vld [vmem:[#allocation10 + $0xb90] sm:$0xff]  ;;  %v11571_v10 = vcombine.low %v5912_v0, %v5916_v25 }
 0x44d   : > { %v5895_v7 = vld [vmem:[#allocation10 + $0xb50] sm:$0xff]  ;;  %v11561_v19 = vcombine.low %v5903_v23, %v5907_v53 }
 0x44e   : > { %v5899_v4 = vld [vmem:[#allocation10 + $0xb70] sm:$0xff] }
 0x44f   : > { %6244 = vmatpush1.bf16.msra.mxu0 %v11549_v58  ;;  %6285 = vmatpush1.bf16.msra.mxu1 %v11551_v11  ;;  %v11562_v58 = vcombine.high %v5903_v23, %v5907_v53  ;;  %v11564_v11 = vcombine.high %v5904_v44, %v5908_v27  ;;  %v5863_v25 = vld [vmem:[#allocation10 + $0xa50] sm:$0xff] }
 0x450   : > { %6245 = vmatprep.subr.bf16.mxu0 %v11542_v6  ;;  %6286 = vmatprep.subr.bf16.mxu1 %v11544_v43  ;;  %v5896_v6 = vld [vmem:[#allocation10 + $0xb58] sm:$0xff] }
 0x451   : > { %v5900_v43 = vld [vmem:[#allocation10 + $0xb78] sm:$0xff] }
 0x452   : > { %v11556_v60 = vcombine.high %v5896_v6, %v5900_v43  ;;  %v11555_v54 = vcombine.low %v5896_v6, %v5900_v43  ;;  %v6468_v43 = vld [vmem:[#allocation10 + $0xdc0] sm:$0xff] }
 0x453   : > { %6246 = vmatpush1.bf16.msra.mxu0 %v11541_v12  ;;  %6287 = vmatpush1.bf16.msra.mxu1 %v11543_v57  ;;  %v11563_v12 = vcombine.low %v5904_v44, %v5908_v27  ;;  %v5855_v27 = vld [vmem:[#allocation10 + $0xa10] sm:$0xff] }
 0x454   : > { %6247 = vmatprep.subr.bf16.mxu0 %v11534_v37  ;;  %6288 = vmatprep.subr.bf16.mxu1 %v11536_v28  ;;  %v11554_v28 = vcombine.high %v5895_v7, %v5899_v4 }
 0x457   : > { %6248 = vmatpush1.bf16.msra.mxu0 %v11533_v34  ;;  %6289 = vmatpush1.bf16.msra.mxu1 %v11535_v51  ;;  %v5888_v34 = vld [vmem:[#allocation10 + $0xb18] sm:$0xff] }
 0x458   : > { %6249 = vmatprep.subr.bf16.mxu0 %v11526_v62  ;;  %6290 = vmatprep.subr.bf16.mxu1 %v11528_v3  ;;  %v11553_v3 = vcombine.low %v5895_v7, %v5899_v4 }
 0x45b   : > { %6250 = vmatpush1.bf16.msra.mxu0 %v11525_v36  ;;  %6291 = vmatpush1.bf16.msra.mxu1 %v11527_v63  ;;  %v5883_v36 = vld [vmem:[#allocation10 + $0xaf0] sm:$0xff]  ;;  %v5880_v63 = vld [vmem:[#allocation10 + $0xad8] sm:$0xff] }
 0x45c   : > { %6251 = vmatprep.subr.bf16.mxu0 %v11518_v8  ;;  %6292 = vmatprep.subr.bf16.mxu1 %v11520_v29  ;;  %v5884_v8 = vld [vmem:[#allocation10 + $0xaf8] sm:$0xff]  ;;  %v11538_v48 = vcombine.high %v5879_v59, %v5883_v36 }
 0x45d   : > { %v11540_v21 = vcombine.high %v5880_v63, %v5884_v8  ;;  %v11539_v32 = vcombine.low %v5880_v63, %v5884_v8 }
 0x45f   : > { %6252 = vmatpush1.bf16.msra.mxu0 %v11517_v39  ;;  %6293 = vmatpush1.bf16.msra.mxu1 %v11519_v31  ;;  %v5875_v39 = vld [vmem:[#allocation10 + $0xab0] sm:$0xff]  ;;  %v5872_v31 = vld [vmem:[#allocation10 + $0xa98] sm:$0xff] }
 0x460   : > { %6253 = vmatprep.subr.bf16.mxu0 %v11510_v35  ;;  %6294 = vmatprep.subr.bf16.mxu1 %v11512_v45  ;;  %v5876_v35 = vld [vmem:[#allocation10 + $0xab8] sm:$0xff]  ;;  %v11537_v45 = vcombine.low %v5879_v59, %v5883_v36  ;;  %v11530_v49 = vcombine.high %v5871_v40, %v5875_v39 }
 0x461   : > { %v11532_v0 = vcombine.high %v5872_v31, %v5876_v35  ;;  %v11531_v23 = vcombine.low %v5872_v31, %v5876_v35  ;;  %v6445_v35 = vld [vmem:[#allocation10 + $0xd08] sm:$0xff] }
 0x463   : > { %6254 = vmatpush1.bf16.msra.mxu0 %v11509_v42  ;;  %6295 = vmatpush1.bf16.msra.mxu1 %v11511_v26  ;;  %v5867_v42 = vld [vmem:[#allocation10 + $0xa70] sm:$0xff]  ;;  %v5864_v26 = vld [vmem:[#allocation10 + $0xa58] sm:$0xff] }
 0x464   : > { %6321 = vmatprep.subr.bf16.mxu0 %v11570_v5  ;;  %6362 = vmatprep.subr.bf16.mxu1 %v11572_v46  ;;  %v5868_v5 = vld [vmem:[#allocation10 + $0xa78] sm:$0xff]  ;;  %v11529_v46 = vcombine.low %v5871_v40, %v5875_v39  ;;  %v11522_v53 = vcombine.high %v5863_v25, %v5867_v42  ;;  %v6444_v39 = vld [vmem:[#allocation10 + $0xd00] sm:$0xff] }
 0x465   : > { %v11524_v44 = vcombine.high %v5864_v26, %v5868_v5  ;;  %v11523_v7 = vcombine.low %v5864_v26, %v5868_v5  ;;  %v6436_v26 = vld [vmem:[#allocation10 + $0xcc0] sm:$0xff] }
 0x466   : > { %v4596_v18 = vpop.f32.mrf.mxu0  ;;  %v4637_v38 = vpop.f32.mrf.mxu1  ;;  %6272 = vmatmul.mubr.bf16.vlgmr.msra.gmra.mxu0 %v14110_v52  ;;  %6313 = vmatmul.mubr.bf16.vlgmr.msra.gmra.mxu1 %v14110_v52  ;;  %v6440_v5 = vld [vmem:[#allocation10 + $0xce0] sm:$0xff] }
 0x467   : > { %v14115_v24 = vadd.f32 %v4596_v18, %v14080_v15  ;;  %v14118_v2 = vadd.f32 %v4637_v38, %v14083_v13  ;;  %6322 = vmatpush1.bf16.msra.mxu0 %v11569_v33  ;;  %6363 = vmatpush1.bf16.msra.mxu1 %v11571_v10  ;;  %v5891_v15 = vld [vmem:[#allocation10 + $0xb30] sm:$0xff]  ;;  %v5892_v13 = vld [vmem:[#allocation10 + $0xb38] sm:$0xff]  ;;  %v6472_v18 = vld [vmem:[#allocation10 + $0xde0] sm:$0xff] }
 0x468   : > { %v4598_v57 = vpop.f32.mrf.mxu0  ;;  %v4639_v37 = vpop.f32.mrf.mxu1  ;;  %6323 = vmatprep.subr.bf16.mxu0 %v11562_v58  ;;  %6364 = vmatprep.subr.bf16.mxu1 %v11564_v11  ;;  %v11545_v29 = vcombine.low %v5887_v47, %v5891_v15  ;;  %v11547_v20 = vcombine.low %v5888_v34, %v5892_v13  ;;  %v5859_v33 = vld [vmem:[#allocation10 + $0xa30] sm:$0xff]  ;;  %v5856_v10 = vld [vmem:[#allocation10 + $0xa18] sm:$0xff]  ;;  %v11521_v11 = vcombine.low %v5863_v25, %v5867_v42  ;;  %v6469_v38 = vld [vmem:[#allocation10 + $0xdc8] sm:$0xff] }
 0x469   : > { %v14121_v22 = vadd.f32 %v4598_v57, %v14086_v50  ;;  %v14124_v56 = vadd.f32 %v4639_v37, %v14089_v1  ;;  %6353 = vmatprep.mubr.bf16.mxu0 %v13123_v14  ;;  %6394 = vmatprep.mubr.bf16.mxu1 %v13123_v14  ;;  %v11546_v50 = vcombine.high %v5887_v47, %v5891_v15  ;;  %v5860_v58 = vld [vmem:[#allocation10 + $0xa38] sm:$0xff]  ;;  %v6464_v47 = vld [vmem:[#allocation10 + $0xda0] sm:$0xff]  ;;  %v6461_v15 = vld [vmem:[#allocation10 + $0xd88] sm:$0xff] }
 0x46a   : > { %v4600_v51 = vpop.f32.mrf.mxu0  ;;  %v4641_v62 = vpop.f32.mrf.mxu1  ;;  %v11548_v1 = vcombine.high %v5888_v34, %v5892_v13  ;;  %v11514_v4 = vcombine.high %v5855_v27, %v5859_v33  ;;  %v11516_v6 = vcombine.high %v5856_v10, %v5860_v58  ;;  %v11515_v57 = vcombine.low %v5856_v10, %v5860_v58  ;;  %v6465_v34 = vld [vmem:[#allocation10 + $0xda8] sm:$0xff]  ;;  %v6428_v10 = vld [vmem:[#allocation10 + $0xc80] sm:$0xff] }
 0x46b   : > { %6324 = vmatpush1.bf16.msra.mxu0 %v11561_v19  ;;  %6365 = vmatpush1.bf16.msra.mxu1 %v11563_v12  ;;  %v6473_v19 = vld [vmem:[#allocation10 + $0xde8] sm:$0xff]  ;;  %v11513_v12 = vcombine.low %v5855_v27, %v5859_v33  ;;  %v11630_v37 = vcombine.high %v6468_v43, %v6472_v18  ;;  %v11629_v13 = vcombine.low %v6468_v43, %v6472_v18  ;;  %v6432_v58 = vld [vmem:[#allocation10 + $0xca0] sm:$0xff] }
 0x46c   : > { %v4601_v61 = vpop.f32.mrf.mxu0  ;;  %v4642_v30 = vpop.f32.mrf.mxu1  ;;  %6325 = vmatprep.subr.bf16.mxu0 %v11554_v28  ;;  %6366 = vmatprep.subr.bf16.mxu1 %v11556_v60  ;;  %v11632_v28 = vcombine.high %v6469_v38, %v6473_v19  ;;  %v6460_v60 = vld [vmem:[#allocation10 + $0xd80] sm:$0xff]  ;;  %v11631_v51 = vcombine.low %v6469_v38, %v6473_v19  ;;  %v11598_v27 = vcombine.high %v6436_v26, %v6440_v5 }
 0x46d   : > { %v11622_v62 = vcombine.high %v6460_v60, %v6464_v47  ;;  %v6456_v61 = vld [vmem:[#allocation10 + $0xd60] sm:$0xff]  ;;  %v6453_v30 = vld [vmem:[#allocation10 + $0xd48] sm:$0xff]  ;;  %v11621_v36 = vcombine.low %v6460_v60, %v6464_v47  ;;  %v11590_v43 = vcombine.high %v6428_v10, %v6432_v58 }
 0x46e   : > { %v6420_v38 = vld [vmem:[#allocation10 + $0xc40] sm:$0xff] }
 0x46f   : > { %6326 = vmatpush1.bf16.msra.mxu0 %v11553_v3  ;;  %6367 = vmatpush1.bf16.msra.mxu1 %v11555_v54  ;;  %v11624_v3 = vcombine.high %v6461_v15, %v6465_v34  ;;  %v6452_v54 = vld [vmem:[#allocation10 + $0xd40] sm:$0xff] }
 0x470   : > { %6327 = vmatprep.subr.bf16.mxu0 %v11546_v50  ;;  %6368 = vmatprep.subr.bf16.mxu1 %v11548_v1  ;;  %v6457_v50 = vld [vmem:[#allocation10 + $0xd68] sm:$0xff]  ;;  %v6424_v19 = vld [vmem:[#allocation10 + $0xc60] sm:$0xff] }
 0x471   : > { %v11616_v40 = vcombine.high %v6453_v30, %v6457_v50  ;;  %v11582_v60 = vcombine.high %v6420_v38, %v6424_v19 }
 0x473   : > { %6328 = vmatpush1.bf16.msra.mxu0 %v11545_v29  ;;  %6369 = vmatpush1.bf16.msra.mxu1 %v11547_v20  ;;  %v11623_v29 = vcombine.low %v6461_v15, %v6465_v34  ;;  %v6412_v15 = vld [vmem:[#allocation10 + $0xc00] sm:$0xff] }
 0x474   : > { %6329 = vmatprep.subr.bf16.mxu0 %v11538_v48  ;;  %6370 = vmatprep.subr.bf16.mxu1 %v11540_v21  ;;  %v11614_v21 = vcombine.high %v6452_v54, %v6456_v61  ;;  %v6416_v34 = vld [vmem:[#allocation10 + $0xc20] sm:$0xff] }
 0x477   : > { %6330 = vmatpush1.bf16.msra.mxu0 %v11537_v45  ;;  %6371 = vmatpush1.bf16.msra.mxu1 %v11539_v32 }
 0x478   : > { %6331 = vmatprep.subr.bf16.mxu0 %v11530_v49  ;;  %6372 = vmatprep.subr.bf16.mxu1 %v11532_v0  ;;  %v11613_v49 = vcombine.low %v6452_v54, %v6456_v61  ;;  %v11615_v0 = vcombine.low %v6453_v30, %v6457_v50  ;;  %v11574_v54 = vcombine.high %v6412_v15, %v6416_v34  ;;  %v6470_v30 = vld [vmem:[#allocation10 + $0xdd0] sm:$0xff] }
 0x479   : > { %v6474_v50 = vld [vmem:[#allocation10 + $0xdf0] sm:$0xff] }
 0x47b   : > { %6332 = vmatpush1.bf16.msra.mxu0 %v11529_v46  ;;  %6373 = vmatpush1.bf16.msra.mxu1 %v11531_v23  ;;  %v6437_v46 = vld [vmem:[#allocation10 + $0xcc8] sm:$0xff] }
 0x47c   : > { %6333 = vmatprep.subr.bf16.mxu0 %v11522_v53  ;;  %6374 = vmatprep.subr.bf16.mxu1 %v11524_v44  ;;  %v6441_v23 = vld [vmem:[#allocation10 + $0xce8] sm:$0xff] }
 0x47d   : > { %v11600_v33 = vcombine.high %v6437_v46, %v6441_v23 }
 0x47f   : > { %6334 = vmatpush1.bf16.msra.mxu0 %v11521_v11  ;;  %6375 = vmatpush1.bf16.msra.mxu1 %v11523_v7  ;;  %v6429_v11 = vld [vmem:[#allocation10 + $0xc88] sm:$0xff] }
 0x480   : > { %6335 = vmatprep.subr.bf16.mxu0 %v11514_v4  ;;  %6376 = vmatprep.subr.bf16.mxu1 %v11516_v6  ;;  %v6433_v7 = vld [vmem:[#allocation10 + $0xca8] sm:$0xff]  ;;  %v11597_v4 = vcombine.low %v6436_v26, %v6440_v5  ;;  %v11599_v6 = vcombine.low %v6437_v46, %v6441_v23 }
 0x481   : > { %v11592_v18 = vcombine.high %v6429_v11, %v6433_v7 }
 0x483   : > { %6336 = vmatpush1.bf16.msra.mxu0 %v11513_v12  ;;  %6377 = vmatpush1.bf16.msra.mxu1 %v11515_v57  ;;  %v6421_v12 = vld [vmem:[#allocation10 + $0xc48] sm:$0xff] }
 0x484   : > { %6798 = vmatprep.subr.bf16.mxu0 %v11630_v37  ;;  %6839 = vmatprep.subr.bf16.mxu1 %v11632_v28  ;;  %v6425_v57 = vld [vmem:[#allocation10 + $0xc68] sm:$0xff]  ;;  %v11589_v37 = vcombine.low %v6428_v10, %v6432_v58  ;;  %v11591_v28 = vcombine.low %v6429_v11, %v6433_v7  ;;  %v6446_v10 = vld [vmem:[#allocation10 + $0xd10] sm:$0xff]  ;;  %v6447_v7 = vld [vmem:[#allocation10 + $0xd18] sm:$0xff] }
 0x485   : > { %v11584_v47 = vcombine.high %v6421_v12, %v6425_v57 }
 0x486   : > { %v4678_v1 = vpop.f32.mrf.mxu0  ;;  %v4719_v59 = vpop.f32.mrf.mxu1  ;;  %6354 = vmatmul.mubr.bf16.vlgmr.msra.gmra.mxu0 %v14110_v52  ;;  %6395 = vmatmul.mubr.bf16.vlgmr.msra.gmra.mxu1 %v14110_v52 }
 0x487   : > { %v14131_v63 = vadd.f32 %v4678_v1, %v14096_v16  ;;  %v14134_v8 = vadd.f32 %v4719_v59, %v14099_v55  ;;  %6799 = vmatpush1.bf16.msra.mxu0 %v11629_v13  ;;  %6840 = vmatpush1.bf16.msra.mxu1 %v11631_v51  ;;  %v6448_v16 = vld [vmem:[#allocation10 + $0xd20] sm:$0xff]  ;;  %v6449_v55 = vld [vmem:[#allocation10 + $0xd28] sm:$0xff]  ;;  %v6471_v1 = vld [vmem:[#allocation10 + $0xdd8] sm:$0xff] }
 0x488   : > { %v4680_v20 = vpop.f32.mrf.mxu0  ;;  %v4721_v48 = vpop.f32.mrf.mxu1  ;;  %6800 = vmatprep.subr.bf16.mxu0 %v11622_v62  ;;  %6841 = vmatprep.subr.bf16.mxu1 %v11624_v3  ;;  %v11605_v53 = vcombine.low %v6444_v39, %v6448_v16  ;;  %v11607_v44 = vcombine.low %v6445_v35, %v6449_v55  ;;  %v6413_v13 = vld [vmem:[#allocation10 + $0xc08] sm:$0xff]  ;;  %v11581_v62 = vcombine.low %v6420_v38, %v6424_v19  ;;  %v6475_v59 = vld [vmem:[#allocation10 + $0xdf8] sm:$0xff] }
 0x489   : > { %v14137_v31 = vadd.f32 %v4680_v20, %v14102_v17  ;;  %v14140_v52 = vadd.f32 %v4721_v48, %v14105_v9  ;;  %6830 = vmatprep.mubr.bf16.mxu0 %v13123_v14  ;;  %6871 = vmatprep.mubr.bf16.mxu1 %v13123_v14  ;;  %v11606_v17 = vcombine.high %v6444_v39, %v6448_v16  ;;  %v6417_v51 = vld [vmem:[#allocation10 + $0xc28] sm:$0xff]  ;;  %v6463_v39 = vld [vmem:[#allocation10 + $0xd98] sm:$0xff] }
 0x48a   : > { %v4682_v45 = vpop.f32.mrf.mxu0  ;;  %v4723_v32 = vpop.f32.mrf.mxu1  ;;  %v11608_v9 = vcombine.high %v6445_v35, %v6449_v55  ;;  %v11583_v3 = vcombine.low %v6421_v12, %v6425_v57  ;;  %v11576_v61 = vcombine.high %v6413_v13, %v6417_v51  ;;  %v11634_v20 = vcombine.high %v6470_v30, %v6474_v50  ;;  %v6467_v16 = vld [vmem:[#allocation10 + $0xdb8] sm:$0xff]  ;;  %v6438_v12 = vld [vmem:[#allocation10 + $0xcd0] sm:$0xff] }
 0x48b   : > { %6801 = vmatpush1.bf16.msra.mxu0 %v11621_v36  ;;  %6842 = vmatpush1.bf16.msra.mxu1 %v11623_v29  ;;  %v11573_v36 = vcombine.low %v6412_v15, %v6416_v34  ;;  %v11575_v29 = vcombine.low %v6413_v13, %v6417_v51  ;;  %v11636_v48 = vcombine.high %v6471_v1, %v6475_v59  ;;  %v14145_v45 = vrot.slane %v14009_v41, 3  ;;  %v6442_v57 = vld [vmem:[#allocation10 + $0xcf0] sm:$0xff]  ;;  %v6431_v51 = vld [vmem:[#allocation10 + $0xc98] sm:$0xff] }
 0x48c   : > { %v4683_v25 = vpop.f32.mrf.mxu0  ;;  %v4724_v42 = vpop.f32.mrf.mxu1  ;;  %6802 = vmatprep.subr.bf16.mxu0 %v11614_v21  ;;  %6843 = vmatprep.subr.bf16.mxu1 %v11616_v40  ;;  %v6462_v21 = vld [vmem:[#allocation10 + $0xd90] sm:$0xff]  ;;  %v11633_v35 = vcombine.low %v6470_v30, %v6474_v50  ;;  %v11635_v55 = vcombine.low %v6471_v1, %v6475_v59  ;;  %v11627_v23 = vcombine.low %v6463_v39, %v6467_v16  ;;  %v6423_v59 = vld [vmem:[#allocation10 + $0xc58] sm:$0xff] }
 0x48d   : > { %v6466_v40 = vld [vmem:[#allocation10 + $0xdb0] sm:$0xff]  ;;  %v6455_v42 = vld [vmem:[#allocation10 + $0xd58] sm:$0xff] }
 0x48e   : > { %v11626_v32 = vcombine.high %v6462_v21, %v6466_v40  ;;  %v6458_v25 = vld [vmem:[#allocation10 + $0xd70] sm:$0xff]  ;;  %v11625_v5 = vcombine.low %v6462_v21, %v6466_v40 }
 0x48f   : > { %6803 = vmatpush1.bf16.msra.mxu0 %v11613_v49  ;;  %6844 = vmatpush1.bf16.msra.mxu1 %v11615_v0  ;;  %v11628_v49 = vcombine.high %v6463_v39, %v6467_v16  ;;  %v6454_v0 = vld [vmem:[#allocation10 + $0xd50] sm:$0xff]  ;;  %v6415_v16 = vld [vmem:[#allocation10 + $0xc18] sm:$0xff] }
 0x490   : > { %6804 = vmatprep.subr.bf16.mxu0 %v11606_v17  ;;  %6845 = vmatprep.subr.bf16.mxu1 %v11608_v9  ;;  %v6459_v17 = vld [vmem:[#allocation10 + $0xd78] sm:$0xff]  ;;  %v6430_v34 = vld [vmem:[#allocation10 + $0xc90] sm:$0xff] }
 0x491   : > { %v6434_v13 = vld [vmem:[#allocation10 + $0xcb0] sm:$0xff] }
 0x492   : > { %v6422_v50 = vld [vmem:[#allocation10 + $0xc50] sm:$0xff] }
 0x493   : > { %6805 = vmatpush1.bf16.msra.mxu0 %v11605_v53  ;;  %6846 = vmatpush1.bf16.msra.mxu1 %v11607_v44  ;;  %v6426_v1 = vld [vmem:[#allocation10 + $0xc70] sm:$0xff] }
 0x494   : > { %6806 = vmatprep.subr.bf16.mxu0 %v11598_v27  ;;  %6847 = vmatprep.subr.bf16.mxu1 %v11600_v33  ;;  %v11618_v27 = vcombine.high %v6454_v0, %v6458_v25  ;;  %v11620_v33 = vcombine.high %v6455_v42, %v6459_v17  ;;  %v6414_v40 = vld [vmem:[#allocation10 + $0xc10] sm:$0xff] }
 0x495   : > { %v6418_v39 = vld [vmem:[#allocation10 + $0xc30] sm:$0xff] }
 0x497   : > { %6807 = vmatpush1.bf16.msra.mxu0 %v11597_v4  ;;  %6848 = vmatpush1.bf16.msra.mxu1 %v11599_v6 }
 0x498   : > { %6808 = vmatprep.subr.bf16.mxu0 %v11590_v43  ;;  %6849 = vmatprep.subr.bf16.mxu1 %v11592_v18  ;;  %v11617_v43 = vcombine.low %v6454_v0, %v6458_v25  ;;  %v11619_v18 = vcombine.low %v6455_v42, %v6459_v17  ;;  %v7092_v25 = vld [vmem:[#allocation13 + $0x1c0] sm:$0xff] }
 0x499   : > { %v7096_v42 = vld [vmem:[#allocation13 + $0x1e0] sm:$0xff] }
 0x49a   : > { %v7220_v17 = vld [vmem:[#allocation13 + $0x5c0] sm:$0xff] }
 0x49b   : > { %6809 = vmatpush1.bf16.msra.mxu0 %v11589_v37  ;;  %6850 = vmatpush1.bf16.msra.mxu1 %v11591_v28  ;;  %v6439_v37 = vld [vmem:[#allocation10 + $0xcd8] sm:$0xff] }
 0x49c   : > { %6810 = vmatprep.subr.bf16.mxu0 %v11582_v60  ;;  %6851 = vmatprep.subr.bf16.mxu1 %v11584_v47  ;;  %v6443_v28 = vld [vmem:[#allocation10 + $0xcf8] sm:$0xff]  ;;  %v11602_v47 = vcombine.high %v6438_v12, %v6442_v57 }
 0x49d   : > { %v11604_v15 = vcombine.high %v6439_v37, %v6443_v28 }
 0x49f   : > { %6811 = vmatpush1.bf16.msra.mxu0 %v11581_v62  ;;  %6852 = vmatpush1.bf16.msra.mxu1 %v11583_v3  ;;  %v6435_v62 = vld [vmem:[#allocation10 + $0xcb8] sm:$0xff]  ;;  %v11601_v3 = vcombine.low %v6438_v12, %v6442_v57 }
 0x4a0   : > { %6812 = vmatprep.subr.bf16.mxu0 %v11574_v54  ;;  %6853 = vmatprep.subr.bf16.mxu1 %v11576_v61  ;;  %v11603_v54 = vcombine.low %v6439_v37, %v6443_v28  ;;  %v11594_v61 = vcombine.high %v6430_v34, %v6434_v13  ;;  %v11596_v30 = vcombine.high %v6431_v51, %v6435_v62 }
 0x4a3   : > { %6813 = vmatpush1.bf16.msra.mxu0 %v11573_v36  ;;  %6854 = vmatpush1.bf16.msra.mxu1 %v11575_v29  ;;  %v6427_v36 = vld [vmem:[#allocation10 + $0xc78] sm:$0xff]  ;;  %v11593_v29 = vcombine.low %v6430_v34, %v6434_v13  ;;  %v7196_v13 = vld [vmem:[#allocation13 + $0x500] sm:$0xff] }
 0x4a4   : > { %6880 = vmatprep.subr.bf16.mxu0 %v11634_v20  ;;  %6921 = vmatprep.subr.bf16.mxu1 %v11636_v48  ;;  %v11595_v20 = vcombine.low %v6431_v51, %v6435_v62  ;;  %v11586_v48 = vcombine.high %v6422_v50, %v6426_v1  ;;  %v11588_v21 = vcombine.high %v6423_v59, %v6427_v36 }
 0x4a6   : > { %v5155_v9 = vpop.f32.mrf.mxu0  ;;  %v5196_v26 = vpop.f32.mrf.mxu1  ;;  %6831 = vmatmul.mubr.bf16.vlgmr.msra.gmra.mxu0 %v14145_v45  ;;  %6872 = vmatmul.mubr.bf16.vlgmr.msra.gmra.mxu1 %v14145_v45 }
 0x4a7   : > { %v14150_v46 = vadd.f32 %v5155_v9, %v14115_v24  ;;  %v14153_v41 = vadd.f32 %v5196_v26, %v14118_v2  ;;  %6881 = vmatpush1.bf16.msra.mxu0 %v11633_v35  ;;  %6922 = vmatpush1.bf16.msra.mxu1 %v11635_v55  ;;  %v6450_v24 = vld [vmem:[#allocation10 + $0xd30] sm:$0xff]  ;;  %v6451_v2 = vld [vmem:[#allocation10 + $0xd38] sm:$0xff]  ;;  %v11585_v55 = vcombine.low %v6422_v50, %v6426_v1  ;;  %v7224_v9 = vld [vmem:[#allocation13 + $0x5e0] sm:$0xff] }
 0x4a8   : > { %v5157_v53 = vpop.f32.mrf.mxu0  ;;  %v5198_v44 = vpop.f32.mrf.mxu1  ;;  %6882 = vmatprep.subr.bf16.mxu0 %v11626_v32  ;;  %6923 = vmatprep.subr.bf16.mxu1 %v11628_v49  ;;  %v11609_v60 = vcombine.low %v6446_v10, %v6450_v24  ;;  %v6419_v35 = vld [vmem:[#allocation10 + $0xc38] sm:$0xff]  ;;  %v11587_v32 = vcombine.low %v6423_v59, %v6427_v36  ;;  %v11578_v49 = vcombine.high %v6414_v40, %v6418_v39  ;;  %v7064_v59 = vld [vmem:[#allocation13 + $0xe0] sm:$0xff] }
 0x4a9   : > { %v14156_v58 = vadd.f32 %v5157_v53, %v14121_v22  ;;  %v14159_v11 = vadd.f32 %v5198_v44, %v14124_v56  ;;  %6912 = vmatprep.mubr.bf16.mxu0 %v13123_v14  ;;  %6953 = vmatprep.mubr.bf16.mxu1 %v13123_v14  ;;  %v11610_v22 = vcombine.high %v6446_v10, %v6450_v24  ;;  %v7084_v44 = vld [vmem:[#allocation13 + $0x180] sm:$0xff] }
 0x4aa   : > { %v5159_v4 = vpop.f32.mrf.mxu0  ;;  %v5200_v6 = vpop.f32.mrf.mxu1  ;;  %v11612_v56 = vcombine.high %v6447_v7, %v6451_v2  ;;  %v11611_v14 = vcombine.low %v6447_v7, %v6451_v2  ;;  %v11580_v0 = vcombine.high %v6415_v16, %v6419_v35  ;;  %v11577_v26 = vcombine.low %v6414_v40, %v6418_v39  ;;  %v7216_v10 = vld [vmem:[#allocation13 + $0x5a0] sm:$0xff] }
 0x4ab   : > { %6883 = vmatpush1.bf16.msra.mxu0 %v11625_v5  ;;  %6924 = vmatpush1.bf16.msra.mxu1 %v11627_v23  ;;  %v11579_v5 = vcombine.low %v6415_v16, %v6419_v35  ;;  %v11694_v23 = vcombine.high %v7092_v25, %v7096_v42  ;;  %v11822_v53 = vcombine.high %v7220_v17, %v7224_v9  ;;  %v7076_v6 = vld [vmem:[#allocation13 + $0x140] sm:$0xff] }
 0x4ac   : > { %v5160_v38 = vpop.f32.mrf.mxu0  ;;  %v5201_v19 = vpop.f32.mrf.mxu1  ;;  %6884 = vmatprep.subr.bf16.mxu0 %v11618_v27  ;;  %6925 = vmatprep.subr.bf16.mxu1 %v11620_v33  ;;  %v7088_v27 = vld [vmem:[#allocation13 + $0x1a0] sm:$0xff]  ;;  %v11693_v24 = vcombine.low %v7092_v25, %v7096_v42  ;;  %v11821_v7 = vcombine.low %v7220_v17, %v7224_v9 }
 0x4ad   : > { %v7212_v33 = vld [vmem:[#allocation13 + $0x580] sm:$0xff]  ;;  %v11686_v2 = vcombine.high %v7084_v44, %v7088_v27 }
 0x4ae   : > { %v11814_v4 = vcombine.high %v7212_v33, %v7216_v10  ;;  %v7208_v38 = vld [vmem:[#allocation13 + $0x560] sm:$0xff]  ;;  %v11813_v37 = vcombine.low %v7212_v33, %v7216_v10 }
 0x4af   : > { %6885 = vmatpush1.bf16.msra.mxu0 %v11617_v43  ;;  %6926 = vmatpush1.bf16.msra.mxu1 %v11619_v18  ;;  %v7080_v43 = vld [vmem:[#allocation13 + $0x160] sm:$0xff] }
 0x4b0   : > { %6886 = vmatprep.subr.bf16.mxu0 %v11610_v22  ;;  %6927 = vmatprep.subr.bf16.mxu1 %v11612_v56  ;;  %v7204_v18 = vld [vmem:[#allocation13 + $0x540] sm:$0xff]  ;;  %v11685_v56 = vcombine.low %v7084_v44, %v7088_v27 }
 0x4b1   : > { %v7188_v36 = vld [vmem:[#allocation13 + $0x4c0] sm:$0xff] }
 0x4b2   : > { %v7052_v40 = vld [vmem:[#allocation13 + $0x80] sm:$0xff] }
 0x4b3   : > { %6887 = vmatpush1.bf16.msra.mxu0 %v11609_v60  ;;  %6928 = vmatpush1.bf16.msra.mxu1 %v11611_v14  ;;  %v11678_v14 = vcombine.high %v7076_v6, %v7080_v43  ;;  %v7056_v39 = vld [vmem:[#allocation13 + $0xa0] sm:$0xff] }
 0x4b4   : > { %6888 = vmatprep.subr.bf16.mxu0 %v11602_v47  ;;  %6929 = vmatprep.subr.bf16.mxu1 %v11604_v15  ;;  %v11806_v47 = vcombine.high %v7204_v18, %v7208_v38  ;;  %v7068_v15 = vld [vmem:[#allocation13 + $0x100] sm:$0xff] }
 0x4b5   : > { %v7180_v16 = vld [vmem:[#allocation13 + $0x480] sm:$0xff] }
 0x4b6   : > { %v7184_v35 = vld [vmem:[#allocation13 + $0x4a0] sm:$0xff] }
 0x4b7   : > { %6889 = vmatpush1.bf16.msra.mxu0 %v11601_v3  ;;  %6930 = vmatpush1.bf16.msra.mxu1 %v11603_v54  ;;  %v11677_v3 = vcombine.low %v7076_v6, %v7080_v43  ;;  %v11805_v54 = vcombine.low %v7204_v18, %v7208_v38  ;;  %v7044_v25 = vld [vmem:[#allocation13 + $0x40] sm:$0xff] }
 0x4b8   : > { %6890 = vmatprep.subr.bf16.mxu0 %v11594_v61  ;;  %6931 = vmatprep.subr.bf16.mxu1 %v11596_v30  ;;  %v7048_v42 = vld [vmem:[#allocation13 + $0x60] sm:$0xff] }
 0x4b9   : > { %v7172_v17 = vld [vmem:[#allocation13 + $0x440] sm:$0xff] }
 0x4ba   : > { %v7176_v9 = vld [vmem:[#allocation13 + $0x460] sm:$0xff] }
 0x4bb   : > { %6891 = vmatpush1.bf16.msra.mxu0 %v11593_v29  ;;  %6932 = vmatpush1.bf16.msra.mxu1 %v11595_v20  ;;  %v7036_v44 = vld [vmem:[#allocation13] sm:$0xff] }
 0x4bc   : > { %6892 = vmatprep.subr.bf16.mxu0 %v11586_v48  ;;  %6933 = vmatprep.subr.bf16.mxu1 %v11588_v21  ;;  %v7040_v27 = vld [vmem:[#allocation13 + $0x20] sm:$0xff] }
 0x4bd   : > { %v7164_v33 = vld [vmem:[#allocation13 + $0x400] sm:$0xff] }
 0x4be   : > { %v7168_v10 = vld [vmem:[#allocation13 + $0x420] sm:$0xff] }
 0x4bf   : > { %6893 = vmatpush1.bf16.msra.mxu0 %v11585_v55  ;;  %6934 = vmatpush1.bf16.msra.mxu1 %v11587_v32  ;;  %v7156_v6 = vld [vmem:[#allocation13 + $0x3c0] sm:$0xff] }
 0x4c0   : > { %6894 = vmatprep.subr.bf16.mxu0 %v11578_v49  ;;  %6935 = vmatprep.subr.bf16.mxu1 %v11580_v0  ;;  %v11654_v49 = vcombine.high %v7052_v40, %v7056_v39  ;;  %v11782_v0 = vcombine.high %v7180_v16, %v7184_v35  ;;  %v7160_v43 = vld [vmem:[#allocation13 + $0x3e0] sm:$0xff] }
 0x4c1   : > { %v7284_v18 = vld [vmem:[#allocation13 + $0x7c0] sm:$0xff] }
 0x4c2   : > { %v7288_v38 = vld [vmem:[#allocation13 + $0x7e0] sm:$0xff] }
 0x4c3   : > { %6895 = vmatpush1.bf16.msra.mxu0 %v11577_v26  ;;  %6936 = vmatpush1.bf16.msra.mxu1 %v11579_v5  ;;  %v11653_v26 = vcombine.low %v7052_v40, %v7056_v39  ;;  %v11781_v5 = vcombine.low %v7180_v16, %v7184_v35  ;;  %v7260_v39 = vld [vmem:[#allocation13 + $0x700] sm:$0xff] }
 0x4c4   : > { %10150 = vmatprep.subr.bf16.mxu0 %v11694_v23  ;;  %10191 = vmatprep.subr.bf16.mxu1 %v11822_v53  ;;  %v11646_v23 = vcombine.high %v7044_v25, %v7048_v42  ;;  %v11774_v53 = vcombine.high %v7172_v17, %v7176_v9 }
 0x4c6   : > { %v5237_v19 = vpop.f32.mrf.mxu0  ;;  %v5278_v22 = vpop.f32.mrf.mxu1  ;;  %6913 = vmatmul.mubr.bf16.vlgmr.msra.gmra.mxu0 %v14145_v45  ;;  %6954 = vmatmul.mubr.bf16.vlgmr.msra.gmra.mxu1 %v14145_v45 }
 0x4c7   : > { %v14166_v12 = vadd.f32 %v5237_v19, %v14131_v63  ;;  %v14169_v57 = vadd.f32 %v5278_v22, %v14134_v8  ;;  %10151 = vmatpush1.bf16.msra.mxu0 %v11693_v24  ;;  %10192 = vmatpush1.bf16.msra.mxu1 %v11821_v7  ;;  %v7072_v63 = vld [vmem:[#allocation13 + $0x120] sm:$0xff]  ;;  %v11645_v24 = vcombine.low %v7044_v25, %v7048_v42 }
 0x4c8   : > { %v5239_v28 = vpop.f32.mrf.mxu0  ;;  %v5280_v60 = vpop.f32.mrf.mxu1  ;;  %10152 = vmatprep.subr.bf16.mxu0 %v11686_v2  ;;  %10193 = vmatprep.subr.bf16.mxu1 %v11814_v4  ;;  %v7200_v8 = vld [vmem:[#allocation13 + $0x520] sm:$0xff]  ;;  %v11670_v50 = vcombine.high %v7068_v15, %v7072_v63  ;;  %v11669_v29 = vcombine.low %v7068_v15, %v7072_v63  ;;  %v11773_v7 = vcombine.low %v7172_v17, %v7176_v9 }
 0x4c9   : > { %v14172_v34 = vadd.f32 %v5239_v28, %v14137_v31  ;;  %v14175_v45 = vadd.f32 %v5280_v60, %v14140_v52  ;;  %v11798_v1 = vcombine.high %v7196_v13, %v7200_v8  ;;  %v7060_v31 = vld [vmem:[#allocation13 + $0xc0] sm:$0xff]  ;;  %v11797_v20 = vcombine.low %v7196_v13, %v7200_v8 }
 0x4ca   : > { %v5241_v51 = vpop.f32.mrf.mxu0  ;;  %v5282_v62 = vpop.f32.mrf.mxu1  ;;  %v7192_v52 = vld [vmem:[#allocation13 + $0x4e0] sm:$0xff]  ;;  %v11662_v48 = vcombine.high %v7060_v31, %v7064_v59  ;;  %v11661_v55 = vcombine.low %v7060_v31, %v7064_v59  ;;  %v11638_v2 = vcombine.high %v7036_v44, %v7040_v27  ;;  %v11766_v4 = vcombine.high %v7164_v33, %v7168_v10 }
 0x4cb   : > { %10153 = vmatpush1.bf16.msra.mxu0 %v11685_v56  ;;  %10194 = vmatpush1.bf16.msra.mxu1 %v11813_v37  ;;  %v11790_v21 = vcombine.high %v7188_v36, %v7192_v52  ;;  %v11789_v32 = vcombine.low %v7188_v36, %v7192_v52  ;;  %v11637_v19 = vcombine.low %v7036_v44, %v7040_v27  ;;  %v7148_v28 = vld [vmem:[#allocation13 + $0x380] sm:$0xff] }
 0x4cc   : > { %v5242_v61 = vpop.f32.mrf.mxu0  ;;  %v5283_v30 = vpop.f32.mrf.mxu1  ;;  %10154 = vmatprep.subr.bf16.mxu0 %v11678_v14  ;;  %10195 = vmatprep.subr.bf16.mxu1 %v11806_v47  ;;  %v11765_v22 = vcombine.low %v7164_v33, %v7168_v10  ;;  %v11758_v56 = vcombine.high %v7156_v6, %v7160_v43  ;;  %v11886_v37 = vcombine.high %v7284_v18, %v7288_v38  ;;  %v7152_v60 = vld [vmem:[#allocation13 + $0x3a0] sm:$0xff] }
 0x4cd   : > { %v7276_v14 = vld [vmem:[#allocation13 + $0x780] sm:$0xff]  ;;  %v11757_v15 = vcombine.low %v7156_v6, %v7160_v43  ;;  %v11885_v63 = vcombine.low %v7284_v18, %v7288_v38  ;;  %v11750_v13 = vcombine.high %v7148_v28, %v7152_v60 }
 0x4ce   : > { %v7280_v47 = vld [vmem:[#allocation13 + $0x7a0] sm:$0xff] }
 0x4cf   : > { %10155 = vmatpush1.bf16.msra.mxu0 %v11677_v3  ;;  %10196 = vmatpush1.bf16.msra.mxu1 %v11805_v54  ;;  %v11878_v8 = vcombine.high %v7276_v14, %v7280_v47  ;;  %v7140_v51 = vld [vmem:[#allocation13 + $0x340] sm:$0xff]  ;;  %v11877_v59 = vcombine.low %v7276_v14, %v7280_v47 }
 0x4d0   : > { %10156 = vmatprep.subr.bf16.mxu0 %v11670_v50  ;;  %10197 = vmatprep.subr.bf16.mxu1 %v11798_v1  ;;  %v7144_v62 = vld [vmem:[#allocation13 + $0x360] sm:$0xff]  ;;  %v11749_v50 = vcombine.low %v7148_v28, %v7152_v60 }
 0x4d1   : > { %v7268_v3 = vld [vmem:[#allocation13 + $0x740] sm:$0xff] }
 0x4d2   : > { %v7272_v54 = vld [vmem:[#allocation13 + $0x760] sm:$0xff] }
 0x4d3   : > { %10157 = vmatpush1.bf16.msra.mxu0 %v11669_v29  ;;  %10198 = vmatpush1.bf16.msra.mxu1 %v11797_v20  ;;  %v11742_v29 = vcombine.high %v7140_v51, %v7144_v62  ;;  %v11870_v20 = vcombine.high %v7268_v3, %v7272_v54  ;;  %v7128_v17 = vld [vmem:[#allocation13 + $0x2e0] sm:$0xff] }
 0x4d4   : > { %10158 = vmatprep.subr.bf16.mxu0 %v11662_v48  ;;  %10199 = vmatprep.subr.bf16.mxu1 %v11790_v21  ;;  %v7132_v48 = vld [vmem:[#allocation13 + $0x300] sm:$0xff] }
 0x4d5   : > { %v7252_v9 = vld [vmem:[#allocation13 + $0x6c0] sm:$0xff] }
 0x4d6   : > { %v7120_v27 = vld [vmem:[#allocation13 + $0x2a0] sm:$0xff] }
 0x4d7   : > { %10159 = vmatpush1.bf16.msra.mxu0 %v11661_v55  ;;  %10200 = vmatpush1.bf16.msra.mxu1 %v11789_v32  ;;  %v11741_v55 = vcombine.low %v7140_v51, %v7144_v62  ;;  %v11869_v32 = vcombine.low %v7268_v3, %v7272_v54  ;;  %v7244_v33 = vld [vmem:[#allocation13 + $0x680] sm:$0xff] }
 0x4d8   : > { %10160 = vmatprep.subr.bf16.mxu0 %v11654_v49  ;;  %10201 = vmatprep.subr.bf16.mxu1 %v11782_v0  ;;  %v7248_v10 = vld [vmem:[#allocation13 + $0x6a0] sm:$0xff] }
 0x4d9   : > { %v14197_v6 = vld [vmem:[#allocation13 + $0xde0] sm:$0xff]  ;;  %v11845_v47 = vcombine.low %v7244_v33, %v7248_v10 }
 0x4da   : > { %v7236_v28 = vld [vmem:[#allocation13 + $0x640] sm:$0xff] }
 0x4db   : > { %10161 = vmatpush1.bf16.msra.mxu0 %v11653_v26  ;;  %10202 = vmatpush1.bf16.msra.mxu1 %v11781_v5  ;;  %v7240_v60 = vld [vmem:[#allocation13 + $0x660] sm:$0xff] }
 0x4dc   : > { %10162 = vmatprep.subr.bf16.mxu0 %v11646_v23  ;;  %10203 = vmatprep.subr.bf16.mxu1 %v11774_v53  ;;  %v7116_v23 = vld [vmem:[#allocation13 + $0x280] sm:$0xff]  ;;  %v11837_v54 = vcombine.low %v7236_v28, %v7240_v60 }
 0x4dd   : > { %v11717_v14 = vcombine.low %v7116_v23, %v7120_v27  ;;  %v7228_v51 = vld [vmem:[#allocation13 + $0x600] sm:$0xff] }
 0x4de   : > { %v7232_v62 = vld [vmem:[#allocation13 + $0x620] sm:$0xff] }
 0x4df   : > { %10163 = vmatpush1.bf16.msra.mxu0 %v11645_v24  ;;  %10204 = vmatpush1.bf16.msra.mxu1 %v11773_v7  ;;  %v14189_v24 = vld [vmem:[#allocation13 + $0x9c0] sm:$0xff] }
 0x4e0   : > { %10164 = vmatprep.subr.bf16.mxu0 %v11638_v2  ;;  %10205 = vmatprep.subr.bf16.mxu1 %v11766_v4  ;;  %v14191_v7 = vld [vmem:[#allocation13 + $0x9e0] sm:$0xff] }
 0x4e1   : > { %v14193_v2 = vld [vmem:[#allocation13 + $0xdc0] sm:$0xff]  ;;  %v11949_v4 = vcombine.low %v14189_v24, %v14191_v7 }
 0x4e2   : > { %v12077_v38 = vcombine.low %v14193_v2, %v14197_v6 }
 0x4e3   : > { %10165 = vmatpush1.bf16.msra.mxu0 %v11637_v19  ;;  %10206 = vmatpush1.bf16.msra.mxu1 %v11765_v22  ;;  %v11718_v19 = vcombine.high %v7116_v23, %v7120_v27  ;;  %v11846_v22 = vcombine.high %v7244_v33, %v7248_v10 }
 0x4e4   : > { %10166 = vmatprep.subr.bf16.mxu0 %v11758_v56  ;;  %10207 = vmatprep.subr.bf16.mxu1 %v11886_v37  ;;  %v7108_v56 = vld [vmem:[#allocation13 + $0x240] sm:$0xff] }
 0x4e5   : > { %v7112_v37 = vld [vmem:[#allocation13 + $0x260] sm:$0xff] }
 0x4e6   : > { %v5714_v61 = vpop.f32.mrf.mxu0  ;;  %v5755_v30 = vpop.f32.mrf.mxu1  ;;  %v11709_v3 = vcombine.low %v7108_v56, %v7112_v37 }
 0x4e7   : > { %v14178_v1 = vadd.f32 %v5714_v61, %v14150_v46  ;;  %v14181_v31 = vadd.f32 %v5755_v30, %v14153_v41  ;;  %10167 = vmatpush2.bf16.msra.mxu0 %v11757_v15  ;;  %10208 = vmatpush2.bf16.msra.mxu1 %v11885_v63  ;;  %v7136_v46 = vld [vmem:[#allocation13 + $0x320] sm:$0xff]  ;;  %v11710_v15 = vcombine.high %v7108_v56, %v7112_v37  ;;  %v14227_v56 = vld [vmem:[#allocation11] sm:$0xff] }
 0x4e8   : > { %v5716_v36 = vpop.f32.mrf.mxu0  ;;  %v5757_v52 = vpop.f32.mrf.mxu1  ;;  %10168 = vmatprep.subr.bf16.mxu0 %v11750_v13  ;;  %10209 = vmatprep.subr.bf16.mxu1 %v11878_v8  ;;  %v7264_v41 = vld [vmem:[#allocation13 + $0x720] sm:$0xff]  ;;  %v11734_v25 = vcombine.high %v7132_v48, %v7136_v46  ;;  %v11733_v26 = vcombine.low %v7132_v48, %v7136_v46  ;;  %v11838_v63 = vcombine.high %v7236_v28, %v7240_v60 }
 0x4e9   : > { %v14184_v21 = vadd.f32 %v5716_v36, %v14156_v58  ;;  %v14187_v40 = vadd.f32 %v5757_v52, %v14159_v11  ;;  %v11862_v42 = vcombine.high %v7260_v39, %v7264_v41  ;;  %v7124_v58 = vld [vmem:[#allocation13 + $0x2c0] sm:$0xff]  ;;  %v11861_v5 = vcombine.low %v7260_v39, %v7264_v41 }
 0x4ea   : > { %v5718_v16 = vpop.f32.mrf.mxu0  ;;  %v5759_v35 = vpop.f32.mrf.mxu1  ;;  %v7256_v11 = vld [vmem:[#allocation13 + $0x6e0] sm:$0xff]  ;;  %v11726_v53 = vcombine.high %v7124_v58, %v7128_v17  ;;  %v11725_v43 = vcombine.low %v7124_v58, %v7128_v17  ;;  %v11830_v30 = vcombine.high %v7228_v51, %v7232_v62  ;;  %v11950_v36 = vcombine.high %v14189_v24, %v14191_v7 }
 0x4eb   : > { %10169 = vmatpush2.bf16.msra.mxu0 %v11749_v50  ;;  %10210 = vmatpush2.bf16.msra.mxu1 %v11877_v59  ;;  %v11854_v44 = vcombine.high %v7252_v9, %v7256_v11  ;;  %v11853_v18 = vcombine.low %v7252_v9, %v7256_v11  ;;  %v7100_v13 = vld [vmem:[#allocation13 + $0x200] sm:$0xff]  ;;  %v11829_v59 = vcombine.low %v7228_v51, %v7232_v62 }
 0x4ec   : > { %v5719_v49 = vpop.f32.mrf.mxu0  ;;  %v5760_v0 = vpop.f32.mrf.mxu1  ;;  %10170 = vmatprep.subr.bf16.mxu0 %v11742_v29  ;;  %10211 = vmatprep.subr.bf16.mxu1 %v11870_v20  ;;  %v7104_v8 = vld [vmem:[#allocation13 + $0x220] sm:$0xff]  ;;  %v12078_v52 = vcombine.high %v14193_v2, %v14197_v6 }
 0x4ed   : > { %v11702_v61 = vcombine.high %v7100_v13, %v7104_v8  ;;  %v11701_v50 = vcombine.low %v7100_v13, %v7104_v8  ;;  %v7316_v2 = vld [vmem:[#allocation13 + $0x8c0] sm:$0xff] }
 0x4ee   : > { %v7444_v6 = vld [vmem:[#allocation13 + $0xcc0] sm:$0xff] }
 0x4ef   : > { %10171 = vmatpush2.bf16.msra.mxu0 %v11741_v55  ;;  %10212 = vmatpush2.bf16.msra.mxu1 %v11869_v32 }
 0x4f0   : > { %10172 = vmatprep.subr.bf16.mxu0 %v11734_v25  ;;  %10213 = vmatprep.subr.bf16.mxu1 %v11862_v42 }
 0x4f3   : > { %10173 = vmatpush2.bf16.msra.mxu0 %v11733_v26  ;;  %10214 = vmatpush2.bf16.msra.mxu1 %v11861_v5 }
 0x4f4   : > { %10174 = vmatprep.subr.bf16.mxu0 %v11726_v53  ;;  %10215 = vmatprep.subr.bf16.mxu1 %v11854_v44 }
 0x4f7   : > { %10175 = vmatpush2.bf16.msra.mxu0 %v11725_v43  ;;  %10216 = vmatpush2.bf16.msra.mxu1 %v11853_v18  ;;  %v6972_v43 = vlaneseq }
 0x4f8   : > { %10176 = vmatprep.subr.bf16.mxu0 %v11718_v19  ;;  %10217 = vmatprep.subr.bf16.mxu1 %v11846_v22 }
 0x4f9   : > { %v14223_v18 = vshrl.u32 %v6972_v43, 7  ;;  %v7328_v43 = vld [vmem:[#allocation13 + $0x920] sm:$0xff] }
 0x4fb   : > { %10177 = vmatpush2.bf16.msra.mxu0 %v11717_v14  ;;  %10218 = vmatpush2.bf16.msra.mxu1 %v11845_v47  ;;  %v6974_v19 = vsub.s32 0, %v14223_v18  ;;  %v6982_v22 = vsub.s32 2, %v14223_v18  ;;  %v6978_v37 = vsub.s32 1, %v14223_v18  ;;  %v6986_v28 = vsub.s32 3, %v14223_v18 }
 0x4fc   : > { %10178 = vmatprep.subr.bf16.mxu0 %v11710_v15  ;;  %10219 = vmatprep.subr.bf16.mxu1 %v11838_v63 }
 0x4fd   : > { %v6975_v60 = vrot.slane %v14227_v56, %v6974_v19  ;;  %v6983_v14 = vrot.slane %v14227_v56, %v6982_v22  ;;  %v6979_v63 = vrot.slane %v14227_v56, %v6978_v37  ;;  %v6987_v13 = vrot.slane %v14227_v56, %v6986_v28 }
 0x4ff   : > { %10179 = vmatpush2.bf16.msra.mxu0 %v11709_v3  ;;  %10220 = vmatpush2.bf16.msra.mxu1 %v11837_v54 }
 0x500   : > { %10180 = vmatprep.subr.bf16.mxu0 %v11702_v61  ;;  %10221 = vmatprep.subr.bf16.mxu1 %v11830_v30 }
 0x503   : > { %10181 = vmatpush2.bf16.msra.mxu0 %v11701_v50  ;;  %10222 = vmatpush2.bf16.msra.mxu1 %v11829_v59 }
 0x504   : > { %10232 = vmatprep.subr.bf16.mxu0 %v11950_v36  ;;  %10273 = vmatprep.subr.bf16.mxu1 %v12078_v52 }
 0x506   : > { %v5796_v29 = vpop.f32.mrf.mxu0  ;;  %v5837_v20 = vpop.f32.mrf.mxu1 }
 0x507   : > { %v5848_v48 = vadd.f32 %v5796_v29, %v14166_v12  ;;  %v5850_v46 = vadd.f32 %v5837_v20, %v14169_v57 }
 0x508   : > { %v5798_v39 = vpop.f32.mrf.mxu0  ;;  %v5839_v41 = vpop.f32.mrf.mxu1 }
 0x509   : > { %v14208_v16 = vadd.f32 %v5798_v39, %v14172_v34  ;;  %v14211_v35 = vadd.f32 %v5839_v41, %v14175_v45 }
 0x50a   : > { %v5800_v55 = vpop.f32.mrf.mxu0  ;;  %v5841_v32 = vpop.f32.mrf.mxu1 }
 0x50b   : > { %v7340_v32 = vld [vmem:[#allocation13 + $0x980] sm:$0xff] }
 0x50c   : > { %v5801_v49 = vpop.f32.mrf.mxu0  ;;  %v5842_v0 = vpop.f32.mrf.mxu1 }
 0x50d   : > { %v7468_v0 = vld [vmem:[#allocation13 + $0xd80] sm:$0xff] }
 0x526   : > { %v6273_v25 = vpop.f32.mrf.mxu0  ;;  %v6314_v42 = vpop.f32.mrf.mxu1 }
 0x527   : > { %v6403_v58 = vadd.f32 %v6273_v25, %v14178_v1  ;;  %v6405_v12 = vadd.f32 %v6314_v42, %v14181_v31  ;;  %v7472_v25 = vld [vmem:[#allocation13 + $0xda0] sm:$0xff] }
 0x528   : > { %v6275_v17 = vpop.f32.mrf.mxu0  ;;  %v6316_v57 = vpop.f32.mrf.mxu1 }
 0x529   : > { %v6404_v8 = vadd.f32 %v6275_v17, %v14184_v21  ;;  %v6406_v51 = vadd.f32 %v6316_v57, %v14187_v40  ;;  %v7344_v40 = vld [vmem:[#allocation13 + $0x9a0] sm:$0xff] }
 0x52a   : > { %v6277_v9 = vpop.f32.mrf.mxu0  ;;  %v6318_v11 = vpop.f32.mrf.mxu1  ;;  %v11942_v57 = vcombine.high %v7340_v32, %v7344_v40 }
 0x52b   : > { %v12070_v9 = vcombine.high %v7468_v0, %v7472_v25  ;;  %v7332_v11 = vld [vmem:[#allocation13 + $0x940] sm:$0xff] }
 0x52c   : > { %v6278_v26 = vpop.f32.mrf.mxu0  ;;  %v6319_v34 = vpop.f32.mrf.mxu1 }
 0x52d   : > { %v7336_v26 = vld [vmem:[#allocation13 + $0x960] sm:$0xff] }
 0x52e   : > { %v7460_v34 = vld [vmem:[#allocation13 + $0xd40] sm:$0xff] }
 0x546   : > { %v6355_v5 = vpop.f32.mrf.mxu0  ;;  %v6396_v23 = vpop.f32.mrf.mxu1 }
 0x547   : > { %v14215_v45 = vadd.f32 %v6355_v5, %v5848_v48  ;;  %v14217_v53 = vadd.f32 %v6396_v23, %v5850_v46  ;;  %v7464_v5 = vld [vmem:[#allocation13 + $0xd60] sm:$0xff]  ;;  %v11941_v23 = vcombine.low %v7340_v32, %v7344_v40 }
 0x548   : > { %v14219_v44 = vpop.f32.mrf.mxu0  ;;  %v14221_v27 = vpop.f32.mrf.mxu1 }
 0x54a   : > { %v6359_v33 = vpop.f32.mrf.mxu0  ;;  %v6400_v1 = vpop.f32.mrf.mxu1 }
 0x54b   : > { %v12069_v33 = vcombine.low %v7468_v0, %v7472_v25  ;;  %v11934_v1 = vcombine.high %v7332_v11, %v7336_v26  ;;  %v7292_v0 = vld [vmem:[#allocation13 + $0x800] sm:$0xff] }
 0x54c   : > { %v6360_v10 = vpop.f32.mrf.mxu0  ;;  %v6401_v31 = vpop.f32.mrf.mxu1 }
 0x54d   : > { %v12062_v10 = vcombine.high %v7460_v34, %v7464_v5  ;;  %v7324_v31 = vld [vmem:[#allocation13 + $0x900] sm:$0xff] }
 0x54e   : > { %v11926_v24 = vcombine.high %v7324_v31, %v7328_v43 }
 0x566   : > { %v6832_v47 = vpop.f32.mrf.mxu0  ;;  %v6873_v15 = vpop.f32.mrf.mxu1 }
 0x567   : > { %v6962_v62 = vadd.f32 %v6832_v47, %v6403_v58  ;;  %v6964_v3 = vadd.f32 %v6873_v15, %v6405_v12  ;;  %v11933_v47 = vcombine.low %v7332_v11, %v7336_v26  ;;  %v12061_v15 = vcombine.low %v7460_v34, %v7464_v5  ;;  %v7296_v11 = vld [vmem:[#allocation13 + $0x820] sm:$0xff] }
 0x568   : > { %v6834_v54 = vpop.f32.mrf.mxu0  ;;  %v6875_v61 = vpop.f32.mrf.mxu1  ;;  %v7420_v26 = vld [vmem:[#allocation13 + $0xc00] sm:$0xff]  ;;  %v6408_v5 = vadd.f32 %v14219_v44, %v14208_v16 }
 0x569   : > { %v7012_v30 = vadd.f32 %v6975_v60, %v6962_v62  ;;  %v7014_v50 = vadd.f32 %v6983_v14, %v6964_v3  ;;  %v6963_v59 = vadd.f32 %v6834_v54, %v6404_v8  ;;  %v6965_v36 = vadd.f32 %v6875_v61, %v6406_v51  ;;  %v7452_v60 = vld [vmem:[#allocation13 + $0xd00] sm:$0xff] }
 0x56a   : > { %v6836_v52 = vpop.f32.mrf.mxu0  ;;  %v6877_v29 = vpop.f32.mrf.mxu1  ;;  %v7456_v14 = vld [vmem:[#allocation13 + $0xd20] sm:$0xff] }
 0x56b   : > { %v7013_v20 = vadd.f32 %v6979_v63, %v6963_v59  ;;  %v7015_v48 = vadd.f32 %v6987_v13, %v6965_v36  ;;  %v7020_v46 = vmax.f32 %v7012_v30, 0.0  ;;  %v7022_v39 = vmax.f32 %v7014_v50, 0.0  ;;  %v7308_v62 = vld [vmem:[#allocation13 + $0x880] sm:$0xff] }
 0x56c   : > { %v6837_v41 = vpop.f32.mrf.mxu0  ;;  %v6878_v55 = vpop.f32.mrf.mxu1  ;;  %v12054_v7 = vcombine.high %v7452_v60, %v7456_v14  ;;  %v11925_v63 = vcombine.low %v7324_v31, %v7328_v43  ;;  %v12053_v13 = vcombine.low %v7452_v60, %v7456_v14  ;;  %v7312_v3 = vld [vmem:[#allocation13 + $0x8a0] sm:$0xff]  ;;  %v6990_v29 = vsub.s32 4, %v14223_v18 }
 0x56d   : > { %v7021_v21 = vmax.f32 %v7013_v20, 0.0  ;;  %v7023_v49 = vmax.f32 %v7015_v48, 0.0  ;;  %v14249_v12 = vpack.c.bf16 %v7020_v46, %v7020_v46  ;;  %v14251_v17 = vpack.c.bf16 %v7022_v39, %v7022_v39  ;;  %v7436_v54 = vld [vmem:[#allocation13 + $0xc80] sm:$0xff] }
 0x56e   : > { %v7440_v61 = vld [vmem:[#allocation13 + $0xca0] sm:$0xff]  ;;  %v11910_v59 = vcombine.high %v7308_v62, %v7312_v3  ;;  %v6998_v20 = vsub.s32 6, %v14223_v18  ;;  %v6994_v41 = vsub.s32 5, %v14223_v18  ;;  %v7002_v55 = vsub.s32 7, %v14223_v18 }
 0x56f   : > { %v14245_v42 = vpack.c.bf16 %v7021_v21, %v7021_v21  ;;  %v14247_v58 = vpack.c.bf16 %v7023_v49, %v7023_v49  ;;  %v12038_v36 = vcombine.high %v7436_v54, %v7440_v61  ;;  %v7300_v52 = vld [vmem:[#allocation13 + $0x840] sm:$0xff]  ;;  %v11909_v32 = vcombine.low %v7308_v62, %v7312_v3 }
 0x570   : > { %v7304_v48 = vld [vmem:[#allocation13 + $0x860] sm:$0xff]  ;;  %v12037_v21 = vcombine.low %v7436_v54, %v7440_v61  ;;  %v6991_v25 = vrot.slane %v14227_v56, %v6990_v29  ;;  %v6410_v43 = vadd.f32 %v14221_v27, %v14211_v35 }
 0x571   : > { %10182 = vmatprep.mubr.bf16.mxu0 %v14245_v42  ;;  %10223 = vmatprep.mubr.bf16.mxu1 %v14247_v58  ;;  %v7428_v46 = vld [vmem:[#allocation13 + $0xc40] sm:$0xff]  ;;  %v11902_v49 = vcombine.high %v7300_v52, %v7304_v48 }
 0x572   : > { %10183 = vmatmul.mubr.bf16.vlgmr.msra.gmra.mxu0 %v14249_v12  ;;  %10224 = vmatmul.mubr.bf16.vlgmr.msra.gmra.mxu1 %v14251_v17  ;;  %v7432_v39 = vld [vmem:[#allocation13 + $0xc60] sm:$0xff] }
 0x573   : > { %10233 = vmatpush1.bf16.msra.mxu0 %v11949_v4  ;;  %10274 = vmatpush1.bf16.msra.mxu1 %v12077_v38  ;;  %v7320_v4 = vld [vmem:[#allocation13 + $0x8e0] sm:$0xff]  ;;  %v12030_v40 = vcombine.high %v7428_v46, %v7432_v39  ;;  %v12029_v31 = vcombine.low %v7428_v46, %v7432_v39 }
 0x574   : > { %10234 = vmatprep.subr.bf16.mxu0 %v11942_v57  ;;  %10275 = vmatprep.subr.bf16.mxu1 %v12070_v9  ;;  %v7448_v38 = vld [vmem:[#allocation13 + $0xce0] sm:$0xff]  ;;  %v11918_v8 = vcombine.high %v7316_v2, %v7320_v4  ;;  %v11917_v30 = vcombine.low %v7316_v2, %v7320_v4  ;;  %v6999_v57 = vrot.slane %v14227_v56, %v6998_v20 }
 0x575   : > { %v12046_v51 = vcombine.high %v7444_v6, %v7448_v38  ;;  %v12045_v50 = vcombine.low %v7444_v6, %v7448_v38  ;;  %v11901_v9 = vcombine.low %v7300_v52, %v7304_v48  ;;  %v7424_v34 = vld [vmem:[#allocation13 + $0xc20] sm:$0xff]  ;;  %v11893_v38 = vcombine.low %v7292_v0, %v7296_v11 }
 0x576   : > { %v7416_v35 = vld [vmem:[#allocation13 + $0xbe0] sm:$0xff] }
 0x577   : > { %10235 = vmatpush1.bf16.msra.mxu0 %v11941_v23  ;;  %10276 = vmatpush1.bf16.msra.mxu1 %v12069_v33  ;;  %v7540_v27 = vld [vmem:[#allocation13 + $0xfc0] sm:$0xff] }
 0x578   : > { %10236 = vmatprep.subr.bf16.mxu0 %v11934_v1  ;;  %10277 = vmatprep.subr.bf16.mxu1 %v12062_v10  ;;  %v6995_v1 = vrot.slane %v14227_v56, %v6994_v41  ;;  %v7003_v10 = vrot.slane %v14227_v56, %v7002_v55  ;;  %v7404_v61 = vld [vmem:[#allocation13 + $0xb80] sm:$0xff] }
 0x579   : > { %v7536_v52 = vld [vmem:[#allocation13 + $0xfa0] sm:$0xff] }
 0x57b   : > { %10237 = vmatpush1.bf16.msra.mxu0 %v11933_v47  ;;  %10278 = vmatpush1.bf16.msra.mxu1 %v12061_v15  ;;  %v11894_v47 = vcombine.high %v7292_v0, %v7296_v11  ;;  %v12022_v15 = vcombine.high %v7420_v26, %v7424_v34  ;;  %v7400_v0 = vld [vmem:[#allocation13 + $0xb60] sm:$0xff] }
 0x57c   : > { %10238 = vmatprep.subr.bf16.mxu0 %v11926_v24  ;;  %10279 = vmatprep.subr.bf16.mxu1 %v12054_v7  ;;  %v7412_v24 = vld [vmem:[#allocation13 + $0xbc0] sm:$0xff] }
 0x57d   : > { %v12014_v3 = vcombine.high %v7412_v24, %v7416_v35  ;;  %v12013_v48 = vcombine.low %v7412_v24, %v7416_v35  ;;  %v7372_v35 = vld [vmem:[#allocation13 + $0xa80] sm:$0xff] }
 0x57f   : > { %10239 = vmatpush1.bf16.msra.mxu0 %v11925_v63  ;;  %10280 = vmatpush1.bf16.msra.mxu1 %v12053_v13 }
 0x580   : > { %10240 = vmatprep.subr.bf16.mxu0 %v11918_v8  ;;  %10281 = vmatprep.subr.bf16.mxu1 %v12046_v51  ;;  %v12021_v8 = vcombine.low %v7420_v26, %v7424_v34 }
 0x583   : > { %10241 = vmatpush1.bf16.msra.mxu0 %v11917_v30  ;;  %10282 = vmatpush1.bf16.msra.mxu1 %v12045_v50 }
 0x584   : > { %10242 = vmatprep.subr.bf16.mxu0 %v11910_v59  ;;  %10283 = vmatprep.subr.bf16.mxu1 %v12038_v36  ;;  %v7408_v59 = vld [vmem:[#allocation13 + $0xba0] sm:$0xff] }
 0x585   : > { %v7532_v36 = vld [vmem:[#allocation13 + $0xf80] sm:$0xff] }
 0x586   : > { %v6914_v23 = vpop.f32.mrf.mxu0  ;;  %v6955_v33 = vpop.f32.mrf.mxu1  ;;  %v12133_v11 = vcombine.low %v7532_v36, %v7536_v52 }
 0x587   : > { %v6966_v60 = vadd.f32 %v6914_v23, %v14215_v45  ;;  %v6968_v14 = vadd.f32 %v6955_v33, %v14217_v53  ;;  %10243 = vmatpush1.bf16.msra.mxu0 %v11909_v32  ;;  %10284 = vmatpush1.bf16.msra.mxu1 %v12037_v21  ;;  %v7544_v45 = vld [vmem:[#allocation13 + $0xfe0] sm:$0xff]  ;;  %v12006_v21 = vcombine.high %v7404_v61, %v7408_v59 }
 0x588   : > { %v6916_v16 = vpop.f32.mrf.mxu0  ;;  %v6957_v44 = vpop.f32.mrf.mxu1  ;;  %10244 = vmatprep.subr.bf16.mxu0 %v11902_v49  ;;  %10285 = vmatprep.subr.bf16.mxu1 %v12030_v40  ;;  %v12142_v54 = vcombine.high %v7540_v27, %v7544_v45  ;;  %v12141_v32 = vcombine.low %v7540_v27, %v7544_v45  ;;  %v12134_v49 = vcombine.high %v7532_v36, %v7536_v52  ;;  %v7396_v40 = vld [vmem:[#allocation13 + $0xb40] sm:$0xff] }
 0x589   : > { %v14285_v7 = vadd.f32 %v6991_v25, %v6966_v60  ;;  %v14287_v56 = vadd.f32 %v6999_v57, %v6968_v14  ;;  %v6967_v2 = vadd.f32 %v6916_v16, %v6408_v5  ;;  %v6969_v4 = vadd.f32 %v6957_v44, %v6410_v43  ;;  %v7524_v25 = vld [vmem:[#allocation13 + $0xf40] sm:$0xff] }
 0x58a   : > { %v6918_v6 = vpop.f32.mrf.mxu0  ;;  %v6959_v53 = vpop.f32.mrf.mxu1  ;;  %v7528_v57 = vld [vmem:[#allocation13 + $0xf60] sm:$0xff]  ;;  %v11998_v26 = vcombine.high %v7396_v40, %v7400_v0 }
 0x58b   : > { %v7017_v63 = vadd.f32 %v6995_v1, %v6967_v2  ;;  %v7019_v13 = vadd.f32 %v7003_v10, %v6969_v4  ;;  %10245 = vmatpush1.bf16.msra.mxu0 %v11901_v9  ;;  %10286 = vmatpush1.bf16.msra.mxu1 %v12029_v31  ;;  %v12005_v9 = vcombine.low %v7404_v61, %v7408_v59  ;;  %v7388_v5 = vld [vmem:[#allocation13 + $0xb00] sm:$0xff] }
 0x58c   : > { %v6919_v51 = vpop.f32.mrf.mxu0  ;;  %v6960_v62 = vpop.f32.mrf.mxu1  ;;  %10246 = vmatprep.subr.bf16.mxu0 %v11894_v47  ;;  %10287 = vmatprep.subr.bf16.mxu1 %v12022_v15  ;;  %v12126_v34 = vcombine.high %v7524_v25, %v7528_v57  ;;  %v7392_v23 = vld [vmem:[#allocation13 + $0xb20] sm:$0xff]  ;;  %v11997_v10 = vcombine.low %v7396_v40, %v7400_v0  ;;  %v12125_v31 = vcombine.low %v7524_v25, %v7528_v57  ;;  %v7093_v0 = vld [vmem:[#allocation13 + $0x1c8] sm:$0xff] }
 0x58d   : > { %v7025_v30 = vmax.f32 %v7017_v63, 0.0  ;;  %v7027_v50 = vmax.f32 %v7019_v13, 0.0  ;;  %v7516_v33 = vld [vmem:[#allocation13 + $0xf00] sm:$0xff]  ;;  %v11990_v43 = vcombine.high %v7388_v5, %v7392_v23  ;;  %v11989_v15 = vcombine.low %v7388_v5, %v7392_v23  ;;  %v7097_v25 = vld [vmem:[#allocation13 + $0x1e8] sm:$0xff] }
 0x58e   : > { %v7520_v1 = vld [vmem:[#allocation13 + $0xf20] sm:$0xff]  ;;  %v7221_v57 = vld [vmem:[#allocation13 + $0x5c8] sm:$0xff]  ;;  %v7026_v5 = vmax.f32 %v14287_v56, 0.0  ;;  %v11696_v23 = vcombine.high %v7093_v0, %v7097_v25 }
 0x58f   : > { %v14289_v46 = vpack.c.bf16 %v7025_v30, %v7025_v30  ;;  %v14291_v39 = vpack.c.bf16 %v7027_v50, %v7027_v50  ;;  %10247 = vmatpush1.bf16.msra.mxu0 %v11893_v38  ;;  %10288 = vmatpush1.bf16.msra.mxu1 %v12021_v8  ;;  %v12118_v60 = vcombine.high %v7516_v33, %v7520_v1  ;;  %v7380_v14 = vld [vmem:[#allocation13 + $0xac0] sm:$0xff] }
 0x590   : > { %10248 = vmatprep.subr.bf16.mxu0 %v12014_v3  ;;  %10289 = vmatprep.subr.bf16.mxu1 %v12142_v54  ;;  %v7384_v16 = vld [vmem:[#allocation13 + $0xae0] sm:$0xff]  ;;  %v12117_v24 = vcombine.low %v7516_v33, %v7520_v1  ;;  %v7085_v1 = vld [vmem:[#allocation13 + $0x188] sm:$0xff] }
 0x591   : > { %10264 = vmatprep.mubr.bf16.mxu0 %v14289_v46  ;;  %10305 = vmatprep.mubr.bf16.mxu1 %v14291_v39  ;;  %v7508_v44 = vld [vmem:[#allocation13 + $0xec0] sm:$0xff]  ;;  %v11982_v2 = vcombine.high %v7380_v14, %v7384_v16  ;;  %v11981_v53 = vcombine.low %v7380_v14, %v7384_v16  ;;  %v14299_v16 = vpack.c.bf16 %v7026_v5, %v7026_v5 }
 0x592   : > { %v7512_v47 = vld [vmem:[#allocation13 + $0xee0] sm:$0xff] }
 0x593   : > { %10249 = vmatpush2.bf16.msra.mxu0 %v12013_v48  ;;  %10290 = vmatpush2.bf16.msra.mxu1 %v12141_v32  ;;  %v12110_v4 = vcombine.high %v7508_v44, %v7512_v47  ;;  %v7376_v27 = vld [vmem:[#allocation13 + $0xaa0] sm:$0xff]  ;;  %v12109_v38 = vcombine.low %v7508_v44, %v7512_v47  ;;  %v7077_v47 = vld [vmem:[#allocation13 + $0x148] sm:$0xff] }
 0x594   : > { %10250 = vmatprep.subr.bf16.mxu0 %v12006_v21  ;;  %10291 = vmatprep.subr.bf16.mxu1 %v12134_v49  ;;  %v7500_v45 = vld [vmem:[#allocation13 + $0xe80] sm:$0xff]  ;;  %v11974_v63 = vcombine.high %v7372_v35, %v7376_v27  ;;  %v11973_v54 = vcombine.low %v7372_v35, %v7376_v27 }
 0x595   : > { %v7504_v6 = vld [vmem:[#allocation13 + $0xea0] sm:$0xff] }
 0x596   : > { %v12102_v13 = vcombine.high %v7500_v45, %v7504_v6  ;;  %v7364_v8 = vld [vmem:[#allocation13 + $0xa40] sm:$0xff]  ;;  %v12101_v61 = vcombine.low %v7500_v45, %v7504_v6  ;;  %v7069_v6 = vld [vmem:[#allocation13 + $0x108] sm:$0xff] }
 0x597   : > { %10251 = vmatpush2.bf16.msra.mxu0 %v12005_v9  ;;  %10292 = vmatpush2.bf16.msra.mxu1 %v12133_v11  ;;  %v7368_v51 = vld [vmem:[#allocation13 + $0xa60] sm:$0xff]  ;;  %v7225_v9 = vld [vmem:[#allocation13 + $0x5e8] sm:$0xff] }
 0x598   : > { %10252 = vmatprep.subr.bf16.mxu0 %v11998_v26  ;;  %10293 = vmatprep.subr.bf16.mxu1 %v12126_v34  ;;  %v7492_v62 = vld [vmem:[#allocation13 + $0xe40] sm:$0xff]  ;;  %v11966_v30 = vcombine.high %v7364_v8, %v7368_v51  ;;  %v11965_v32 = vcombine.low %v7364_v8, %v7368_v51  ;;  %v7024_v34 = vmax.f32 %v14285_v7, 0.0  ;;  %v11824_v33 = vcombine.high %v7221_v57, %v7225_v9 }
 0x599   : > { %v7496_v3 = vld [vmem:[#allocation13 + $0xe60] sm:$0xff]  ;;  %v11823_v44 = vcombine.low %v7221_v57, %v7225_v9  ;;  %v7045_v9 = vld [vmem:[#allocation13 + $0x48] sm:$0xff] }
 0x59a   : > { %v12094_v50 = vcombine.high %v7492_v62, %v7496_v3  ;;  %v7356_v59 = vld [vmem:[#allocation13 + $0xa00] sm:$0xff]  ;;  %v12093_v21 = vcombine.low %v7492_v62, %v7496_v3  ;;  %v14297_v14 = vpack.c.bf16 %v7024_v34, %v7024_v34  ;;  %v7061_v3 = vld [vmem:[#allocation13 + $0xc8] sm:$0xff] }
 0x59b   : > { %10253 = vmatpush2.bf16.msra.mxu0 %v11997_v10  ;;  %10294 = vmatpush2.bf16.msra.mxu1 %v12125_v31  ;;  %v7360_v36 = vld [vmem:[#allocation13 + $0xa20] sm:$0xff]  ;;  %v7089_v10 = vld [vmem:[#allocation13 + $0x1a8] sm:$0xff] }
 0x59c   : > { %10254 = vmatprep.subr.bf16.mxu0 %v11990_v43  ;;  %10295 = vmatprep.subr.bf16.mxu1 %v12118_v60  ;;  %v7484_v52 = vld [vmem:[#allocation13 + $0xe00] sm:$0xff]  ;;  %v11958_v49 = vcombine.high %v7356_v59, %v7360_v36  ;;  %v11957_v11 = vcombine.low %v7356_v59, %v7360_v36  ;;  %v7213_v31 = vld [vmem:[#allocation13 + $0x588] sm:$0xff]  ;;  %v11695_v60 = vcombine.low %v7093_v0, %v7097_v25 }
 0x59d   : > { %v7488_v48 = vld [vmem:[#allocation13 + $0xe20] sm:$0xff]  ;;  %v7217_v43 = vld [vmem:[#allocation13 + $0x5a8] sm:$0xff]  ;;  %v11688_v7 = vcombine.high %v7085_v1, %v7089_v10 }
 0x59e   : > { %v12086_v40 = vcombine.high %v7484_v52, %v7488_v48  ;;  %v12085_v26 = vcombine.low %v7484_v52, %v7488_v48  ;;  %v11816_v56 = vcombine.high %v7213_v31, %v7217_v43  ;;  %v11815_v35 = vcombine.low %v7213_v31, %v7217_v43  ;;  %v7053_v48 = vld [vmem:[#allocation13 + $0x88] sm:$0xff] }
 0x59f   : > { %10255 = vmatpush2.bf16.msra.mxu0 %v11989_v15  ;;  %10296 = vmatpush2.bf16.msra.mxu1 %v12117_v24  ;;  %v7081_v15 = vld [vmem:[#allocation13 + $0x168] sm:$0xff] }
 0x5a0   : > { %10256 = vmatprep.subr.bf16.mxu0 %v11982_v2  ;;  %10297 = vmatprep.subr.bf16.mxu1 %v12110_v4  ;;  %v7205_v24 = vld [vmem:[#allocation13 + $0x548] sm:$0xff]  ;;  %v11687_v4 = vcombine.low %v7085_v1, %v7089_v10  ;;  %v11680_v27 = vcombine.high %v7077_v47, %v7081_v15 }
 0x5a1   : > { %v7209_v2 = vld [vmem:[#allocation13 + $0x568] sm:$0xff] }
 0x5a2   : > { %v11808_v45 = vcombine.high %v7205_v24, %v7209_v2  ;;  %v11807_v8 = vcombine.low %v7205_v24, %v7209_v2  ;;  %v7177_v34 = vld [vmem:[#allocation13 + $0x468] sm:$0xff] }
 0x5a3   : > { %10257 = vmatpush2.bf16.msra.mxu0 %v11981_v53  ;;  %10298 = vmatpush2.bf16.msra.mxu1 %v12109_v38  ;;  %v7073_v53 = vld [vmem:[#allocation13 + $0x128] sm:$0xff] }
 0x5a4   : > { %10258 = vmatprep.subr.bf16.mxu0 %v11974_v63  ;;  %10299 = vmatprep.subr.bf16.mxu1 %v12102_v13  ;;  %v7197_v38 = vld [vmem:[#allocation13 + $0x508] sm:$0xff]  ;;  %v11679_v13 = vcombine.low %v7077_v47, %v7081_v15  ;;  %v11672_v51 = vcombine.high %v7069_v6, %v7073_v53 }
 0x5a5   : > { %v7201_v63 = vld [vmem:[#allocation13 + $0x528] sm:$0xff] }
 0x5a6   : > { %v11800_v62 = vcombine.high %v7197_v38, %v7201_v63  ;;  %v11799_v59 = vcombine.low %v7197_v38, %v7201_v63  ;;  %v7037_v10 = vld [vmem:[#allocation13 + $0x8] sm:$0xff] }
 0x5a7   : > { %10259 = vmatpush2.bf16.msra.mxu0 %v11973_v54  ;;  %10300 = vmatpush2.bf16.msra.mxu1 %v12101_v61  ;;  %v7065_v54 = vld [vmem:[#allocation13 + $0xe8] sm:$0xff] }
 0x5a8   : > { %10260 = vmatprep.subr.bf16.mxu0 %v11966_v30  ;;  %10301 = vmatprep.subr.bf16.mxu1 %v12094_v50  ;;  %v7189_v61 = vld [vmem:[#allocation13 + $0x4c8] sm:$0xff]  ;;  %v11671_v50 = vcombine.low %v7069_v6, %v7073_v53  ;;  %v11664_v36 = vcombine.high %v7061_v3, %v7065_v54 }
 0x5a9   : > { %v7193_v30 = vld [vmem:[#allocation13 + $0x4e8] sm:$0xff] }
 0x5aa   : > { %v11792_v52 = vcombine.high %v7189_v61, %v7193_v30  ;;  %v11791_v0 = vcombine.low %v7189_v61, %v7193_v30  ;;  %v7041_v31 = vld [vmem:[#allocation13 + $0x28] sm:$0xff] }
 0x5ab   : > { %10261 = vmatpush2.bf16.msra.mxu0 %v11965_v32  ;;  %10302 = vmatpush2.bf16.msra.mxu1 %v12093_v21  ;;  %v7057_v32 = vld [vmem:[#allocation13 + $0xa8] sm:$0xff] }
 0x5ac   : > { %10262 = vmatprep.subr.bf16.mxu0 %v11958_v49  ;;  %10303 = vmatprep.subr.bf16.mxu1 %v12086_v40  ;;  %v7181_v21 = vld [vmem:[#allocation13 + $0x488] sm:$0xff]  ;;  %v11663_v40 = vcombine.low %v7061_v3, %v7065_v54  ;;  %v11656_v25 = vcombine.high %v7053_v48, %v7057_v32  ;;  %v11655_v5 = vcombine.low %v7053_v48, %v7057_v32 }
 0x5ad   : > { %v7185_v49 = vld [vmem:[#allocation13 + $0x4a8] sm:$0xff] }
 0x5ae   : > { %v11784_v57 = vcombine.high %v7181_v21, %v7185_v49  ;;  %v7165_v43 = vld [vmem:[#allocation13 + $0x408] sm:$0xff] }
 0x5af   : > { %10263 = vmatpush2.bf16.msra.mxu0 %v11957_v11  ;;  %10304 = vmatpush2.bf16.msra.mxu1 %v12085_v26  ;;  %v7049_v11 = vld [vmem:[#allocation13 + $0x68] sm:$0xff] }
 0x5b0   : > { %10314 = vmatprep.subr.bf16.mxu0 %v11696_v23  ;;  %10355 = vmatprep.subr.bf16.mxu1 %v11824_v33  ;;  %v7173_v26 = vld [vmem:[#allocation13 + $0x448] sm:$0xff]  ;;  %v11783_v23 = vcombine.low %v7181_v21, %v7185_v49  ;;  %v11648_v33 = vcombine.high %v7045_v9, %v7049_v11 }
 0x5b1   : > { %v11776_v1 = vcombine.high %v7173_v26, %v7177_v34  ;;  %v7157_v15 = vld [vmem:[#allocation13 + $0x3c8] sm:$0xff] }
 0x5b2   : > { %10265 = vmatmul.mubr.bf16.vlgmr.msra.gmra.mxu0 %v14297_v14  ;;  %10306 = vmatmul.mubr.bf16.vlgmr.msra.gmra.mxu1 %v14299_v16  ;;  %v7161_v24 = vld [vmem:[#allocation13 + $0x3e8] sm:$0xff] }
 0x5b3   : > { %10315 = vmatpush1.bf16.msra.mxu0 %v11695_v60  ;;  %10346 = vmatprep.mubr.bf16.mxu0 %v14245_v42  ;;  %v7169_v60 = vld [vmem:[#allocation13 + $0x428] sm:$0xff] }
 0x5b4   : > { %10356 = vmatpush1.bf16.msra.mxu1 %v11823_v44  ;;  %10387 = vmatprep.mubr.bf16.mxu1 %v14247_v58  ;;  %v11647_v44 = vcombine.low %v7045_v9, %v7049_v11  ;;  %v11768_v47 = vcombine.high %v7165_v43, %v7169_v60  ;;  %v7285_v2 = vld [vmem:[#allocation13 + $0x7c8] sm:$0xff] }
 0x5b5   : > { %10316 = vmatprep.subr.bf16.mxu0 %v11688_v7  ;;  %10357 = vmatprep.subr.bf16.mxu1 %v11816_v56  ;;  %v11775_v7 = vcombine.low %v7173_v26, %v7177_v34  ;;  %v11640_v56 = vcombine.high %v7037_v10, %v7041_v31  ;;  %v7149_v53 = vld [vmem:[#allocation13 + $0x388] sm:$0xff] }
 0x5b6   : > { %v7153_v38 = vld [vmem:[#allocation13 + $0x3a8] sm:$0xff] }
 0x5b7   : > { %10317 = vmatpush1.bf16.msra.mxu0 %v11687_v4  ;;  %v7289_v4 = vld [vmem:[#allocation13 + $0x7e8] sm:$0xff] }
 0x5b8   : > { %10358 = vmatpush1.bf16.msra.mxu1 %v11815_v35  ;;  %10318 = vmatprep.subr.bf16.mxu0 %v11680_v27  ;;  %v11639_v35 = vcombine.low %v7037_v10, %v7041_v31  ;;  %v11767_v27 = vcombine.low %v7165_v43, %v7169_v60  ;;  %v11888_v6 = vcombine.high %v7285_v2, %v7289_v4  ;;  %v7277_v63 = vld [vmem:[#allocation13 + $0x788] sm:$0xff] }
 0x5b9   : > { %10359 = vmatprep.subr.bf16.mxu1 %v11808_v45  ;;  %v11760_v45 = vcombine.high %v7157_v15, %v7161_v24  ;;  %v7141_v54 = vld [vmem:[#allocation13 + $0x348] sm:$0xff] }
 0x5ba   : > { %v7145_v61 = vld [vmem:[#allocation13 + $0x368] sm:$0xff] }
 0x5bb   : > { %10319 = vmatpush1.bf16.msra.mxu0 %v11679_v13  ;;  %v7281_v13 = vld [vmem:[#allocation13 + $0x7a8] sm:$0xff] }
 0x5bc   : > { %10360 = vmatpush1.bf16.msra.mxu1 %v11807_v8  ;;  %10320 = vmatprep.subr.bf16.mxu0 %v11672_v51  ;;  %v11759_v8 = vcombine.low %v7157_v15, %v7161_v24  ;;  %v11887_v51 = vcombine.low %v7285_v2, %v7289_v4  ;;  %v11880_v3 = vcombine.high %v7277_v63, %v7281_v13  ;;  %v7269_v30 = vld [vmem:[#allocation13 + $0x748] sm:$0xff] }
 0x5bd   : > { %10361 = vmatprep.subr.bf16.mxu1 %v11800_v62  ;;  %v11752_v62 = vcombine.high %v7149_v53, %v7153_v38  ;;  %v7133_v32 = vld [vmem:[#allocation13 + $0x308] sm:$0xff] }
 0x5be   : > { %v7137_v21 = vld [vmem:[#allocation13 + $0x328] sm:$0xff] }
 0x5bf   : > { %10321 = vmatpush1.bf16.msra.mxu0 %v11671_v50  ;;  %v7273_v50 = vld [vmem:[#allocation13 + $0x768] sm:$0xff] }
 0x5c0   : > { %10362 = vmatpush1.bf16.msra.mxu1 %v11799_v59  ;;  %10322 = vmatprep.subr.bf16.mxu0 %v11664_v36  ;;  %v11751_v59 = vcombine.low %v7149_v53, %v7153_v38  ;;  %v11879_v36 = vcombine.low %v7277_v63, %v7281_v13  ;;  %v11872_v48 = vcombine.high %v7269_v30, %v7273_v50  ;;  %v7261_v49 = vld [vmem:[#allocation13 + $0x708] sm:$0xff] }
 0x5c1   : > { %10363 = vmatprep.subr.bf16.mxu1 %v11792_v52  ;;  %v11744_v52 = vcombine.high %v7141_v54, %v7145_v61  ;;  %v7125_v11 = vld [vmem:[#allocation13 + $0x2c8] sm:$0xff] }
 0x5c2   : > { %v7129_v26 = vld [vmem:[#allocation13 + $0x2e8] sm:$0xff] }
 0x5c3   : > { %10323 = vmatpush1.bf16.msra.mxu0 %v11663_v40  ;;  %v7265_v40 = vld [vmem:[#allocation13 + $0x728] sm:$0xff] }
 0x5c4   : > { %10364 = vmatpush1.bf16.msra.mxu1 %v11791_v0  ;;  %10324 = vmatprep.subr.bf16.mxu0 %v11656_v25  ;;  %v11743_v0 = vcombine.low %v7141_v54, %v7145_v61  ;;  %v11871_v25 = vcombine.low %v7269_v30, %v7273_v50  ;;  %v11864_v9 = vcombine.high %v7261_v49, %v7265_v40  ;;  %v7253_v34 = vld [vmem:[#allocation13 + $0x6c8] sm:$0xff] }
 0x5c5   : > { %10365 = vmatprep.subr.bf16.mxu1 %v11784_v57  ;;  %v11736_v57 = vcombine.high %v7133_v32, %v7137_v21  ;;  %v7117_v31 = vld [vmem:[#allocation13 + $0x288] sm:$0xff] }
 0x5c6   : > { %v7121_v43 = vld [vmem:[#allocation13 + $0x2a8] sm:$0xff] }
 0x5c7   : > { %10325 = vmatpush1.bf16.msra.mxu0 %v11655_v5  ;;  %v7257_v5 = vld [vmem:[#allocation13 + $0x6e8] sm:$0xff] }
 0x5c8   : > { %10366 = vmatpush1.bf16.msra.mxu1 %v11783_v23  ;;  %10326 = vmatprep.subr.bf16.mxu0 %v11648_v33  ;;  %v11735_v23 = vcombine.low %v7133_v32, %v7137_v21  ;;  %v11863_v33 = vcombine.low %v7261_v49, %v7265_v40  ;;  %v11856_v10 = vcombine.high %v7253_v34, %v7257_v5  ;;  %v7245_v60 = vld [vmem:[#allocation13 + $0x688] sm:$0xff] }
 0x5c9   : > { %10367 = vmatprep.subr.bf16.mxu1 %v11776_v1  ;;  %v11728_v1 = vcombine.high %v7125_v11, %v7129_v26  ;;  %v7109_v24 = vld [vmem:[#allocation13 + $0x248] sm:$0xff] }
 0x5ca   : > { %v7113_v2 = vld [vmem:[#allocation13 + $0x268] sm:$0xff] }
 0x5cb   : > { %10327 = vmatpush1.bf16.msra.mxu0 %v11647_v44  ;;  %v7249_v44 = vld [vmem:[#allocation13 + $0x6a8] sm:$0xff] }
 0x5cc   : > { %10368 = vmatpush1.bf16.msra.mxu1 %v11775_v7  ;;  %10328 = vmatprep.subr.bf16.mxu0 %v11640_v56  ;;  %v11727_v7 = vcombine.low %v7125_v11, %v7129_v26  ;;  %v11855_v56 = vcombine.low %v7253_v34, %v7257_v5  ;;  %v11848_v15 = vcombine.high %v7245_v60, %v7249_v44  ;;  %v7237_v4 = vld [vmem:[#allocation13 + $0x648] sm:$0xff] }
 0x5cd   : > { %10369 = vmatprep.subr.bf16.mxu1 %v11768_v47  ;;  %v11720_v47 = vcombine.high %v7117_v31, %v7121_v43  ;;  %v7101_v38 = vld [vmem:[#allocation13 + $0x208] sm:$0xff] }
 0x5ce   : > { %v7105_v63 = vld [vmem:[#allocation13 + $0x228] sm:$0xff] }
 0x5cf   : > { %10329 = vmatpush1.bf16.msra.mxu0 %v11639_v35  ;;  %v7241_v35 = vld [vmem:[#allocation13 + $0x668] sm:$0xff] }
 0x5d0   : > { %10370 = vmatpush1.bf16.msra.mxu1 %v11767_v27  ;;  %10330 = vmatprep.subr.bf16.mxu0 %v11760_v45  ;;  %v11719_v27 = vcombine.low %v7117_v31, %v7121_v43  ;;  %v11847_v45 = vcombine.low %v7245_v60, %v7249_v44  ;;  %v11840_v53 = vcombine.high %v7237_v4, %v7241_v35  ;;  %v7229_v13 = vld [vmem:[#allocation13 + $0x608] sm:$0xff] }
 0x5d1   : > { %10371 = vmatprep.subr.bf16.mxu1 %v11888_v6  ;;  %v11712_v6 = vcombine.high %v7109_v24, %v7113_v2  ;;  %v7349_v61 = vld [vmem:[#allocation13 + $0x9c8] sm:$0xff] }
 0x5d2   : > { %v7353_v30 = vld [vmem:[#allocation13 + $0x9e8] sm:$0xff] }
 0x5d3   : > { %10331 = vmatpush2.bf16.msra.mxu0 %v11759_v8  ;;  %v7233_v8 = vld [vmem:[#allocation13 + $0x628] sm:$0xff]  ;;  %v11951_v40 = vcombine.low %v7349_v61, %v7353_v30 }
 0x5d4   : > { %10372 = vmatpush2.bf16.msra.mxu1 %v11887_v51  ;;  %10332 = vmatprep.subr.bf16.mxu0 %v11752_v62  ;;  %v11711_v51 = vcombine.low %v7109_v24, %v7113_v2  ;;  %v11839_v62 = vcombine.low %v7237_v4, %v7241_v35  ;;  %v11832_v54 = vcombine.high %v7229_v13, %v7233_v8  ;;  %v7477_v50 = vld [vmem:[#allocation13 + $0xdc8] sm:$0xff] }
 0x5d5   : > { %10373 = vmatprep.subr.bf16.mxu1 %v11880_v3  ;;  %v11704_v3 = vcombine.high %v7101_v38, %v7105_v63  ;;  %v7341_v21 = vld [vmem:[#allocation13 + $0x988] sm:$0xff] }
 0x5d6   : > { %v7345_v49 = vld [vmem:[#allocation13 + $0x9a8] sm:$0xff] }
 0x5d7   : > { %10333 = vmatpush2.bf16.msra.mxu0 %v11751_v59  ;;  %v7481_v59 = vld [vmem:[#allocation13 + $0xde8] sm:$0xff] }
 0x5d8   : > { %10374 = vmatpush2.bf16.msra.mxu1 %v11879_v36  ;;  %10334 = vmatprep.subr.bf16.mxu0 %v11744_v52  ;;  %v11703_v36 = vcombine.low %v7101_v38, %v7105_v63  ;;  %v11831_v52 = vcombine.low %v7229_v13, %v7233_v8  ;;  %v12080_v32 = vcombine.high %v7477_v50, %v7481_v59  ;;  %v7333_v11 = vld [vmem:[#allocation13 + $0x948] sm:$0xff] }
 0x5d9   : > { %10375 = vmatprep.subr.bf16.mxu1 %v11872_v48  ;;  %v11952_v48 = vcombine.high %v7349_v61, %v7353_v30  ;;  %v7337_v26 = vld [vmem:[#allocation13 + $0x968] sm:$0xff] }
 0x5da   : > { %v7461_v5 = vld [vmem:[#allocation13 + $0xd48] sm:$0xff] }
 0x5db   : > { %10335 = vmatpush2.bf16.msra.mxu0 %v11743_v0  ;;  %v7469_v0 = vld [vmem:[#allocation13 + $0xd88] sm:$0xff] }
 0x5dc   : > { %10376 = vmatpush2.bf16.msra.mxu1 %v11871_v25  ;;  %10336 = vmatprep.subr.bf16.mxu0 %v11736_v57  ;;  %v7473_v25 = vld [vmem:[#allocation13 + $0xda8] sm:$0xff]  ;;  %v12079_v57 = vcombine.low %v7477_v50, %v7481_v59 }
 0x5dd   : > { %10377 = vmatprep.subr.bf16.mxu1 %v11864_v9  ;;  %v11944_v9 = vcombine.high %v7341_v21, %v7345_v49  ;;  %v12072_v34 = vcombine.high %v7469_v0, %v7473_v25  ;;  %v7325_v43 = vld [vmem:[#allocation13 + $0x908] sm:$0xff] }
 0x5de   : > { %v7329_v60 = vld [vmem:[#allocation13 + $0x928] sm:$0xff] }
 0x5df   : > { %10337 = vmatpush2.bf16.msra.mxu0 %v11735_v23  ;;  %v7465_v23 = vld [vmem:[#allocation13 + $0xd68] sm:$0xff] }
 0x5e0   : > { %10378 = vmatpush2.bf16.msra.mxu1 %v11863_v33  ;;  %10338 = vmatprep.subr.bf16.mxu0 %v11728_v1  ;;  %v11943_v33 = vcombine.low %v7341_v21, %v7345_v49  ;;  %v12071_v1 = vcombine.low %v7469_v0, %v7473_v25  ;;  %v12064_v31 = vcombine.high %v7461_v5, %v7465_v23  ;;  %v7453_v44 = vld [vmem:[#allocation13 + $0xd08] sm:$0xff] }
 0x5e1   : > { %10379 = vmatprep.subr.bf16.mxu1 %v11856_v10  ;;  %v11936_v10 = vcombine.high %v7333_v11, %v7337_v26  ;;  %v7317_v2 = vld [vmem:[#allocation13 + $0x8c8] sm:$0xff] }
 0x5e2   : > { %v7321_v4 = vld [vmem:[#allocation13 + $0x8e8] sm:$0xff] }
 0x5e3   : > { %10339 = vmatpush2.bf16.msra.mxu0 %v11727_v7  ;;  %v7457_v7 = vld [vmem:[#allocation13 + $0xd28] sm:$0xff] }
 0x5e4   : > { %10380 = vmatpush2.bf16.msra.mxu1 %v11855_v56  ;;  %10340 = vmatprep.subr.bf16.mxu0 %v11720_v47  ;;  %v11935_v56 = vcombine.low %v7333_v11, %v7337_v26  ;;  %v12063_v47 = vcombine.low %v7461_v5, %v7465_v23  ;;  %v12056_v24 = vcombine.high %v7453_v44, %v7457_v7  ;;  %v7445_v35 = vld [vmem:[#allocation13 + $0xcc8] sm:$0xff] }
 0x5e5   : > { %10381 = vmatprep.subr.bf16.mxu1 %v11848_v15  ;;  %v11928_v15 = vcombine.high %v7325_v43, %v7329_v60  ;;  %v7309_v63 = vld [vmem:[#allocation13 + $0x888] sm:$0xff] }
 0x5e6   : > { %v7313_v13 = vld [vmem:[#allocation13 + $0x8a8] sm:$0xff] }
 0x5e7   : > { %10341 = vmatpush2.bf16.msra.mxu0 %v11719_v27  ;;  %v7449_v27 = vld [vmem:[#allocation13 + $0xce8] sm:$0xff] }
 0x5e8   : > { %10382 = vmatpush2.bf16.msra.mxu1 %v11847_v45  ;;  %10342 = vmatprep.subr.bf16.mxu0 %v11712_v6  ;;  %v11927_v45 = vcombine.low %v7325_v43, %v7329_v60  ;;  %v12055_v6 = vcombine.low %v7453_v44, %v7457_v7  ;;  %v12048_v38 = vcombine.high %v7445_v35, %v7449_v27  ;;  %v7437_v8 = vld [vmem:[#allocation13 + $0xc88] sm:$0xff] }
 0x5e9   : > { %10383 = vmatprep.subr.bf16.mxu1 %v11840_v53  ;;  %v11920_v53 = vcombine.high %v7317_v2, %v7321_v4  ;;  %v7301_v30 = vld [vmem:[#allocation13 + $0x848] sm:$0xff] }
 0x5ea   : > { %v7305_v50 = vld [vmem:[#allocation13 + $0x868] sm:$0xff] }
 0x5eb   : > { %10343 = vmatpush2.bf16.msra.mxu0 %v11711_v51  ;;  %v7441_v51 = vld [vmem:[#allocation13 + $0xca8] sm:$0xff] }
 0x5ec   : > { %10384 = vmatpush2.bf16.msra.mxu1 %v11839_v62  ;;  %10344 = vmatprep.subr.bf16.mxu0 %v11704_v3  ;;  %v11919_v62 = vcombine.low %v7317_v2, %v7321_v4  ;;  %v12047_v3 = vcombine.low %v7445_v35, %v7449_v27  ;;  %v12040_v61 = vcombine.high %v7437_v8, %v7441_v51  ;;  %v7429_v59 = vld [vmem:[#allocation13 + $0xc48] sm:$0xff] }
 0x5ed   : > { %10385 = vmatprep.subr.bf16.mxu1 %v11832_v54  ;;  %v11912_v54 = vcombine.high %v7309_v63, %v7313_v13  ;;  %v7293_v49 = vld [vmem:[#allocation13 + $0x808] sm:$0xff] }
 0x5ee   : > { %v7421_v0 = vld [vmem:[#allocation13 + $0xc08] sm:$0xff] }
 0x5ef   : > { %10345 = vmatpush2.bf16.msra.mxu0 %v11703_v36  ;;  %v7433_v36 = vld [vmem:[#allocation13 + $0xc68] sm:$0xff] }
 0x5f0   : > { %10386 = vmatpush2.bf16.msra.mxu1 %v11831_v52  ;;  %10396 = vmatprep.subr.bf16.mxu0 %v11952_v48  ;;  %v11911_v52 = vcombine.low %v7309_v63, %v7313_v13  ;;  %v12039_v48 = vcombine.low %v7437_v8, %v7441_v51  ;;  %v12032_v21 = vcombine.high %v7429_v59, %v7433_v36  ;;  %v7425_v25 = vld [vmem:[#allocation13 + $0xc28] sm:$0xff] }
 0x5f1   : > { %10437 = vmatprep.subr.bf16.mxu1 %v12080_v32  ;;  %v11904_v32 = vcombine.high %v7301_v30, %v7305_v50  ;;  %v12024_v26 = vcombine.high %v7421_v0, %v7425_v25  ;;  %v7417_v5 = vld [vmem:[#allocation13 + $0xbe8] sm:$0xff] }
 0x5f2   : > { %10347 = vmatmul.mubr.bf16.vlgmr.msra.gmra.mxu0 %v14249_v12  ;;  %v7541_v23 = vld [vmem:[#allocation13 + $0xfc8] sm:$0xff] }
 0x5f3   : > { %10388 = vmatmul.mubr.bf16.vlgmr.msra.gmra.mxu1 %v14251_v17  ;;  %10397 = vmatpush1.bf16.msra.mxu0 %v11951_v40  ;;  %v7297_v40 = vld [vmem:[#allocation13 + $0x828] sm:$0xff] }
 0x5f4   : > { %10428 = vmatprep.mubr.bf16.mxu0 %v14289_v46  ;;  %10438 = vmatpush1.bf16.msra.mxu1 %v12079_v57  ;;  %v11903_v57 = vcombine.low %v7301_v30, %v7305_v50  ;;  %v11896_v11 = vcombine.high %v7293_v49, %v7297_v40  ;;  %v7405_v60 = vld [vmem:[#allocation13 + $0xb88] sm:$0xff] }
 0x5f5   : > { %10469 = vmatprep.mubr.bf16.mxu1 %v14291_v39  ;;  %10398 = vmatprep.subr.bf16.mxu0 %v11944_v9  ;;  %v12031_v9 = vcombine.low %v7429_v59, %v7433_v36  ;;  %v7409_v44 = vld [vmem:[#allocation13 + $0xba8] sm:$0xff] }
 0x5f6   : > { %10439 = vmatprep.subr.bf16.mxu1 %v12072_v34  ;;  %v7413_v34 = vld [vmem:[#allocation13 + $0xbc8] sm:$0xff] }
 0x5f7   : > { %10399 = vmatpush1.bf16.msra.mxu0 %v11943_v33  ;;  %v7545_v33 = vld [vmem:[#allocation13 + $0xfe8] sm:$0xff] }
 0x5f8   : > { %10440 = vmatpush1.bf16.msra.mxu1 %v12071_v1  ;;  %10400 = vmatprep.subr.bf16.mxu0 %v11936_v10  ;;  %v11895_v1 = vcombine.low %v7293_v49, %v7297_v40  ;;  %v12023_v10 = vcombine.low %v7421_v0, %v7425_v25  ;;  %v12144_v43 = vcombine.high %v7541_v23, %v7545_v33  ;;  %v7533_v7 = vld [vmem:[#allocation13 + $0xf88] sm:$0xff] }
 0x5f9   : > { %10441 = vmatprep.subr.bf16.mxu1 %v12064_v31  ;;  %v12016_v31 = vcombine.high %v7413_v34, %v7417_v5  ;;  %v7397_v4 = vld [vmem:[#allocation13 + $0xb48] sm:$0xff] }
 0x5fa   : > { %v7401_v35 = vld [vmem:[#allocation13 + $0xb68] sm:$0xff] }
 0x5fb   : > { %10401 = vmatpush1.bf16.msra.mxu0 %v11935_v56  ;;  %v7537_v56 = vld [vmem:[#allocation13 + $0xfa8] sm:$0xff] }
 0x5fc   : > { %10442 = vmatpush1.bf16.msra.mxu1 %v12063_v47  ;;  %10402 = vmatprep.subr.bf16.mxu0 %v11928_v15  ;;  %v12015_v47 = vcombine.low %v7413_v34, %v7417_v5  ;;  %v12143_v15 = vcombine.low %v7541_v23, %v7545_v33  ;;  %v12136_v2 = vcombine.high %v7533_v7, %v7537_v56  ;;  %v7525_v27 = vld [vmem:[#allocation13 + $0xf48] sm:$0xff] }
 0x5fd   : > { %10443 = vmatprep.subr.bf16.mxu1 %v12056_v24  ;;  %v12008_v24 = vcombine.high %v7405_v60, %v7409_v44  ;;  %v7389_v13 = vld [vmem:[#allocation13 + $0xb08] sm:$0xff] }
 0x5fe   : > { %v7393_v8 = vld [vmem:[#allocation13 + $0xb28] sm:$0xff] }
 0x5ff   : > { %10403 = vmatpush1.bf16.msra.mxu0 %v11927_v45  ;;  %v7529_v45 = vld [vmem:[#allocation13 + $0xf68] sm:$0xff] }
 0x600   : > { %10444 = vmatpush1.bf16.msra.mxu1 %v12055_v6  ;;  %10404 = vmatprep.subr.bf16.mxu0 %v11920_v53  ;;  %v12007_v6 = vcombine.low %v7405_v60, %v7409_v44  ;;  %v12135_v53 = vcombine.low %v7533_v7, %v7537_v56  ;;  %v12128_v63 = vcombine.high %v7525_v27, %v7529_v45  ;;  %v7517_v51 = vld [vmem:[#allocation13 + $0xf08] sm:$0xff] }
 0x601   : > { %10445 = vmatprep.subr.bf16.mxu1 %v12048_v38  ;;  %v12000_v38 = vcombine.high %v7397_v4, %v7401_v35  ;;  %v7381_v50 = vld [vmem:[#allocation13 + $0xac8] sm:$0xff] }
 0x602   : > { %v7385_v59 = vld [vmem:[#allocation13 + $0xae8] sm:$0xff] }
 0x603   : > { %10405 = vmatpush1.bf16.msra.mxu0 %v11919_v62  ;;  %v7521_v62 = vld [vmem:[#allocation13 + $0xf28] sm:$0xff] }
 0x604   : > { %10446 = vmatpush1.bf16.msra.mxu1 %v12047_v3  ;;  %10406 = vmatprep.subr.bf16.mxu0 %v11912_v54  ;;  %v11999_v3 = vcombine.low %v7397_v4, %v7401_v35  ;;  %v12127_v54 = vcombine.low %v7525_v27, %v7529_v45  ;;  %v12120_v30 = vcombine.high %v7517_v51, %v7521_v62  ;;  %v7509_v36 = vld [vmem:[#allocation13 + $0xec8] sm:$0xff]  ;;  %v7094_v35 = vld [vmem:[#allocation13 + $0x1d0] sm:$0xff] }
 0x605   : > { %10447 = vmatprep.subr.bf16.mxu1 %v12040_v61  ;;  %v11992_v61 = vcombine.high %v7389_v13, %v7393_v8  ;;  %v7373_v40 = vld [vmem:[#allocation13 + $0xa88] sm:$0xff]  ;;  %v7098_v27 = vld [vmem:[#allocation13 + $0x1f0] sm:$0xff] }
 0x606   : > { %v7377_v0 = vld [vmem:[#allocation13 + $0xaa8] sm:$0xff]  ;;  %v7222_v45 = vld [vmem:[#allocation13 + $0x5d0] sm:$0xff] }
 0x607   : > { %10407 = vmatpush1.bf16.msra.mxu0 %v11911_v52  ;;  %v7513_v52 = vld [vmem:[#allocation13 + $0xee8] sm:$0xff] }
 0x608   : > { %10448 = vmatpush1.bf16.msra.mxu1 %v12039_v48  ;;  %10408 = vmatprep.subr.bf16.mxu0 %v11904_v32  ;;  %v11991_v48 = vcombine.low %v7389_v13, %v7393_v8  ;;  %v12119_v32 = vcombine.low %v7517_v51, %v7521_v62  ;;  %v12112_v49 = vcombine.high %v7509_v36, %v7513_v52  ;;  %v7501_v25 = vld [vmem:[#allocation13 + $0xe88] sm:$0xff]  ;;  %v14309_v13 = vld [vmem:[#allocation14] sm:$0xff]  ;;  %v7086_v51 = vld [vmem:[#allocation13 + $0x190] sm:$0xff] }
 0x609   : > { %10449 = vmatprep.subr.bf16.mxu1 %v12032_v21  ;;  %v11984_v21 = vcombine.high %v7381_v50, %v7385_v59  ;;  %v7365_v5 = vld [vmem:[#allocation13 + $0xa48] sm:$0xff]  ;;  %v7090_v62 = vld [vmem:[#allocation13 + $0x1b0] sm:$0xff] }
 0x60a   : > { %v7369_v23 = vld [vmem:[#allocation13 + $0xa68] sm:$0xff] }
 0x60b   : > { %10409 = vmatpush1.bf16.msra.mxu0 %v11903_v57  ;;  %v7505_v57 = vld [vmem:[#allocation13 + $0xea8] sm:$0xff] }
 0x60c   : > { %10450 = vmatpush1.bf16.msra.mxu1 %v12031_v9  ;;  %10410 = vmatprep.subr.bf16.mxu0 %v11896_v11  ;;  %v11983_v9 = vcombine.low %v7381_v50, %v7385_v59  ;;  %v12111_v11 = vcombine.low %v7509_v36, %v7513_v52  ;;  %v12104_v34 = vcombine.high %v7501_v25, %v7505_v57  ;;  %v7493_v33 = vld [vmem:[#allocation13 + $0xe48] sm:$0xff]  ;;  %v7078_v52 = vld [vmem:[#allocation13 + $0x150] sm:$0xff] }
 0x60d   : > { %10451 = vmatprep.subr.bf16.mxu1 %v12024_v26  ;;  %v11976_v26 = vcombine.high %v7373_v40, %v7377_v0  ;;  %v7357_v44 = vld [vmem:[#allocation13 + $0xa08] sm:$0xff]  ;;  %v10117_v59 = vrot.slane %v14309_v13, %v6978_v37  ;;  %v11690_v36 = vcombine.high %v7086_v51, %v7090_v62 }
 0x60e   : > { %v7361_v7 = vld [vmem:[#allocation13 + $0xa28] sm:$0xff] }
 0x60f   : > { %10411 = vmatpush1.bf16.msra.mxu0 %v11895_v1  ;;  %v7497_v1 = vld [vmem:[#allocation13 + $0xe68] sm:$0xff] }
 0x610   : > { %10452 = vmatpush1.bf16.msra.mxu1 %v12023_v10  ;;  %10412 = vmatprep.subr.bf16.mxu0 %v12016_v31  ;;  %v11975_v10 = vcombine.low %v7373_v40, %v7377_v0  ;;  %v12103_v31 = vcombine.low %v7501_v25, %v7505_v57  ;;  %v12096_v60 = vcombine.high %v7493_v33, %v7497_v1  ;;  %v7485_v56 = vld [vmem:[#allocation13 + $0xe08] sm:$0xff]  ;;  %v7206_v40 = vld [vmem:[#allocation13 + $0x550] sm:$0xff] }
 0x611   : > { %10453 = vmatprep.subr.bf16.mxu1 %v12144_v43  ;;  %v11968_v43 = vcombine.high %v7365_v5, %v7369_v23  ;;  %v11689_v25 = vcombine.low %v7086_v51, %v7090_v62  ;;  %v7182_v51 = vld [vmem:[#allocation13 + $0x490] sm:$0xff] }
 0x612   : > { %v7186_v62 = vld [vmem:[#allocation13 + $0x4b0] sm:$0xff] }
 0x613   : > { %10413 = vmatpush2.bf16.msra.mxu0 %v12015_v47  ;;  %v7489_v47 = vld [vmem:[#allocation13 + $0xe28] sm:$0xff] }
 0x614   : > { %10454 = vmatpush2.bf16.msra.mxu1 %v12143_v15  ;;  %10414 = vmatprep.subr.bf16.mxu0 %v12008_v24  ;;  %v11967_v15 = vcombine.low %v7365_v5, %v7369_v23  ;;  %v12095_v24 = vcombine.low %v7493_v33, %v7497_v1  ;;  %v12088_v4 = vcombine.high %v7485_v56, %v7489_v47  ;;  %v7070_v23 = vld [vmem:[#allocation13 + $0x110] sm:$0xff] }
 0x615   : > { %10455 = vmatprep.subr.bf16.mxu1 %v12136_v2  ;;  %v11960_v2 = vcombine.high %v7357_v44, %v7361_v7  ;;  %v7074_v33 = vld [vmem:[#allocation13 + $0x130] sm:$0xff] }
 0x617   : > { %10415 = vmatpush2.bf16.msra.mxu0 %v12007_v6  ;;  %v7226_v6 = vld [vmem:[#allocation13 + $0x5f0] sm:$0xff] }
 0x618   : > { %10456 = vmatpush2.bf16.msra.mxu1 %v12135_v53  ;;  %10416 = vmatprep.subr.bf16.mxu0 %v12000_v38  ;;  %v11959_v53 = vcombine.low %v7357_v44, %v7361_v7  ;;  %v12087_v38 = vcombine.low %v7485_v56, %v7489_v47  ;;  %v11826_v8 = vcombine.high %v7222_v45, %v7226_v6 }
 0x619   : > { %10457 = vmatprep.subr.bf16.mxu1 %v12128_v63  ;;  %v11698_v63 = vcombine.high %v7094_v35, %v7098_v27  ;;  %v11825_v50 = vcombine.low %v7222_v45, %v7226_v6  ;;  %v11673_v45 = vcombine.low %v7070_v23, %v7074_v33 }
 0x61b   : > { %10417 = vmatpush2.bf16.msra.mxu0 %v11999_v3  ;;  %v11697_v3 = vcombine.low %v7094_v35, %v7098_v27  ;;  %v7190_v35 = vld [vmem:[#allocation13 + $0x4d0] sm:$0xff] }
 0x61c   : > { %10458 = vmatpush2.bf16.msra.mxu1 %v12127_v54  ;;  %10418 = vmatprep.subr.bf16.mxu0 %v11992_v61  ;;  %v10113_v54 = vrot.slane %v14309_v13, %v6974_v19  ;;  %v7214_v61 = vld [vmem:[#allocation13 + $0x590] sm:$0xff] }
 0x61d   : > { %10459 = vmatprep.subr.bf16.mxu1 %v12120_v30  ;;  %v7218_v30 = vld [vmem:[#allocation13 + $0x5b0] sm:$0xff] }
 0x61e   : > { %v7210_v19 = vld [vmem:[#allocation13 + $0x570] sm:$0xff] }
 0x61f   : > { %10419 = vmatpush2.bf16.msra.mxu0 %v11991_v48  ;;  %v7082_v48 = vld [vmem:[#allocation13 + $0x170] sm:$0xff]  ;;  %v11810_v5 = vcombine.high %v7206_v40, %v7210_v19  ;;  %v11809_v47 = vcombine.low %v7206_v40, %v7210_v19 }
 0x620   : > { %10460 = vmatpush2.bf16.msra.mxu1 %v12119_v32  ;;  %10420 = vmatprep.subr.bf16.mxu0 %v11984_v21  ;;  %v11681_v44 = vcombine.low %v7078_v52, %v7082_v48  ;;  %v7194_v27 = vld [vmem:[#allocation13 + $0x4f0] sm:$0xff] }
 0x621   : > { %10461 = vmatprep.subr.bf16.mxu1 %v12112_v49  ;;  %v11818_v49 = vcombine.high %v7214_v61, %v7218_v30  ;;  %v7038_v40 = vld [vmem:[#allocation13 + $0x10] sm:$0xff] }
 0x622   : > { %v7042_v19 = vld [vmem:[#allocation13 + $0x30] sm:$0xff] }
 0x623   : > { %10421 = vmatpush2.bf16.msra.mxu0 %v11983_v9  ;;  %v11817_v9 = vcombine.low %v7214_v61, %v7218_v30  ;;  %v11786_v30 = vcombine.high %v7182_v51, %v7186_v62 }
 0x624   : > { %10462 = vmatpush2.bf16.msra.mxu1 %v12111_v11  ;;  %10422 = vmatprep.subr.bf16.mxu0 %v11976_v26  ;;  %v11682_v11 = vcombine.high %v7078_v52, %v7082_v48  ;;  %v7178_v52 = vld [vmem:[#allocation13 + $0x470] sm:$0xff] }
 0x625   : > { %10463 = vmatprep.subr.bf16.mxu1 %v12104_v34 }
 0x627   : > { %10423 = vmatpush2.bf16.msra.mxu0 %v11975_v10 }
 0x628   : > { %10464 = vmatpush2.bf16.msra.mxu1 %v12103_v31  ;;  %10424 = vmatprep.subr.bf16.mxu0 %v11968_v43  ;;  %v7198_v31 = vld [vmem:[#allocation13 + $0x510] sm:$0xff] }
 0x629   : > { %10465 = vmatprep.subr.bf16.mxu1 %v12096_v60  ;;  %v7202_v43 = vld [vmem:[#allocation13 + $0x530] sm:$0xff] }
 0x62a   : > { %v11801_v6 = vcombine.low %v7198_v31, %v7202_v43 }
 0x62b   : > { %10425 = vmatpush2.bf16.msra.mxu0 %v11967_v15  ;;  %v11674_v15 = vcombine.high %v7070_v23, %v7074_v33  ;;  %v7286_v23 = vld [vmem:[#allocation13 + $0x7d0] sm:$0xff] }
 0x62c   : > { %10466 = vmatpush2.bf16.msra.mxu1 %v12095_v24  ;;  %10426 = vmatprep.subr.bf16.mxu0 %v11960_v2  ;;  %v11802_v24 = vcombine.high %v7198_v31, %v7202_v43  ;;  %v7062_v2 = vld [vmem:[#allocation13 + $0xd0] sm:$0xff] }
 0x62d   : > { %10467 = vmatprep.subr.bf16.mxu1 %v12088_v4  ;;  %v7066_v4 = vld [vmem:[#allocation13 + $0xf0] sm:$0xff] }
 0x62e   : > { %v7290_v33 = vld [vmem:[#allocation13 + $0x7f0] sm:$0xff] }
 0x62f   : > { %10427 = vmatpush2.bf16.msra.mxu0 %v11959_v53  ;;  %v11666_v53 = vcombine.high %v7062_v2, %v7066_v4  ;;  %v11890_v43 = vcombine.high %v7286_v23, %v7290_v33 }
 0x630   : > { %10468 = vmatpush2.bf16.msra.mxu1 %v12087_v38  ;;  %10478 = vmatprep.subr.bf16.mxu0 %v11698_v63  ;;  %v11794_v38 = vcombine.high %v7190_v35, %v7194_v27  ;;  %v7054_v63 = vld [vmem:[#allocation13 + $0x90] sm:$0xff] }
 0x631   : > { %10519 = vmatprep.subr.bf16.mxu1 %v11826_v8  ;;  %v7058_v8 = vld [vmem:[#allocation13 + $0xb0] sm:$0xff] }
 0x632   : > { %10429 = vmatmul.mubr.bf16.vlgmr.msra.gmra.mxu0 %v14297_v14  ;;  %v10184_v32 = vpop.f32.mrf.mxu0  ;;  %v10225_v21 = vpop.f32.mrf.mxu1  ;;  %v11658_v61 = vcombine.high %v7054_v63, %v7058_v8  ;;  %v11657_v48 = vcombine.low %v7054_v63, %v7058_v8 }
 0x633   : > { %10470 = vmatmul.mubr.bf16.vlgmr.msra.gmra.mxu1 %v14299_v16  ;;  %v10185_v0 = vadd.f32 %v10184_v32, %v10113_v54  ;;  %10479 = vmatpush1.bf16.msra.mxu0 %v11697_v3  ;;  %v11665_v3 = vcombine.low %v7062_v2, %v7066_v4  ;;  %v11793_v54 = vcombine.low %v7190_v35, %v7194_v27  ;;  %v7142_v35 = vld [vmem:[#allocation13 + $0x350] sm:$0xff] }
 0x634   : > { %10510 = vmatprep.mubr.bf16.mxu0 %v14245_v42  ;;  %10520 = vmatpush1.bf16.msra.mxu1 %v11825_v50  ;;  %v10186_v57 = vpop.f32.mrf.mxu0  ;;  %v10227_v37 = vpop.f32.mrf.mxu1  ;;  %v7046_v50 = vld [vmem:[#allocation13 + $0x50] sm:$0xff]  ;;  %v11785_v32 = vcombine.low %v7182_v51, %v7186_v62 }
 0x635   : > { %v14320_v26 = vadd.f32 %v10225_v21, %v10185_v0  ;;  %10551 = vmatprep.mubr.bf16.mxu1 %v14247_v58  ;;  %v10187_v34 = vadd.f32 %v10186_v57, %v10117_v59  ;;  %10480 = vmatprep.subr.bf16.mxu0 %v11690_v36  ;;  %v7050_v59 = vld [vmem:[#allocation13 + $0x70] sm:$0xff] }
 0x636   : > { %10521 = vmatprep.subr.bf16.mxu1 %v11818_v49  ;;  %v10188_v1 = vpop.f32.mrf.mxu0  ;;  %v10229_v10 = vpop.f32.mrf.mxu1  ;;  %v7174_v36 = vld [vmem:[#allocation13 + $0x450] sm:$0xff]  ;;  %v11650_v21 = vcombine.high %v7046_v50, %v7050_v59  ;;  %v11649_v57 = vcombine.low %v7046_v50, %v7050_v59 }
 0x637   : > { %v14323_v60 = vadd.f32 %v10227_v37, %v10187_v34  ;;  %10481 = vmatpush1.bf16.msra.mxu0 %v11689_v25  ;;  %v11778_v49 = vcombine.high %v7174_v36, %v7178_v52  ;;  %v7166_v0 = vld [vmem:[#allocation13 + $0x410] sm:$0xff]  ;;  %v11777_v37 = vcombine.low %v7174_v36, %v7178_v52  ;;  %v11641_v1 = vcombine.low %v7038_v40, %v7042_v19 }
 0x638   : > { %10522 = vmatpush1.bf16.msra.mxu1 %v11817_v9  ;;  %v10189_v7 = vpop.f32.mrf.mxu0  ;;  %v10230_v56 = vpop.f32.mrf.mxu1  ;;  %10482 = vmatprep.subr.bf16.mxu0 %v11682_v11  ;;  %v7170_v25 = vld [vmem:[#allocation13 + $0x430] sm:$0xff]  ;;  %v11642_v9 = vcombine.high %v7038_v40, %v7042_v19 }
 0x639   : > { %10523 = vmatprep.subr.bf16.mxu1 %v11810_v5  ;;  %v11770_v11 = vcombine.high %v7166_v0, %v7170_v25  ;;  %v7158_v34 = vld [vmem:[#allocation13 + $0x3d0] sm:$0xff]  ;;  %v11769_v10 = vcombine.low %v7166_v0, %v7170_v25 }
 0x63a   : > { %v7162_v5 = vld [vmem:[#allocation13 + $0x3f0] sm:$0xff] }
 0x63b   : > { %10483 = vmatpush1.bf16.msra.mxu0 %v11681_v44  ;;  %v11762_v31 = vcombine.high %v7158_v34, %v7162_v5  ;;  %v7150_v44 = vld [vmem:[#allocation13 + $0x390] sm:$0xff] }
 0x63c   : > { %10524 = vmatpush1.bf16.msra.mxu1 %v11809_v47  ;;  %10484 = vmatprep.subr.bf16.mxu0 %v11674_v15  ;;  %v7154_v7 = vld [vmem:[#allocation13 + $0x3b0] sm:$0xff]  ;;  %v11761_v15 = vcombine.low %v7158_v34, %v7162_v5 }
 0x63d   : > { %10525 = vmatprep.subr.bf16.mxu1 %v11802_v24  ;;  %v7278_v56 = vld [vmem:[#allocation13 + $0x790] sm:$0xff]  ;;  %v11889_v24 = vcombine.low %v7286_v23, %v7290_v33  ;;  %v11754_v2 = vcombine.high %v7150_v44, %v7154_v7 }
 0x63e   : > { %v7282_v47 = vld [vmem:[#allocation13 + $0x7b0] sm:$0xff] }
 0x63f   : > { %10485 = vmatpush1.bf16.msra.mxu0 %v11673_v45  ;;  %v11882_v4 = vcombine.high %v7278_v56, %v7282_v47  ;;  %v7146_v27 = vld [vmem:[#allocation13 + $0x370] sm:$0xff] }
 0x640   : > { %10526 = vmatpush1.bf16.msra.mxu1 %v11801_v6  ;;  %10486 = vmatprep.subr.bf16.mxu0 %v11666_v53  ;;  %v7270_v45 = vld [vmem:[#allocation13 + $0x750] sm:$0xff]  ;;  %v11753_v53 = vcombine.low %v7150_v44, %v7154_v7  ;;  %v11746_v63 = vcombine.high %v7142_v35, %v7146_v27 }
 0x641   : > { %10527 = vmatprep.subr.bf16.mxu1 %v11794_v38  ;;  %v7274_v6 = vld [vmem:[#allocation13 + $0x770] sm:$0xff]  ;;  %v11881_v38 = vcombine.low %v7278_v56, %v7282_v47 }
 0x642   : > { %v11874_v8 = vcombine.high %v7270_v45, %v7274_v6  ;;  %v7134_v51 = vld [vmem:[#allocation13 + $0x310] sm:$0xff] }
 0x643   : > { %10487 = vmatpush1.bf16.msra.mxu0 %v11665_v3  ;;  %v7138_v62 = vld [vmem:[#allocation13 + $0x330] sm:$0xff] }
 0x644   : > { %10528 = vmatpush1.bf16.msra.mxu1 %v11793_v54  ;;  %10488 = vmatprep.subr.bf16.mxu0 %v11658_v61  ;;  %v7262_v3 = vld [vmem:[#allocation13 + $0x710] sm:$0xff]  ;;  %v11745_v61 = vcombine.low %v7142_v35, %v7146_v27  ;;  %v11738_v50 = vcombine.high %v7134_v51, %v7138_v62 }
 0x645   : > { %10529 = vmatprep.subr.bf16.mxu1 %v11786_v30  ;;  %v7266_v54 = vld [vmem:[#allocation13 + $0x730] sm:$0xff]  ;;  %v11873_v30 = vcombine.low %v7270_v45, %v7274_v6 }
 0x646   : > { %v11866_v59 = vcombine.high %v7262_v3, %v7266_v54  ;;  %v7126_v36 = vld [vmem:[#allocation13 + $0x2d0] sm:$0xff] }
 0x647   : > { %10489 = vmatpush1.bf16.msra.mxu0 %v11657_v48  ;;  %v7130_v52 = vld [vmem:[#allocation13 + $0x2f0] sm:$0xff] }
 0x648   : > { %10530 = vmatpush1.bf16.msra.mxu1 %v11785_v32  ;;  %10490 = vmatprep.subr.bf16.mxu0 %v11650_v21  ;;  %v7254_v48 = vld [vmem:[#allocation13 + $0x6d0] sm:$0xff]  ;;  %v11737_v21 = vcombine.low %v7134_v51, %v7138_v62  ;;  %v11730_v40 = vcombine.high %v7126_v36, %v7130_v52 }
 0x649   : > { %10531 = vmatprep.subr.bf16.mxu1 %v11778_v49  ;;  %v7258_v32 = vld [vmem:[#allocation13 + $0x6f0] sm:$0xff]  ;;  %v11865_v49 = vcombine.low %v7262_v3, %v7266_v54 }
 0x64a   : > { %v11858_v19 = vcombine.high %v7254_v48, %v7258_v32  ;;  %v7118_v0 = vld [vmem:[#allocation13 + $0x290] sm:$0xff] }
 0x64b   : > { %10491 = vmatpush1.bf16.msra.mxu0 %v11649_v57  ;;  %v7122_v25 = vld [vmem:[#allocation13 + $0x2b0] sm:$0xff] }
 0x64c   : > { %10532 = vmatpush1.bf16.msra.mxu1 %v11777_v37  ;;  %10492 = vmatprep.subr.bf16.mxu0 %v11642_v9  ;;  %v7246_v57 = vld [vmem:[#allocation13 + $0x690] sm:$0xff]  ;;  %v11729_v9 = vcombine.low %v7126_v36, %v7130_v52  ;;  %v11722_v34 = vcombine.high %v7118_v0, %v7122_v25 }
 0x64d   : > { %10533 = vmatprep.subr.bf16.mxu1 %v11770_v11  ;;  %v7250_v37 = vld [vmem:[#allocation13 + $0x6b0] sm:$0xff]  ;;  %v11857_v11 = vcombine.low %v7254_v48, %v7258_v32 }
 0x64e   : > { %v11850_v5 = vcombine.high %v7246_v57, %v7250_v37  ;;  %v7110_v23 = vld [vmem:[#allocation13 + $0x250] sm:$0xff] }
 0x64f   : > { %10493 = vmatpush1.bf16.msra.mxu0 %v11641_v1  ;;  %v7114_v33 = vld [vmem:[#allocation13 + $0x270] sm:$0xff] }
 0x650   : > { %10534 = vmatpush1.bf16.msra.mxu1 %v11769_v10  ;;  %10494 = vmatprep.subr.bf16.mxu0 %v11762_v31  ;;  %v7238_v1 = vld [vmem:[#allocation13 + $0x650] sm:$0xff]  ;;  %v11721_v31 = vcombine.low %v7118_v0, %v7122_v25  ;;  %v11714_v44 = vcombine.high %v7110_v23, %v7114_v33 }
 0x651   : > { %10535 = vmatprep.subr.bf16.mxu1 %v11890_v43  ;;  %v7242_v10 = vld [vmem:[#allocation13 + $0x670] sm:$0xff]  ;;  %v11849_v43 = vcombine.low %v7246_v57, %v7250_v37 }
 0x652   : > { %v11842_v7 = vcombine.high %v7238_v1, %v7242_v10  ;;  %v7102_v56 = vld [vmem:[#allocation13 + $0x210] sm:$0xff] }
 0x653   : > { %10495 = vmatpush2.bf16.msra.mxu0 %v11761_v15  ;;  %v7106_v47 = vld [vmem:[#allocation13 + $0x230] sm:$0xff] }
 0x654   : > { %10536 = vmatpush2.bf16.msra.mxu1 %v11889_v24  ;;  %10496 = vmatprep.subr.bf16.mxu0 %v11754_v2  ;;  %v7230_v15 = vld [vmem:[#allocation13 + $0x610] sm:$0xff]  ;;  %v11713_v2 = vcombine.low %v7110_v23, %v7114_v33  ;;  %v11706_v35 = vcombine.high %v7102_v56, %v7106_v47 }
 0x655   : > { %10537 = vmatprep.subr.bf16.mxu1 %v11882_v4  ;;  %v7234_v24 = vld [vmem:[#allocation13 + $0x630] sm:$0xff]  ;;  %v11841_v4 = vcombine.low %v7238_v1, %v7242_v10 }
 0x656   : > { %v11834_v27 = vcombine.high %v7230_v15, %v7234_v24  ;;  %v7350_v45 = vld [vmem:[#allocation13 + $0x9d0] sm:$0xff] }
 0x657   : > { %10497 = vmatpush2.bf16.msra.mxu0 %v11753_v53  ;;  %v7354_v6 = vld [vmem:[#allocation13 + $0x9f0] sm:$0xff] }
 0x658   : > { %10538 = vmatpush2.bf16.msra.mxu1 %v11881_v38  ;;  %10498 = vmatprep.subr.bf16.mxu0 %v11746_v63  ;;  %v7478_v53 = vld [vmem:[#allocation13 + $0xdd0] sm:$0xff]  ;;  %v11705_v63 = vcombine.low %v7102_v56, %v7106_v47  ;;  %v11954_v51 = vcombine.high %v7350_v45, %v7354_v6 }
 0x659   : > { %10539 = vmatprep.subr.bf16.mxu1 %v11874_v8  ;;  %v7482_v38 = vld [vmem:[#allocation13 + $0xdf0] sm:$0xff]  ;;  %v11833_v8 = vcombine.low %v7230_v15, %v7234_v24 }
 0x65a   : > { %v12082_v62 = vcombine.high %v7478_v53, %v7482_v38  ;;  %v7342_v3 = vld [vmem:[#allocation13 + $0x990] sm:$0xff] }
 0x65b   : > { %10499 = vmatpush2.bf16.msra.mxu0 %v11745_v61  ;;  %v7346_v54 = vld [vmem:[#allocation13 + $0x9b0] sm:$0xff]  ;;  %v11953_v61 = vcombine.low %v7350_v45, %v7354_v6 }
 0x65c   : > { %10540 = vmatpush2.bf16.msra.mxu1 %v11873_v30  ;;  %10500 = vmatprep.subr.bf16.mxu0 %v11738_v50  ;;  %v7470_v30 = vld [vmem:[#allocation13 + $0xd90] sm:$0xff]  ;;  %v11946_v36 = vcombine.high %v7342_v3, %v7346_v54  ;;  %v11945_v25 = vcombine.low %v7342_v3, %v7346_v54 }
 0x65d   : > { %10541 = vmatprep.subr.bf16.mxu1 %v11866_v59  ;;  %v7474_v50 = vld [vmem:[#allocation13 + $0xdb0] sm:$0xff]  ;;  %v12081_v59 = vcombine.low %v7478_v53, %v7482_v38 }
 0x65e   : > { %v7334_v52 = vld [vmem:[#allocation13 + $0x950] sm:$0xff] }
 0x65f   : > { %10501 = vmatpush2.bf16.msra.mxu0 %v11737_v21  ;;  %v7338_v48 = vld [vmem:[#allocation13 + $0x970] sm:$0xff] }
 0x660   : > { %10542 = vmatpush2.bf16.msra.mxu1 %v11865_v49  ;;  %10502 = vmatprep.subr.bf16.mxu0 %v11730_v40  ;;  %v12074_v49 = vcombine.high %v7470_v30, %v7474_v50  ;;  %v7462_v40 = vld [vmem:[#allocation13 + $0xd50] sm:$0xff] }
 0x661   : > { %10543 = vmatprep.subr.bf16.mxu1 %v11858_v19  ;;  %v7466_v19 = vld [vmem:[#allocation13 + $0xd70] sm:$0xff] }
 0x662   : > { %v12066_v23 = vcombine.high %v7462_v40, %v7466_v19  ;;  %v7330_v33 = vld [vmem:[#allocation13 + $0x930] sm:$0xff]  ;;  %v12065_v15 = vcombine.low %v7462_v40, %v7466_v19 }
 0x663   : > { %10503 = vmatpush2.bf16.msra.mxu0 %v11729_v9  ;;  %v12073_v9 = vcombine.low %v7470_v30, %v7474_v50  ;;  %v7450_v45 = vld [vmem:[#allocation13 + $0xcf0] sm:$0xff] }
 0x664   : > { %10544 = vmatpush2.bf16.msra.mxu1 %v11857_v11  ;;  %10504 = vmatprep.subr.bf16.mxu0 %v11722_v34  ;;  %v11938_v11 = vcombine.high %v7334_v52, %v7338_v48  ;;  %v7442_v3 = vld [vmem:[#allocation13 + $0xcb0] sm:$0xff] }
 0x665   : > { %10545 = vmatprep.subr.bf16.mxu1 %v11850_v5  ;;  %v7294_v19 = vld [vmem:[#allocation13 + $0x810] sm:$0xff] }
 0x667   : > { %10505 = vmatpush2.bf16.msra.mxu0 %v11721_v31  ;;  %v7454_v31 = vld [vmem:[#allocation13 + $0xd10] sm:$0xff] }
 0x668   : > { %10546 = vmatpush2.bf16.msra.mxu1 %v11849_v43  ;;  %10506 = vmatprep.subr.bf16.mxu0 %v11714_v44  ;;  %v7458_v43 = vld [vmem:[#allocation13 + $0xd30] sm:$0xff] }
 0x669   : > { %10547 = vmatprep.subr.bf16.mxu1 %v11842_v7  ;;  %v11937_v7 = vcombine.low %v7334_v52, %v7338_v48  ;;  %v12057_v53 = vcombine.low %v7454_v31, %v7458_v43  ;;  %v7430_v52 = vld [vmem:[#allocation13 + $0xc50] sm:$0xff] }
 0x66a   : > { %v7434_v48 = vld [vmem:[#allocation13 + $0xc70] sm:$0xff] }
 0x66b   : > { %10507 = vmatpush2.bf16.msra.mxu0 %v11713_v2  ;;  %v12058_v2 = vcombine.high %v7454_v31, %v7458_v43  ;;  %v12034_v40 = vcombine.high %v7430_v52, %v7434_v48 }
 0x66c   : > { %10548 = vmatpush2.bf16.msra.mxu1 %v11841_v4  ;;  %10508 = vmatprep.subr.bf16.mxu0 %v11706_v35  ;;  %v7318_v4 = vld [vmem:[#allocation13 + $0x8d0] sm:$0xff] }
 0x66d   : > { %10549 = vmatprep.subr.bf16.mxu1 %v11834_v27  ;;  %v7322_v35 = vld [vmem:[#allocation13 + $0x8f0] sm:$0xff] }
 0x66e   : > { %v7446_v27 = vld [vmem:[#allocation13 + $0xcd0] sm:$0xff]  ;;  %v11922_v38 = vcombine.high %v7318_v4, %v7322_v35  ;;  %v11921_v54 = vcombine.low %v7318_v4, %v7322_v35 }
 0x66f   : > { %10509 = vmatpush2.bf16.msra.mxu0 %v11705_v63  ;;  %v12050_v63 = vcombine.high %v7446_v27, %v7450_v45 }
 0x670   : > { %10550 = vmatpush2.bf16.msra.mxu1 %v11833_v8  ;;  %10560 = vmatprep.subr.bf16.mxu0 %v11954_v51  ;;  %v7310_v8 = vld [vmem:[#allocation13 + $0x890] sm:$0xff] }
 0x671   : > { %10601 = vmatprep.subr.bf16.mxu1 %v12082_v62  ;;  %v7314_v51 = vld [vmem:[#allocation13 + $0x8b0] sm:$0xff] }
 0x672   : > { %v10266_v32 = vpop.f32.mrf.mxu0  ;;  %v10307_v21 = vpop.f32.mrf.mxu1  ;;  %10511 = vmatmul.mubr.bf16.vlgmr.msra.gmra.mxu0 %v14249_v12  ;;  %v7438_v62 = vld [vmem:[#allocation13 + $0xc90] sm:$0xff]  ;;  %v11914_v30 = vcombine.high %v7310_v8, %v7314_v51 }
 0x673   : > { %v10267_v0 = vadd.f32 %v10266_v32, %v14320_v26  ;;  %10552 = vmatmul.mubr.bf16.vlgmr.msra.gmra.mxu1 %v14251_v17  ;;  %10561 = vmatpush1.bf16.msra.mxu0 %v11953_v61  ;;  %v7326_v26 = vld [vmem:[#allocation13 + $0x910] sm:$0xff]  ;;  %v12049_v61 = vcombine.low %v7446_v27, %v7450_v45  ;;  %v12042_v50 = vcombine.high %v7438_v62, %v7442_v3 }
 0x674   : > { %10592 = vmatprep.mubr.bf16.mxu0 %v14289_v46  ;;  %10602 = vmatpush1.bf16.msra.mxu1 %v12081_v59  ;;  %v10268_v57 = vpop.f32.mrf.mxu0  ;;  %v10309_v37 = vpop.f32.mrf.mxu1  ;;  %v11930_v24 = vcombine.high %v7326_v26, %v7330_v33  ;;  %v11929_v6 = vcombine.low %v7326_v26, %v7330_v33  ;;  %v7302_v59 = vld [vmem:[#allocation13 + $0x850] sm:$0xff]  ;;  %v11913_v32 = vcombine.low %v7310_v8, %v7314_v51 }
 0x675   : > { %v14329_v34 = vadd.f32 %v10307_v21, %v10267_v0  ;;  %10633 = vmatprep.mubr.bf16.mxu1 %v14291_v39  ;;  %v10269_v5 = vadd.f32 %v10268_v57, %v14323_v60  ;;  %10562 = vmatprep.subr.bf16.mxu0 %v11946_v36  ;;  %v7306_v36 = vld [vmem:[#allocation13 + $0x870] sm:$0xff]  ;;  %v12041_v21 = vcombine.low %v7438_v62, %v7442_v3 }
 0x676   : > { %v10270_v1 = vpop.f32.mrf.mxu0  ;;  %v10311_v10 = vpop.f32.mrf.mxu1  ;;  %10603 = vmatprep.subr.bf16.mxu1 %v12074_v49  ;;  %v11906_v49 = vcombine.high %v7302_v59, %v7306_v36  ;;  %v7298_v0 = vld [vmem:[#allocation13 + $0x830] sm:$0xff] }
 0x677   : > { %v14333_v44 = vadd.f32 %v10309_v37, %v10269_v5  ;;  %10563 = vmatpush1.bf16.msra.mxu0 %v11945_v25  ;;  %v7422_v25 = vld [vmem:[#allocation13 + $0xc10] sm:$0xff]  ;;  %v11905_v37 = vcombine.low %v7302_v59, %v7306_v36  ;;  %v11897_v10 = vcombine.low %v7294_v19, %v7298_v0 }
 0x678   : > { %10604 = vmatpush1.bf16.msra.mxu1 %v12073_v9  ;;  %v10271_v56 = vpop.f32.mrf.mxu0  ;;  %v10312_v47 = vpop.f32.mrf.mxu1  ;;  %10564 = vmatprep.subr.bf16.mxu0 %v11938_v11  ;;  %v7426_v57 = vld [vmem:[#allocation13 + $0xc30] sm:$0xff]  ;;  %v12033_v9 = vcombine.low %v7430_v52, %v7434_v48  ;;  %v11898_v11 = vcombine.high %v7294_v19, %v7298_v0 }
 0x679   : > { %v10814_v60 = vcombine.low %v14329_v34, %v14333_v44  ;;  %10605 = vmatprep.subr.bf16.mxu1 %v12066_v23  ;;  %v12026_v5 = vcombine.high %v7422_v25, %v7426_v57  ;;  %v7414_v23 = vld [vmem:[#allocation13 + $0xbd0] sm:$0xff]  ;;  %v12025_v31 = vcombine.low %v7422_v25, %v7426_v57  ;;  %v7443_v34 = vld [vmem:[#allocation13 + $0xcb8] sm:$0xff] }
 0x67a   : > { %v7418_v26 = vld [vmem:[#allocation13 + $0xbf0] sm:$0xff] }
 0x67b   : > { %10565 = vmatpush1.bf16.msra.mxu0 %v11937_v7  ;;  %v7542_v33 = vld [vmem:[#allocation13 + $0xfd0] sm:$0xff]  ;;  %v12018_v43 = vcombine.high %v7414_v23, %v7418_v26 }
 0x67c   : > { %10606 = vmatpush1.bf16.msra.mxu1 %v12065_v15  ;;  %10566 = vmatprep.subr.bf16.mxu0 %v11930_v24  ;;  %v7546_v1 = vld [vmem:[#allocation13 + $0xff0] sm:$0xff] }
 0x67d   : > { %10607 = vmatprep.subr.bf16.mxu1 %v12058_v2  ;;  %v12146_v7 = vcombine.high %v7542_v33, %v7546_v1  ;;  %v7406_v56 = vld [vmem:[#allocation13 + $0xb90] sm:$0xff]  ;;  %v12017_v2 = vcombine.low %v7414_v23, %v7418_v26  ;;  %v12145_v4 = vcombine.low %v7542_v33, %v7546_v1 }
 0x67e   : > { %v7410_v47 = vld [vmem:[#allocation13 + $0xbb0] sm:$0xff] }
 0x67f   : > { %10567 = vmatpush1.bf16.msra.mxu0 %v11929_v6  ;;  %v7534_v15 = vld [vmem:[#allocation13 + $0xf90] sm:$0xff]  ;;  %v12010_v35 = vcombine.high %v7406_v56, %v7410_v47 }
 0x680   : > { %10608 = vmatpush1.bf16.msra.mxu1 %v12057_v53  ;;  %10568 = vmatprep.subr.bf16.mxu0 %v11922_v38  ;;  %v7538_v24 = vld [vmem:[#allocation13 + $0xfb0] sm:$0xff] }
 0x681   : > { %10609 = vmatprep.subr.bf16.mxu1 %v12050_v63  ;;  %v12138_v27 = vcombine.high %v7534_v15, %v7538_v24  ;;  %v7398_v45 = vld [vmem:[#allocation13 + $0xb50] sm:$0xff]  ;;  %v12009_v63 = vcombine.low %v7406_v56, %v7410_v47  ;;  %v12137_v8 = vcombine.low %v7534_v15, %v7538_v24 }
 0x682   : > { %v7402_v6 = vld [vmem:[#allocation13 + $0xb70] sm:$0xff] }
 0x683   : > { %10569 = vmatpush1.bf16.msra.mxu0 %v11921_v54  ;;  %v7526_v53 = vld [vmem:[#allocation13 + $0xf50] sm:$0xff]  ;;  %v12002_v51 = vcombine.high %v7398_v45, %v7402_v6 }
 0x684   : > { %10610 = vmatpush1.bf16.msra.mxu1 %v12049_v61  ;;  %10570 = vmatprep.subr.bf16.mxu0 %v11914_v30  ;;  %v7530_v38 = vld [vmem:[#allocation13 + $0xf70] sm:$0xff] }
 0x685   : > { %10611 = vmatprep.subr.bf16.mxu1 %v12042_v50  ;;  %v12130_v62 = vcombine.high %v7526_v53, %v7530_v38  ;;  %v7390_v3 = vld [vmem:[#allocation13 + $0xb10] sm:$0xff]  ;;  %v12001_v50 = vcombine.low %v7398_v45, %v7402_v6  ;;  %v12129_v59 = vcombine.low %v7526_v53, %v7530_v38  ;;  %v7095_v38 = vld [vmem:[#allocation13 + $0x1d8] sm:$0xff] }
 0x686   : > { %v7394_v54 = vld [vmem:[#allocation13 + $0xb30] sm:$0xff] }
 0x687   : > { %10571 = vmatpush1.bf16.msra.mxu0 %v11913_v32  ;;  %v7518_v61 = vld [vmem:[#allocation13 + $0xf10] sm:$0xff]  ;;  %v11994_v36 = vcombine.high %v7390_v3, %v7394_v54 }
 0x688   : > { %10612 = vmatpush1.bf16.msra.mxu1 %v12041_v21  ;;  %10572 = vmatprep.subr.bf16.mxu0 %v11906_v49  ;;  %v7522_v30 = vld [vmem:[#allocation13 + $0xf30] sm:$0xff] }
 0x689   : > { %10613 = vmatprep.subr.bf16.mxu1 %v12034_v40  ;;  %v12122_v52 = vcombine.high %v7518_v61, %v7522_v30  ;;  %v7382_v48 = vld [vmem:[#allocation13 + $0xad0] sm:$0xff]  ;;  %v11993_v40 = vcombine.low %v7390_v3, %v7394_v54  ;;  %v12121_v19 = vcombine.low %v7518_v61, %v7522_v30  ;;  %v7087_v30 = vld [vmem:[#allocation13 + $0x198] sm:$0xff] }
 0x68a   : > { %v7386_v32 = vld [vmem:[#allocation13 + $0xaf0] sm:$0xff] }
 0x68b   : > { %10573 = vmatpush1.bf16.msra.mxu0 %v11905_v37  ;;  %v7510_v21 = vld [vmem:[#allocation13 + $0xed0] sm:$0xff]  ;;  %v11986_v0 = vcombine.high %v7382_v48, %v7386_v32 }
 0x68c   : > { %10614 = vmatpush1.bf16.msra.mxu1 %v12033_v9  ;;  %10574 = vmatprep.subr.bf16.mxu0 %v11898_v11  ;;  %v7514_v49 = vld [vmem:[#allocation13 + $0xef0] sm:$0xff] }
 0x68d   : > { %10615 = vmatprep.subr.bf16.mxu1 %v12026_v5  ;;  %v12114_v25 = vcombine.high %v7510_v21, %v7514_v49  ;;  %v7374_v57 = vld [vmem:[#allocation13 + $0xa90] sm:$0xff]  ;;  %v11985_v5 = vcombine.low %v7382_v48, %v7386_v32  ;;  %v12113_v23 = vcombine.low %v7510_v21, %v7514_v49  ;;  %v7219_v48 = vld [vmem:[#allocation13 + $0x5b8] sm:$0xff]  ;;  %v10125_v21 = vrot.slane %v14309_v13, %v6986_v28 }
 0x68e   : > { %v7378_v37 = vld [vmem:[#allocation13 + $0xab0] sm:$0xff] }
 0x68f   : > { %10575 = vmatpush1.bf16.msra.mxu0 %v11897_v10  ;;  %v7502_v9 = vld [vmem:[#allocation13 + $0xe90] sm:$0xff]  ;;  %v11978_v26 = vcombine.high %v7374_v57, %v7378_v37 }
 0x690   : > { %10616 = vmatpush1.bf16.msra.mxu1 %v12025_v31  ;;  %10576 = vmatprep.subr.bf16.mxu0 %v12018_v43  ;;  %v7506_v11 = vld [vmem:[#allocation13 + $0xeb0] sm:$0xff] }
 0x691   : > { %10617 = vmatprep.subr.bf16.mxu1 %v12146_v7  ;;  %v12106_v33 = vcombine.high %v7502_v9, %v7506_v11  ;;  %v7366_v1 = vld [vmem:[#allocation13 + $0xa50] sm:$0xff]  ;;  %v11977_v7 = vcombine.low %v7374_v57, %v7378_v37  ;;  %v12105_v56 = vcombine.low %v7502_v9, %v7506_v11  ;;  %v7207_v57 = vld [vmem:[#allocation13 + $0x558] sm:$0xff] }
 0x692   : > { %v7370_v10 = vld [vmem:[#allocation13 + $0xa70] sm:$0xff] }
 0x693   : > { %10577 = vmatpush2.bf16.msra.mxu0 %v12017_v2  ;;  %v7494_v31 = vld [vmem:[#allocation13 + $0xe50] sm:$0xff]  ;;  %v11970_v47 = vcombine.high %v7366_v1, %v7370_v10 }
 0x694   : > { %10618 = vmatpush2.bf16.msra.mxu1 %v12145_v4  ;;  %10578 = vmatprep.subr.bf16.mxu0 %v12010_v35  ;;  %v7498_v43 = vld [vmem:[#allocation13 + $0xe70] sm:$0xff] }
 0x695   : > { %10619 = vmatprep.subr.bf16.mxu1 %v12138_v27  ;;  %v12098_v15 = vcombine.high %v7494_v31, %v7498_v43  ;;  %v7358_v24 = vld [vmem:[#allocation13 + $0xa10] sm:$0xff]  ;;  %v11969_v27 = vcombine.low %v7366_v1, %v7370_v10  ;;  %v12097_v45 = vcombine.low %v7494_v31, %v7498_v43  ;;  %v7071_v10 = vld [vmem:[#allocation13 + $0x118] sm:$0xff] }
 0x696   : > { %v7362_v2 = vld [vmem:[#allocation13 + $0xa30] sm:$0xff]  ;;  %v7075_v31 = vld [vmem:[#allocation13 + $0x138] sm:$0xff] }
 0x697   : > { %10579 = vmatpush2.bf16.msra.mxu0 %v12009_v63  ;;  %v7486_v4 = vld [vmem:[#allocation13 + $0xe10] sm:$0xff]  ;;  %v11962_v6 = vcombine.high %v7358_v24, %v7362_v2  ;;  %v7099_v63 = vld [vmem:[#allocation13 + $0x1f8] sm:$0xff] }
 0x698   : > { %10620 = vmatpush2.bf16.msra.mxu1 %v12137_v8  ;;  %10580 = vmatprep.subr.bf16.mxu0 %v12002_v51  ;;  %v7490_v35 = vld [vmem:[#allocation13 + $0xe30] sm:$0xff]  ;;  %v7223_v8 = vld [vmem:[#allocation13 + $0x5d8] sm:$0xff]  ;;  %v11700_v54 = vcombine.high %v7095_v38, %v7099_v63 }
 0x699   : > { %10621 = vmatprep.subr.bf16.mxu1 %v12130_v62  ;;  %v12090_v53 = vcombine.high %v7486_v4, %v7490_v35  ;;  %v7227_v51 = vld [vmem:[#allocation13 + $0x5f8] sm:$0xff]  ;;  %v11961_v62 = vcombine.low %v7358_v24, %v7362_v2  ;;  %v12089_v3 = vcombine.low %v7486_v4, %v7490_v35 }
 0x69a   : > { %v11828_v61 = vcombine.high %v7223_v8, %v7227_v51  ;;  %v11827_v32 = vcombine.low %v7223_v8, %v7227_v51 }
 0x69b   : > { %10581 = vmatpush2.bf16.msra.mxu0 %v12001_v50  ;;  %v7091_v50 = vld [vmem:[#allocation13 + $0x1b8] sm:$0xff] }
 0x69c   : > { %10622 = vmatpush2.bf16.msra.mxu1 %v12129_v59  ;;  %10582 = vmatprep.subr.bf16.mxu0 %v11994_v36  ;;  %v10121_v59 = vrot.slane %v14309_v13, %v6982_v22  ;;  %v11699_v36 = vcombine.low %v7095_v38, %v7099_v63  ;;  %v11692_v49 = vcombine.high %v7087_v30, %v7091_v50  ;;  %v7211_v22 = vld [vmem:[#allocation13 + $0x578] sm:$0xff] }
 0x69d   : > { %10623 = vmatprep.subr.bf16.mxu1 %v12122_v52  ;;  %v7215_v52 = vld [vmem:[#allocation13 + $0x598] sm:$0xff]  ;;  %v11691_v11 = vcombine.low %v7087_v30, %v7091_v50  ;;  %v11812_v1 = vcombine.high %v7207_v57, %v7211_v22  ;;  %v11811_v2 = vcombine.low %v7207_v57, %v7211_v22  ;;  %v11675_v38 = vcombine.low %v7071_v10, %v7075_v31 }
 0x69e   : > { %v11819_v28 = vcombine.low %v7215_v52, %v7219_v48  ;;  %v7043_v57 = vld [vmem:[#allocation13 + $0x38] sm:$0xff] }
 0x69f   : > { %10583 = vmatpush2.bf16.msra.mxu0 %v11993_v40  ;;  %v7079_v40 = vld [vmem:[#allocation13 + $0x158] sm:$0xff] }
 0x6a0   : > { %10624 = vmatpush2.bf16.msra.mxu1 %v12121_v19  ;;  %10584 = vmatprep.subr.bf16.mxu0 %v11986_v0  ;;  %v7083_v19 = vld [vmem:[#allocation13 + $0x178] sm:$0xff] }
 0x6a1   : > { %10625 = vmatprep.subr.bf16.mxu1 %v12114_v25  ;;  %v11820_v25 = vcombine.high %v7215_v52, %v7219_v48  ;;  %v11684_v13 = vcombine.high %v7079_v40, %v7083_v19  ;;  %v7047_v52 = vld [vmem:[#allocation13 + $0x58] sm:$0xff] }
 0x6a2   : > { %v7051_v48 = vld [vmem:[#allocation13 + $0x78] sm:$0xff] }
 0x6a3   : > { %10585 = vmatpush2.bf16.msra.mxu0 %v11985_v5  ;;  %v7167_v22 = vld [vmem:[#allocation13 + $0x418] sm:$0xff] }
 0x6a4   : > { %10626 = vmatpush2.bf16.msra.mxu1 %v12113_v23  ;;  %10586 = vmatprep.subr.bf16.mxu0 %v11978_v26 }
 0x6a5   : > { %10627 = vmatprep.subr.bf16.mxu1 %v12106_v33 }
 0x6a7   : > { %10587 = vmatpush2.bf16.msra.mxu0 %v11977_v7  ;;  %v7199_v7 = vld [vmem:[#allocation13 + $0x518] sm:$0xff] }
 0x6a8   : > { %10628 = vmatpush2.bf16.msra.mxu1 %v12105_v56  ;;  %10588 = vmatprep.subr.bf16.mxu0 %v11970_v47  ;;  %v7203_v56 = vld [vmem:[#allocation13 + $0x538] sm:$0xff] }
 0x6a9   : > { %10629 = vmatprep.subr.bf16.mxu1 %v12098_v15  ;;  %v11683_v15 = vcombine.low %v7079_v40, %v7083_v19  ;;  %v11804_v35 = vcombine.high %v7199_v7, %v7203_v56  ;;  %v11803_v63 = vcombine.low %v7199_v7, %v7203_v56  ;;  %v11652_v19 = vcombine.high %v7047_v52, %v7051_v48  ;;  %v7151_v56 = vld [vmem:[#allocation13 + $0x398] sm:$0xff] }
 0x6ab   : > { %10589 = vmatpush2.bf16.msra.mxu0 %v11969_v27  ;;  %v7063_v27 = vld [vmem:[#allocation13 + $0xd8] sm:$0xff] }
 0x6ac   : > { %10630 = vmatpush2.bf16.msra.mxu1 %v12097_v45  ;;  %10590 = vmatprep.subr.bf16.mxu0 %v11962_v6  ;;  %v7067_v45 = vld [vmem:[#allocation13 + $0xf8] sm:$0xff] }
 0x6ad   : > { %10631 = vmatprep.subr.bf16.mxu1 %v12090_v53  ;;  %v7191_v6 = vld [vmem:[#allocation13 + $0x4d8] sm:$0xff]  ;;  %v11668_v8 = vcombine.high %v7063_v27, %v7067_v45  ;;  %v11667_v30 = vcombine.low %v7063_v27, %v7067_v45 }
 0x6ae   : > { %v7195_v53 = vld [vmem:[#allocation13 + $0x4f8] sm:$0xff] }
 0x6af   : > { %10591 = vmatpush2.bf16.msra.mxu0 %v11961_v62  ;;  %v11796_v51 = vcombine.high %v7191_v6, %v7195_v53  ;;  %v7055_v62 = vld [vmem:[#allocation13 + $0x98] sm:$0xff]  ;;  %v11795_v50 = vcombine.low %v7191_v6, %v7195_v53 }
 0x6b0   : > { %10632 = vmatpush2.bf16.msra.mxu1 %v12089_v3  ;;  %10642 = vmatprep.subr.bf16.mxu0 %v11700_v54  ;;  %v7059_v3 = vld [vmem:[#allocation13 + $0xb8] sm:$0xff] }
 0x6b1   : > { %10683 = vmatprep.subr.bf16.mxu1 %v11828_v61  ;;  %v7183_v54 = vld [vmem:[#allocation13 + $0x498] sm:$0xff] }
 0x6b2   : > { %v10348_v0 = vpop.f32.mrf.mxu0  ;;  %10593 = vmatmul.mubr.bf16.vlgmr.msra.gmra.mxu0 %v14297_v14  ;;  %v7187_v61 = vld [vmem:[#allocation13 + $0x4b8] sm:$0xff] }
 0x6b3   : > { %v10349_v37 = vadd.f32 %v10348_v0, %v10121_v59  ;;  %v10389_v9 = vpop.f32.mrf.mxu1  ;;  %10634 = vmatmul.mubr.bf16.vlgmr.msra.gmra.mxu1 %v14299_v16  ;;  %10643 = vmatpush1.bf16.msra.mxu0 %v11699_v36  ;;  %v11660_v59 = vcombine.high %v7055_v62, %v7059_v3  ;;  %v11788_v36 = vcombine.high %v7183_v54, %v7187_v61  ;;  %v7143_v27 = vld [vmem:[#allocation13 + $0x358] sm:$0xff] }
 0x6b4   : > { %10674 = vmatprep.mubr.bf16.mxu0 %v14245_v42  ;;  %10684 = vmatpush1.bf16.msra.mxu1 %v11827_v32  ;;  %v10350_v5 = vpop.f32.mrf.mxu0  ;;  %v7175_v32 = vld [vmem:[#allocation13 + $0x458] sm:$0xff]  ;;  %v11787_v40 = vcombine.low %v7183_v54, %v7187_v61 }
 0x6b5   : > { %v14346_v23 = vadd.f32 %v10389_v9, %v10349_v37  ;;  %10715 = vmatprep.mubr.bf16.mxu1 %v14247_v58  ;;  %v10351_v26 = vadd.f32 %v10350_v5, %v10125_v21  ;;  %v10391_v33 = vpop.f32.mrf.mxu1  ;;  %10644 = vmatprep.subr.bf16.mxu0 %v11692_v49  ;;  %v11676_v58 = vcombine.high %v7071_v10, %v7075_v31  ;;  %v7179_v21 = vld [vmem:[#allocation13 + $0x478] sm:$0xff] }
 0x6b6   : > { %v10352_v43 = vpop.f32.mrf.mxu0  ;;  %10685 = vmatprep.subr.bf16.mxu1 %v11820_v25  ;;  %v11659_v49 = vcombine.low %v7055_v62, %v7059_v3  ;;  %v11780_v0 = vcombine.high %v7175_v32, %v7179_v21  ;;  %v7039_v25 = vld [vmem:[#allocation13 + $0x18] sm:$0xff]  ;;  %v11651_v9 = vcombine.low %v7047_v52, %v7051_v48 }
 0x6b7   : > { %v14349_v47 = vadd.f32 %v10391_v33, %v10351_v26  ;;  %v10393_v42 = vpop.f32.mrf.mxu1  ;;  %10645 = vmatpush1.bf16.msra.mxu0 %v11691_v11  ;;  %v7171_v37 = vld [vmem:[#allocation13 + $0x438] sm:$0xff]  ;;  %v11779_v11 = vcombine.low %v7175_v32, %v7179_v21  ;;  %v11644_v5 = vcombine.high %v7039_v25, %v7043_v57  ;;  %v11643_v10 = vcombine.low %v7039_v25, %v7043_v57 }
 0x6b8   : > { %10686 = vmatpush1.bf16.msra.mxu1 %v11819_v28  ;;  %v10353_v24 = vpop.f32.mrf.mxu0  ;;  %10646 = vmatprep.subr.bf16.mxu0 %v11684_v13  ;;  %v11772_v28 = vcombine.high %v7167_v22, %v7171_v37  ;;  %v7159_v13 = vld [vmem:[#allocation13 + $0x3d8] sm:$0xff]  ;;  %v11771_v31 = vcombine.low %v7167_v22, %v7171_v37 }
 0x6b9   : > { %v10394_v4 = vpop.f32.mrf.mxu1  ;;  %10687 = vmatprep.subr.bf16.mxu1 %v11812_v1  ;;  %v7163_v26 = vld [vmem:[#allocation13 + $0x3f8] sm:$0xff] }
 0x6ba   : > { %v7287_v33 = vld [vmem:[#allocation13 + $0x7d8] sm:$0xff]  ;;  %v11764_v43 = vcombine.high %v7159_v13, %v7163_v26 }
 0x6bb   : > { %10647 = vmatpush1.bf16.msra.mxu0 %v11683_v15  ;;  %v7291_v1 = vld [vmem:[#allocation13 + $0x7f8] sm:$0xff] }
 0x6bc   : > { %10688 = vmatpush1.bf16.msra.mxu1 %v11811_v2  ;;  %10648 = vmatprep.subr.bf16.mxu0 %v11676_v58  ;;  %v11892_v7 = vcombine.high %v7287_v33, %v7291_v1  ;;  %v7155_v42 = vld [vmem:[#allocation13 + $0x3b8] sm:$0xff]  ;;  %v11763_v2 = vcombine.low %v7159_v13, %v7163_v26  ;;  %v11891_v58 = vcombine.low %v7287_v33, %v7291_v1 }
 0x6bd   : > { %10689 = vmatprep.subr.bf16.mxu1 %v11804_v35  ;;  %v7279_v15 = vld [vmem:[#allocation13 + $0x798] sm:$0xff]  ;;  %v11756_v4 = vcombine.high %v7151_v56, %v7155_v42 }
 0x6be   : > { %v7283_v24 = vld [vmem:[#allocation13 + $0x7b8] sm:$0xff] }
 0x6bf   : > { %10649 = vmatpush1.bf16.msra.mxu0 %v11675_v38  ;;  %v11884_v35 = vcombine.high %v7279_v15, %v7283_v24  ;;  %v7147_v45 = vld [vmem:[#allocation13 + $0x378] sm:$0xff]  ;;  %v11755_v38 = vcombine.low %v7151_v56, %v7155_v42 }
 0x6c0   : > { %10690 = vmatpush1.bf16.msra.mxu1 %v11803_v63  ;;  %10650 = vmatprep.subr.bf16.mxu0 %v11668_v8  ;;  %v7271_v6 = vld [vmem:[#allocation13 + $0x758] sm:$0xff]  ;;  %v11883_v63 = vcombine.low %v7279_v15, %v7283_v24  ;;  %v11748_v8 = vcombine.high %v7143_v27, %v7147_v45 }
 0x6c1   : > { %10691 = vmatprep.subr.bf16.mxu1 %v11796_v51  ;;  %v7275_v53 = vld [vmem:[#allocation13 + $0x778] sm:$0xff] }
 0x6c2   : > { %v11876_v51 = vcombine.high %v7271_v6, %v7275_v53  ;;  %v7135_v62 = vld [vmem:[#allocation13 + $0x318] sm:$0xff] }
 0x6c3   : > { %10651 = vmatpush1.bf16.msra.mxu0 %v11667_v30  ;;  %v7139_v3 = vld [vmem:[#allocation13 + $0x338] sm:$0xff]  ;;  %v11747_v30 = vcombine.low %v7143_v27, %v7147_v45 }
 0x6c4   : > { %10692 = vmatpush1.bf16.msra.mxu1 %v11795_v50  ;;  %10652 = vmatprep.subr.bf16.mxu0 %v11660_v59  ;;  %v7263_v54 = vld [vmem:[#allocation13 + $0x718] sm:$0xff]  ;;  %v11875_v50 = vcombine.low %v7271_v6, %v7275_v53  ;;  %v11740_v59 = vcombine.high %v7135_v62, %v7139_v3 }
 0x6c5   : > { %10693 = vmatprep.subr.bf16.mxu1 %v11788_v36  ;;  %v7267_v61 = vld [vmem:[#allocation13 + $0x738] sm:$0xff] }
 0x6c6   : > { %v11868_v36 = vcombine.high %v7263_v54, %v7267_v61  ;;  %v7127_v52 = vld [vmem:[#allocation13 + $0x2d8] sm:$0xff] }
 0x6c7   : > { %10653 = vmatpush1.bf16.msra.mxu0 %v11659_v49  ;;  %v7131_v48 = vld [vmem:[#allocation13 + $0x2f8] sm:$0xff]  ;;  %v11739_v49 = vcombine.low %v7135_v62, %v7139_v3 }
 0x6c8   : > { %10694 = vmatpush1.bf16.msra.mxu1 %v11787_v40  ;;  %10654 = vmatprep.subr.bf16.mxu0 %v11652_v19  ;;  %v7255_v32 = vld [vmem:[#allocation13 + $0x6d8] sm:$0xff]  ;;  %v11867_v40 = vcombine.low %v7263_v54, %v7267_v61  ;;  %v11732_v19 = vcombine.high %v7127_v52, %v7131_v48  ;;  %v13124_v54 = vmov 1966171168  }
 0x6c9   : > { %10695 = vmatprep.subr.bf16.mxu1 %v11780_v0  ;;  %v7259_v21 = vld [vmem:[#allocation13 + $0x6f8] sm:$0xff]  ;;  %v10819_v61 = vunpack.c.l.s4 %v13124_v54 }
 0x6ca   : > { %v11860_v0 = vcombine.high %v7255_v32, %v7259_v21  ;;  %v7119_v25 = vld [vmem:[#allocation13 + $0x298] sm:$0xff] }
 0x6cb   : > { %10655 = vmatpush1.bf16.msra.mxu0 %v11651_v9  ;;  %v7123_v57 = vld [vmem:[#allocation13 + $0x2b8] sm:$0xff]  ;;  %v11731_v9 = vcombine.low %v7127_v52, %v7131_v48 }
 0x6cc   : > { %10696 = vmatpush1.bf16.msra.mxu1 %v11779_v11  ;;  %10656 = vmatprep.subr.bf16.mxu0 %v11644_v5  ;;  %v7247_v22 = vld [vmem:[#allocation13 + $0x698] sm:$0xff]  ;;  %v11859_v11 = vcombine.low %v7255_v32, %v7259_v21  ;;  %v11724_v5 = vcombine.high %v7119_v25, %v7123_v57 }
 0x6cd   : > { %10697 = vmatprep.subr.bf16.mxu1 %v11772_v28  ;;  %v7251_v37 = vld [vmem:[#allocation13 + $0x6b8] sm:$0xff] }
 0x6ce   : > { %v11852_v28 = vcombine.high %v7247_v22, %v7251_v37  ;;  %v7111_v13 = vld [vmem:[#allocation13 + $0x258] sm:$0xff] }
 0x6cf   : > { %10657 = vmatpush1.bf16.msra.mxu0 %v11643_v10  ;;  %v7115_v26 = vld [vmem:[#allocation13 + $0x278] sm:$0xff]  ;;  %v11723_v10 = vcombine.low %v7119_v25, %v7123_v57 }
 0x6d0   : > { %10698 = vmatpush1.bf16.msra.mxu1 %v11771_v31  ;;  %10658 = vmatprep.subr.bf16.mxu0 %v11764_v43  ;;  %v7239_v33 = vld [vmem:[#allocation13 + $0x658] sm:$0xff]  ;;  %v11851_v31 = vcombine.low %v7247_v22, %v7251_v37  ;;  %v11716_v43 = vcombine.high %v7111_v13, %v7115_v26 }
 0x6d1   : > { %10699 = vmatprep.subr.bf16.mxu1 %v11892_v7  ;;  %v7243_v1 = vld [vmem:[#allocation13 + $0x678] sm:$0xff] }
 0x6d2   : > { %v11844_v7 = vcombine.high %v7239_v33, %v7243_v1  ;;  %v7103_v56 = vld [vmem:[#allocation13 + $0x218] sm:$0xff] }
 0x6d3   : > { %10659 = vmatpush2.bf16.msra.mxu0 %v11763_v2  ;;  %v7107_v42 = vld [vmem:[#allocation13 + $0x238] sm:$0xff]  ;;  %v11715_v2 = vcombine.low %v7111_v13, %v7115_v26 }
 0x6d4   : > { %10700 = vmatpush2.bf16.msra.mxu1 %v11891_v58  ;;  %10660 = vmatprep.subr.bf16.mxu0 %v11756_v4  ;;  %v7231_v15 = vld [vmem:[#allocation13 + $0x618] sm:$0xff]  ;;  %v11843_v58 = vcombine.low %v7239_v33, %v7243_v1  ;;  %v11708_v4 = vcombine.high %v7103_v56, %v7107_v42 }
 0x6d5   : > { %10701 = vmatprep.subr.bf16.mxu1 %v11884_v35  ;;  %v7235_v24 = vld [vmem:[#allocation13 + $0x638] sm:$0xff] }
 0x6d6   : > { %v11836_v35 = vcombine.high %v7231_v15, %v7235_v24  ;;  %v7351_v27 = vld [vmem:[#allocation13 + $0x9d8] sm:$0xff] }
 0x6d7   : > { %10661 = vmatpush2.bf16.msra.mxu0 %v11755_v38  ;;  %v7355_v45 = vld [vmem:[#allocation13 + $0x9f8] sm:$0xff]  ;;  %v11707_v38 = vcombine.low %v7103_v56, %v7107_v42 }
 0x6d8   : > { %10702 = vmatpush2.bf16.msra.mxu1 %v11883_v63  ;;  %10662 = vmatprep.subr.bf16.mxu0 %v11748_v8  ;;  %v7479_v6 = vld [vmem:[#allocation13 + $0xdd8] sm:$0xff]  ;;  %v11835_v63 = vcombine.low %v7231_v15, %v7235_v24  ;;  %v11956_v8 = vcombine.high %v7351_v27, %v7355_v45 }
 0x6d9   : > { %10703 = vmatprep.subr.bf16.mxu1 %v11876_v51  ;;  %v7483_v53 = vld [vmem:[#allocation13 + $0xdf8] sm:$0xff] }
 0x6da   : > { %v12084_v51 = vcombine.high %v7479_v6, %v7483_v53  ;;  %v7343_v62 = vld [vmem:[#allocation13 + $0x998] sm:$0xff] }
 0x6db   : > { %10663 = vmatpush2.bf16.msra.mxu0 %v11747_v30  ;;  %v7347_v3 = vld [vmem:[#allocation13 + $0x9b8] sm:$0xff]  ;;  %v11955_v30 = vcombine.low %v7351_v27, %v7355_v45 }
 0x6dc   : > { %10704 = vmatpush2.bf16.msra.mxu1 %v11875_v50  ;;  %10664 = vmatprep.subr.bf16.mxu0 %v11740_v59  ;;  %v7471_v50 = vld [vmem:[#allocation13 + $0xd98] sm:$0xff]  ;;  %v11948_v52 = vcombine.high %v7343_v62, %v7347_v3  ;;  %v11947_v22 = vcombine.low %v7343_v62, %v7347_v3 }
 0x6dd   : > { %10705 = vmatprep.subr.bf16.mxu1 %v11868_v36  ;;  %v7475_v59 = vld [vmem:[#allocation13 + $0xdb8] sm:$0xff]  ;;  %v12083_v36 = vcombine.low %v7479_v6, %v7483_v53 }
 0x6de   : > { %v7335_v48 = vld [vmem:[#allocation13 + $0x958] sm:$0xff] }
 0x6df   : > { %10665 = vmatpush2.bf16.msra.mxu0 %v11739_v49  ;;  %v7339_v32 = vld [vmem:[#allocation13 + $0x978] sm:$0xff]  ;;  %v12076_v49 = vcombine.high %v7471_v50, %v7475_v59 }
 0x6e0   : > { %10706 = vmatpush2.bf16.msra.mxu1 %v11867_v40  ;;  %10666 = vmatprep.subr.bf16.mxu0 %v11732_v19  ;;  %v7463_v40 = vld [vmem:[#allocation13 + $0xd58] sm:$0xff] }
 0x6e1   : > { %10707 = vmatprep.subr.bf16.mxu1 %v11860_v0  ;;  %v7467_v19 = vld [vmem:[#allocation13 + $0xd78] sm:$0xff]  ;;  %v10820_v0 = vunpack.c.0.s8 %v10819_v61 }
 0x6e2   : > { %v12068_v13 = vcombine.high %v7463_v40, %v7467_v19  ;;  %v7331_v26 = vld [vmem:[#allocation13 + $0x938] sm:$0xff] }
 0x6e3   : > { %10667 = vmatpush2.bf16.msra.mxu0 %v11731_v9  ;;  %v12075_v9 = vcombine.low %v7471_v50, %v7475_v59  ;;  %v7459_v1 = vld [vmem:[#allocation13 + $0xd38] sm:$0xff] }
 0x6e4   : > { %10708 = vmatpush2.bf16.msra.mxu1 %v11859_v11  ;;  %10668 = vmatprep.subr.bf16.mxu0 %v11724_v5  ;;  %v11940_v11 = vcombine.high %v7335_v48, %v7339_v32  ;;  %v7319_v24 = vld [vmem:[#allocation13 + $0x8d8] sm:$0xff] }
 0x6e5   : > { %10709 = vmatprep.subr.bf16.mxu1 %v11852_v28  ;;  %v7439_v62 = vld [vmem:[#allocation13 + $0xc98] sm:$0xff] }
 0x6e6   : > { %v12044_v54 = vcombine.high %v7439_v62, %v7443_v34  ;;  %v7303_v61 = vld [vmem:[#allocation13 + $0x858] sm:$0xff] }
 0x6e7   : > { %10669 = vmatpush2.bf16.msra.mxu0 %v11723_v10  ;;  %v7431_v50 = vld [vmem:[#allocation13 + $0xc58] sm:$0xff] }
 0x6e8   : > { %10710 = vmatpush2.bf16.msra.mxu1 %v11851_v31  ;;  %10670 = vmatprep.subr.bf16.mxu0 %v11716_v43  ;;  %v11939_v43 = vcombine.low %v7335_v48, %v7339_v32  ;;  %v7435_v59 = vld [vmem:[#allocation13 + $0xc78] sm:$0xff] }
 0x6e9   : > { %10711 = vmatprep.subr.bf16.mxu1 %v11844_v7  ;;  %v12036_v32 = vcombine.high %v7431_v50, %v7435_v59 }
 0x6eb   : > { %10671 = vmatpush2.bf16.msra.mxu0 %v11715_v2  ;;  %v7323_v2 = vld [vmem:[#allocation13 + $0x8f8] sm:$0xff] }
 0x6ec   : > { %10712 = vmatpush2.bf16.msra.mxu1 %v11843_v58  ;;  %10672 = vmatprep.subr.bf16.mxu0 %v11708_v4  ;;  %v7447_v58 = vld [vmem:[#allocation13 + $0xcd8] sm:$0xff]  ;;  %v11924_v53 = vcombine.high %v7319_v24, %v7323_v2  ;;  %v11923_v44 = vcombine.low %v7319_v24, %v7323_v2 }
 0x6ed   : > { %10713 = vmatprep.subr.bf16.mxu1 %v11836_v35  ;;  %v7451_v4 = vld [vmem:[#allocation13 + $0xcf8] sm:$0xff] }
 0x6ef   : > { %10673 = vmatpush2.bf16.msra.mxu0 %v11707_v38 }
 0x6f0   : > { %10714 = vmatpush2.bf16.msra.mxu1 %v11835_v63  ;;  %10724 = vmatprep.subr.bf16.mxu0 %v11956_v8  ;;  %v12052_v63 = vcombine.high %v7447_v58, %v7451_v4  ;;  %v7311_v8 = vld [vmem:[#allocation13 + $0x898] sm:$0xff] }
 0x6f1   : > { %10765 = vmatprep.subr.bf16.mxu1 %v12084_v51  ;;  %v7315_v51 = vld [vmem:[#allocation13 + $0x8b8] sm:$0xff] }
 0x6f2   : > { %v10430_v21 = vpop.f32.mrf.mxu0  ;;  %10675 = vmatmul.mubr.bf16.vlgmr.msra.gmra.mxu0 %v14249_v12  ;;  %v11916_v3 = vcombine.high %v7311_v8, %v7315_v51 }
 0x6f3   : > { %v10431_v25 = vadd.f32 %v10430_v21, %v14346_v23  ;;  %v10471_v57 = vpop.f32.mrf.mxu1  ;;  %10716 = vmatmul.mubr.bf16.vlgmr.msra.gmra.mxu1 %v14251_v17  ;;  %10725 = vmatpush1.bf16.msra.mxu0 %v11955_v30  ;;  %v7327_v23 = vld [vmem:[#allocation13 + $0x918] sm:$0xff] }
 0x6f4   : > { %10756 = vmatprep.mubr.bf16.mxu0 %v14289_v46  ;;  %10766 = vmatpush1.bf16.msra.mxu1 %v12083_v36  ;;  %v10432_v37 = vpop.f32.mrf.mxu0  ;;  %v7455_v17 = vld [vmem:[#allocation13 + $0xd18] sm:$0xff]  ;;  %v14358_v46 = vsub.s32 %v10820_v0, %v14223_v18  ;;  %v11932_v7 = vcombine.high %v7327_v23, %v7331_v26  ;;  %v11931_v45 = vcombine.low %v7327_v23, %v7331_v26 }
 0x6f5   : > { %v10472_v5 = vadd.f32 %v10471_v57, %v10431_v25  ;;  %10797 = vmatprep.mubr.bf16.mxu1 %v14291_v39  ;;  %v10433_v12 = vadd.f32 %v10432_v37, %v14349_v47  ;;  %v10473_v28 = vpop.f32.mrf.mxu1  ;;  %10726 = vmatprep.subr.bf16.mxu0 %v11948_v52  ;;  %v12067_v47 = vcombine.low %v7463_v40, %v7467_v19  ;;  %v7307_v30 = vld [vmem:[#allocation13 + $0x878] sm:$0xff] }
 0x6f6   : > { %v10434_v33 = vpop.f32.mrf.mxu0  ;;  %10767 = vmatprep.subr.bf16.mxu1 %v12076_v49  ;;  %v12060_v15 = vcombine.high %v7455_v17, %v7459_v1  ;;  %v14364_v35 = vrot.slane %v10814_v60, %v14358_v46  ;;  %v12059_v6 = vcombine.low %v7455_v17, %v7459_v1  ;;  %v12051_v60 = vcombine.low %v7447_v58, %v7451_v4  ;;  %v7295_v21 = vld [vmem:[#allocation13 + $0x818] sm:$0xff] }
 0x6f7   : > { %v10474_v10 = vadd.f32 %v10473_v28, %v10433_v12  ;;  %v10475_v31 = vpop.f32.mrf.mxu1  ;;  %10727 = vmatpush1.bf16.msra.mxu0 %v11947_v22  ;;  %v11915_v36 = vcombine.low %v7311_v8, %v7315_v51  ;;  %v12043_v52 = vcombine.low %v7439_v62, %v7443_v34  ;;  %v11908_v48 = vcombine.high %v7303_v61, %v7307_v30  ;;  %v7299_v49 = vld [vmem:[#allocation13 + $0x838] sm:$0xff] }
 0x6f8   : > { %10768 = vmatpush1.bf16.msra.mxu1 %v12075_v9  ;;  %v10435_v39 = vpop.f32.mrf.mxu0  ;;  %10728 = vmatprep.subr.bf16.mxu0 %v11940_v11  ;;  %v7423_v40 = vld [vmem:[#allocation13 + $0xc18] sm:$0xff]  ;;  %v11907_v0 = vcombine.low %v7303_v61, %v7307_v30  ;;  %v12035_v25 = vcombine.low %v7431_v50, %v7435_v59  ;;  %v11900_v57 = vcombine.high %v7295_v21, %v7299_v49 }
 0x6f9   : > { %v10815_v56 = vcombine.low %v10472_v5, %v10474_v10  ;;  %v10476_v42 = vpop.f32.mrf.mxu1  ;;  %10769 = vmatprep.subr.bf16.mxu1 %v12068_v13  ;;  %v7427_v19 = vld [vmem:[#allocation13 + $0xc38] sm:$0xff]  ;;  %v11899_v12 = vcombine.low %v7295_v21, %v7299_v49 }
 0x6fa   : > { %v12028_v22 = vcombine.high %v7423_v40, %v7427_v19  ;;  %v7415_v37 = vld [vmem:[#allocation13 + $0xbd8] sm:$0xff]  ;;  %v12027_v28 = vcombine.low %v7423_v40, %v7427_v19 }
 0x6fb   : > { %v14367_v27 = vrot.slane %v10815_v56, %v14358_v46  ;;  %10729 = vmatpush1.bf16.msra.mxu0 %v11939_v43  ;;  %v7419_v9 = vld [vmem:[#allocation13 + $0xbf8] sm:$0xff] }
 0x6fc   : > { %10770 = vmatpush1.bf16.msra.mxu1 %v12067_v47  ;;  %10730 = vmatprep.subr.bf16.mxu0 %v11932_v7  ;;  %v7543_v11 = vld [vmem:[#allocation13 + $0xfd8] sm:$0xff]  ;;  %v12020_v13 = vcombine.high %v7415_v37, %v7419_v9  ;;  %v12019_v10 = vcombine.low %v7415_v37, %v7419_v9 }
 0x6fd   : > { %v10846_v38 = vcombine.low %v14364_v35, %v14367_v27  ;;  %10771 = vmatprep.subr.bf16.mxu1 %v12060_v15  ;;  %v7547_v5 = vld [vmem:[#allocation13 + $0xff8] sm:$0xff] }
 0x6fe   : > { %v12148_v23 = vcombine.high %v7543_v11, %v7547_v5  ;;  %v7407_v26 = vld [vmem:[#allocation13 + $0xb98] sm:$0xff]  ;;  %v12147_v31 = vcombine.low %v7543_v11, %v7547_v5 }
 0x6ff   : > { %10731 = vmatpush1.bf16.msra.mxu0 %v11931_v45  ;;  %v7411_v33 = vld [vmem:[#allocation13 + $0xbb8] sm:$0xff] }
 0x700   : > { %10772 = vmatpush1.bf16.msra.mxu1 %v12059_v6  ;;  %10732 = vmatprep.subr.bf16.mxu0 %v11924_v53  ;;  %v7535_v17 = vld [vmem:[#allocation13 + $0xf98] sm:$0xff]  ;;  %v12012_v43 = vcombine.high %v7407_v26, %v7411_v33  ;;  %v12011_v15 = vcombine.low %v7407_v26, %v7411_v33 }
 0x701   : > { %10773 = vmatprep.subr.bf16.mxu1 %v12052_v63  ;;  %v7539_v1 = vld [vmem:[#allocation13 + $0xfb8] sm:$0xff] }
 0x702   : > { %v12140_v39 = vcombine.high %v7535_v17, %v7539_v1  ;;  %v7399_v47 = vld [vmem:[#allocation13 + $0xb58] sm:$0xff]  ;;  %v12139_v24 = vcombine.low %v7535_v17, %v7539_v1 }
 0x703   : > { %10733 = vmatpush1.bf16.msra.mxu0 %v11923_v44  ;;  %v7403_v7 = vld [vmem:[#allocation13 + $0xb78] sm:$0xff] }
 0x704   : > { %10774 = vmatpush1.bf16.msra.mxu1 %v12051_v60  ;;  %10734 = vmatprep.subr.bf16.mxu0 %v11916_v3  ;;  %v7527_v56 = vld [vmem:[#allocation13 + $0xf58] sm:$0xff]  ;;  %v12004_v2 = vcombine.high %v7399_v47, %v7403_v7  ;;  %v12003_v63 = vcombine.low %v7399_v47, %v7403_v7 }
 0x705   : > { %10775 = vmatprep.subr.bf16.mxu1 %v12044_v54  ;;  %v7531_v42 = vld [vmem:[#allocation13 + $0xf78] sm:$0xff] }
 0x706   : > { %v12132_v58 = vcombine.high %v7527_v56, %v7531_v42  ;;  %v7391_v4 = vld [vmem:[#allocation13 + $0xb18] sm:$0xff]  ;;  %v12131_v8 = vcombine.low %v7527_v56, %v7531_v42 }
 0x707   : > { %10735 = vmatpush1.bf16.msra.mxu0 %v11915_v36  ;;  %v7395_v45 = vld [vmem:[#allocation13 + $0xb38] sm:$0xff] }
 0x708   : > { %10776 = vmatpush1.bf16.msra.mxu1 %v12043_v52  ;;  %10736 = vmatprep.subr.bf16.mxu0 %v11908_v48  ;;  %v7519_v6 = vld [vmem:[#allocation13 + $0xf18] sm:$0xff]  ;;  %v11996_v51 = vcombine.high %v7391_v4, %v7395_v45  ;;  %v11995_v54 = vcombine.low %v7391_v4, %v7395_v45 }
 0x709   : > { %10777 = vmatprep.subr.bf16.mxu1 %v12036_v32  ;;  %v7523_v53 = vld [vmem:[#allocation13 + $0xf38] sm:$0xff] }
 0x70a   : > { %v12124_v62 = vcombine.high %v7519_v6, %v7523_v53  ;;  %v7383_v34 = vld [vmem:[#allocation13 + $0xad8] sm:$0xff]  ;;  %v12123_v61 = vcombine.low %v7519_v6, %v7523_v53 }
 0x70b   : > { %10737 = vmatpush1.bf16.msra.mxu0 %v11907_v0  ;;  %v7387_v44 = vld [vmem:[#allocation13 + $0xaf8] sm:$0xff] }
 0x70c   : > { %10778 = vmatpush1.bf16.msra.mxu1 %v12035_v25  ;;  %10738 = vmatprep.subr.bf16.mxu0 %v11900_v57  ;;  %v7511_v60 = vld [vmem:[#allocation13 + $0xed8] sm:$0xff]  ;;  %v11988_v30 = vcombine.high %v7383_v34, %v7387_v44  ;;  %v11987_v32 = vcombine.low %v7383_v34, %v7387_v44 }
 0x70d   : > { %10779 = vmatprep.subr.bf16.mxu1 %v12028_v22  ;;  %v7515_v3 = vld [vmem:[#allocation13 + $0xef8] sm:$0xff] }
 0x70e   : > { %v12116_v50 = vcombine.high %v7511_v60, %v7515_v3  ;;  %v7375_v59 = vld [vmem:[#allocation13 + $0xa98] sm:$0xff]  ;;  %v12115_v21 = vcombine.low %v7511_v60, %v7515_v3 }
 0x70f   : > { %10739 = vmatpush1.bf16.msra.mxu0 %v11899_v12  ;;  %v7379_v36 = vld [vmem:[#allocation13 + $0xab8] sm:$0xff] }
 0x710   : > { %10780 = vmatpush1.bf16.msra.mxu1 %v12027_v28  ;;  %10740 = vmatprep.subr.bf16.mxu0 %v12020_v13  ;;  %v7503_v52 = vld [vmem:[#allocation13 + $0xe98] sm:$0xff]  ;;  %v11980_v49 = vcombine.high %v7375_v59, %v7379_v36  ;;  %v11979_v22 = vcombine.low %v7375_v59, %v7379_v36 }
 0x711   : > { %10781 = vmatprep.subr.bf16.mxu1 %v12148_v23  ;;  %v7507_v48 = vld [vmem:[#allocation13 + $0xeb8] sm:$0xff] }
 0x712   : > { %v12108_v40 = vcombine.high %v7503_v52, %v7507_v48  ;;  %v7367_v19 = vld [vmem:[#allocation13 + $0xa58] sm:$0xff]  ;;  %v12107_v37 = vcombine.low %v7503_v52, %v7507_v48 }
 0x713   : > { %10741 = vmatpush2.bf16.msra.mxu0 %v12019_v10  ;;  %v7371_v0 = vld [vmem:[#allocation13 + $0xa78] sm:$0xff] }
 0x714   : > { %10782 = vmatpush2.bf16.msra.mxu1 %v12147_v31  ;;  %10742 = vmatprep.subr.bf16.mxu0 %v12012_v43  ;;  %v7495_v25 = vld [vmem:[#allocation13 + $0xe58] sm:$0xff]  ;;  %v11972_v9 = vcombine.high %v7367_v19, %v7371_v0  ;;  %v11971_v23 = vcombine.low %v7367_v19, %v7371_v0  ;;  %v12874_v31 = vld [vmem:[#allocation14] sm:$0xff] }
 0x715   : > { %10783 = vmatprep.subr.bf16.mxu1 %v12140_v39  ;;  %v7499_v57 = vld [vmem:[#allocation13 + $0xe78] sm:$0xff]  ;;  %v10129_v43 = vrot.slane %v12874_v31, %v6990_v29  ;;  %v10133_v39 = vrot.slane %v12874_v31, %v6994_v41 }
 0x716   : > { %v12100_v11 = vcombine.high %v7495_v25, %v7499_v57  ;;  %v7359_v5 = vld [vmem:[#allocation13 + $0xa18] sm:$0xff]  ;;  %v12099_v26 = vcombine.low %v7495_v25, %v7499_v57 }
 0x717   : > { %10743 = vmatpush2.bf16.msra.mxu0 %v12011_v15  ;;  %v7363_v12 = vld [vmem:[#allocation13 + $0xa38] sm:$0xff] }
 0x718   : > { %10784 = vmatpush2.bf16.msra.mxu1 %v12139_v24  ;;  %10744 = vmatprep.subr.bf16.mxu0 %v12004_v2  ;;  %v7487_v28 = vld [vmem:[#allocation13 + $0xe18] sm:$0xff]  ;;  %v11964_v33 = vcombine.high %v7359_v5, %v7363_v12  ;;  %v11963_v1 = vcombine.low %v7359_v5, %v7363_v12 }
 0x719   : > { %10785 = vmatprep.subr.bf16.mxu1 %v12132_v58  ;;  %v7491_v13 = vld [vmem:[#allocation13 + $0xe38] sm:$0xff] }
 0x71a   : > { %v12092_v17 = vcombine.high %v7487_v28, %v7491_v13  ;;  %v12091_v10 = vcombine.low %v7487_v28, %v7491_v13 }
 0x71b   : > { %10745 = vmatpush2.bf16.msra.mxu0 %v12003_v63 }
 0x71c   : > { %10786 = vmatpush2.bf16.msra.mxu1 %v12131_v8  ;;  %10746 = vmatprep.subr.bf16.mxu0 %v11996_v51 }
 0x71d   : > { %10787 = vmatprep.subr.bf16.mxu1 %v12124_v62 }
 0x71f   : > { %10747 = vmatpush2.bf16.msra.mxu0 %v11995_v54 }
 0x720   : > { %10788 = vmatpush2.bf16.msra.mxu1 %v12123_v61  ;;  %10748 = vmatprep.subr.bf16.mxu0 %v11988_v30 }
 0x721   : > { %10789 = vmatprep.subr.bf16.mxu1 %v12116_v50 }
 0x723   : > { %10749 = vmatpush2.bf16.msra.mxu0 %v11987_v32 }
 0x724   : > { %10790 = vmatpush2.bf16.msra.mxu1 %v12115_v21  ;;  %10750 = vmatprep.subr.bf16.mxu0 %v11980_v49  ;;  %v10137_v21 = vrot.slane %v12874_v31, %v6998_v20  ;;  %v10141_v49 = vrot.slane %v12874_v31, %v7002_v55 }
 0x725   : > { %10791 = vmatprep.subr.bf16.mxu1 %v12108_v40 }
 0x727   : > { %10751 = vmatpush2.bf16.msra.mxu0 %v11979_v22 }
 0x728   : > { %10792 = vmatpush2.bf16.msra.mxu1 %v12107_v37  ;;  %10752 = vmatprep.subr.bf16.mxu0 %v11972_v9 }
 0x729   : > { %10793 = vmatprep.subr.bf16.mxu1 %v12100_v11 }
 0x72b   : > { %10753 = vmatpush2.bf16.msra.mxu0 %v11971_v23 }
 0x72c   : > { %10794 = vmatpush2.bf16.msra.mxu1 %v12099_v26  ;;  %10754 = vmatprep.subr.bf16.mxu0 %v11964_v33 }
 0x72d   : > { %10795 = vmatprep.subr.bf16.mxu1 %v12092_v17 }
 0x72f   : > { %10755 = vmatpush2.bf16.msra.mxu0 %v11963_v1  ;;  %v10854_v1 = vrot.slane %v10846_v38, %v14358_v46 }
 0x730   : > { %10796 = vmatpush2.bf16.msra.mxu1 %v12091_v10 }
 0x732   : > { %v10512_v47 = vpop.f32.mrf.mxu0  ;;  %10757 = vmatmul.mubr.bf16.vlgmr.msra.gmra.mxu0 %v14297_v14 }
 0x733   : > { %v10513_v7 = vadd.f32 %v10512_v47, %v10129_v43  ;;  %v10553_v56 = vpop.f32.mrf.mxu1  ;;  %10798 = vmatmul.mubr.bf16.vlgmr.msra.gmra.mxu1 %v14299_v16 }
 0x734   : > { %v10514_v42 = vpop.f32.mrf.mxu0 }
 0x735   : > { %v10554_v15 = vadd.f32 %v10553_v56, %v10513_v7  ;;  %v10515_v24 = vadd.f32 %v10514_v42, %v10133_v39  ;;  %v10555_v2 = vpop.f32.mrf.mxu1 }
 0x736   : > { %v10516_v58 = vpop.f32.mrf.mxu0 }
 0x737   : > { %v10556_v4 = vadd.f32 %v10555_v2, %v10515_v24  ;;  %v10557_v45 = vpop.f32.mrf.mxu1 }
 0x738   : > { %v10517_v6 = vpop.f32.mrf.mxu0 }
 0x739   : > { %v10558_v29 = vpop.f32.mrf.mxu1 }
 0x772   : > { %v10594_v53 = vpop.f32.mrf.mxu0 }
 0x773   : > { %v10595_v63 = vadd.f32 %v10594_v53, %v10554_v15  ;;  %v10635_v8 = vpop.f32.mrf.mxu1 }
 0x774   : > { %v10596_v41 = vpop.f32.mrf.mxu0 }
 0x775   : > { %v10636_v51 = vadd.f32 %v10635_v8, %v10595_v63  ;;  %v10597_v62 = vadd.f32 %v10596_v41, %v10556_v4  ;;  %v10637_v14 = vpop.f32.mrf.mxu1 }
 0x776   : > { %v10598_v34 = vpop.f32.mrf.mxu0 }
 0x777   : > { %v10638_v44 = vadd.f32 %v10637_v14, %v10597_v62  ;;  %v10639_v60 = vpop.f32.mrf.mxu1 }
 0x778   : > { %v10599_v16 = vpop.f32.mrf.mxu0 }
 0x779   : > { %v10816_v3 = vcombine.low %v10636_v51, %v10638_v44  ;;  %v10640_v54 = vpop.f32.mrf.mxu1 }
 0x77b   : > { %v10838_v18 = vrot.slane %v10816_v3, %v14358_v46 }
 0x7b2   : > { %v10676_v61 = vpop.f32.mrf.mxu0 }
 0x7b3   : > { %v10717_v30 = vpop.f32.mrf.mxu1  ;;  %v10677_v40 = vadd.f32 %v10676_v61, %v10137_v21 }
 0x7b4   : > { %v10678_v50 = vpop.f32.mrf.mxu0 }
 0x7b5   : > { %v10719_v59 = vpop.f32.mrf.mxu1  ;;  %v10679_v19 = vadd.f32 %v10678_v50, %v10141_v49  ;;  %v10718_v0 = vadd.f32 %v10717_v30, %v10677_v40 }
 0x7b6   : > { %v10680_v36 = vpop.f32.mrf.mxu0 }
 0x7b7   : > { %v10721_v52 = vpop.f32.mrf.mxu1  ;;  %v10720_v57 = vadd.f32 %v10719_v59, %v10679_v19 }
 0x7b8   : > { %v10681_v48 = vpop.f32.mrf.mxu0 }
 0x7b9   : > { %v10722_v32 = vpop.f32.mrf.mxu1 }
 0x7f2   : > { %v10758_v25 = vpop.f32.mrf.mxu0 }
 0x7f3   : > { %v10759_v22 = vadd.f32 %v10758_v25, %v10718_v0  ;;  %v10799_v37 = vpop.f32.mrf.mxu1 }
 0x7f4   : > { %v10760_v9 = vpop.f32.mrf.mxu0 }
 0x7f5   : > { %v10761_v11 = vadd.f32 %v10760_v9, %v10720_v57  ;;  %v10801_v5 = vpop.f32.mrf.mxu1  ;;  %v10800_v28 = vadd.f32 %v10799_v37, %v10759_v22 }
 0x7f6   : > { %v10762_v12 = vpop.f32.mrf.mxu0 }
 0x7f7   : > { %v10802_v13 = vadd.f32 %v10801_v5, %v10761_v11  ;;  %v10803_v23 = vpop.f32.mrf.mxu1 }
 0x7f8   : > { %v10763_v26 = vpop.f32.mrf.mxu0 }
 0x7f9   : > { %v10817_v20 = vcombine.low %v10800_v28, %v10802_v13  ;;  %v10804_v33 = vpop.f32.mrf.mxu1 }
 0x7fb   : > { %v10845_v55 = vrot.slane %v10817_v20, %v14358_v46 }
 0x7fd   : > { %v10847_v17 = vcombine.low %v10838_v18, %v10845_v55 }
 0x7ff   : > { %v10861_v10 = vrot.slane %v10847_v17, %v14358_v46 }
 0x801   : > { %v10862_v31 = vcombine.low %v10854_v1, %v10861_v10 }
 0x803   : > { %10864 = vst [vmem:[%s439_s14] sm:$0xff] %v10862_v31 }
 0x804 PF: > { %s24_s30 = sadd.s32 1, %s13109_s30  }
 0x805   : > { %p21_p7 = scmp.ge.s32.totalorder %s24_s30, 4  }
 0x807   :  { %23 = sbr.rel (!%p21_p7) target bundleno = 5 (0x5), region = 153 }
 0x80c   :  { %10884 = vsyncpa [#allocation4], 1 }
 0x80d   :  { %10886 = vsyncpa [#allocation4 + $0x1], 1 }
 0x80e   :  { %10887 = vsyncpa [#allocation6], 1 }
 0x80f   :  { %10888 = vsyncpa [#allocation9], 1 }
 0x810   :  { %10889 = vsyncpa [#allocation12], 1 }
 0x811   :  { %10890 = vsyncpa [#allocation15], 1 }

</bundles_post_ra>
